<compile_context>
chip_gen: v7x
topology: tpu7x:2x2x1
jax: 0.10.0
libtpu: 0.0.40
codegen_flags: <defaults>
</compile_context>

<pallas_src>
import jax
import jax.numpy as jnp
from jax.experimental import pallas as pl
from jax.experimental.pallas import tpu as pltpu


# ----------------------------------------------------------------------------
# In-kernel helpers.  Activations have layout (H, C, W); all shapes static.
# ----------------------------------------------------------------------------

def _pad_hw(x, p):
    """Zero-pad the H (leading) and W (lane) dims of an (H, C, W) activation."""
    if p == 0:
        return x
    H, C, W = x.shape
    zc = jnp.zeros((H, C, p), x.dtype)
    x = jnp.concatenate([zc, x, zc], axis=2)
    zr = jnp.zeros((p, C, W + 2 * p), x.dtype)
    return jnp.concatenate([zr, x, zr], axis=0)


def _subsample(x, s):
    """Keep every s-th row (H) and column (W) of an (H, C, W) activation."""
    if s == 1:
        return x
    H, _, W = x.shape
    Ho = (H - 1) // s + 1
    Wo = (W - 1) // s + 1
    x = jnp.concatenate([x[s * i:s * i + 1] for i in range(Ho)], axis=0)
    x = jnp.concatenate([x[:, :, s * j:s * j + 1] for j in range(Wo)], axis=2)
    return x


def _dilate(x, s):
    """Insert (s-1) zeros between rows/columns (transposed-conv input)."""
    if s == 1:
        return x
    H, C, W = x.shape
    zc = jnp.zeros((H, C, 1), x.dtype)
    cols = []
    for j in range(W):
        cols.append(x[:, :, j:j + 1])
        if j < W - 1:
            cols.extend([zc] * (s - 1))
    x = jnp.concatenate(cols, axis=2)
    Wd = (W - 1) * s + 1
    zr = jnp.zeros((1, C, Wd), x.dtype)
    rows = []
    for i in range(H):
        rows.append(x[i:i + 1])
        if i < H - 1:
            rows.extend([zr] * (s - 1))
    return jnp.concatenate(rows, axis=0)


def _conv_s1(xp, wmat, kh, kw):
    """Dense stride-1 convolution of a padded (Hp, Cin, Wp) input.

    wmat: (Cout, kh*kw*Cin), columns ordered tap-major / cin-minor (matches the
    patch concat below).  Returns (Hf, Cout, Wf), Hf = Hp-kh+1, Wf = Wp-kw+1.
    bf16 MXU operands, f32 accumulation.
    """
    Hp, _, Wp = xp.shape
    Hf, Wf = Hp - kh + 1, Wp - kw + 1
    taps = [xp[i:i + Hf, :, j:j + Wf] for i in range(kh) for j in range(kw)]
    patches = jnp.concatenate(taps, axis=1).astype(jnp.bfloat16)     # (Hf, K, Wf)
    wmat = wmat.astype(jnp.bfloat16)                                 # (Cout, K)
    rows = [
        jnp.dot(wmat, patches[h], preferred_element_type=jnp.float32)[None]
        for h in range(Hf)
    ]
    return jnp.concatenate(rows, axis=0)                             # (Hf, Cout, Wf)


def _conv(x, wmat, bias, kh, kw, stride, pad, act):
    full = _conv_s1(_pad_hw(x, pad), wmat, kh, kw)
    return act(_subsample(full, stride) + bias)


def _conv_transpose(x, wmat, bias, kh, kw, stride, pad, act):
    xp = _pad_hw(_dilate(x, stride), kh - 1 - pad)
    return act(_conv_s1(xp, wmat, kh, kw) + bias)


def _maxpool(x, k, s):
    H, _, W = x.shape
    Hf, Wf = H - k + 1, W - k + 1
    m = x[0:Hf, :, 0:Wf]
    for i in range(k):
        for j in range(k):
            if i == 0 and j == 0:
                continue
            m = jnp.maximum(m, x[i:i + Hf, :, j:j + Wf])
    return _subsample(m, s)


def _autoencoder_kernel(x_ref, w1_ref, b1_ref, w2_ref, b2_ref, w3_ref, b3_ref,
                        w4_ref, b4_ref, w5_ref, b5_ref, o_ref):
    relu = lambda v: jnp.maximum(v, 0.0)
    sigmoid = lambda v: 1.0 / (1.0 + jnp.exp(-v))

    x = x_ref[...]                                                     # (28, 1, 28)
    # encoder
    h = _conv(x, w1_ref[...], b1_ref[...], 3, 3, 3, 1, relu)           # (10, 16, 10)
    h = _maxpool(h, 2, 2)                                              # (5, 16, 5)
    h = _conv(h, w2_ref[...], b2_ref[...], 3, 3, 2, 1, relu)           # (3, 8, 3)
    h = _maxpool(h, 2, 1)                                              # (2, 8, 2)
    # decoder
    h = _conv_transpose(h, w3_ref[...], b3_ref[...], 3, 3, 2, 0, relu)     # (5, 16, 5)
    h = _conv_transpose(h, w4_ref[...], b4_ref[...], 5, 5, 3, 1, relu)     # (15, 8, 15)
    h = _conv_transpose(h, w5_ref[...], b5_ref[...], 2, 2, 2, 1, sigmoid)  # (28, 1, 28)
    o_ref[...] = h


# ----------------------------------------------------------------------------
# Host-side wrapper: weight repacking (tiny, once) + the single pallas_call.
# ----------------------------------------------------------------------------

def _conv_weight_matrix(w):
    # PyTorch Conv2d weight (Cout, Cin, kh, kw) -> (Cout, kh*kw*Cin),
    # column order tap-major / cin-minor (matches in-kernel patch concat).
    cout = w.shape[0]
    return jnp.transpose(w, (0, 2, 3, 1)).reshape(cout, -1).astype(jnp.float32)


def _conv_transpose_weight_matrix(w):
    # PyTorch ConvTranspose2d weight (Cin, Cout, kh, kw) -> equivalent forward
    # conv weight (flip spatial, swap in/out channels) -> matmul form.
    wc = jnp.transpose(jnp.flip(w, (2, 3)), (1, 0, 2, 3))
    return _conv_weight_matrix(wc)


def _col(b):
    return b.reshape(-1, 1).astype(jnp.float32)        # broadcasts over (H, C, W)


def _full_spec(arr):
    # whole (tiny) array resident in VMEM, same block every grid step
    return pl.BlockSpec(arr.shape, lambda b: (0,) * arr.ndim)


def autoencoder_forward(params, x):
    B = x.shape[0]
    assert x.shape[1:] == (1, 28, 28), x.shape

    # NCHW -> internal (B, H, C, W), once, at the model boundary.
    xin = jnp.transpose(x.astype(jnp.float32), (0, 2, 1, 3))           # (B, 28, 1, 28)

    w1 = _conv_weight_matrix(params["enc1_w"]);           b1 = _col(params["enc1_b"])
    w2 = _conv_weight_matrix(params["enc2_w"]);           b2 = _col(params["enc2_b"])
    w3 = _conv_transpose_weight_matrix(params["dec1_w"]); b3 = _col(params["dec1_b"])
    w4 = _conv_transpose_weight_matrix(params["dec2_w"]); b4 = _col(params["dec2_b"])
    w5 = _conv_transpose_weight_matrix(params["dec3_w"]); b5 = _col(params["dec3_b"])
    consts = (w1, b1, w2, b2, w3, b3, w4, b4, w5, b5)

    macs = (28 * 28 * 16 * 9 + 5 * 5 * 8 * 144 + 5 * 5 * 16 * 72
            + 15 * 15 * 8 * 400 + 28 * 28 * 1 * 32)
    param_elems = sum(int(a.size) for a in consts)
    cost = pl.CostEstimate(
        flops=2 * B * macs,
        transcendentals=B * 28 * 28,
        bytes_accessed=4 * (2 * B * 28 * 28 + param_elems),
    )

    out = pl.pallas_call(
        _autoencoder_kernel,
        out_shape=jax.ShapeDtypeStruct((B, 28, 1, 28), jnp.float32),
        grid=(B,),
        in_specs=[pl.BlockSpec((None, 28, 1, 28), lambda b: (b, 0, 0, 0))]
                 + [_full_spec(a) for a in consts],
        out_specs=pl.BlockSpec((None, 28, 1, 28), lambda b: (b, 0, 0, 0)),
        compiler_params=pltpu.CompilerParams(dimension_semantics=("parallel",)),
        cost_estimate=cost,
    )(xin, *consts)

    # internal (B, H, C, W) -> NCHW
    return jnp.transpose(out, (0, 2, 1, 3))


# ----------------------------------------------------------------------------
# Pure-JAX reference (for correctness check) and parameter init.
# ----------------------------------------------------------------------------

def reference_forward(params, x):
    dn = ("NCHW", "OIHW", "NCHW")

    def conv(h, w, b, s, p):
        y = jax.lax.conv_general_dilated(h, w, (s, s), [(p, p), (p, p)],
                                         dimension_numbers=dn)
        return y + b.reshape(1, -1, 1, 1)

    def convT(h, w, b, s, p):
        k = w.shape[2]
        wt = jnp.transpose(jnp.flip(w, (2, 3)), (1, 0, 2, 3))
        y = jax.lax.conv_general_dilated(h, wt, (1, 1),
                                         [(k - 1 - p, k - 1 - p)] * 2,
                                         lhs_dilation=(s, s),
                                         dimension_numbers=dn)
        return y + b.reshape(1, -1, 1, 1)

    def pool(h, k, s):
        return jax.lax.reduce_window(h, -jnp.inf, jax.lax.max,
                                     (1, 1, k, k), (1, 1, s, s), "VALID")

    h = jax.nn.relu(conv(x, params["enc1_w"], params["enc1_b"], 3, 1))
    h = pool(h, 2, 2)
    h = jax.nn.relu(conv(h, params["enc2_w"], params["enc2_b"], 2, 1))
    h = pool(h, 2, 1)
    h = jax.nn.relu(convT(h, params["dec1_w"], params["dec1_b"], 2, 0))
    h = jax.nn.relu(convT(h, params["dec2_w"], params["dec2_b"], 3, 1))
    return jax.nn.sigmoid(convT(h, params["dec3_w"], params["dec3_b"], 2, 1))


def init_params(key):
    def uni(k, shape, fan_in):
        bound = 1.0 / jnp.sqrt(float(fan_in))
        return jax.random.uniform(k, shape, jnp.float32, -bound, bound)

    ks = jax.random.split(key, 10)
    return {
        "enc1_w": uni(ks[0], (16, 1, 3, 3), 1 * 9),   "enc1_b": uni(ks[1], (16,), 1 * 9),
        "enc2_w": uni(ks[2], (8, 16, 3, 3), 16 * 9),  "enc2_b": uni(ks[3], (8,), 16 * 9),
        "dec1_w": uni(ks[4], (8, 16, 3, 3), 16 * 9),  "dec1_b": uni(ks[5], (16,), 16 * 9),
        "dec2_w": uni(ks[6], (16, 8, 5, 5), 8 * 25),  "dec2_b": uni(ks[7], (8,), 8 * 25),
        "dec3_w": uni(ks[8], (8, 1, 2, 2), 1 * 4),    "dec3_b": uni(ks[9], (1,), 1 * 4),
    }


if __name__ == "__main__":
    key = jax.random.PRNGKey(0)
    pkey, xkey = jax.random.split(key)
    params = init_params(pkey)
    x = jax.random.normal(xkey, (2, 1, 28, 28), jnp.float32)

    y = jax.jit(autoencoder_forward)(params, x)
    jax.block_until_ready(y)
    assert y.shape == (2, 1, 28, 28), y.shape
    assert bool(jnp.all(jnp.isfinite(y)))
    assert bool(jnp.all((y >= 0) & (y <= 1)))

    y_ref = jax.jit(reference_forward)(params, x)
    err = float(jnp.max(jnp.abs(y - y_ref)))
    assert err < 5e-2, f"max abs error vs reference = {err}"

    print("KERNEL_OK")
</pallas_src>

<mosaic_0001>
module attributes {stable_mosaic.version = 11 : i64} {
  func.func @_autoencoder_kernel(%arg0: i32, %arg1: memref<1x28x1x28xf32, #tpu.memory_space<vmem>>, %arg2: memref<16x9xf32, #tpu.memory_space<vmem>>, %arg3: memref<16x1xf32, #tpu.memory_space<vmem>>, %arg4: memref<8x144xf32, #tpu.memory_space<vmem>>, %arg5: memref<8x1xf32, #tpu.memory_space<vmem>>, %arg6: memref<16x72xf32, #tpu.memory_space<vmem>>, %arg7: memref<16x1xf32, #tpu.memory_space<vmem>>, %arg8: memref<8x400xf32, #tpu.memory_space<vmem>>, %arg9: memref<8x1xf32, #tpu.memory_space<vmem>>, %arg10: memref<1x32xf32, #tpu.memory_space<vmem>>, %arg11: memref<1x1xf32, #tpu.memory_space<vmem>>, %arg12: memref<1x28x1x28xf32, #tpu.memory_space<vmem>>) attributes {dimension_semantics = [#tpu.dimension_semantics<parallel>], iteration_bounds = array<i64: 2>, scalar_prefetch = 0 : i64, scratch_operands = 0 : i64, tpu.core_type = #tpu.core_type<tc>, window_params = [{transform_indices = @transform_0, window_bounds = array<i64: 1, 28, 1, 28>}, {pipeline_mode = #tpu.pipeline_mode<synchronous>, transform_indices = @transform_1, window_bounds = array<i64: 16, 9>}, {pipeline_mode = #tpu.pipeline_mode<synchronous>, transform_indices = @transform_2, window_bounds = array<i64: 16, 1>}, {pipeline_mode = #tpu.pipeline_mode<synchronous>, transform_indices = @transform_3, window_bounds = array<i64: 8, 144>}, {pipeline_mode = #tpu.pipeline_mode<synchronous>, transform_indices = @transform_4, window_bounds = array<i64: 8, 1>}, {pipeline_mode = #tpu.pipeline_mode<synchronous>, transform_indices = @transform_5, window_bounds = array<i64: 16, 72>}, {pipeline_mode = #tpu.pipeline_mode<synchronous>, transform_indices = @transform_6, window_bounds = array<i64: 16, 1>}, {pipeline_mode = #tpu.pipeline_mode<synchronous>, transform_indices = @transform_7, window_bounds = array<i64: 8, 400>}, {pipeline_mode = #tpu.pipeline_mode<synchronous>, transform_indices = @transform_8, window_bounds = array<i64: 8, 1>}, {pipeline_mode = #tpu.pipeline_mode<synchronous>, transform_indices = @transform_9, window_bounds = array<i64: 1, 32>}, {pipeline_mode = #tpu.pipeline_mode<synchronous>, transform_indices = @transform_10, window_bounds = array<i64: 1, 1>}, {transform_indices = @transform_11, window_bounds = array<i64: 1, 28, 1, 28>}]} {
    %c0 = arith.constant 0 : index
    %c0_0 = arith.constant 0 : index
    %c0_1 = arith.constant 0 : index
    %c0_2 = arith.constant 0 : index
    %0 = vector.load %arg1[%c0, %c0_0, %c0_1, %c0_2] : memref<1x28x1x28xf32, #tpu.memory_space<vmem>>, vector<1x28x1x28xf32>
    %1 = vector.shape_cast %0 : vector<1x28x1x28xf32> to vector<28x1x28xf32>
    %c0_3 = arith.constant 0 : index
    %c0_4 = arith.constant 0 : index
    %2 = vector.load %arg2[%c0_3, %c0_4] : memref<16x9xf32, #tpu.memory_space<vmem>>, vector<16x9xf32>
    %c0_5 = arith.constant 0 : index
    %c0_6 = arith.constant 0 : index
    %3 = vector.load %arg3[%c0_5, %c0_6] : memref<16x1xf32, #tpu.memory_space<vmem>>, vector<16x1xf32>
    %cst = arith.constant 0.000000e+00 : f32
    %4 = vector.broadcast %cst : f32 to vector<28x1x1xf32>
    %5 = tpu.concatenate %4, %1, %4 in 2 : vector<28x1x1xf32>, vector<28x1x28xf32>, vector<28x1x1xf32> -> vector<28x1x30xf32>
    %cst_7 = arith.constant 0.000000e+00 : f32
    %6 = vector.broadcast %cst_7 : f32 to vector<1x1x30xf32>
    %7 = tpu.concatenate %6, %5, %6 in 0 : vector<1x1x30xf32>, vector<28x1x30xf32>, vector<1x1x30xf32> -> vector<30x1x30xf32>
    %8 = vector.extract_strided_slice %7 {offsets = [0, 0, 0], sizes = [28, 1, 28], strides = [1, 1, 1]} : vector<30x1x30xf32> to vector<28x1x28xf32>
    %9 = vector.extract_strided_slice %7 {offsets = [0, 0, 1], sizes = [28, 1, 28], strides = [1, 1, 1]} : vector<30x1x30xf32> to vector<28x1x28xf32>
    %10 = vector.extract_strided_slice %7 {offsets = [0, 0, 2], sizes = [28, 1, 28], strides = [1, 1, 1]} : vector<30x1x30xf32> to vector<28x1x28xf32>
    %11 = vector.extract_strided_slice %7 {offsets = [1, 0, 0], sizes = [28, 1, 28], strides = [1, 1, 1]} : vector<30x1x30xf32> to vector<28x1x28xf32>
    %12 = vector.extract_strided_slice %7 {offsets = [1, 0, 1], sizes = [28, 1, 28], strides = [1, 1, 1]} : vector<30x1x30xf32> to vector<28x1x28xf32>
    %13 = vector.extract_strided_slice %7 {offsets = [1, 0, 2], sizes = [28, 1, 28], strides = [1, 1, 1]} : vector<30x1x30xf32> to vector<28x1x28xf32>
    %14 = vector.extract_strided_slice %7 {offsets = [2, 0, 0], sizes = [28, 1, 28], strides = [1, 1, 1]} : vector<30x1x30xf32> to vector<28x1x28xf32>
    %15 = vector.extract_strided_slice %7 {offsets = [2, 0, 1], sizes = [28, 1, 28], strides = [1, 1, 1]} : vector<30x1x30xf32> to vector<28x1x28xf32>
    %16 = vector.extract_strided_slice %7 {offsets = [2, 0, 2], sizes = [28, 1, 28], strides = [1, 1, 1]} : vector<30x1x30xf32> to vector<28x1x28xf32>
    %17 = tpu.concatenate %8, %9, %10, %11, %12, %13, %14, %15, %16 in 1 : vector<28x1x28xf32>, vector<28x1x28xf32>, vector<28x1x28xf32>, vector<28x1x28xf32>, vector<28x1x28xf32>, vector<28x1x28xf32>, vector<28x1x28xf32>, vector<28x1x28xf32>, vector<28x1x28xf32> -> vector<28x9x28xf32>
    %18 = arith.truncf %17 : vector<28x9x28xf32> to vector<28x9x28xbf16>
    %19 = arith.truncf %2 : vector<16x9xf32> to vector<16x9xbf16>
    %20 = vector.extract_strided_slice %18 {offsets = [0, 0, 0], sizes = [1, 9, 28], strides = [1, 1, 1]} : vector<28x9x28xbf16> to vector<1x9x28xbf16>
    %21 = vector.shape_cast %20 : vector<1x9x28xbf16> to vector<9x28xbf16>
    %cst_8 = arith.constant dense<0.000000e+00> : vector<16x28xf32>
    %22 = tpu.matmul %19, %21, %cst_8 {dimension_numbers = #tpu.dot_dimension_numbers<[1], [0], [0], [1], [0, 0, 1, 1], [], []>} : vector<16x9xbf16>, vector<9x28xbf16>, vector<16x28xf32> -> vector<16x28xf32>
    %23 = vector.shape_cast %22 : vector<16x28xf32> to vector<1x16x28xf32>
    %24 = vector.extract_strided_slice %18 {offsets = [1, 0, 0], sizes = [1, 9, 28], strides = [1, 1, 1]} : vector<28x9x28xbf16> to vector<1x9x28xbf16>
    %25 = vector.shape_cast %24 : vector<1x9x28xbf16> to vector<9x28xbf16>
    %cst_9 = arith.constant dense<0.000000e+00> : vector<16x28xf32>
    %26 = tpu.matmul %19, %25, %cst_9 {dimension_numbers = #tpu.dot_dimension_numbers<[1], [0], [0], [1], [0, 0, 1, 1], [], []>} : vector<16x9xbf16>, vector<9x28xbf16>, vector<16x28xf32> -> vector<16x28xf32>
    %27 = vector.shape_cast %26 : vector<16x28xf32> to vector<1x16x28xf32>
    %28 = vector.extract_strided_slice %18 {offsets = [2, 0, 0], sizes = [1, 9, 28], strides = [1, 1, 1]} : vector<28x9x28xbf16> to vector<1x9x28xbf16>
    %29 = vector.shape_cast %28 : vector<1x9x28xbf16> to vector<9x28xbf16>
    %cst_10 = arith.constant dense<0.000000e+00> : vector<16x28xf32>
    %30 = tpu.matmul %19, %29, %cst_10 {dimension_numbers = #tpu.dot_dimension_numbers<[1], [0], [0], [1], [0, 0, 1, 1], [], []>} : vector<16x9xbf16>, vector<9x28xbf16>, vector<16x28xf32> -> vector<16x28xf32>
    %31 = vector.shape_cast %30 : vector<16x28xf32> to vector<1x16x28xf32>
    %32 = vector.extract_strided_slice %18 {offsets = [3, 0, 0], sizes = [1, 9, 28], strides = [1, 1, 1]} : vector<28x9x28xbf16> to vector<1x9x28xbf16>
    %33 = vector.shape_cast %32 : vector<1x9x28xbf16> to vector<9x28xbf16>
    %cst_11 = arith.constant dense<0.000000e+00> : vector<16x28xf32>
    %34 = tpu.matmul %19, %33, %cst_11 {dimension_numbers = #tpu.dot_dimension_numbers<[1], [0], [0], [1], [0, 0, 1, 1], [], []>} : vector<16x9xbf16>, vector<9x28xbf16>, vector<16x28xf32> -> vector<16x28xf32>
    %35 = vector.shape_cast %34 : vector<16x28xf32> to vector<1x16x28xf32>
    %36 = vector.extract_strided_slice %18 {offsets = [4, 0, 0], sizes = [1, 9, 28], strides = [1, 1, 1]} : vector<28x9x28xbf16> to vector<1x9x28xbf16>
    %37 = vector.shape_cast %36 : vector<1x9x28xbf16> to vector<9x28xbf16>
    %cst_12 = arith.constant dense<0.000000e+00> : vector<16x28xf32>
    %38 = tpu.matmul %19, %37, %cst_12 {dimension_numbers = #tpu.dot_dimension_numbers<[1], [0], [0], [1], [0, 0, 1, 1], [], []>} : vector<16x9xbf16>, vector<9x28xbf16>, vector<16x28xf32> -> vector<16x28xf32>
    %39 = vector.shape_cast %38 : vector<16x28xf32> to vector<1x16x28xf32>
    %40 = vector.extract_strided_slice %18 {offsets = [5, 0, 0], sizes = [1, 9, 28], strides = [1, 1, 1]} : vector<28x9x28xbf16> to vector<1x9x28xbf16>
    %41 = vector.shape_cast %40 : vector<1x9x28xbf16> to vector<9x28xbf16>
    %cst_13 = arith.constant dense<0.000000e+00> : vector<16x28xf32>
    %42 = tpu.matmul %19, %41, %cst_13 {dimension_numbers = #tpu.dot_dimension_numbers<[1], [0], [0], [1], [0, 0, 1, 1], [], []>} : vector<16x9xbf16>, vector<9x28xbf16>, vector<16x28xf32> -> vector<16x28xf32>
    %43 = vector.shape_cast %42 : vector<16x28xf32> to vector<1x16x28xf32>
    %44 = vector.extract_strided_slice %18 {offsets = [6, 0, 0], sizes = [1, 9, 28], strides = [1, 1, 1]} : vector<28x9x28xbf16> to vector<1x9x28xbf16>
    %45 = vector.shape_cast %44 : vector<1x9x28xbf16> to vector<9x28xbf16>
    %cst_14 = arith.constant dense<0.000000e+00> : vector<16x28xf32>
    %46 = tpu.matmul %19, %45, %cst_14 {dimension_numbers = #tpu.dot_dimension_numbers<[1], [0], [0], [1], [0, 0, 1, 1], [], []>} : vector<16x9xbf16>, vector<9x28xbf16>, vector<16x28xf32> -> vector<16x28xf32>
    %47 = vector.shape_cast %46 : vector<16x28xf32> to vector<1x16x28xf32>
    %48 = vector.extract_strided_slice %18 {offsets = [7, 0, 0], sizes = [1, 9, 28], strides = [1, 1, 1]} : vector<28x9x28xbf16> to vector<1x9x28xbf16>
    %49 = vector.shape_cast %48 : vector<1x9x28xbf16> to vector<9x28xbf16>
    %cst_15 = arith.constant dense<0.000000e+00> : vector<16x28xf32>
    %50 = tpu.matmul %19, %49, %cst_15 {dimension_numbers = #tpu.dot_dimension_numbers<[1], [0], [0], [1], [0, 0, 1, 1], [], []>} : vector<16x9xbf16>, vector<9x28xbf16>, vector<16x28xf32> -> vector<16x28xf32>
    %51 = vector.shape_cast %50 : vector<16x28xf32> to vector<1x16x28xf32>
    %52 = vector.extract_strided_slice %18 {offsets = [8, 0, 0], sizes = [1, 9, 28], strides = [1, 1, 1]} : vector<28x9x28xbf16> to vector<1x9x28xbf16>
    %53 = vector.shape_cast %52 : vector<1x9x28xbf16> to vector<9x28xbf16>
    %cst_16 = arith.constant dense<0.000000e+00> : vector<16x28xf32>
    %54 = tpu.matmul %19, %53, %cst_16 {dimension_numbers = #tpu.dot_dimension_numbers<[1], [0], [0], [1], [0, 0, 1, 1], [], []>} : vector<16x9xbf16>, vector<9x28xbf16>, vector<16x28xf32> -> vector<16x28xf32>
    %55 = vector.shape_cast %54 : vector<16x28xf32> to vector<1x16x28xf32>
    %56 = vector.extract_strided_slice %18 {offsets = [9, 0, 0], sizes = [1, 9, 28], strides = [1, 1, 1]} : vector<28x9x28xbf16> to vector<1x9x28xbf16>
    %57 = vector.shape_cast %56 : vector<1x9x28xbf16> to vector<9x28xbf16>
    %cst_17 = arith.constant dense<0.000000e+00> : vector<16x28xf32>
    %58 = tpu.matmul %19, %57, %cst_17 {dimension_numbers = #tpu.dot_dimension_numbers<[1], [0], [0], [1], [0, 0, 1, 1], [], []>} : vector<16x9xbf16>, vector<9x28xbf16>, vector<16x28xf32> -> vector<16x28xf32>
    %59 = vector.shape_cast %58 : vector<16x28xf32> to vector<1x16x28xf32>
    %60 = vector.extract_strided_slice %18 {offsets = [10, 0, 0], sizes = [1, 9, 28], strides = [1, 1, 1]} : vector<28x9x28xbf16> to vector<1x9x28xbf16>
    %61 = vector.shape_cast %60 : vector<1x9x28xbf16> to vector<9x28xbf16>
    %cst_18 = arith.constant dense<0.000000e+00> : vector<16x28xf32>
    %62 = tpu.matmul %19, %61, %cst_18 {dimension_numbers = #tpu.dot_dimension_numbers<[1], [0], [0], [1], [0, 0, 1, 1], [], []>} : vector<16x9xbf16>, vector<9x28xbf16>, vector<16x28xf32> -> vector<16x28xf32>
    %63 = vector.shape_cast %62 : vector<16x28xf32> to vector<1x16x28xf32>
    %64 = vector.extract_strided_slice %18 {offsets = [11, 0, 0], sizes = [1, 9, 28], strides = [1, 1, 1]} : vector<28x9x28xbf16> to vector<1x9x28xbf16>
    %65 = vector.shape_cast %64 : vector<1x9x28xbf16> to vector<9x28xbf16>
    %cst_19 = arith.constant dense<0.000000e+00> : vector<16x28xf32>
    %66 = tpu.matmul %19, %65, %cst_19 {dimension_numbers = #tpu.dot_dimension_numbers<[1], [0], [0], [1], [0, 0, 1, 1], [], []>} : vector<16x9xbf16>, vector<9x28xbf16>, vector<16x28xf32> -> vector<16x28xf32>
    %67 = vector.shape_cast %66 : vector<16x28xf32> to vector<1x16x28xf32>
    %68 = vector.extract_strided_slice %18 {offsets = [12, 0, 0], sizes = [1, 9, 28], strides = [1, 1, 1]} : vector<28x9x28xbf16> to vector<1x9x28xbf16>
    %69 = vector.shape_cast %68 : vector<1x9x28xbf16> to vector<9x28xbf16>
    %cst_20 = arith.constant dense<0.000000e+00> : vector<16x28xf32>
    %70 = tpu.matmul %19, %69, %cst_20 {dimension_numbers = #tpu.dot_dimension_numbers<[1], [0], [0], [1], [0, 0, 1, 1], [], []>} : vector<16x9xbf16>, vector<9x28xbf16>, vector<16x28xf32> -> vector<16x28xf32>
    %71 = vector.shape_cast %70 : vector<16x28xf32> to vector<1x16x28xf32>
    %72 = vector.extract_strided_slice %18 {offsets = [13, 0, 0], sizes = [1, 9, 28], strides = [1, 1, 1]} : vector<28x9x28xbf16> to vector<1x9x28xbf16>
    %73 = vector.shape_cast %72 : vector<1x9x28xbf16> to vector<9x28xbf16>
    %cst_21 = arith.constant dense<0.000000e+00> : vector<16x28xf32>
    %74 = tpu.matmul %19, %73, %cst_21 {dimension_numbers = #tpu.dot_dimension_numbers<[1], [0], [0], [1], [0, 0, 1, 1], [], []>} : vector<16x9xbf16>, vector<9x28xbf16>, vector<16x28xf32> -> vector<16x28xf32>
    %75 = vector.shape_cast %74 : vector<16x28xf32> to vector<1x16x28xf32>
    %76 = vector.extract_strided_slice %18 {offsets = [14, 0, 0], sizes = [1, 9, 28], strides = [1, 1, 1]} : vector<28x9x28xbf16> to vector<1x9x28xbf16>
    %77 = vector.shape_cast %76 : vector<1x9x28xbf16> to vector<9x28xbf16>
    %cst_22 = arith.constant dense<0.000000e+00> : vector<16x28xf32>
    %78 = tpu.matmul %19, %77, %cst_22 {dimension_numbers = #tpu.dot_dimension_numbers<[1], [0], [0], [1], [0, 0, 1, 1], [], []>} : vector<16x9xbf16>, vector<9x28xbf16>, vector<16x28xf32> -> vector<16x28xf32>
    %79 = vector.shape_cast %78 : vector<16x28xf32> to vector<1x16x28xf32>
    %80 = vector.extract_strided_slice %18 {offsets = [15, 0, 0], sizes = [1, 9, 28], strides = [1, 1, 1]} : vector<28x9x28xbf16> to vector<1x9x28xbf16>
    %81 = vector.shape_cast %80 : vector<1x9x28xbf16> to vector<9x28xbf16>
    %cst_23 = arith.constant dense<0.000000e+00> : vector<16x28xf32>
    %82 = tpu.matmul %19, %81, %cst_23 {dimension_numbers = #tpu.dot_dimension_numbers<[1], [0], [0], [1], [0, 0, 1, 1], [], []>} : vector<16x9xbf16>, vector<9x28xbf16>, vector<16x28xf32> -> vector<16x28xf32>
    %83 = vector.shape_cast %82 : vector<16x28xf32> to vector<1x16x28xf32>
    %84 = vector.extract_strided_slice %18 {offsets = [16, 0, 0], sizes = [1, 9, 28], strides = [1, 1, 1]} : vector<28x9x28xbf16> to vector<1x9x28xbf16>
    %85 = vector.shape_cast %84 : vector<1x9x28xbf16> to vector<9x28xbf16>
    %cst_24 = arith.constant dense<0.000000e+00> : vector<16x28xf32>
    %86 = tpu.matmul %19, %85, %cst_24 {dimension_numbers = #tpu.dot_dimension_numbers<[1], [0], [0], [1], [0, 0, 1, 1], [], []>} : vector<16x9xbf16>, vector<9x28xbf16>, vector<16x28xf32> -> vector<16x28xf32>
    %87 = vector.shape_cast %86 : vector<16x28xf32> to vector<1x16x28xf32>
    %88 = vector.extract_strided_slice %18 {offsets = [17, 0, 0], sizes = [1, 9, 28], strides = [1, 1, 1]} : vector<28x9x28xbf16> to vector<1x9x28xbf16>
    %89 = vector.shape_cast %88 : vector<1x9x28xbf16> to vector<9x28xbf16>
    %cst_25 = arith.constant dense<0.000000e+00> : vector<16x28xf32>
    %90 = tpu.matmul %19, %89, %cst_25 {dimension_numbers = #tpu.dot_dimension_numbers<[1], [0], [0], [1], [0, 0, 1, 1], [], []>} : vector<16x9xbf16>, vector<9x28xbf16>, vector<16x28xf32> -> vector<16x28xf32>
    %91 = vector.shape_cast %90 : vector<16x28xf32> to vector<1x16x28xf32>
    %92 = vector.extract_strided_slice %18 {offsets = [18, 0, 0], sizes = [1, 9, 28], strides = [1, 1, 1]} : vector<28x9x28xbf16> to vector<1x9x28xbf16>
    %93 = vector.shape_cast %92 : vector<1x9x28xbf16> to vector<9x28xbf16>
    %cst_26 = arith.constant dense<0.000000e+00> : vector<16x28xf32>
    %94 = tpu.matmul %19, %93, %cst_26 {dimension_numbers = #tpu.dot_dimension_numbers<[1], [0], [0], [1], [0, 0, 1, 1], [], []>} : vector<16x9xbf16>, vector<9x28xbf16>, vector<16x28xf32> -> vector<16x28xf32>
    %95 = vector.shape_cast %94 : vector<16x28xf32> to vector<1x16x28xf32>
    %96 = vector.extract_strided_slice %18 {offsets = [19, 0, 0], sizes = [1, 9, 28], strides = [1, 1, 1]} : vector<28x9x28xbf16> to vector<1x9x28xbf16>
    %97 = vector.shape_cast %96 : vector<1x9x28xbf16> to vector<9x28xbf16>
    %cst_27 = arith.constant dense<0.000000e+00> : vector<16x28xf32>
    %98 = tpu.matmul %19, %97, %cst_27 {dimension_numbers = #tpu.dot_dimension_numbers<[1], [0], [0], [1], [0, 0, 1, 1], [], []>} : vector<16x9xbf16>, vector<9x28xbf16>, vector<16x28xf32> -> vector<16x28xf32>
    %99 = vector.shape_cast %98 : vector<16x28xf32> to vector<1x16x28xf32>
    %100 = vector.extract_strided_slice %18 {offsets = [20, 0, 0], sizes = [1, 9, 28], strides = [1, 1, 1]} : vector<28x9x28xbf16> to vector<1x9x28xbf16>
    %101 = vector.shape_cast %100 : vector<1x9x28xbf16> to vector<9x28xbf16>
    %cst_28 = arith.constant dense<0.000000e+00> : vector<16x28xf32>
    %102 = tpu.matmul %19, %101, %cst_28 {dimension_numbers = #tpu.dot_dimension_numbers<[1], [0], [0], [1], [0, 0, 1, 1], [], []>} : vector<16x9xbf16>, vector<9x28xbf16>, vector<16x28xf32> -> vector<16x28xf32>
    %103 = vector.shape_cast %102 : vector<16x28xf32> to vector<1x16x28xf32>
    %104 = vector.extract_strided_slice %18 {offsets = [21, 0, 0], sizes = [1, 9, 28], strides = [1, 1, 1]} : vector<28x9x28xbf16> to vector<1x9x28xbf16>
    %105 = vector.shape_cast %104 : vector<1x9x28xbf16> to vector<9x28xbf16>
    %cst_29 = arith.constant dense<0.000000e+00> : vector<16x28xf32>
    %106 = tpu.matmul %19, %105, %cst_29 {dimension_numbers = #tpu.dot_dimension_numbers<[1], [0], [0], [1], [0, 0, 1, 1], [], []>} : vector<16x9xbf16>, vector<9x28xbf16>, vector<16x28xf32> -> vector<16x28xf32>
    %107 = vector.shape_cast %106 : vector<16x28xf32> to vector<1x16x28xf32>
    %108 = vector.extract_strided_slice %18 {offsets = [22, 0, 0], sizes = [1, 9, 28], strides = [1, 1, 1]} : vector<28x9x28xbf16> to vector<1x9x28xbf16>
    %109 = vector.shape_cast %108 : vector<1x9x28xbf16> to vector<9x28xbf16>
    %cst_30 = arith.constant dense<0.000000e+00> : vector<16x28xf32>
    %110 = tpu.matmul %19, %109, %cst_30 {dimension_numbers = #tpu.dot_dimension_numbers<[1], [0], [0], [1], [0, 0, 1, 1], [], []>} : vector<16x9xbf16>, vector<9x28xbf16>, vector<16x28xf32> -> vector<16x28xf32>
    %111 = vector.shape_cast %110 : vector<16x28xf32> to vector<1x16x28xf32>
    %112 = vector.extract_strided_slice %18 {offsets = [23, 0, 0], sizes = [1, 9, 28], strides = [1, 1, 1]} : vector<28x9x28xbf16> to vector<1x9x28xbf16>
    %113 = vector.shape_cast %112 : vector<1x9x28xbf16> to vector<9x28xbf16>
    %cst_31 = arith.constant dense<0.000000e+00> : vector<16x28xf32>
    %114 = tpu.matmul %19, %113, %cst_31 {dimension_numbers = #tpu.dot_dimension_numbers<[1], [0], [0], [1], [0, 0, 1, 1], [], []>} : vector<16x9xbf16>, vector<9x28xbf16>, vector<16x28xf32> -> vector<16x28xf32>
    %115 = vector.shape_cast %114 : vector<16x28xf32> to vector<1x16x28xf32>
    %116 = vector.extract_strided_slice %18 {offsets = [24, 0, 0], sizes = [1, 9, 28], strides = [1, 1, 1]} : vector<28x9x28xbf16> to vector<1x9x28xbf16>
    %117 = vector.shape_cast %116 : vector<1x9x28xbf16> to vector<9x28xbf16>
    %cst_32 = arith.constant dense<0.000000e+00> : vector<16x28xf32>
    %118 = tpu.matmul %19, %117, %cst_32 {dimension_numbers = #tpu.dot_dimension_numbers<[1], [0], [0], [1], [0, 0, 1, 1], [], []>} : vector<16x9xbf16>, vector<9x28xbf16>, vector<16x28xf32> -> vector<16x28xf32>
    %119 = vector.shape_cast %118 : vector<16x28xf32> to vector<1x16x28xf32>
    %120 = vector.extract_strided_slice %18 {offsets = [25, 0, 0], sizes = [1, 9, 28], strides = [1, 1, 1]} : vector<28x9x28xbf16> to vector<1x9x28xbf16>
    %121 = vector.shape_cast %120 : vector<1x9x28xbf16> to vector<9x28xbf16>
    %cst_33 = arith.constant dense<0.000000e+00> : vector<16x28xf32>
    %122 = tpu.matmul %19, %121, %cst_33 {dimension_numbers = #tpu.dot_dimension_numbers<[1], [0], [0], [1], [0, 0, 1, 1], [], []>} : vector<16x9xbf16>, vector<9x28xbf16>, vector<16x28xf32> -> vector<16x28xf32>
    %123 = vector.shape_cast %122 : vector<16x28xf32> to vector<1x16x28xf32>
    %124 = vector.extract_strided_slice %18 {offsets = [26, 0, 0], sizes = [1, 9, 28], strides = [1, 1, 1]} : vector<28x9x28xbf16> to vector<1x9x28xbf16>
    %125 = vector.shape_cast %124 : vector<1x9x28xbf16> to vector<9x28xbf16>
    %cst_34 = arith.constant dense<0.000000e+00> : vector<16x28xf32>
    %126 = tpu.matmul %19, %125, %cst_34 {dimension_numbers = #tpu.dot_dimension_numbers<[1], [0], [0], [1], [0, 0, 1, 1], [], []>} : vector<16x9xbf16>, vector<9x28xbf16>, vector<16x28xf32> -> vector<16x28xf32>
    %127 = vector.shape_cast %126 : vector<16x28xf32> to vector<1x16x28xf32>
    %128 = vector.extract_strided_slice %18 {offsets = [27, 0, 0], sizes = [1, 9, 28], strides = [1, 1, 1]} : vector<28x9x28xbf16> to vector<1x9x28xbf16>
    %129 = vector.shape_cast %128 : vector<1x9x28xbf16> to vector<9x28xbf16>
    %cst_35 = arith.constant dense<0.000000e+00> : vector<16x28xf32>
    %130 = tpu.matmul %19, %129, %cst_35 {dimension_numbers = #tpu.dot_dimension_numbers<[1], [0], [0], [1], [0, 0, 1, 1], [], []>} : vector<16x9xbf16>, vector<9x28xbf16>, vector<16x28xf32> -> vector<16x28xf32>
    %131 = vector.shape_cast %130 : vector<16x28xf32> to vector<1x16x28xf32>
    %132 = tpu.concatenate %23, %27, %31, %35, %39, %43, %47, %51, %55, %59, %63, %67, %71, %75, %79, %83 in 0 : vector<1x16x28xf32>, vector<1x16x28xf32>, vector<1x16x28xf32>, vector<1x16x28xf32>, vector<1x16x28xf32>, vector<1x16x28xf32>, vector<1x16x28xf32>, vector<1x16x28xf32>, vector<1x16x28xf32>, vector<1x16x28xf32>, vector<1x16x28xf32>, vector<1x16x28xf32>, vector<1x16x28xf32>, vector<1x16x28xf32>, vector<1x16x28xf32>, vector<1x16x28xf32> -> vector<16x16x28xf32>
    %133 = tpu.concatenate %87, %91, %95, %99, %103, %107, %111, %115, %119, %123, %127, %131 in 0 : vector<1x16x28xf32>, vector<1x16x28xf32>, vector<1x16x28xf32>, vector<1x16x28xf32>, vector<1x16x28xf32>, vector<1x16x28xf32>, vector<1x16x28xf32>, vector<1x16x28xf32>, vector<1x16x28xf32>, vector<1x16x28xf32>, vector<1x16x28xf32>, vector<1x16x28xf32> -> vector<12x16x28xf32>
    %134 = tpu.concatenate %132, %133 in 0 : vector<16x16x28xf32>, vector<12x16x28xf32> -> vector<28x16x28xf32>
    %135 = vector.extract_strided_slice %134 {offsets = [0, 0, 0], sizes = [1, 16, 28], strides = [1, 1, 1]} : vector<28x16x28xf32> to vector<1x16x28xf32>
    %136 = vector.extract_strided_slice %134 {offsets = [3, 0, 0], sizes = [1, 16, 28], strides = [1, 1, 1]} : vector<28x16x28xf32> to vector<1x16x28xf32>
    %137 = vector.extract_strided_slice %134 {offsets = [6, 0, 0], sizes = [1, 16, 28], strides = [1, 1, 1]} : vector<28x16x28xf32> to vector<1x16x28xf32>
    %138 = vector.extract_strided_slice %134 {offsets = [9, 0, 0], sizes = [1, 16, 28], strides = [1, 1, 1]} : vector<28x16x28xf32> to vector<1x16x28xf32>
    %139 = vector.extract_strided_slice %134 {offsets = [12, 0, 0], sizes = [1, 16, 28], strides = [1, 1, 1]} : vector<28x16x28xf32> to vector<1x16x28xf32>
    %140 = vector.extract_strided_slice %134 {offsets = [15, 0, 0], sizes = [1, 16, 28], strides = [1, 1, 1]} : vector<28x16x28xf32> to vector<1x16x28xf32>
    %141 = vector.extract_strided_slice %134 {offsets = [18, 0, 0], sizes = [1, 16, 28], strides = [1, 1, 1]} : vector<28x16x28xf32> to vector<1x16x28xf32>
    %142 = vector.extract_strided_slice %134 {offsets = [21, 0, 0], sizes = [1, 16, 28], strides = [1, 1, 1]} : vector<28x16x28xf32> to vector<1x16x28xf32>
    %143 = vector.extract_strided_slice %134 {offsets = [24, 0, 0], sizes = [1, 16, 28], strides = [1, 1, 1]} : vector<28x16x28xf32> to vector<1x16x28xf32>
    %144 = vector.extract_strided_slice %134 {offsets = [27, 0, 0], sizes = [1, 16, 28], strides = [1, 1, 1]} : vector<28x16x28xf32> to vector<1x16x28xf32>
    %145 = tpu.concatenate %135, %136, %137, %138, %139, %140, %141, %142, %143, %144 in 0 : vector<1x16x28xf32>, vector<1x16x28xf32>, vector<1x16x28xf32>, vector<1x16x28xf32>, vector<1x16x28xf32>, vector<1x16x28xf32>, vector<1x16x28xf32>, vector<1x16x28xf32>, vector<1x16x28xf32>, vector<1x16x28xf32> -> vector<10x16x28xf32>
    %146 = vector.extract_strided_slice %145 {offsets = [0, 0, 0], sizes = [10, 16, 1], strides = [1, 1, 1]} : vector<10x16x28xf32> to vector<10x16x1xf32>
    %147 = vector.extract_strided_slice %145 {offsets = [0, 0, 3], sizes = [10, 16, 1], strides = [1, 1, 1]} : vector<10x16x28xf32> to vector<10x16x1xf32>
    %148 = vector.extract_strided_slice %145 {offsets = [0, 0, 6], sizes = [10, 16, 1], strides = [1, 1, 1]} : vector<10x16x28xf32> to vector<10x16x1xf32>
    %149 = vector.extract_strided_slice %145 {offsets = [0, 0, 9], sizes = [10, 16, 1], strides = [1, 1, 1]} : vector<10x16x28xf32> to vector<10x16x1xf32>
    %150 = vector.extract_strided_slice %145 {offsets = [0, 0, 12], sizes = [10, 16, 1], strides = [1, 1, 1]} : vector<10x16x28xf32> to vector<10x16x1xf32>
    %151 = vector.extract_strided_slice %145 {offsets = [0, 0, 15], sizes = [10, 16, 1], strides = [1, 1, 1]} : vector<10x16x28xf32> to vector<10x16x1xf32>
    %152 = vector.extract_strided_slice %145 {offsets = [0, 0, 18], sizes = [10, 16, 1], strides = [1, 1, 1]} : vector<10x16x28xf32> to vector<10x16x1xf32>
    %153 = vector.extract_strided_slice %145 {offsets = [0, 0, 21], sizes = [10, 16, 1], strides = [1, 1, 1]} : vector<10x16x28xf32> to vector<10x16x1xf32>
    %154 = vector.extract_strided_slice %145 {offsets = [0, 0, 24], sizes = [10, 16, 1], strides = [1, 1, 1]} : vector<10x16x28xf32> to vector<10x16x1xf32>
    %155 = vector.extract_strided_slice %145 {offsets = [0, 0, 27], sizes = [10, 16, 1], strides = [1, 1, 1]} : vector<10x16x28xf32> to vector<10x16x1xf32>
    %156 = tpu.concatenate %146, %147, %148, %149, %150, %151, %152, %153, %154, %155 in 2 : vector<10x16x1xf32>, vector<10x16x1xf32>, vector<10x16x1xf32>, vector<10x16x1xf32>, vector<10x16x1xf32>, vector<10x16x1xf32>, vector<10x16x1xf32>, vector<10x16x1xf32>, vector<10x16x1xf32>, vector<10x16x1xf32> -> vector<10x16x10xf32>
    %157 = vector.shape_cast %3 : vector<16x1xf32> to vector<1x16x1xf32>
    %158 = vector.broadcast %157 : vector<1x16x1xf32> to vector<10x16x10xf32>
    %159 = arith.addf %156, %158 : vector<10x16x10xf32>
    %cst_36 = arith.constant 0.000000e+00 : f32
    %160 = vector.broadcast %cst_36 : f32 to vector<10x16x10xf32>
    %161 = arith.maximumf %159, %160 : vector<10x16x10xf32>
    %162 = vector.extract_strided_slice %161 {offsets = [0, 0, 0], sizes = [9, 16, 9], strides = [1, 1, 1]} : vector<10x16x10xf32> to vector<9x16x9xf32>
    %163 = vector.extract_strided_slice %161 {offsets = [0, 0, 1], sizes = [9, 16, 9], strides = [1, 1, 1]} : vector<10x16x10xf32> to vector<9x16x9xf32>
    %164 = arith.maximumf %162, %163 : vector<9x16x9xf32>
    %165 = vector.extract_strided_slice %161 {offsets = [1, 0, 0], sizes = [9, 16, 9], strides = [1, 1, 1]} : vector<10x16x10xf32> to vector<9x16x9xf32>
    %166 = arith.maximumf %164, %165 : vector<9x16x9xf32>
    %167 = vector.extract_strided_slice %161 {offsets = [1, 0, 1], sizes = [9, 16, 9], strides = [1, 1, 1]} : vector<10x16x10xf32> to vector<9x16x9xf32>
    %168 = arith.maximumf %166, %167 : vector<9x16x9xf32>
    %169 = vector.extract_strided_slice %168 {offsets = [0, 0, 0], sizes = [1, 16, 9], strides = [1, 1, 1]} : vector<9x16x9xf32> to vector<1x16x9xf32>
    %170 = vector.extract_strided_slice %168 {offsets = [2, 0, 0], sizes = [1, 16, 9], strides = [1, 1, 1]} : vector<9x16x9xf32> to vector<1x16x9xf32>
    %171 = vector.extract_strided_slice %168 {offsets = [4, 0, 0], sizes = [1, 16, 9], strides = [1, 1, 1]} : vector<9x16x9xf32> to vector<1x16x9xf32>
    %172 = vector.extract_strided_slice %168 {offsets = [6, 0, 0], sizes = [1, 16, 9], strides = [1, 1, 1]} : vector<9x16x9xf32> to vector<1x16x9xf32>
    %173 = vector.extract_strided_slice %168 {offsets = [8, 0, 0], sizes = [1, 16, 9], strides = [1, 1, 1]} : vector<9x16x9xf32> to vector<1x16x9xf32>
    %174 = tpu.concatenate %169, %170, %171, %172, %173 in 0 : vector<1x16x9xf32>, vector<1x16x9xf32>, vector<1x16x9xf32>, vector<1x16x9xf32>, vector<1x16x9xf32> -> vector<5x16x9xf32>
    %175 = vector.extract_strided_slice %174 {offsets = [0, 0, 0], sizes = [5, 16, 1], strides = [1, 1, 1]} : vector<5x16x9xf32> to vector<5x16x1xf32>
    %176 = vector.extract_strided_slice %174 {offsets = [0, 0, 2], sizes = [5, 16, 1], strides = [1, 1, 1]} : vector<5x16x9xf32> to vector<5x16x1xf32>
    %177 = vector.extract_strided_slice %174 {offsets = [0, 0, 4], sizes = [5, 16, 1], strides = [1, 1, 1]} : vector<5x16x9xf32> to vector<5x16x1xf32>
    %178 = vector.extract_strided_slice %174 {offsets = [0, 0, 6], sizes = [5, 16, 1], strides = [1, 1, 1]} : vector<5x16x9xf32> to vector<5x16x1xf32>
    %179 = vector.extract_strided_slice %174 {offsets = [0, 0, 8], sizes = [5, 16, 1], strides = [1, 1, 1]} : vector<5x16x9xf32> to vector<5x16x1xf32>
    %180 = tpu.concatenate %175, %176, %177, %178, %179 in 2 : vector<5x16x1xf32>, vector<5x16x1xf32>, vector<5x16x1xf32>, vector<5x16x1xf32>, vector<5x16x1xf32> -> vector<5x16x5xf32>
    %c0_37 = arith.constant 0 : index
    %c0_38 = arith.constant 0 : index
    %181 = vector.load %arg4[%c0_37, %c0_38] : memref<8x144xf32, #tpu.memory_space<vmem>>, vector<8x144xf32>
    %c0_39 = arith.constant 0 : index
    %c0_40 = arith.constant 0 : index
    %182 = vector.load %arg5[%c0_39, %c0_40] : memref<8x1xf32, #tpu.memory_space<vmem>>, vector<8x1xf32>
    %cst_41 = arith.constant 0.000000e+00 : f32
    %183 = vector.broadcast %cst_41 : f32 to vector<5x16x1xf32>
    %184 = tpu.concatenate %183, %180, %183 in 2 : vector<5x16x1xf32>, vector<5x16x5xf32>, vector<5x16x1xf32> -> vector<5x16x7xf32>
    %cst_42 = arith.constant 0.000000e+00 : f32
    %185 = vector.broadcast %cst_42 : f32 to vector<1x16x7xf32>
    %186 = tpu.concatenate %185, %184, %185 in 0 : vector<1x16x7xf32>, vector<5x16x7xf32>, vector<1x16x7xf32> -> vector<7x16x7xf32>
    %187 = vector.extract_strided_slice %186 {offsets = [0, 0, 0], sizes = [5, 16, 5], strides = [1, 1, 1]} : vector<7x16x7xf32> to vector<5x16x5xf32>
    %188 = vector.extract_strided_slice %186 {offsets = [0, 0, 1], sizes = [5, 16, 5], strides = [1, 1, 1]} : vector<7x16x7xf32> to vector<5x16x5xf32>
    %189 = vector.extract_strided_slice %186 {offsets = [0, 0, 2], sizes = [5, 16, 5], strides = [1, 1, 1]} : vector<7x16x7xf32> to vector<5x16x5xf32>
    %190 = vector.extract_strided_slice %186 {offsets = [1, 0, 0], sizes = [5, 16, 5], strides = [1, 1, 1]} : vector<7x16x7xf32> to vector<5x16x5xf32>
    %191 = vector.extract_strided_slice %186 {offsets = [1, 0, 1], sizes = [5, 16, 5], strides = [1, 1, 1]} : vector<7x16x7xf32> to vector<5x16x5xf32>
    %192 = vector.extract_strided_slice %186 {offsets = [1, 0, 2], sizes = [5, 16, 5], strides = [1, 1, 1]} : vector<7x16x7xf32> to vector<5x16x5xf32>
    %193 = vector.extract_strided_slice %186 {offsets = [2, 0, 0], sizes = [5, 16, 5], strides = [1, 1, 1]} : vector<7x16x7xf32> to vector<5x16x5xf32>
    %194 = vector.extract_strided_slice %186 {offsets = [2, 0, 1], sizes = [5, 16, 5], strides = [1, 1, 1]} : vector<7x16x7xf32> to vector<5x16x5xf32>
    %195 = vector.extract_strided_slice %186 {offsets = [2, 0, 2], sizes = [5, 16, 5], strides = [1, 1, 1]} : vector<7x16x7xf32> to vector<5x16x5xf32>
    %196 = tpu.concatenate %187, %188, %189, %190, %191, %192, %193, %194, %195 in 1 : vector<5x16x5xf32>, vector<5x16x5xf32>, vector<5x16x5xf32>, vector<5x16x5xf32>, vector<5x16x5xf32>, vector<5x16x5xf32>, vector<5x16x5xf32>, vector<5x16x5xf32>, vector<5x16x5xf32> -> vector<5x144x5xf32>
    %197 = arith.truncf %196 : vector<5x144x5xf32> to vector<5x144x5xbf16>
    %198 = arith.truncf %181 : vector<8x144xf32> to vector<8x144xbf16>
    %199 = vector.extract_strided_slice %197 {offsets = [0, 0, 0], sizes = [1, 144, 5], strides = [1, 1, 1]} : vector<5x144x5xbf16> to vector<1x144x5xbf16>
    %200 = vector.shape_cast %199 : vector<1x144x5xbf16> to vector<144x5xbf16>
    %cst_43 = arith.constant dense<0.000000e+00> : vector<8x5xf32>
    %201 = tpu.matmul %198, %200, %cst_43 {dimension_numbers = #tpu.dot_dimension_numbers<[1], [0], [0], [1], [0, 0, 1, 1], [], []>} : vector<8x144xbf16>, vector<144x5xbf16>, vector<8x5xf32> -> vector<8x5xf32>
    %202 = vector.shape_cast %201 : vector<8x5xf32> to vector<1x8x5xf32>
    %203 = vector.extract_strided_slice %197 {offsets = [1, 0, 0], sizes = [1, 144, 5], strides = [1, 1, 1]} : vector<5x144x5xbf16> to vector<1x144x5xbf16>
    %204 = vector.shape_cast %203 : vector<1x144x5xbf16> to vector<144x5xbf16>
    %cst_44 = arith.constant dense<0.000000e+00> : vector<8x5xf32>
    %205 = tpu.matmul %198, %204, %cst_44 {dimension_numbers = #tpu.dot_dimension_numbers<[1], [0], [0], [1], [0, 0, 1, 1], [], []>} : vector<8x144xbf16>, vector<144x5xbf16>, vector<8x5xf32> -> vector<8x5xf32>
    %206 = vector.shape_cast %205 : vector<8x5xf32> to vector<1x8x5xf32>
    %207 = vector.extract_strided_slice %197 {offsets = [2, 0, 0], sizes = [1, 144, 5], strides = [1, 1, 1]} : vector<5x144x5xbf16> to vector<1x144x5xbf16>
    %208 = vector.shape_cast %207 : vector<1x144x5xbf16> to vector<144x5xbf16>
    %cst_45 = arith.constant dense<0.000000e+00> : vector<8x5xf32>
    %209 = tpu.matmul %198, %208, %cst_45 {dimension_numbers = #tpu.dot_dimension_numbers<[1], [0], [0], [1], [0, 0, 1, 1], [], []>} : vector<8x144xbf16>, vector<144x5xbf16>, vector<8x5xf32> -> vector<8x5xf32>
    %210 = vector.shape_cast %209 : vector<8x5xf32> to vector<1x8x5xf32>
    %211 = vector.extract_strided_slice %197 {offsets = [3, 0, 0], sizes = [1, 144, 5], strides = [1, 1, 1]} : vector<5x144x5xbf16> to vector<1x144x5xbf16>
    %212 = vector.shape_cast %211 : vector<1x144x5xbf16> to vector<144x5xbf16>
    %cst_46 = arith.constant dense<0.000000e+00> : vector<8x5xf32>
    %213 = tpu.matmul %198, %212, %cst_46 {dimension_numbers = #tpu.dot_dimension_numbers<[1], [0], [0], [1], [0, 0, 1, 1], [], []>} : vector<8x144xbf16>, vector<144x5xbf16>, vector<8x5xf32> -> vector<8x5xf32>
    %214 = vector.shape_cast %213 : vector<8x5xf32> to vector<1x8x5xf32>
    %215 = vector.extract_strided_slice %197 {offsets = [4, 0, 0], sizes = [1, 144, 5], strides = [1, 1, 1]} : vector<5x144x5xbf16> to vector<1x144x5xbf16>
    %216 = vector.shape_cast %215 : vector<1x144x5xbf16> to vector<144x5xbf16>
    %cst_47 = arith.constant dense<0.000000e+00> : vector<8x5xf32>
    %217 = tpu.matmul %198, %216, %cst_47 {dimension_numbers = #tpu.dot_dimension_numbers<[1], [0], [0], [1], [0, 0, 1, 1], [], []>} : vector<8x144xbf16>, vector<144x5xbf16>, vector<8x5xf32> -> vector<8x5xf32>
    %218 = vector.shape_cast %217 : vector<8x5xf32> to vector<1x8x5xf32>
    %219 = tpu.concatenate %202, %206, %210, %214, %218 in 0 : vector<1x8x5xf32>, vector<1x8x5xf32>, vector<1x8x5xf32>, vector<1x8x5xf32>, vector<1x8x5xf32> -> vector<5x8x5xf32>
    %220 = vector.extract_strided_slice %219 {offsets = [0, 0, 0], sizes = [1, 8, 5], strides = [1, 1, 1]} : vector<5x8x5xf32> to vector<1x8x5xf32>
    %221 = vector.extract_strided_slice %219 {offsets = [2, 0, 0], sizes = [1, 8, 5], strides = [1, 1, 1]} : vector<5x8x5xf32> to vector<1x8x5xf32>
    %222 = vector.extract_strided_slice %219 {offsets = [4, 0, 0], sizes = [1, 8, 5], strides = [1, 1, 1]} : vector<5x8x5xf32> to vector<1x8x5xf32>
    %223 = tpu.concatenate %220, %221, %222 in 0 : vector<1x8x5xf32>, vector<1x8x5xf32>, vector<1x8x5xf32> -> vector<3x8x5xf32>
    %224 = vector.extract_strided_slice %223 {offsets = [0, 0, 0], sizes = [3, 8, 1], strides = [1, 1, 1]} : vector<3x8x5xf32> to vector<3x8x1xf32>
    %225 = vector.extract_strided_slice %223 {offsets = [0, 0, 2], sizes = [3, 8, 1], strides = [1, 1, 1]} : vector<3x8x5xf32> to vector<3x8x1xf32>
    %226 = vector.extract_strided_slice %223 {offsets = [0, 0, 4], sizes = [3, 8, 1], strides = [1, 1, 1]} : vector<3x8x5xf32> to vector<3x8x1xf32>
    %227 = tpu.concatenate %224, %225, %226 in 2 : vector<3x8x1xf32>, vector<3x8x1xf32>, vector<3x8x1xf32> -> vector<3x8x3xf32>
    %228 = vector.shape_cast %182 : vector<8x1xf32> to vector<1x8x1xf32>
    %229 = vector.broadcast %228 : vector<1x8x1xf32> to vector<3x8x3xf32>
    %230 = arith.addf %227, %229 : vector<3x8x3xf32>
    %cst_48 = arith.constant 0.000000e+00 : f32
    %231 = vector.broadcast %cst_48 : f32 to vector<3x8x3xf32>
    %232 = arith.maximumf %230, %231 : vector<3x8x3xf32>
    %233 = vector.extract_strided_slice %232 {offsets = [0, 0, 0], sizes = [2, 8, 2], strides = [1, 1, 1]} : vector<3x8x3xf32> to vector<2x8x2xf32>
    %234 = vector.extract_strided_slice %232 {offsets = [0, 0, 1], sizes = [2, 8, 2], strides = [1, 1, 1]} : vector<3x8x3xf32> to vector<2x8x2xf32>
    %235 = arith.maximumf %233, %234 : vector<2x8x2xf32>
    %236 = vector.extract_strided_slice %232 {offsets = [1, 0, 0], sizes = [2, 8, 2], strides = [1, 1, 1]} : vector<3x8x3xf32> to vector<2x8x2xf32>
    %237 = arith.maximumf %235, %236 : vector<2x8x2xf32>
    %238 = vector.extract_strided_slice %232 {offsets = [1, 0, 1], sizes = [2, 8, 2], strides = [1, 1, 1]} : vector<3x8x3xf32> to vector<2x8x2xf32>
    %239 = arith.maximumf %237, %238 : vector<2x8x2xf32>
    %c0_49 = arith.constant 0 : index
    %c0_50 = arith.constant 0 : index
    %240 = vector.load %arg6[%c0_49, %c0_50] : memref<16x72xf32, #tpu.memory_space<vmem>>, vector<16x72xf32>
    %c0_51 = arith.constant 0 : index
    %c0_52 = arith.constant 0 : index
    %241 = vector.load %arg7[%c0_51, %c0_52] : memref<16x1xf32, #tpu.memory_space<vmem>>, vector<16x1xf32>
    %cst_53 = arith.constant 0.000000e+00 : f32
    %242 = vector.broadcast %cst_53 : f32 to vector<2x8x1xf32>
    %243 = vector.extract_strided_slice %239 {offsets = [0, 0, 0], sizes = [2, 8, 1], strides = [1, 1, 1]} : vector<2x8x2xf32> to vector<2x8x1xf32>
    %244 = vector.extract_strided_slice %239 {offsets = [0, 0, 1], sizes = [2, 8, 1], strides = [1, 1, 1]} : vector<2x8x2xf32> to vector<2x8x1xf32>
    %245 = tpu.concatenate %243, %242, %244 in 2 : vector<2x8x1xf32>, vector<2x8x1xf32>, vector<2x8x1xf32> -> vector<2x8x3xf32>
    %cst_54 = arith.constant 0.000000e+00 : f32
    %246 = vector.broadcast %cst_54 : f32 to vector<1x8x3xf32>
    %247 = vector.extract_strided_slice %245 {offsets = [0, 0, 0], sizes = [1, 8, 3], strides = [1, 1, 1]} : vector<2x8x3xf32> to vector<1x8x3xf32>
    %248 = vector.extract_strided_slice %245 {offsets = [1, 0, 0], sizes = [1, 8, 3], strides = [1, 1, 1]} : vector<2x8x3xf32> to vector<1x8x3xf32>
    %249 = tpu.concatenate %247, %246, %248 in 0 : vector<1x8x3xf32>, vector<1x8x3xf32>, vector<1x8x3xf32> -> vector<3x8x3xf32>
    %cst_55 = arith.constant 0.000000e+00 : f32
    %250 = vector.broadcast %cst_55 : f32 to vector<3x8x2xf32>
    %251 = tpu.concatenate %250, %249, %250 in 2 : vector<3x8x2xf32>, vector<3x8x3xf32>, vector<3x8x2xf32> -> vector<3x8x7xf32>
    %cst_56 = arith.constant 0.000000e+00 : f32
    %252 = vector.broadcast %cst_56 : f32 to vector<2x8x7xf32>
    %253 = tpu.concatenate %252, %251, %252 in 0 : vector<2x8x7xf32>, vector<3x8x7xf32>, vector<2x8x7xf32> -> vector<7x8x7xf32>
    %254 = vector.extract_strided_slice %253 {offsets = [0, 0, 0], sizes = [5, 8, 5], strides = [1, 1, 1]} : vector<7x8x7xf32> to vector<5x8x5xf32>
    %255 = vector.extract_strided_slice %253 {offsets = [0, 0, 1], sizes = [5, 8, 5], strides = [1, 1, 1]} : vector<7x8x7xf32> to vector<5x8x5xf32>
    %256 = vector.extract_strided_slice %253 {offsets = [0, 0, 2], sizes = [5, 8, 5], strides = [1, 1, 1]} : vector<7x8x7xf32> to vector<5x8x5xf32>
    %257 = vector.extract_strided_slice %253 {offsets = [1, 0, 0], sizes = [5, 8, 5], strides = [1, 1, 1]} : vector<7x8x7xf32> to vector<5x8x5xf32>
    %258 = vector.extract_strided_slice %253 {offsets = [1, 0, 1], sizes = [5, 8, 5], strides = [1, 1, 1]} : vector<7x8x7xf32> to vector<5x8x5xf32>
    %259 = vector.extract_strided_slice %253 {offsets = [1, 0, 2], sizes = [5, 8, 5], strides = [1, 1, 1]} : vector<7x8x7xf32> to vector<5x8x5xf32>
    %260 = vector.extract_strided_slice %253 {offsets = [2, 0, 0], sizes = [5, 8, 5], strides = [1, 1, 1]} : vector<7x8x7xf32> to vector<5x8x5xf32>
    %261 = vector.extract_strided_slice %253 {offsets = [2, 0, 1], sizes = [5, 8, 5], strides = [1, 1, 1]} : vector<7x8x7xf32> to vector<5x8x5xf32>
    %262 = vector.extract_strided_slice %253 {offsets = [2, 0, 2], sizes = [5, 8, 5], strides = [1, 1, 1]} : vector<7x8x7xf32> to vector<5x8x5xf32>
    %263 = tpu.concatenate %254, %255, %256, %257, %258, %259, %260, %261, %262 in 1 : vector<5x8x5xf32>, vector<5x8x5xf32>, vector<5x8x5xf32>, vector<5x8x5xf32>, vector<5x8x5xf32>, vector<5x8x5xf32>, vector<5x8x5xf32>, vector<5x8x5xf32>, vector<5x8x5xf32> -> vector<5x72x5xf32>
    %264 = arith.truncf %263 : vector<5x72x5xf32> to vector<5x72x5xbf16>
    %265 = arith.truncf %240 : vector<16x72xf32> to vector<16x72xbf16>
    %266 = vector.extract_strided_slice %264 {offsets = [0, 0, 0], sizes = [1, 72, 5], strides = [1, 1, 1]} : vector<5x72x5xbf16> to vector<1x72x5xbf16>
    %267 = vector.shape_cast %266 : vector<1x72x5xbf16> to vector<72x5xbf16>
    %cst_57 = arith.constant dense<0.000000e+00> : vector<16x5xf32>
    %268 = tpu.matmul %265, %267, %cst_57 {dimension_numbers = #tpu.dot_dimension_numbers<[1], [0], [0], [1], [0, 0, 1, 1], [], []>} : vector<16x72xbf16>, vector<72x5xbf16>, vector<16x5xf32> -> vector<16x5xf32>
    %269 = vector.shape_cast %268 : vector<16x5xf32> to vector<1x16x5xf32>
    %270 = vector.extract_strided_slice %264 {offsets = [1, 0, 0], sizes = [1, 72, 5], strides = [1, 1, 1]} : vector<5x72x5xbf16> to vector<1x72x5xbf16>
    %271 = vector.shape_cast %270 : vector<1x72x5xbf16> to vector<72x5xbf16>
    %cst_58 = arith.constant dense<0.000000e+00> : vector<16x5xf32>
    %272 = tpu.matmul %265, %271, %cst_58 {dimension_numbers = #tpu.dot_dimension_numbers<[1], [0], [0], [1], [0, 0, 1, 1], [], []>} : vector<16x72xbf16>, vector<72x5xbf16>, vector<16x5xf32> -> vector<16x5xf32>
    %273 = vector.shape_cast %272 : vector<16x5xf32> to vector<1x16x5xf32>
    %274 = vector.extract_strided_slice %264 {offsets = [2, 0, 0], sizes = [1, 72, 5], strides = [1, 1, 1]} : vector<5x72x5xbf16> to vector<1x72x5xbf16>
    %275 = vector.shape_cast %274 : vector<1x72x5xbf16> to vector<72x5xbf16>
    %cst_59 = arith.constant dense<0.000000e+00> : vector<16x5xf32>
    %276 = tpu.matmul %265, %275, %cst_59 {dimension_numbers = #tpu.dot_dimension_numbers<[1], [0], [0], [1], [0, 0, 1, 1], [], []>} : vector<16x72xbf16>, vector<72x5xbf16>, vector<16x5xf32> -> vector<16x5xf32>
    %277 = vector.shape_cast %276 : vector<16x5xf32> to vector<1x16x5xf32>
    %278 = vector.extract_strided_slice %264 {offsets = [3, 0, 0], sizes = [1, 72, 5], strides = [1, 1, 1]} : vector<5x72x5xbf16> to vector<1x72x5xbf16>
    %279 = vector.shape_cast %278 : vector<1x72x5xbf16> to vector<72x5xbf16>
    %cst_60 = arith.constant dense<0.000000e+00> : vector<16x5xf32>
    %280 = tpu.matmul %265, %279, %cst_60 {dimension_numbers = #tpu.dot_dimension_numbers<[1], [0], [0], [1], [0, 0, 1, 1], [], []>} : vector<16x72xbf16>, vector<72x5xbf16>, vector<16x5xf32> -> vector<16x5xf32>
    %281 = vector.shape_cast %280 : vector<16x5xf32> to vector<1x16x5xf32>
    %282 = vector.extract_strided_slice %264 {offsets = [4, 0, 0], sizes = [1, 72, 5], strides = [1, 1, 1]} : vector<5x72x5xbf16> to vector<1x72x5xbf16>
    %283 = vector.shape_cast %282 : vector<1x72x5xbf16> to vector<72x5xbf16>
    %cst_61 = arith.constant dense<0.000000e+00> : vector<16x5xf32>
    %284 = tpu.matmul %265, %283, %cst_61 {dimension_numbers = #tpu.dot_dimension_numbers<[1], [0], [0], [1], [0, 0, 1, 1], [], []>} : vector<16x72xbf16>, vector<72x5xbf16>, vector<16x5xf32> -> vector<16x5xf32>
    %285 = vector.shape_cast %284 : vector<16x5xf32> to vector<1x16x5xf32>
    %286 = tpu.concatenate %269, %273, %277, %281, %285 in 0 : vector<1x16x5xf32>, vector<1x16x5xf32>, vector<1x16x5xf32>, vector<1x16x5xf32>, vector<1x16x5xf32> -> vector<5x16x5xf32>
    %287 = vector.shape_cast %241 : vector<16x1xf32> to vector<1x16x1xf32>
    %288 = vector.broadcast %287 : vector<1x16x1xf32> to vector<5x16x5xf32>
    %289 = arith.addf %286, %288 : vector<5x16x5xf32>
    %cst_62 = arith.constant 0.000000e+00 : f32
    %290 = vector.broadcast %cst_62 : f32 to vector<5x16x5xf32>
    %291 = arith.maximumf %289, %290 : vector<5x16x5xf32>
    %c0_63 = arith.constant 0 : index
    %c0_64 = arith.constant 0 : index
    %292 = vector.load %arg8[%c0_63, %c0_64] : memref<8x400xf32, #tpu.memory_space<vmem>>, vector<8x400xf32>
    %c0_65 = arith.constant 0 : index
    %c0_66 = arith.constant 0 : index
    %293 = vector.load %arg9[%c0_65, %c0_66] : memref<8x1xf32, #tpu.memory_space<vmem>>, vector<8x1xf32>
    %cst_67 = arith.constant 0.000000e+00 : f32
    %294 = vector.broadcast %cst_67 : f32 to vector<5x16x1xf32>
    %295 = vector.extract_strided_slice %291 {offsets = [0, 0, 0], sizes = [5, 16, 1], strides = [1, 1, 1]} : vector<5x16x5xf32> to vector<5x16x1xf32>
    %296 = vector.extract_strided_slice %291 {offsets = [0, 0, 1], sizes = [5, 16, 1], strides = [1, 1, 1]} : vector<5x16x5xf32> to vector<5x16x1xf32>
    %297 = vector.extract_strided_slice %291 {offsets = [0, 0, 2], sizes = [5, 16, 1], strides = [1, 1, 1]} : vector<5x16x5xf32> to vector<5x16x1xf32>
    %298 = vector.extract_strided_slice %291 {offsets = [0, 0, 3], sizes = [5, 16, 1], strides = [1, 1, 1]} : vector<5x16x5xf32> to vector<5x16x1xf32>
    %299 = vector.extract_strided_slice %291 {offsets = [0, 0, 4], sizes = [5, 16, 1], strides = [1, 1, 1]} : vector<5x16x5xf32> to vector<5x16x1xf32>
    %300 = tpu.concatenate %295, %294, %294, %296, %294, %294, %297, %294, %294, %298, %294, %294, %299 in 2 : vector<5x16x1xf32>, vector<5x16x1xf32>, vector<5x16x1xf32>, vector<5x16x1xf32>, vector<5x16x1xf32>, vector<5x16x1xf32>, vector<5x16x1xf32>, vector<5x16x1xf32>, vector<5x16x1xf32>, vector<5x16x1xf32>, vector<5x16x1xf32>, vector<5x16x1xf32>, vector<5x16x1xf32> -> vector<5x16x13xf32>
    %cst_68 = arith.constant 0.000000e+00 : f32
    %301 = vector.broadcast %cst_68 : f32 to vector<1x16x13xf32>
    %302 = vector.extract_strided_slice %300 {offsets = [0, 0, 0], sizes = [1, 16, 13], strides = [1, 1, 1]} : vector<5x16x13xf32> to vector<1x16x13xf32>
    %303 = vector.extract_strided_slice %300 {offsets = [1, 0, 0], sizes = [1, 16, 13], strides = [1, 1, 1]} : vector<5x16x13xf32> to vector<1x16x13xf32>
    %304 = vector.extract_strided_slice %300 {offsets = [2, 0, 0], sizes = [1, 16, 13], strides = [1, 1, 1]} : vector<5x16x13xf32> to vector<1x16x13xf32>
    %305 = vector.extract_strided_slice %300 {offsets = [3, 0, 0], sizes = [1, 16, 13], strides = [1, 1, 1]} : vector<5x16x13xf32> to vector<1x16x13xf32>
    %306 = vector.extract_strided_slice %300 {offsets = [4, 0, 0], sizes = [1, 16, 13], strides = [1, 1, 1]} : vector<5x16x13xf32> to vector<1x16x13xf32>
    %307 = tpu.concatenate %302, %301, %301, %303, %301, %301, %304, %301, %301, %305, %301, %301, %306 in 0 : vector<1x16x13xf32>, vector<1x16x13xf32>, vector<1x16x13xf32>, vector<1x16x13xf32>, vector<1x16x13xf32>, vector<1x16x13xf32>, vector<1x16x13xf32>, vector<1x16x13xf32>, vector<1x16x13xf32>, vector<1x16x13xf32>, vector<1x16x13xf32>, vector<1x16x13xf32>, vector<1x16x13xf32> -> vector<13x16x13xf32>
    %cst_69 = arith.constant 0.000000e+00 : f32
    %308 = vector.broadcast %cst_69 : f32 to vector<13x16x3xf32>
    %309 = tpu.concatenate %308, %307, %308 in 2 : vector<13x16x3xf32>, vector<13x16x13xf32>, vector<13x16x3xf32> -> vector<13x16x19xf32>
    %cst_70 = arith.constant 0.000000e+00 : f32
    %310 = vector.broadcast %cst_70 : f32 to vector<3x16x19xf32>
    %311 = tpu.concatenate %310, %309, %310 in 0 : vector<3x16x19xf32>, vector<13x16x19xf32>, vector<3x16x19xf32> -> vector<19x16x19xf32>
    %312 = vector.extract_strided_slice %311 {offsets = [0, 0, 0], sizes = [15, 16, 15], strides = [1, 1, 1]} : vector<19x16x19xf32> to vector<15x16x15xf32>
    %313 = vector.extract_strided_slice %311 {offsets = [0, 0, 1], sizes = [15, 16, 15], strides = [1, 1, 1]} : vector<19x16x19xf32> to vector<15x16x15xf32>
    %314 = vector.extract_strided_slice %311 {offsets = [0, 0, 2], sizes = [15, 16, 15], strides = [1, 1, 1]} : vector<19x16x19xf32> to vector<15x16x15xf32>
    %315 = vector.extract_strided_slice %311 {offsets = [0, 0, 3], sizes = [15, 16, 15], strides = [1, 1, 1]} : vector<19x16x19xf32> to vector<15x16x15xf32>
    %316 = vector.extract_strided_slice %311 {offsets = [0, 0, 4], sizes = [15, 16, 15], strides = [1, 1, 1]} : vector<19x16x19xf32> to vector<15x16x15xf32>
    %317 = vector.extract_strided_slice %311 {offsets = [1, 0, 0], sizes = [15, 16, 15], strides = [1, 1, 1]} : vector<19x16x19xf32> to vector<15x16x15xf32>
    %318 = vector.extract_strided_slice %311 {offsets = [1, 0, 1], sizes = [15, 16, 15], strides = [1, 1, 1]} : vector<19x16x19xf32> to vector<15x16x15xf32>
    %319 = vector.extract_strided_slice %311 {offsets = [1, 0, 2], sizes = [15, 16, 15], strides = [1, 1, 1]} : vector<19x16x19xf32> to vector<15x16x15xf32>
    %320 = vector.extract_strided_slice %311 {offsets = [1, 0, 3], sizes = [15, 16, 15], strides = [1, 1, 1]} : vector<19x16x19xf32> to vector<15x16x15xf32>
    %321 = vector.extract_strided_slice %311 {offsets = [1, 0, 4], sizes = [15, 16, 15], strides = [1, 1, 1]} : vector<19x16x19xf32> to vector<15x16x15xf32>
    %322 = vector.extract_strided_slice %311 {offsets = [2, 0, 0], sizes = [15, 16, 15], strides = [1, 1, 1]} : vector<19x16x19xf32> to vector<15x16x15xf32>
    %323 = vector.extract_strided_slice %311 {offsets = [2, 0, 1], sizes = [15, 16, 15], strides = [1, 1, 1]} : vector<19x16x19xf32> to vector<15x16x15xf32>
    %324 = vector.extract_strided_slice %311 {offsets = [2, 0, 2], sizes = [15, 16, 15], strides = [1, 1, 1]} : vector<19x16x19xf32> to vector<15x16x15xf32>
    %325 = vector.extract_strided_slice %311 {offsets = [2, 0, 3], sizes = [15, 16, 15], strides = [1, 1, 1]} : vector<19x16x19xf32> to vector<15x16x15xf32>
    %326 = vector.extract_strided_slice %311 {offsets = [2, 0, 4], sizes = [15, 16, 15], strides = [1, 1, 1]} : vector<19x16x19xf32> to vector<15x16x15xf32>
    %327 = vector.extract_strided_slice %311 {offsets = [3, 0, 0], sizes = [15, 16, 15], strides = [1, 1, 1]} : vector<19x16x19xf32> to vector<15x16x15xf32>
    %328 = vector.extract_strided_slice %311 {offsets = [3, 0, 1], sizes = [15, 16, 15], strides = [1, 1, 1]} : vector<19x16x19xf32> to vector<15x16x15xf32>
    %329 = vector.extract_strided_slice %311 {offsets = [3, 0, 2], sizes = [15, 16, 15], strides = [1, 1, 1]} : vector<19x16x19xf32> to vector<15x16x15xf32>
    %330 = vector.extract_strided_slice %311 {offsets = [3, 0, 3], sizes = [15, 16, 15], strides = [1, 1, 1]} : vector<19x16x19xf32> to vector<15x16x15xf32>
    %331 = vector.extract_strided_slice %311 {offsets = [3, 0, 4], sizes = [15, 16, 15], strides = [1, 1, 1]} : vector<19x16x19xf32> to vector<15x16x15xf32>
    %332 = vector.extract_strided_slice %311 {offsets = [4, 0, 0], sizes = [15, 16, 15], strides = [1, 1, 1]} : vector<19x16x19xf32> to vector<15x16x15xf32>
    %333 = vector.extract_strided_slice %311 {offsets = [4, 0, 1], sizes = [15, 16, 15], strides = [1, 1, 1]} : vector<19x16x19xf32> to vector<15x16x15xf32>
    %334 = vector.extract_strided_slice %311 {offsets = [4, 0, 2], sizes = [15, 16, 15], strides = [1, 1, 1]} : vector<19x16x19xf32> to vector<15x16x15xf32>
    %335 = vector.extract_strided_slice %311 {offsets = [4, 0, 3], sizes = [15, 16, 15], strides = [1, 1, 1]} : vector<19x16x19xf32> to vector<15x16x15xf32>
    %336 = vector.extract_strided_slice %311 {offsets = [4, 0, 4], sizes = [15, 16, 15], strides = [1, 1, 1]} : vector<19x16x19xf32> to vector<15x16x15xf32>
    %337 = tpu.concatenate %312, %313, %314, %315, %316, %317, %318, %319, %320, %321, %322, %323, %324, %325, %326, %327 in 1 : vector<15x16x15xf32>, vector<15x16x15xf32>, vector<15x16x15xf32>, vector<15x16x15xf32>, vector<15x16x15xf32>, vector<15x16x15xf32>, vector<15x16x15xf32>, vector<15x16x15xf32>, vector<15x16x15xf32>, vector<15x16x15xf32>, vector<15x16x15xf32>, vector<15x16x15xf32>, vector<15x16x15xf32>, vector<15x16x15xf32>, vector<15x16x15xf32>, vector<15x16x15xf32> -> vector<15x256x15xf32>
    %338 = tpu.concatenate %328, %329, %330, %331, %332, %333, %334, %335, %336 in 1 : vector<15x16x15xf32>, vector<15x16x15xf32>, vector<15x16x15xf32>, vector<15x16x15xf32>, vector<15x16x15xf32>, vector<15x16x15xf32>, vector<15x16x15xf32>, vector<15x16x15xf32>, vector<15x16x15xf32> -> vector<15x144x15xf32>
    %339 = tpu.concatenate %337, %338 in 1 : vector<15x256x15xf32>, vector<15x144x15xf32> -> vector<15x400x15xf32>
    %340 = arith.truncf %339 : vector<15x400x15xf32> to vector<15x400x15xbf16>
    %341 = arith.truncf %292 : vector<8x400xf32> to vector<8x400xbf16>
    %342 = vector.extract_strided_slice %340 {offsets = [0, 0, 0], sizes = [1, 400, 15], strides = [1, 1, 1]} : vector<15x400x15xbf16> to vector<1x400x15xbf16>
    %343 = vector.shape_cast %342 : vector<1x400x15xbf16> to vector<400x15xbf16>
    %cst_71 = arith.constant dense<0.000000e+00> : vector<8x15xf32>
    %344 = tpu.matmul %341, %343, %cst_71 {dimension_numbers = #tpu.dot_dimension_numbers<[1], [0], [0], [1], [0, 0, 1, 1], [], []>} : vector<8x400xbf16>, vector<400x15xbf16>, vector<8x15xf32> -> vector<8x15xf32>
    %345 = vector.shape_cast %344 : vector<8x15xf32> to vector<1x8x15xf32>
    %346 = vector.extract_strided_slice %340 {offsets = [1, 0, 0], sizes = [1, 400, 15], strides = [1, 1, 1]} : vector<15x400x15xbf16> to vector<1x400x15xbf16>
    %347 = vector.shape_cast %346 : vector<1x400x15xbf16> to vector<400x15xbf16>
    %cst_72 = arith.constant dense<0.000000e+00> : vector<8x15xf32>
    %348 = tpu.matmul %341, %347, %cst_72 {dimension_numbers = #tpu.dot_dimension_numbers<[1], [0], [0], [1], [0, 0, 1, 1], [], []>} : vector<8x400xbf16>, vector<400x15xbf16>, vector<8x15xf32> -> vector<8x15xf32>
    %349 = vector.shape_cast %348 : vector<8x15xf32> to vector<1x8x15xf32>
    %350 = vector.extract_strided_slice %340 {offsets = [2, 0, 0], sizes = [1, 400, 15], strides = [1, 1, 1]} : vector<15x400x15xbf16> to vector<1x400x15xbf16>
    %351 = vector.shape_cast %350 : vector<1x400x15xbf16> to vector<400x15xbf16>
    %cst_73 = arith.constant dense<0.000000e+00> : vector<8x15xf32>
    %352 = tpu.matmul %341, %351, %cst_73 {dimension_numbers = #tpu.dot_dimension_numbers<[1], [0], [0], [1], [0, 0, 1, 1], [], []>} : vector<8x400xbf16>, vector<400x15xbf16>, vector<8x15xf32> -> vector<8x15xf32>
    %353 = vector.shape_cast %352 : vector<8x15xf32> to vector<1x8x15xf32>
    %354 = vector.extract_strided_slice %340 {offsets = [3, 0, 0], sizes = [1, 400, 15], strides = [1, 1, 1]} : vector<15x400x15xbf16> to vector<1x400x15xbf16>
    %355 = vector.shape_cast %354 : vector<1x400x15xbf16> to vector<400x15xbf16>
    %cst_74 = arith.constant dense<0.000000e+00> : vector<8x15xf32>
    %356 = tpu.matmul %341, %355, %cst_74 {dimension_numbers = #tpu.dot_dimension_numbers<[1], [0], [0], [1], [0, 0, 1, 1], [], []>} : vector<8x400xbf16>, vector<400x15xbf16>, vector<8x15xf32> -> vector<8x15xf32>
    %357 = vector.shape_cast %356 : vector<8x15xf32> to vector<1x8x15xf32>
    %358 = vector.extract_strided_slice %340 {offsets = [4, 0, 0], sizes = [1, 400, 15], strides = [1, 1, 1]} : vector<15x400x15xbf16> to vector<1x400x15xbf16>
    %359 = vector.shape_cast %358 : vector<1x400x15xbf16> to vector<400x15xbf16>
    %cst_75 = arith.constant dense<0.000000e+00> : vector<8x15xf32>
    %360 = tpu.matmul %341, %359, %cst_75 {dimension_numbers = #tpu.dot_dimension_numbers<[1], [0], [0], [1], [0, 0, 1, 1], [], []>} : vector<8x400xbf16>, vector<400x15xbf16>, vector<8x15xf32> -> vector<8x15xf32>
    %361 = vector.shape_cast %360 : vector<8x15xf32> to vector<1x8x15xf32>
    %362 = vector.extract_strided_slice %340 {offsets = [5, 0, 0], sizes = [1, 400, 15], strides = [1, 1, 1]} : vector<15x400x15xbf16> to vector<1x400x15xbf16>
    %363 = vector.shape_cast %362 : vector<1x400x15xbf16> to vector<400x15xbf16>
    %cst_76 = arith.constant dense<0.000000e+00> : vector<8x15xf32>
    %364 = tpu.matmul %341, %363, %cst_76 {dimension_numbers = #tpu.dot_dimension_numbers<[1], [0], [0], [1], [0, 0, 1, 1], [], []>} : vector<8x400xbf16>, vector<400x15xbf16>, vector<8x15xf32> -> vector<8x15xf32>
    %365 = vector.shape_cast %364 : vector<8x15xf32> to vector<1x8x15xf32>
    %366 = vector.extract_strided_slice %340 {offsets = [6, 0, 0], sizes = [1, 400, 15], strides = [1, 1, 1]} : vector<15x400x15xbf16> to vector<1x400x15xbf16>
    %367 = vector.shape_cast %366 : vector<1x400x15xbf16> to vector<400x15xbf16>
    %cst_77 = arith.constant dense<0.000000e+00> : vector<8x15xf32>
    %368 = tpu.matmul %341, %367, %cst_77 {dimension_numbers = #tpu.dot_dimension_numbers<[1], [0], [0], [1], [0, 0, 1, 1], [], []>} : vector<8x400xbf16>, vector<400x15xbf16>, vector<8x15xf32> -> vector<8x15xf32>
    %369 = vector.shape_cast %368 : vector<8x15xf32> to vector<1x8x15xf32>
    %370 = vector.extract_strided_slice %340 {offsets = [7, 0, 0], sizes = [1, 400, 15], strides = [1, 1, 1]} : vector<15x400x15xbf16> to vector<1x400x15xbf16>
    %371 = vector.shape_cast %370 : vector<1x400x15xbf16> to vector<400x15xbf16>
    %cst_78 = arith.constant dense<0.000000e+00> : vector<8x15xf32>
    %372 = tpu.matmul %341, %371, %cst_78 {dimension_numbers = #tpu.dot_dimension_numbers<[1], [0], [0], [1], [0, 0, 1, 1], [], []>} : vector<8x400xbf16>, vector<400x15xbf16>, vector<8x15xf32> -> vector<8x15xf32>
    %373 = vector.shape_cast %372 : vector<8x15xf32> to vector<1x8x15xf32>
    %374 = vector.extract_strided_slice %340 {offsets = [8, 0, 0], sizes = [1, 400, 15], strides = [1, 1, 1]} : vector<15x400x15xbf16> to vector<1x400x15xbf16>
    %375 = vector.shape_cast %374 : vector<1x400x15xbf16> to vector<400x15xbf16>
    %cst_79 = arith.constant dense<0.000000e+00> : vector<8x15xf32>
    %376 = tpu.matmul %341, %375, %cst_79 {dimension_numbers = #tpu.dot_dimension_numbers<[1], [0], [0], [1], [0, 0, 1, 1], [], []>} : vector<8x400xbf16>, vector<400x15xbf16>, vector<8x15xf32> -> vector<8x15xf32>
    %377 = vector.shape_cast %376 : vector<8x15xf32> to vector<1x8x15xf32>
    %378 = vector.extract_strided_slice %340 {offsets = [9, 0, 0], sizes = [1, 400, 15], strides = [1, 1, 1]} : vector<15x400x15xbf16> to vector<1x400x15xbf16>
    %379 = vector.shape_cast %378 : vector<1x400x15xbf16> to vector<400x15xbf16>
    %cst_80 = arith.constant dense<0.000000e+00> : vector<8x15xf32>
    %380 = tpu.matmul %341, %379, %cst_80 {dimension_numbers = #tpu.dot_dimension_numbers<[1], [0], [0], [1], [0, 0, 1, 1], [], []>} : vector<8x400xbf16>, vector<400x15xbf16>, vector<8x15xf32> -> vector<8x15xf32>
    %381 = vector.shape_cast %380 : vector<8x15xf32> to vector<1x8x15xf32>
    %382 = vector.extract_strided_slice %340 {offsets = [10, 0, 0], sizes = [1, 400, 15], strides = [1, 1, 1]} : vector<15x400x15xbf16> to vector<1x400x15xbf16>
    %383 = vector.shape_cast %382 : vector<1x400x15xbf16> to vector<400x15xbf16>
    %cst_81 = arith.constant dense<0.000000e+00> : vector<8x15xf32>
    %384 = tpu.matmul %341, %383, %cst_81 {dimension_numbers = #tpu.dot_dimension_numbers<[1], [0], [0], [1], [0, 0, 1, 1], [], []>} : vector<8x400xbf16>, vector<400x15xbf16>, vector<8x15xf32> -> vector<8x15xf32>
    %385 = vector.shape_cast %384 : vector<8x15xf32> to vector<1x8x15xf32>
    %386 = vector.extract_strided_slice %340 {offsets = [11, 0, 0], sizes = [1, 400, 15], strides = [1, 1, 1]} : vector<15x400x15xbf16> to vector<1x400x15xbf16>
    %387 = vector.shape_cast %386 : vector<1x400x15xbf16> to vector<400x15xbf16>
    %cst_82 = arith.constant dense<0.000000e+00> : vector<8x15xf32>
    %388 = tpu.matmul %341, %387, %cst_82 {dimension_numbers = #tpu.dot_dimension_numbers<[1], [0], [0], [1], [0, 0, 1, 1], [], []>} : vector<8x400xbf16>, vector<400x15xbf16>, vector<8x15xf32> -> vector<8x15xf32>
    %389 = vector.shape_cast %388 : vector<8x15xf32> to vector<1x8x15xf32>
    %390 = vector.extract_strided_slice %340 {offsets = [12, 0, 0], sizes = [1, 400, 15], strides = [1, 1, 1]} : vector<15x400x15xbf16> to vector<1x400x15xbf16>
    %391 = vector.shape_cast %390 : vector<1x400x15xbf16> to vector<400x15xbf16>
    %cst_83 = arith.constant dense<0.000000e+00> : vector<8x15xf32>
    %392 = tpu.matmul %341, %391, %cst_83 {dimension_numbers = #tpu.dot_dimension_numbers<[1], [0], [0], [1], [0, 0, 1, 1], [], []>} : vector<8x400xbf16>, vector<400x15xbf16>, vector<8x15xf32> -> vector<8x15xf32>
    %393 = vector.shape_cast %392 : vector<8x15xf32> to vector<1x8x15xf32>
    %394 = vector.extract_strided_slice %340 {offsets = [13, 0, 0], sizes = [1, 400, 15], strides = [1, 1, 1]} : vector<15x400x15xbf16> to vector<1x400x15xbf16>
    %395 = vector.shape_cast %394 : vector<1x400x15xbf16> to vector<400x15xbf16>
    %cst_84 = arith.constant dense<0.000000e+00> : vector<8x15xf32>
    %396 = tpu.matmul %341, %395, %cst_84 {dimension_numbers = #tpu.dot_dimension_numbers<[1], [0], [0], [1], [0, 0, 1, 1], [], []>} : vector<8x400xbf16>, vector<400x15xbf16>, vector<8x15xf32> -> vector<8x15xf32>
    %397 = vector.shape_cast %396 : vector<8x15xf32> to vector<1x8x15xf32>
    %398 = vector.extract_strided_slice %340 {offsets = [14, 0, 0], sizes = [1, 400, 15], strides = [1, 1, 1]} : vector<15x400x15xbf16> to vector<1x400x15xbf16>
    %399 = vector.shape_cast %398 : vector<1x400x15xbf16> to vector<400x15xbf16>
    %cst_85 = arith.constant dense<0.000000e+00> : vector<8x15xf32>
    %400 = tpu.matmul %341, %399, %cst_85 {dimension_numbers = #tpu.dot_dimension_numbers<[1], [0], [0], [1], [0, 0, 1, 1], [], []>} : vector<8x400xbf16>, vector<400x15xbf16>, vector<8x15xf32> -> vector<8x15xf32>
    %401 = vector.shape_cast %400 : vector<8x15xf32> to vector<1x8x15xf32>
    %402 = tpu.concatenate %345, %349, %353, %357, %361, %365, %369, %373, %377, %381, %385, %389, %393, %397, %401 in 0 : vector<1x8x15xf32>, vector<1x8x15xf32>, vector<1x8x15xf32>, vector<1x8x15xf32>, vector<1x8x15xf32>, vector<1x8x15xf32>, vector<1x8x15xf32>, vector<1x8x15xf32>, vector<1x8x15xf32>, vector<1x8x15xf32>, vector<1x8x15xf32>, vector<1x8x15xf32>, vector<1x8x15xf32>, vector<1x8x15xf32>, vector<1x8x15xf32> -> vector<15x8x15xf32>
    %403 = vector.shape_cast %293 : vector<8x1xf32> to vector<1x8x1xf32>
    %404 = vector.broadcast %403 : vector<1x8x1xf32> to vector<15x8x15xf32>
    %405 = arith.addf %402, %404 : vector<15x8x15xf32>
    %cst_86 = arith.constant 0.000000e+00 : f32
    %406 = vector.broadcast %cst_86 : f32 to vector<15x8x15xf32>
    %407 = arith.maximumf %405, %406 : vector<15x8x15xf32>
    %c0_87 = arith.constant 0 : index
    %c0_88 = arith.constant 0 : index
    %408 = vector.load %arg10[%c0_87, %c0_88] : memref<1x32xf32, #tpu.memory_space<vmem>>, vector<1x32xf32>
    %c0_89 = arith.constant 0 : index
    %c0_90 = arith.constant 0 : index
    %409 = vector.load %arg11[%c0_89, %c0_90] : memref<1x1xf32, #tpu.memory_space<vmem>>, vector<1x1xf32>
    %cst_91 = arith.constant 0.000000e+00 : f32
    %410 = vector.broadcast %cst_91 : f32 to vector<15x8x1xf32>
    %411 = vector.extract_strided_slice %407 {offsets = [0, 0, 0], sizes = [15, 8, 1], strides = [1, 1, 1]} : vector<15x8x15xf32> to vector<15x8x1xf32>
    %412 = vector.extract_strided_slice %407 {offsets = [0, 0, 1], sizes = [15, 8, 1], strides = [1, 1, 1]} : vector<15x8x15xf32> to vector<15x8x1xf32>
    %413 = vector.extract_strided_slice %407 {offsets = [0, 0, 2], sizes = [15, 8, 1], strides = [1, 1, 1]} : vector<15x8x15xf32> to vector<15x8x1xf32>
    %414 = vector.extract_strided_slice %407 {offsets = [0, 0, 3], sizes = [15, 8, 1], strides = [1, 1, 1]} : vector<15x8x15xf32> to vector<15x8x1xf32>
    %415 = vector.extract_strided_slice %407 {offsets = [0, 0, 4], sizes = [15, 8, 1], strides = [1, 1, 1]} : vector<15x8x15xf32> to vector<15x8x1xf32>
    %416 = vector.extract_strided_slice %407 {offsets = [0, 0, 5], sizes = [15, 8, 1], strides = [1, 1, 1]} : vector<15x8x15xf32> to vector<15x8x1xf32>
    %417 = vector.extract_strided_slice %407 {offsets = [0, 0, 6], sizes = [15, 8, 1], strides = [1, 1, 1]} : vector<15x8x15xf32> to vector<15x8x1xf32>
    %418 = vector.extract_strided_slice %407 {offsets = [0, 0, 7], sizes = [15, 8, 1], strides = [1, 1, 1]} : vector<15x8x15xf32> to vector<15x8x1xf32>
    %419 = vector.extract_strided_slice %407 {offsets = [0, 0, 8], sizes = [15, 8, 1], strides = [1, 1, 1]} : vector<15x8x15xf32> to vector<15x8x1xf32>
    %420 = vector.extract_strided_slice %407 {offsets = [0, 0, 9], sizes = [15, 8, 1], strides = [1, 1, 1]} : vector<15x8x15xf32> to vector<15x8x1xf32>
    %421 = vector.extract_strided_slice %407 {offsets = [0, 0, 10], sizes = [15, 8, 1], strides = [1, 1, 1]} : vector<15x8x15xf32> to vector<15x8x1xf32>
    %422 = vector.extract_strided_slice %407 {offsets = [0, 0, 11], sizes = [15, 8, 1], strides = [1, 1, 1]} : vector<15x8x15xf32> to vector<15x8x1xf32>
    %423 = vector.extract_strided_slice %407 {offsets = [0, 0, 12], sizes = [15, 8, 1], strides = [1, 1, 1]} : vector<15x8x15xf32> to vector<15x8x1xf32>
    %424 = vector.extract_strided_slice %407 {offsets = [0, 0, 13], sizes = [15, 8, 1], strides = [1, 1, 1]} : vector<15x8x15xf32> to vector<15x8x1xf32>
    %425 = vector.extract_strided_slice %407 {offsets = [0, 0, 14], sizes = [15, 8, 1], strides = [1, 1, 1]} : vector<15x8x15xf32> to vector<15x8x1xf32>
    %426 = tpu.concatenate %411, %410, %412, %410, %413, %410, %414, %410, %415, %410, %416, %410, %417, %410, %418, %410 in 2 : vector<15x8x1xf32>, vector<15x8x1xf32>, vector<15x8x1xf32>, vector<15x8x1xf32>, vector<15x8x1xf32>, vector<15x8x1xf32>, vector<15x8x1xf32>, vector<15x8x1xf32>, vector<15x8x1xf32>, vector<15x8x1xf32>, vector<15x8x1xf32>, vector<15x8x1xf32>, vector<15x8x1xf32>, vector<15x8x1xf32>, vector<15x8x1xf32>, vector<15x8x1xf32> -> vector<15x8x16xf32>
    %427 = tpu.concatenate %419, %410, %420, %410, %421, %410, %422, %410, %423, %410, %424, %410, %425 in 2 : vector<15x8x1xf32>, vector<15x8x1xf32>, vector<15x8x1xf32>, vector<15x8x1xf32>, vector<15x8x1xf32>, vector<15x8x1xf32>, vector<15x8x1xf32>, vector<15x8x1xf32>, vector<15x8x1xf32>, vector<15x8x1xf32>, vector<15x8x1xf32>, vector<15x8x1xf32>, vector<15x8x1xf32> -> vector<15x8x13xf32>
    %428 = tpu.concatenate %426, %427 in 2 : vector<15x8x16xf32>, vector<15x8x13xf32> -> vector<15x8x29xf32>
    %cst_92 = arith.constant 0.000000e+00 : f32
    %429 = vector.broadcast %cst_92 : f32 to vector<1x8x29xf32>
    %430 = vector.extract_strided_slice %428 {offsets = [0, 0, 0], sizes = [1, 8, 29], strides = [1, 1, 1]} : vector<15x8x29xf32> to vector<1x8x29xf32>
    %431 = vector.extract_strided_slice %428 {offsets = [1, 0, 0], sizes = [1, 8, 29], strides = [1, 1, 1]} : vector<15x8x29xf32> to vector<1x8x29xf32>
    %432 = vector.extract_strided_slice %428 {offsets = [2, 0, 0], sizes = [1, 8, 29], strides = [1, 1, 1]} : vector<15x8x29xf32> to vector<1x8x29xf32>
    %433 = vector.extract_strided_slice %428 {offsets = [3, 0, 0], sizes = [1, 8, 29], strides = [1, 1, 1]} : vector<15x8x29xf32> to vector<1x8x29xf32>
    %434 = vector.extract_strided_slice %428 {offsets = [4, 0, 0], sizes = [1, 8, 29], strides = [1, 1, 1]} : vector<15x8x29xf32> to vector<1x8x29xf32>
    %435 = vector.extract_strided_slice %428 {offsets = [5, 0, 0], sizes = [1, 8, 29], strides = [1, 1, 1]} : vector<15x8x29xf32> to vector<1x8x29xf32>
    %436 = vector.extract_strided_slice %428 {offsets = [6, 0, 0], sizes = [1, 8, 29], strides = [1, 1, 1]} : vector<15x8x29xf32> to vector<1x8x29xf32>
    %437 = vector.extract_strided_slice %428 {offsets = [7, 0, 0], sizes = [1, 8, 29], strides = [1, 1, 1]} : vector<15x8x29xf32> to vector<1x8x29xf32>
    %438 = vector.extract_strided_slice %428 {offsets = [8, 0, 0], sizes = [1, 8, 29], strides = [1, 1, 1]} : vector<15x8x29xf32> to vector<1x8x29xf32>
    %439 = vector.extract_strided_slice %428 {offsets = [9, 0, 0], sizes = [1, 8, 29], strides = [1, 1, 1]} : vector<15x8x29xf32> to vector<1x8x29xf32>
    %440 = vector.extract_strided_slice %428 {offsets = [10, 0, 0], sizes = [1, 8, 29], strides = [1, 1, 1]} : vector<15x8x29xf32> to vector<1x8x29xf32>
    %441 = vector.extract_strided_slice %428 {offsets = [11, 0, 0], sizes = [1, 8, 29], strides = [1, 1, 1]} : vector<15x8x29xf32> to vector<1x8x29xf32>
    %442 = vector.extract_strided_slice %428 {offsets = [12, 0, 0], sizes = [1, 8, 29], strides = [1, 1, 1]} : vector<15x8x29xf32> to vector<1x8x29xf32>
    %443 = vector.extract_strided_slice %428 {offsets = [13, 0, 0], sizes = [1, 8, 29], strides = [1, 1, 1]} : vector<15x8x29xf32> to vector<1x8x29xf32>
    %444 = vector.extract_strided_slice %428 {offsets = [14, 0, 0], sizes = [1, 8, 29], strides = [1, 1, 1]} : vector<15x8x29xf32> to vector<1x8x29xf32>
    %445 = tpu.concatenate %430, %429, %431, %429, %432, %429, %433, %429, %434, %429, %435, %429, %436, %429, %437, %429 in 0 : vector<1x8x29xf32>, vector<1x8x29xf32>, vector<1x8x29xf32>, vector<1x8x29xf32>, vector<1x8x29xf32>, vector<1x8x29xf32>, vector<1x8x29xf32>, vector<1x8x29xf32>, vector<1x8x29xf32>, vector<1x8x29xf32>, vector<1x8x29xf32>, vector<1x8x29xf32>, vector<1x8x29xf32>, vector<1x8x29xf32>, vector<1x8x29xf32>, vector<1x8x29xf32> -> vector<16x8x29xf32>
    %446 = tpu.concatenate %438, %429, %439, %429, %440, %429, %441, %429, %442, %429, %443, %429, %444 in 0 : vector<1x8x29xf32>, vector<1x8x29xf32>, vector<1x8x29xf32>, vector<1x8x29xf32>, vector<1x8x29xf32>, vector<1x8x29xf32>, vector<1x8x29xf32>, vector<1x8x29xf32>, vector<1x8x29xf32>, vector<1x8x29xf32>, vector<1x8x29xf32>, vector<1x8x29xf32>, vector<1x8x29xf32> -> vector<13x8x29xf32>
    %447 = tpu.concatenate %445, %446 in 0 : vector<16x8x29xf32>, vector<13x8x29xf32> -> vector<29x8x29xf32>
    %448 = vector.extract_strided_slice %447 {offsets = [0, 0, 0], sizes = [28, 8, 28], strides = [1, 1, 1]} : vector<29x8x29xf32> to vector<28x8x28xf32>
    %449 = vector.extract_strided_slice %447 {offsets = [0, 0, 1], sizes = [28, 8, 28], strides = [1, 1, 1]} : vector<29x8x29xf32> to vector<28x8x28xf32>
    %450 = vector.extract_strided_slice %447 {offsets = [1, 0, 0], sizes = [28, 8, 28], strides = [1, 1, 1]} : vector<29x8x29xf32> to vector<28x8x28xf32>
    %451 = vector.extract_strided_slice %447 {offsets = [1, 0, 1], sizes = [28, 8, 28], strides = [1, 1, 1]} : vector<29x8x29xf32> to vector<28x8x28xf32>
    %452 = tpu.concatenate %448, %449, %450, %451 in 1 : vector<28x8x28xf32>, vector<28x8x28xf32>, vector<28x8x28xf32>, vector<28x8x28xf32> -> vector<28x32x28xf32>
    %453 = arith.truncf %452 : vector<28x32x28xf32> to vector<28x32x28xbf16>
    %454 = arith.truncf %408 : vector<1x32xf32> to vector<1x32xbf16>
    %455 = vector.extract_strided_slice %453 {offsets = [0, 0, 0], sizes = [1, 32, 28], strides = [1, 1, 1]} : vector<28x32x28xbf16> to vector<1x32x28xbf16>
    %456 = vector.shape_cast %455 : vector<1x32x28xbf16> to vector<32x28xbf16>
    %cst_93 = arith.constant dense<0.000000e+00> : vector<1x28xf32>
    %457 = tpu.matmul %454, %456, %cst_93 {dimension_numbers = #tpu.dot_dimension_numbers<[1], [0], [0], [1], [0, 0, 1, 1], [], []>} : vector<1x32xbf16>, vector<32x28xbf16>, vector<1x28xf32> -> vector<1x28xf32>
    %458 = vector.shape_cast %457 : vector<1x28xf32> to vector<1x1x28xf32>
    %459 = vector.extract_strided_slice %453 {offsets = [1, 0, 0], sizes = [1, 32, 28], strides = [1, 1, 1]} : vector<28x32x28xbf16> to vector<1x32x28xbf16>
    %460 = vector.shape_cast %459 : vector<1x32x28xbf16> to vector<32x28xbf16>
    %cst_94 = arith.constant dense<0.000000e+00> : vector<1x28xf32>
    %461 = tpu.matmul %454, %460, %cst_94 {dimension_numbers = #tpu.dot_dimension_numbers<[1], [0], [0], [1], [0, 0, 1, 1], [], []>} : vector<1x32xbf16>, vector<32x28xbf16>, vector<1x28xf32> -> vector<1x28xf32>
    %462 = vector.shape_cast %461 : vector<1x28xf32> to vector<1x1x28xf32>
    %463 = vector.extract_strided_slice %453 {offsets = [2, 0, 0], sizes = [1, 32, 28], strides = [1, 1, 1]} : vector<28x32x28xbf16> to vector<1x32x28xbf16>
    %464 = vector.shape_cast %463 : vector<1x32x28xbf16> to vector<32x28xbf16>
    %cst_95 = arith.constant dense<0.000000e+00> : vector<1x28xf32>
    %465 = tpu.matmul %454, %464, %cst_95 {dimension_numbers = #tpu.dot_dimension_numbers<[1], [0], [0], [1], [0, 0, 1, 1], [], []>} : vector<1x32xbf16>, vector<32x28xbf16>, vector<1x28xf32> -> vector<1x28xf32>
    %466 = vector.shape_cast %465 : vector<1x28xf32> to vector<1x1x28xf32>
    %467 = vector.extract_strided_slice %453 {offsets = [3, 0, 0], sizes = [1, 32, 28], strides = [1, 1, 1]} : vector<28x32x28xbf16> to vector<1x32x28xbf16>
    %468 = vector.shape_cast %467 : vector<1x32x28xbf16> to vector<32x28xbf16>
    %cst_96 = arith.constant dense<0.000000e+00> : vector<1x28xf32>
    %469 = tpu.matmul %454, %468, %cst_96 {dimension_numbers = #tpu.dot_dimension_numbers<[1], [0], [0], [1], [0, 0, 1, 1], [], []>} : vector<1x32xbf16>, vector<32x28xbf16>, vector<1x28xf32> -> vector<1x28xf32>
    %470 = vector.shape_cast %469 : vector<1x28xf32> to vector<1x1x28xf32>
    %471 = vector.extract_strided_slice %453 {offsets = [4, 0, 0], sizes = [1, 32, 28], strides = [1, 1, 1]} : vector<28x32x28xbf16> to vector<1x32x28xbf16>
    %472 = vector.shape_cast %471 : vector<1x32x28xbf16> to vector<32x28xbf16>
    %cst_97 = arith.constant dense<0.000000e+00> : vector<1x28xf32>
    %473 = tpu.matmul %454, %472, %cst_97 {dimension_numbers = #tpu.dot_dimension_numbers<[1], [0], [0], [1], [0, 0, 1, 1], [], []>} : vector<1x32xbf16>, vector<32x28xbf16>, vector<1x28xf32> -> vector<1x28xf32>
    %474 = vector.shape_cast %473 : vector<1x28xf32> to vector<1x1x28xf32>
    %475 = vector.extract_strided_slice %453 {offsets = [5, 0, 0], sizes = [1, 32, 28], strides = [1, 1, 1]} : vector<28x32x28xbf16> to vector<1x32x28xbf16>
    %476 = vector.shape_cast %475 : vector<1x32x28xbf16> to vector<32x28xbf16>
    %cst_98 = arith.constant dense<0.000000e+00> : vector<1x28xf32>
    %477 = tpu.matmul %454, %476, %cst_98 {dimension_numbers = #tpu.dot_dimension_numbers<[1], [0], [0], [1], [0, 0, 1, 1], [], []>} : vector<1x32xbf16>, vector<32x28xbf16>, vector<1x28xf32> -> vector<1x28xf32>
    %478 = vector.shape_cast %477 : vector<1x28xf32> to vector<1x1x28xf32>
    %479 = vector.extract_strided_slice %453 {offsets = [6, 0, 0], sizes = [1, 32, 28], strides = [1, 1, 1]} : vector<28x32x28xbf16> to vector<1x32x28xbf16>
    %480 = vector.shape_cast %479 : vector<1x32x28xbf16> to vector<32x28xbf16>
    %cst_99 = arith.constant dense<0.000000e+00> : vector<1x28xf32>
    %481 = tpu.matmul %454, %480, %cst_99 {dimension_numbers = #tpu.dot_dimension_numbers<[1], [0], [0], [1], [0, 0, 1, 1], [], []>} : vector<1x32xbf16>, vector<32x28xbf16>, vector<1x28xf32> -> vector<1x28xf32>
    %482 = vector.shape_cast %481 : vector<1x28xf32> to vector<1x1x28xf32>
    %483 = vector.extract_strided_slice %453 {offsets = [7, 0, 0], sizes = [1, 32, 28], strides = [1, 1, 1]} : vector<28x32x28xbf16> to vector<1x32x28xbf16>
    %484 = vector.shape_cast %483 : vector<1x32x28xbf16> to vector<32x28xbf16>
    %cst_100 = arith.constant dense<0.000000e+00> : vector<1x28xf32>
    %485 = tpu.matmul %454, %484, %cst_100 {dimension_numbers = #tpu.dot_dimension_numbers<[1], [0], [0], [1], [0, 0, 1, 1], [], []>} : vector<1x32xbf16>, vector<32x28xbf16>, vector<1x28xf32> -> vector<1x28xf32>
    %486 = vector.shape_cast %485 : vector<1x28xf32> to vector<1x1x28xf32>
    %487 = vector.extract_strided_slice %453 {offsets = [8, 0, 0], sizes = [1, 32, 28], strides = [1, 1, 1]} : vector<28x32x28xbf16> to vector<1x32x28xbf16>
    %488 = vector.shape_cast %487 : vector<1x32x28xbf16> to vector<32x28xbf16>
    %cst_101 = arith.constant dense<0.000000e+00> : vector<1x28xf32>
    %489 = tpu.matmul %454, %488, %cst_101 {dimension_numbers = #tpu.dot_dimension_numbers<[1], [0], [0], [1], [0, 0, 1, 1], [], []>} : vector<1x32xbf16>, vector<32x28xbf16>, vector<1x28xf32> -> vector<1x28xf32>
    %490 = vector.shape_cast %489 : vector<1x28xf32> to vector<1x1x28xf32>
    %491 = vector.extract_strided_slice %453 {offsets = [9, 0, 0], sizes = [1, 32, 28], strides = [1, 1, 1]} : vector<28x32x28xbf16> to vector<1x32x28xbf16>
    %492 = vector.shape_cast %491 : vector<1x32x28xbf16> to vector<32x28xbf16>
    %cst_102 = arith.constant dense<0.000000e+00> : vector<1x28xf32>
    %493 = tpu.matmul %454, %492, %cst_102 {dimension_numbers = #tpu.dot_dimension_numbers<[1], [0], [0], [1], [0, 0, 1, 1], [], []>} : vector<1x32xbf16>, vector<32x28xbf16>, vector<1x28xf32> -> vector<1x28xf32>
    %494 = vector.shape_cast %493 : vector<1x28xf32> to vector<1x1x28xf32>
    %495 = vector.extract_strided_slice %453 {offsets = [10, 0, 0], sizes = [1, 32, 28], strides = [1, 1, 1]} : vector<28x32x28xbf16> to vector<1x32x28xbf16>
    %496 = vector.shape_cast %495 : vector<1x32x28xbf16> to vector<32x28xbf16>
    %cst_103 = arith.constant dense<0.000000e+00> : vector<1x28xf32>
    %497 = tpu.matmul %454, %496, %cst_103 {dimension_numbers = #tpu.dot_dimension_numbers<[1], [0], [0], [1], [0, 0, 1, 1], [], []>} : vector<1x32xbf16>, vector<32x28xbf16>, vector<1x28xf32> -> vector<1x28xf32>
    %498 = vector.shape_cast %497 : vector<1x28xf32> to vector<1x1x28xf32>
    %499 = vector.extract_strided_slice %453 {offsets = [11, 0, 0], sizes = [1, 32, 28], strides = [1, 1, 1]} : vector<28x32x28xbf16> to vector<1x32x28xbf16>
    %500 = vector.shape_cast %499 : vector<1x32x28xbf16> to vector<32x28xbf16>
    %cst_104 = arith.constant dense<0.000000e+00> : vector<1x28xf32>
    %501 = tpu.matmul %454, %500, %cst_104 {dimension_numbers = #tpu.dot_dimension_numbers<[1], [0], [0], [1], [0, 0, 1, 1], [], []>} : vector<1x32xbf16>, vector<32x28xbf16>, vector<1x28xf32> -> vector<1x28xf32>
    %502 = vector.shape_cast %501 : vector<1x28xf32> to vector<1x1x28xf32>
    %503 = vector.extract_strided_slice %453 {offsets = [12, 0, 0], sizes = [1, 32, 28], strides = [1, 1, 1]} : vector<28x32x28xbf16> to vector<1x32x28xbf16>
    %504 = vector.shape_cast %503 : vector<1x32x28xbf16> to vector<32x28xbf16>
    %cst_105 = arith.constant dense<0.000000e+00> : vector<1x28xf32>
    %505 = tpu.matmul %454, %504, %cst_105 {dimension_numbers = #tpu.dot_dimension_numbers<[1], [0], [0], [1], [0, 0, 1, 1], [], []>} : vector<1x32xbf16>, vector<32x28xbf16>, vector<1x28xf32> -> vector<1x28xf32>
    %506 = vector.shape_cast %505 : vector<1x28xf32> to vector<1x1x28xf32>
    %507 = vector.extract_strided_slice %453 {offsets = [13, 0, 0], sizes = [1, 32, 28], strides = [1, 1, 1]} : vector<28x32x28xbf16> to vector<1x32x28xbf16>
    %508 = vector.shape_cast %507 : vector<1x32x28xbf16> to vector<32x28xbf16>
    %cst_106 = arith.constant dense<0.000000e+00> : vector<1x28xf32>
    %509 = tpu.matmul %454, %508, %cst_106 {dimension_numbers = #tpu.dot_dimension_numbers<[1], [0], [0], [1], [0, 0, 1, 1], [], []>} : vector<1x32xbf16>, vector<32x28xbf16>, vector<1x28xf32> -> vector<1x28xf32>
    %510 = vector.shape_cast %509 : vector<1x28xf32> to vector<1x1x28xf32>
    %511 = vector.extract_strided_slice %453 {offsets = [14, 0, 0], sizes = [1, 32, 28], strides = [1, 1, 1]} : vector<28x32x28xbf16> to vector<1x32x28xbf16>
    %512 = vector.shape_cast %511 : vector<1x32x28xbf16> to vector<32x28xbf16>
    %cst_107 = arith.constant dense<0.000000e+00> : vector<1x28xf32>
    %513 = tpu.matmul %454, %512, %cst_107 {dimension_numbers = #tpu.dot_dimension_numbers<[1], [0], [0], [1], [0, 0, 1, 1], [], []>} : vector<1x32xbf16>, vector<32x28xbf16>, vector<1x28xf32> -> vector<1x28xf32>
    %514 = vector.shape_cast %513 : vector<1x28xf32> to vector<1x1x28xf32>
    %515 = vector.extract_strided_slice %453 {offsets = [15, 0, 0], sizes = [1, 32, 28], strides = [1, 1, 1]} : vector<28x32x28xbf16> to vector<1x32x28xbf16>
    %516 = vector.shape_cast %515 : vector<1x32x28xbf16> to vector<32x28xbf16>
    %cst_108 = arith.constant dense<0.000000e+00> : vector<1x28xf32>
    %517 = tpu.matmul %454, %516, %cst_108 {dimension_numbers = #tpu.dot_dimension_numbers<[1], [0], [0], [1], [0, 0, 1, 1], [], []>} : vector<1x32xbf16>, vector<32x28xbf16>, vector<1x28xf32> -> vector<1x28xf32>
    %518 = vector.shape_cast %517 : vector<1x28xf32> to vector<1x1x28xf32>
    %519 = vector.extract_strided_slice %453 {offsets = [16, 0, 0], sizes = [1, 32, 28], strides = [1, 1, 1]} : vector<28x32x28xbf16> to vector<1x32x28xbf16>
    %520 = vector.shape_cast %519 : vector<1x32x28xbf16> to vector<32x28xbf16>
    %cst_109 = arith.constant dense<0.000000e+00> : vector<1x28xf32>
    %521 = tpu.matmul %454, %520, %cst_109 {dimension_numbers = #tpu.dot_dimension_numbers<[1], [0], [0], [1], [0, 0, 1, 1], [], []>} : vector<1x32xbf16>, vector<32x28xbf16>, vector<1x28xf32> -> vector<1x28xf32>
    %522 = vector.shape_cast %521 : vector<1x28xf32> to vector<1x1x28xf32>
    %523 = vector.extract_strided_slice %453 {offsets = [17, 0, 0], sizes = [1, 32, 28], strides = [1, 1, 1]} : vector<28x32x28xbf16> to vector<1x32x28xbf16>
    %524 = vector.shape_cast %523 : vector<1x32x28xbf16> to vector<32x28xbf16>
    %cst_110 = arith.constant dense<0.000000e+00> : vector<1x28xf32>
    %525 = tpu.matmul %454, %524, %cst_110 {dimension_numbers = #tpu.dot_dimension_numbers<[1], [0], [0], [1], [0, 0, 1, 1], [], []>} : vector<1x32xbf16>, vector<32x28xbf16>, vector<1x28xf32> -> vector<1x28xf32>
    %526 = vector.shape_cast %525 : vector<1x28xf32> to vector<1x1x28xf32>
    %527 = vector.extract_strided_slice %453 {offsets = [18, 0, 0], sizes = [1, 32, 28], strides = [1, 1, 1]} : vector<28x32x28xbf16> to vector<1x32x28xbf16>
    %528 = vector.shape_cast %527 : vector<1x32x28xbf16> to vector<32x28xbf16>
    %cst_111 = arith.constant dense<0.000000e+00> : vector<1x28xf32>
    %529 = tpu.matmul %454, %528, %cst_111 {dimension_numbers = #tpu.dot_dimension_numbers<[1], [0], [0], [1], [0, 0, 1, 1], [], []>} : vector<1x32xbf16>, vector<32x28xbf16>, vector<1x28xf32> -> vector<1x28xf32>
    %530 = vector.shape_cast %529 : vector<1x28xf32> to vector<1x1x28xf32>
    %531 = vector.extract_strided_slice %453 {offsets = [19, 0, 0], sizes = [1, 32, 28], strides = [1, 1, 1]} : vector<28x32x28xbf16> to vector<1x32x28xbf16>
    %532 = vector.shape_cast %531 : vector<1x32x28xbf16> to vector<32x28xbf16>
    %cst_112 = arith.constant dense<0.000000e+00> : vector<1x28xf32>
    %533 = tpu.matmul %454, %532, %cst_112 {dimension_numbers = #tpu.dot_dimension_numbers<[1], [0], [0], [1], [0, 0, 1, 1], [], []>} : vector<1x32xbf16>, vector<32x28xbf16>, vector<1x28xf32> -> vector<1x28xf32>
    %534 = vector.shape_cast %533 : vector<1x28xf32> to vector<1x1x28xf32>
    %535 = vector.extract_strided_slice %453 {offsets = [20, 0, 0], sizes = [1, 32, 28], strides = [1, 1, 1]} : vector<28x32x28xbf16> to vector<1x32x28xbf16>
    %536 = vector.shape_cast %535 : vector<1x32x28xbf16> to vector<32x28xbf16>
    %cst_113 = arith.constant dense<0.000000e+00> : vector<1x28xf32>
    %537 = tpu.matmul %454, %536, %cst_113 {dimension_numbers = #tpu.dot_dimension_numbers<[1], [0], [0], [1], [0, 0, 1, 1], [], []>} : vector<1x32xbf16>, vector<32x28xbf16>, vector<1x28xf32> -> vector<1x28xf32>
    %538 = vector.shape_cast %537 : vector<1x28xf32> to vector<1x1x28xf32>
    %539 = vector.extract_strided_slice %453 {offsets = [21, 0, 0], sizes = [1, 32, 28], strides = [1, 1, 1]} : vector<28x32x28xbf16> to vector<1x32x28xbf16>
    %540 = vector.shape_cast %539 : vector<1x32x28xbf16> to vector<32x28xbf16>
    %cst_114 = arith.constant dense<0.000000e+00> : vector<1x28xf32>
    %541 = tpu.matmul %454, %540, %cst_114 {dimension_numbers = #tpu.dot_dimension_numbers<[1], [0], [0], [1], [0, 0, 1, 1], [], []>} : vector<1x32xbf16>, vector<32x28xbf16>, vector<1x28xf32> -> vector<1x28xf32>
    %542 = vector.shape_cast %541 : vector<1x28xf32> to vector<1x1x28xf32>
    %543 = vector.extract_strided_slice %453 {offsets = [22, 0, 0], sizes = [1, 32, 28], strides = [1, 1, 1]} : vector<28x32x28xbf16> to vector<1x32x28xbf16>
    %544 = vector.shape_cast %543 : vector<1x32x28xbf16> to vector<32x28xbf16>
    %cst_115 = arith.constant dense<0.000000e+00> : vector<1x28xf32>
    %545 = tpu.matmul %454, %544, %cst_115 {dimension_numbers = #tpu.dot_dimension_numbers<[1], [0], [0], [1], [0, 0, 1, 1], [], []>} : vector<1x32xbf16>, vector<32x28xbf16>, vector<1x28xf32> -> vector<1x28xf32>
    %546 = vector.shape_cast %545 : vector<1x28xf32> to vector<1x1x28xf32>
    %547 = vector.extract_strided_slice %453 {offsets = [23, 0, 0], sizes = [1, 32, 28], strides = [1, 1, 1]} : vector<28x32x28xbf16> to vector<1x32x28xbf16>
    %548 = vector.shape_cast %547 : vector<1x32x28xbf16> to vector<32x28xbf16>
    %cst_116 = arith.constant dense<0.000000e+00> : vector<1x28xf32>
    %549 = tpu.matmul %454, %548, %cst_116 {dimension_numbers = #tpu.dot_dimension_numbers<[1], [0], [0], [1], [0, 0, 1, 1], [], []>} : vector<1x32xbf16>, vector<32x28xbf16>, vector<1x28xf32> -> vector<1x28xf32>
    %550 = vector.shape_cast %549 : vector<1x28xf32> to vector<1x1x28xf32>
    %551 = vector.extract_strided_slice %453 {offsets = [24, 0, 0], sizes = [1, 32, 28], strides = [1, 1, 1]} : vector<28x32x28xbf16> to vector<1x32x28xbf16>
    %552 = vector.shape_cast %551 : vector<1x32x28xbf16> to vector<32x28xbf16>
    %cst_117 = arith.constant dense<0.000000e+00> : vector<1x28xf32>
    %553 = tpu.matmul %454, %552, %cst_117 {dimension_numbers = #tpu.dot_dimension_numbers<[1], [0], [0], [1], [0, 0, 1, 1], [], []>} : vector<1x32xbf16>, vector<32x28xbf16>, vector<1x28xf32> -> vector<1x28xf32>
    %554 = vector.shape_cast %553 : vector<1x28xf32> to vector<1x1x28xf32>
    %555 = vector.extract_strided_slice %453 {offsets = [25, 0, 0], sizes = [1, 32, 28], strides = [1, 1, 1]} : vector<28x32x28xbf16> to vector<1x32x28xbf16>
    %556 = vector.shape_cast %555 : vector<1x32x28xbf16> to vector<32x28xbf16>
    %cst_118 = arith.constant dense<0.000000e+00> : vector<1x28xf32>
    %557 = tpu.matmul %454, %556, %cst_118 {dimension_numbers = #tpu.dot_dimension_numbers<[1], [0], [0], [1], [0, 0, 1, 1], [], []>} : vector<1x32xbf16>, vector<32x28xbf16>, vector<1x28xf32> -> vector<1x28xf32>
    %558 = vector.shape_cast %557 : vector<1x28xf32> to vector<1x1x28xf32>
    %559 = vector.extract_strided_slice %453 {offsets = [26, 0, 0], sizes = [1, 32, 28], strides = [1, 1, 1]} : vector<28x32x28xbf16> to vector<1x32x28xbf16>
    %560 = vector.shape_cast %559 : vector<1x32x28xbf16> to vector<32x28xbf16>
    %cst_119 = arith.constant dense<0.000000e+00> : vector<1x28xf32>
    %561 = tpu.matmul %454, %560, %cst_119 {dimension_numbers = #tpu.dot_dimension_numbers<[1], [0], [0], [1], [0, 0, 1, 1], [], []>} : vector<1x32xbf16>, vector<32x28xbf16>, vector<1x28xf32> -> vector<1x28xf32>
    %562 = vector.shape_cast %561 : vector<1x28xf32> to vector<1x1x28xf32>
    %563 = vector.extract_strided_slice %453 {offsets = [27, 0, 0], sizes = [1, 32, 28], strides = [1, 1, 1]} : vector<28x32x28xbf16> to vector<1x32x28xbf16>
    %564 = vector.shape_cast %563 : vector<1x32x28xbf16> to vector<32x28xbf16>
    %cst_120 = arith.constant dense<0.000000e+00> : vector<1x28xf32>
    %565 = tpu.matmul %454, %564, %cst_120 {dimension_numbers = #tpu.dot_dimension_numbers<[1], [0], [0], [1], [0, 0, 1, 1], [], []>} : vector<1x32xbf16>, vector<32x28xbf16>, vector<1x28xf32> -> vector<1x28xf32>
    %566 = vector.shape_cast %565 : vector<1x28xf32> to vector<1x1x28xf32>
    %567 = tpu.concatenate %458, %462, %466, %470, %474, %478, %482, %486, %490, %494, %498, %502, %506, %510, %514, %518 in 0 : vector<1x1x28xf32>, vector<1x1x28xf32>, vector<1x1x28xf32>, vector<1x1x28xf32>, vector<1x1x28xf32>, vector<1x1x28xf32>, vector<1x1x28xf32>, vector<1x1x28xf32>, vector<1x1x28xf32>, vector<1x1x28xf32>, vector<1x1x28xf32>, vector<1x1x28xf32>, vector<1x1x28xf32>, vector<1x1x28xf32>, vector<1x1x28xf32>, vector<1x1x28xf32> -> vector<16x1x28xf32>
    %568 = tpu.concatenate %522, %526, %530, %534, %538, %542, %546, %550, %554, %558, %562, %566 in 0 : vector<1x1x28xf32>, vector<1x1x28xf32>, vector<1x1x28xf32>, vector<1x1x28xf32>, vector<1x1x28xf32>, vector<1x1x28xf32>, vector<1x1x28xf32>, vector<1x1x28xf32>, vector<1x1x28xf32>, vector<1x1x28xf32>, vector<1x1x28xf32>, vector<1x1x28xf32> -> vector<12x1x28xf32>
    %569 = tpu.concatenate %567, %568 in 0 : vector<16x1x28xf32>, vector<12x1x28xf32> -> vector<28x1x28xf32>
    %570 = vector.shape_cast %409 : vector<1x1xf32> to vector<1x1x1xf32>
    %571 = vector.broadcast %570 : vector<1x1x1xf32> to vector<28x1x28xf32>
    %572 = arith.addf %569, %571 : vector<28x1x28xf32>
    %cst_121 = arith.constant 0.000000e+00 : f32
    %573 = vector.broadcast %cst_121 : f32 to vector<28x1x28xf32>
    %574 = arith.subf %573, %572 : vector<28x1x28xf32>
    %575 = math.exp %574 : vector<28x1x28xf32>
    %cst_122 = arith.constant 1.000000e+00 : f32
    %576 = vector.broadcast %cst_122 : f32 to vector<28x1x28xf32>
    %577 = arith.addf %576, %575 : vector<28x1x28xf32>
    %cst_123 = arith.constant 1.000000e+00 : f32
    %578 = vector.broadcast %cst_123 : f32 to vector<28x1x28xf32>
    %579 = arith.divf %578, %577 : vector<28x1x28xf32>
    %c0_124 = arith.constant 0 : index
    %c0_125 = arith.constant 0 : index
    %c0_126 = arith.constant 0 : index
    %c0_127 = arith.constant 0 : index
    %580 = vector.load %arg12[%c0_124, %c0_125, %c0_126, %c0_127] : memref<1x28x1x28xf32, #tpu.memory_space<vmem>>, vector<1x28x1x28xf32>
    %581 = vector.shape_cast %580 : vector<1x28x1x28xf32> to vector<28x1x28xf32>
    %582 = vector.shape_cast %579 : vector<28x1x28xf32> to vector<1x28x1x28xf32>
    tpu.vector_store %arg12[%c0_124, %c0_125, %c0_126, %c0_127], %582 {strides = array<i32>} : memref<1x28x1x28xf32, #tpu.memory_space<vmem>>, vector<1x28x1x28xf32>,
    return
  }
  func.func @transform_0(%arg0: i32) -> (i32, i32, i32, i32) {
    %c0_i32 = arith.constant 0 : i32
    %c0_i32_0 = arith.constant 0 : i32
    %c0_i32_1 = arith.constant 0 : i32
    %c0_i32_2 = arith.constant 0 : i32
    return %arg0, %c0_i32, %c0_i32_0, %c0_i32_1 : i32, i32, i32, i32
  }
  func.func @transform_1(%arg0: i32) -> (i32, i32) {
    %c0_i32 = arith.constant 0 : i32
    %c0_i32_0 = arith.constant 0 : i32
    %c0_i32_1 = arith.constant 0 : i32
    return %c0_i32, %c0_i32_0 : i32, i32
  }
  func.func @transform_2(%arg0: i32) -> (i32, i32) {
    %c0_i32 = arith.constant 0 : i32
    %c0_i32_0 = arith.constant 0 : i32
    %c0_i32_1 = arith.constant 0 : i32
    return %c0_i32, %c0_i32_0 : i32, i32
  }
  func.func @transform_3(%arg0: i32) -> (i32, i32) {
    %c0_i32 = arith.constant 0 : i32
    %c0_i32_0 = arith.constant 0 : i32
    %c0_i32_1 = arith.constant 0 : i32
    return %c0_i32, %c0_i32_0 : i32, i32
  }
  func.func @transform_4(%arg0: i32) -> (i32, i32) {
    %c0_i32 = arith.constant 0 : i32
    %c0_i32_0 = arith.constant 0 : i32
    %c0_i32_1 = arith.constant 0 : i32
    return %c0_i32, %c0_i32_0 : i32, i32
  }
  func.func @transform_5(%arg0: i32) -> (i32, i32) {
    %c0_i32 = arith.constant 0 : i32
    %c0_i32_0 = arith.constant 0 : i32
    %c0_i32_1 = arith.constant 0 : i32
    return %c0_i32, %c0_i32_0 : i32, i32
  }
  func.func @transform_6(%arg0: i32) -> (i32, i32) {
    %c0_i32 = arith.constant 0 : i32
    %c0_i32_0 = arith.constant 0 : i32
    %c0_i32_1 = arith.constant 0 : i32
    return %c0_i32, %c0_i32_0 : i32, i32
  }
  func.func @transform_7(%arg0: i32) -> (i32, i32) {
    %c0_i32 = arith.constant 0 : i32
    %c0_i32_0 = arith.constant 0 : i32
    %c0_i32_1 = arith.constant 0 : i32
    return %c0_i32, %c0_i32_0 : i32, i32
  }
  func.func @transform_8(%arg0: i32) -> (i32, i32) {
    %c0_i32 = arith.constant 0 : i32
    %c0_i32_0 = arith.constant 0 : i32
    %c0_i32_1 = arith.constant 0 : i32
    return %c0_i32, %c0_i32_0 : i32, i32
  }
  func.func @transform_9(%arg0: i32) -> (i32, i32) {
    %c0_i32 = arith.constant 0 : i32
    %c0_i32_0 = arith.constant 0 : i32
    %c0_i32_1 = arith.constant 0 : i32
    return %c0_i32, %c0_i32_0 : i32, i32
  }
  func.func @transform_10(%arg0: i32) -> (i32, i32) {
    %c0_i32 = arith.constant 0 : i32
    %c0_i32_0 = arith.constant 0 : i32
    %c0_i32_1 = arith.constant 0 : i32
    return %c0_i32, %c0_i32_0 : i32, i32
  }
  func.func @transform_11(%arg0: i32) -> (i32, i32, i32, i32) {
    %c0_i32 = arith.constant 0 : i32
    %c0_i32_0 = arith.constant 0 : i32
    %c0_i32_1 = arith.constant 0 : i32
    %c0_i32_2 = arith.constant 0 : i32
    return %arg0, %c0_i32, %c0_i32_0, %c0_i32_1 : i32, i32, i32, i32
  }
}

</mosaic_0001>

<bundles_post_ra>
// kernel: autoencoder_forward.1
= control target key start
LH: loop header
LB: loop body
LE: loop exit
PB: predicated region body
PF: predicated region fallthrough
CT: control target
= control target key end

     0   :  { %s15109_s0 = inlined_call_operand.vmem [shape: f32[2,28,1,28], index: 0, kind: input, shape index: {}]   ;;  %s15110_s1 = inlined_call_operand.vmem [shape: f32[16,9], index: 1, kind: input, shape index: {}]   ;;  %s15111_s2 = inlined_call_operand.vmem [shape: f32[16,1], index: 2, kind: input, shape index: {}]   ;;  %s15112_s3 = inlined_call_operand.vmem [shape: f32[8,144], index: 3, kind: input, shape index: {}]   ;;  %s15113_s4 = inlined_call_operand.vmem [shape: f32[8,1], index: 4, kind: input, shape index: {}]   ;;  %s15114_s5 = inlined_call_operand.vmem [shape: f32[16,72], index: 5, kind: input, shape index: {}]   ;;  %s15115_s6 = inlined_call_operand.vmem [shape: f32[16,1], index: 6, kind: input, shape index: {}]   ;;  %s15116_s7 = inlined_call_operand.vmem [shape: f32[8,400], index: 7, kind: input, shape index: {}]   ;;  %s15117_s8 = inlined_call_operand.vmem [shape: f32[8,1], index: 8, kind: input, shape index: {}]   ;;  %s15118_s9 = inlined_call_operand.vmem [shape: f32[1,32], index: 9, kind: input, shape index: {}]   ;;  %s15119_s10 = inlined_call_operand.<no memory space> [shape: f32[1,1], index: 10, kind: input, shape index: {}]   ;;  %s15120_s11 = inlined_call_operand.hbm [shape: f32[2,28,1,28], index: 11, kind: output, shape index: {}]  }
   0x1   :  { %15174 = sst [smem:[#allocation39_spill]] %s15109_s0  ;;  %v16_v0 = vstv %s15119_s10 }
   0x2   :  { %15175 = sst [smem:[#allocation40_spill]] %s15110_s1  ;;  %17 = vst [vmem:[#allocation2] sm:$0x1] %v16_v0 }
   0x3   :  { %15176 = sst [smem:[#allocation41_spill]] %s15111_s2 }
   0x4   :  { %15177 = sst [smem:[#allocation42_spill]] %s15112_s3 }
   0x5   :  { %15178 = sst [smem:[#allocation43_spill]] %s15113_s4 }
   0x6   :  { %18 = vsyncpa [#allocation4], 0 }
   0x7   :  { %20 = vsyncpa [#allocation4 + $0x1], 0  ;;  %s10564_s19 = smov 0   ;;  %s10566_s20 = smov 0  }
   0x8   :  { %s10568_s21 = smov 0   ;;  %s10570_s22 = smov 0  }
   0x9 LB: > { %s10585_s10 = sadd.s32 4294967295, %s10470_s22   ;;  %s7838_s23 = sadd.s32 4294967294, %s10470_s22   ;;  %s10470_s22 = sphi %s10570_s22, %s15330_s22   ;;  %s10466_s21 = sphi %s10568_s21, %s15329_s21   ;;  %s10462_s20 = sphi %s10566_s20, %s15328_s20   ;;  %s10458_s19 = sphi %s10564_s19, %s15327_s19  }
   0xa   : > { %s10589_s24 = sadd.s32 1, %s10470_s22   ;;  %s269_s25 = sadd.s32 1, %s10466_s21 }
   0xb   : > { %s266_s26 = ssub.s32 %s10470_s22, %s10589_s24  ;;  %p279_p0 = scmp.ne.s32.totalorder %s10466_s21, %s10462_s20 }
   0xc   : > { %p267_p1 = scmp.eq.s32.totalorder %s266_s26, 0  ;;  %p280_p2 = scmp.eq.s32.totalorder %s10585_s10, 1 }
   0xd   : > { %p285_p3 = scmp.ne.s32.totalorder %s10462_s20, %s10458_s19  ;;  %p286_p4 = scmp.eq.s32.totalorder %s7838_s23, 1 }
   0xe   : > { %s10600_s27 = scalar_select %p267_p1, %s10466_s21, %s269_s25  }
   0xf   : > { %p10602_p5 = por %p280_p2, %p279_p0  ;;  %p10606_p6 = por %p286_p4, %p285_p3 }
  0x10   : > { %p7841_p7 = scmp.ge.s32.totalorder %s10470_s22, 1  ;;  %p341_p8 = scmp.lt.s32.totalorder %s10470_s22, 3 }
  0x12   : > { %p342_p9 = pnand %p7841_p7, %p341_p8 }
  0x14   : > { %345 = sbr.rel (%p342_p9) target bundleno = 4652 (0x122c), region = 64 }
  0x1b   : > { %p380_p10 = scmp.lt.s32.totalorder %s10585_s10, 1  ;;  %v15123_v1 = vmov 0   ;;  %v15121_v2 = vmov 0.0   ;;  %s15181_s0 = sld [smem:[#allocation39_spill]]  ;;  %vm641_vm0 = vcmask 7168   ;;  %vm670_vm1 = vcmask 236544  }
  0x1c   : > { %9045 = vset.pattern.permute.xlu0 %v15123_v1  ;;  %9044 = vset.pattern.permute.xlu1 %v15123_v1  ;;  %s15134_s16 = smov 1   ;;  %s15182_s2 = sld [smem:[#allocation41_spill]]  ;;  %v749_v56 = vrot.slane %v15121_v2, 6  ;;  %v709_v57 = vrot.slane %v15121_v2, 7  ;;  %vm15164_vm2 = vmmov 0   ;;  %vm998_vm3 = vcmask 1040384  }
  0x1d   : > { %s381_s30 = scalar_select %p380_p10, %s10585_s10, 1  ;;  %8555 = vmatprep.subr.bf16.mxu0 %v15121_v2  ;;  %8561 = vmatprep.subr.bf16.mxu1 %v15121_v2  ;;  %vm1009_vm4 = vcmask 1041408   ;;  %vm1020_vm5 = vcmask 1042432   ;;  %vm1031_vm6 = vcmask 1043456   ;;  %vm1042_vm7 = vcmask 1044480  }
  0x1e   : > { %s15150_s26 = smov 126   ;;  %8557 = vmatprep.mubr.msk.bf16.mxu0 %vm15164_vm2, %v15121_v2  ;;  %8563 = vmatprep.mubr.msk.bf16.mxu1 %vm15164_vm2, %v15121_v2  ;;  %vm1053_vm8 = vcmask 1045504   ;;  %vm1064_vm9 = vcmask 1046528   ;;  %s15183_s1 = sld [smem:[#allocation40_spill]]  ;;  %vm1086_vm10 = vcmask 72704   ;;  %vm2112_vm11 = vcmask 15360  }
  0x1f   : > { %s8910_s12 = smul.u32 28, %s381_s30  ;;  %s15144_s30 = smov 127   ;;  %vm2133_vm12 = vcmask 23552   ;;  %vm2154_vm13 = vcmask 31744   ;;  %vm15170_vm14 = vcmask 39936   ;;  %vm15171_vm15 = vcmask 48128  }
  0x20   : > { %s15148_s17 = smov 124   ;;  %s15136_s18 = smov 122  }
  0x21   : > { %s10621_s15 = scalar_lea.vmem %s15181_s0, %s8910_s12  ;;  %s15138_s23 = smov 120  }
  0x22   : > { %v7842_v3 = vld [vmem:[%s10621_s15] ss:$0 sm:$0xff]  ;;  %v7844_v4 = vld [vmem:[%s10621_s15 + $0x2] ss:$0 sm:$0xff]  ;;  %v7843_v5 = vld [vmem:[%s10621_s15 + $0x1] ss:$0 sm:$0xff] }
  0x23   : > { %v8979_v6 = vpack.i.bf16 %v7844_v4, %v7842_v3  ;;  %v7845_v7 = vld [vmem:[%s10621_s15 + $0x3] ss:$0 sm:$0xff]  ;;  %v7846_v8 = vld [vmem:[%s10621_s15 + $0x4] ss:$0 sm:$0xff]  ;;  %v7847_v9 = vld [vmem:[%s10621_s15 + $0x5] ss:$0 sm:$0xff] }
  0x24   : > { %v8989_v10 = vpack.i.bf16 %v7846_v8, %v7847_v9  ;;  %v7848_v11 = vld [vmem:[%s10621_s15 + $0x6] ss:$0 sm:$0xff]  ;;  %v7850_v12 = vld [vmem:[%s10621_s15 + $0x8] ss:$0 sm:$0xff]  ;;  %v8984_v13 = vpack.i.bf16 %v7845_v7, %v7843_v5  ;;  %v7849_v15 = vld [vmem:[%s10621_s15 + $0x7] ss:$0 sm:$0xff] }
  0x25   : > { %8980 = vrot.lane.b32.xlu0 %v8979_v6, %s15134_s16  ;;  %v8994_v14 = vpack.i.bf16 %v7850_v12, %v7848_v11  ;;  %v7851_v16 = vld [vmem:[%s10621_s15 + $0x9] ss:$0 sm:$0xff]  ;;  %v7852_v17 = vld [vmem:[%s10621_s15 + $0xa] ss:$0 sm:$0xff]  ;;  %v7853_v18 = vld [vmem:[%s10621_s15 + $0xb] ss:$0 sm:$0xff] }
  0x26   : > { %8990 = vrot.lane.b32.xlu1 %v8989_v10, %s15134_s16  ;;  %v8999_v19 = vpack.i.bf16 %v7851_v16, %v7849_v15  ;;  %v9004_v20 = vpack.i.bf16 %v7853_v18, %v7852_v17  ;;  %v7854_v21 = vld [vmem:[%s10621_s15 + $0xc] ss:$0 sm:$0xff]  ;;  %v7856_v22 = vld [vmem:[%s10621_s15 + $0xe] ss:$0 sm:$0xff]  ;;  %v7855_v23 = vld [vmem:[%s10621_s15 + $0xd] ss:$0 sm:$0xff] }
  0x27   : > { %v7857_v24 = vld [vmem:[%s10621_s15 + $0xf] ss:$0 sm:$0xff]  ;;  %v9009_v25 = vpack.i.bf16 %v7856_v22, %v7854_v21  ;;  %v7858_v27 = vld [vmem:[%s10621_s15 + $0x10] ss:$0 sm:$0xff]  ;;  %v7859_v28 = vld [vmem:[%s10621_s15 + $0x11] ss:$0 sm:$0xff] }
  0x28   : > { %v9014_v26 = vpack.i.bf16 %v7857_v24, %v7855_v23  ;;  %v7860_v29 = vld [vmem:[%s10621_s15 + $0x12] ss:$0 sm:$0xff]  ;;  %v7862_v30 = vld [vmem:[%s10621_s15 + $0x14] ss:$0 sm:$0xff]  ;;  %v9019_v31 = vpack.i.bf16 %v7859_v28, %v7858_v27  ;;  %v7861_v33 = vld [vmem:[%s10621_s15 + $0x13] ss:$0 sm:$0xff] }
  0x29   : > { %8985 = vrot.lane.b32.xlu0 %v8984_v13, %s15134_s16  ;;  %v9024_v32 = vpack.i.bf16 %v7862_v30, %v7860_v29  ;;  %v7863_v34 = vld [vmem:[%s10621_s15 + $0x15] ss:$0 sm:$0xff]  ;;  %v7865_v36 = vld [vmem:[%s10621_s15 + $0x17] ss:$0 sm:$0xff]  ;;  %v7866_v37 = vld [vmem:[%s10621_s15 + $0x18] ss:$0 sm:$0xff] }
  0x2a   : > { %8995 = vrot.lane.b32.xlu1 %v8994_v14, %s15134_s16  ;;  %v9029_v35 = vpack.i.bf16 %v7863_v34, %v7861_v33  ;;  %v7864_v38 = vld [vmem:[%s10621_s15 + $0x16] ss:$0 sm:$0xff]  ;;  %v7867_v39 = vld [vmem:[%s10621_s15 + $0x19] ss:$0 sm:$0xff]  ;;  %v7868_v40 = vld [vmem:[%s10621_s15 + $0x1a] ss:$0 sm:$0xff]  ;;  %v9034_v41 = vpack.i.bf16 %v7866_v37, %v7865_v36 }
  0x2b   : > { %v9039_v42 = vpack.i.bf16 %v7867_v39, %v7868_v40  ;;  %v7869_v43 = vld [vmem:[%s10621_s15 + $0x1b] ss:$0 sm:$0xff]  ;;  %v415_v44 = vld [vmem:[%s15182_s2] sm:$0xff]  ;;  %v416_v45 = vld [vmem:[%s15182_s2 + $0x8] sm:$0xff]  ;;  %s10482_s25 = smov 118   ;;  %s10483_s12 = smov 116  }
  0x2c   : > { %s10484_s13 = smov 114   ;;  %s10485_s14 = smov 112  }
  0x2d   : > { %9000 = vrot.lane.b32.xlu0 %v8999_v19, %s15134_s16  ;;  %s10486_s15 = smov 110   ;;  %s15254_s3 = sld [smem:[#allocation42_spill]] }
  0x2e   : > { %9005 = vrot.lane.b32.xlu1 %v9004_v20, %s15134_s16  ;;  %s15256_s4 = sld [smem:[#allocation43_spill]]  ;;  %s15272_s0 = smov 7  }
  0x2f   : > { %s15274_s2 = smov 5  }
  0x31   : > { %9010 = vrot.lane.b32.xlu0 %v9009_v25, %s15134_s16 }
  0x32   : > { %9015 = vrot.lane.b32.xlu1 %v9014_v26, %s15134_s16 }
  0x35   : > { %9020 = vrot.lane.b32.xlu0 %v9019_v31, %s15134_s16 }
  0x36   : > { %9025 = vrot.lane.b32.xlu1 %v9024_v32, %s15134_s16 }
  0x39   : > { %9030 = vrot.lane.b32.xlu0 %v9029_v35, %s15134_s16 }
  0x3a   : > { %601 = vrot.lane.b32.xlu1 %v7864_v38, %s15134_s16 }
  0x3d   : > { %9035 = vrot.lane.b32.xlu0 %v9034_v41, %s15134_s16 }
  0x3e   : > { %9040 = vrot.lane.b32.xlu1 %v9039_v42, %s15134_s16 }
  0x41   : > { %611 = vrot.lane.b32.xlu0 %v7869_v43, %s15134_s16  ;;  %s15142_s16 = smov 125  }
  0x42   : > { %2281 = vperm.xlu1 %9044, %v415_v44  }
  0x45   : > { %2286 = vperm.xlu0 %9045, %v416_v45  }
  0x97   : > { %v8981_v46 = vpop.permute.xlu0 %8980 }
  0x98   : > { %v8983_v47 = vunpack.i.h.bf16 %v8981_v46  ;;  %v8982_v48 = vunpack.i.l.bf16 %v8981_v46  ;;  %v8991_v49 = vpop.permute.xlu1 %8990 }
  0x99   : > { %v8992_v50 = vunpack.i.l.bf16 %v8991_v49  ;;  %v8993_v55 = vunpack.i.h.bf16 %v8991_v49 }
  0x9a   : > { %v644_v51 = vsel %vm641_vm0, 0.0, %v8983_v47  ;;  %v642_v52 = vsel %vm641_vm0, 0.0, %v8982_v48 }
  0x9b   : > { %v10675_v53 = vsel %vm670_vm1, %v642_v52, 0.0  ;;  %v8986_v54 = vpop.permute.xlu0 %8985  ;;  %v10680_v58 = vsel %vm670_vm1, %v644_v51, 0.0  ;;  %v647_v61 = vsel %vm641_vm0, 0.0, %v8992_v50  ;;  %v646_v7 = vsel %vm641_vm0, 0.0, %v8993_v55 }
  0x9c   : > { %v8988_v59 = vunpack.i.h.bf16 %v8986_v54  ;;  %v8987_v60 = vunpack.i.l.bf16 %v8986_v54  ;;  %v8996_v62 = vpop.permute.xlu1 %8995  ;;  %v859_v63 = vrot.slane %v10675_v53, 3  ;;  %v819_v0 = vrot.slane %v10675_v53, 4 }
  0x9d   : > { %v8998_v3 = vunpack.i.h.bf16 %v8996_v62  ;;  %v8997_v4 = vunpack.i.l.bf16 %v8996_v62  ;;  %v10689_v8 = vsel %vm670_vm1, %v647_v61, 0.0  ;;  %v750_v15 = vrot.slane %v10680_v58, 6 }
  0x9e   : > { %v645_v5 = vsel %vm641_vm0, 0.0, %v8988_v59  ;;  %v643_v6 = vsel %vm641_vm0, 0.0, %v8987_v60  ;;  %v9051_v9 = vpack.i.bf16 %v859_v63, %v749_v56  ;;  %v9046_v10 = vpack.i.bf16 %v819_v0, %v709_v57 }
  0x9f   : > { %v9001_v11 = vpop.permute.xlu0 %9000  ;;  %v10692_v12 = vsel %vm670_vm1, %v645_v5, 0.0  ;;  %v648_v13 = vsel %vm641_vm0, 0.0, %v8997_v4  ;;  %v10696_v14 = vsel %vm670_vm1, %v643_v6, 0.0  ;;  %v650_v16 = vsel %vm641_vm0, 0.0, %v8998_v3 }
  0xa0   : > { %9052 = vrot.lane.b32.xlu1 %v9051_v9, %s15150_s26  ;;  %9047 = vrot.lane.b32.xlu0 %v9046_v10, %s15144_s30  ;;  %v10703_v17 = vsel %vm670_vm1, %v648_v13, 0.0  ;;  %v710_v18 = vrot.slane %v10680_v58, 7  ;;  %v928_v19 = vrot.slane %v10696_v14, 1  ;;  %v9006_v20 = vpop.permute.xlu1 %9005  ;;  %v9061_v21 = vpack.i.bf16 %v10696_v14, %v750_v15 }
  0xa1   : > { %v9003_v22 = vunpack.i.h.bf16 %v9001_v11  ;;  %v9002_v23 = vunpack.i.l.bf16 %v9001_v11  ;;  %v751_v24 = vrot.slane %v10689_v8, 6  ;;  %v860_v26 = vrot.slane %v10692_v12, 3 }
  0xa2   : > { %v9056_v25 = vpack.i.bf16 %v928_v19, %v710_v18  ;;  %v711_v27 = vrot.slane %v10689_v8, 7  ;;  %v820_v28 = vrot.slane %v10692_v12, 4  ;;  %v9008_v29 = vunpack.i.h.bf16 %v9006_v20 }
  0xa3   : > { %v9007_v30 = vunpack.i.l.bf16 %v9006_v20  ;;  %v649_v31 = vsel %vm641_vm0, 0.0, %v9002_v23  ;;  %v10716_v32 = vsel %vm670_vm1, %v646_v7, 0.0  ;;  %v9011_v33 = vpop.permute.xlu0 %9010  ;;  %v10719_v34 = vsel %vm670_vm1, %v650_v16, 0.0 }
  0xa4   : > { %9062 = vrot.lane.b32.xlu1 %v9061_v21, %s15150_s26  ;;  %9057 = vrot.lane.b32.xlu0 %v9056_v25, %s15144_s30  ;;  %v651_v35 = vsel %vm641_vm0, 0.0, %v9003_v22  ;;  %v9071_v36 = vpack.i.bf16 %v751_v24, %v860_v26  ;;  %v861_v37 = vrot.slane %v10703_v17, 3  ;;  %v9066_v38 = vpack.i.bf16 %v711_v27, %v820_v28  ;;  %v9016_v46 = vpop.permute.xlu1 %9015 }
  0xa5   : > { %v653_v39 = vsel %vm641_vm0, 0.0, %v9008_v29  ;;  %v821_v40 = vrot.slane %v10703_v17, 4  ;;  %v929_v41 = vrot.slane %v10716_v32, 1  ;;  %v652_v42 = vsel %vm641_vm0, 0.0, %v9007_v30 }
  0xa6   : > { %v9013_v43 = vunpack.i.h.bf16 %v9011_v33  ;;  %v9012_v44 = vunpack.i.l.bf16 %v9011_v33  ;;  %v10728_v45 = vsel %vm670_vm1, %v649_v31, 0.0  ;;  %v9081_v47 = vpack.i.bf16 %v861_v37, %v10716_v32 }
  0xa7   : > { %v9076_v48 = vpack.i.bf16 %v821_v40, %v929_v41  ;;  %v752_v49 = vrot.slane %v10719_v34, 6  ;;  %v712_v50 = vrot.slane %v10719_v34, 7  ;;  %v10736_v51 = vsel %vm670_vm1, %v651_v35, 0.0  ;;  %v9021_v60 = vpop.permute.xlu0 %9020 }
  0xa8   : > { %9072 = vrot.lane.b32.xlu1 %v9071_v36, %s15150_s26  ;;  %9067 = vrot.lane.b32.xlu0 %v9066_v38, %s15144_s30  ;;  %v654_v52 = vsel %vm641_vm0, 0.0, %v9012_v44  ;;  %v930_v54 = vrot.slane %v10728_v45, 1  ;;  %v9017_v55 = vunpack.i.l.bf16 %v9016_v46  ;;  %v10741_v56 = vsel %vm670_vm1, %v653_v39, 0.0  ;;  %v9026_v9 = vpop.permute.xlu1 %9025 }
  0xa9   : > { %v656_v57 = vsel %vm641_vm0, 0.0, %v9013_v43  ;;  %v10745_v59 = vsel %vm670_vm1, %v652_v42, 0.0  ;;  %v10750_v61 = vsel %vm670_vm1, %v654_v52, 0.0  ;;  %v9091_v62 = vpack.i.bf16 %v10728_v45, %v752_v49 }
  0xaa   : > { %v9086_v63 = vpack.i.bf16 %v930_v54, %v712_v50  ;;  %v862_v0 = vrot.slane %v10736_v51, 3  ;;  %v822_v3 = vrot.slane %v10736_v51, 4  ;;  %v931_v4 = vrot.slane %v10745_v59, 1 }
  0xab   : > { %v9018_v5 = vunpack.i.h.bf16 %v9016_v46  ;;  %v655_v6 = vsel %vm641_vm0, 0.0, %v9017_v55  ;;  %v9022_v7 = vunpack.i.l.bf16 %v9021_v60  ;;  %v10758_v10 = vsel %vm670_vm1, %v656_v57, 0.0  ;;  %v9031_v28 = vpop.permute.xlu0 %9030 }
  0xac   : > { %9082 = vrot.lane.b32.xlu1 %v9081_v47, %s15150_s26  ;;  %9077 = vrot.lane.b32.xlu0 %v9076_v48, %s15144_s30  ;;  %v9023_v11 = vunpack.i.h.bf16 %v9021_v60  ;;  %v753_v13 = vrot.slane %v10741_v56, 6  ;;  %v863_v15 = vrot.slane %v10750_v61, 3  ;;  %v9101_v16 = vpack.i.bf16 %v10745_v59, %v862_v0  ;;  %v602_v48 = vpop.permute.xlu1 %601 }
  0xad   : > { %v9096_v18 = vpack.i.bf16 %v931_v4, %v822_v3  ;;  %v713_v19 = vrot.slane %v10741_v56, 7  ;;  %v823_v20 = vrot.slane %v10750_v61, 4  ;;  %v9027_v21 = vunpack.i.l.bf16 %v9026_v9 }
  0xae   : > { %v10768_v22 = vsel %vm670_vm1, %v655_v6, 0.0  ;;  %v657_v23 = vsel %vm641_vm0, 0.0, %v9018_v5  ;;  %v658_v24 = vsel %vm641_vm0, 0.0, %v9022_v7  ;;  %v659_v25 = vsel %vm641_vm0, 0.0, %v9023_v11 }
  0xaf   : > { %v9111_v26 = vpack.i.bf16 %v863_v15, %v753_v13  ;;  %v754_v27 = vrot.slane %v10758_v10, 6  ;;  %v9106_v29 = vpack.i.bf16 %v823_v20, %v713_v19  ;;  %v660_v30 = vsel %vm641_vm0, 0.0, %v9027_v21  ;;  %v9036_v47 = vpop.permute.xlu0 %9035 }
  0xb0   : > { %9092 = vrot.lane.b32.xlu1 %v9091_v62, %s15150_s26  ;;  %9087 = vrot.lane.b32.xlu0 %v9086_v63, %s15144_s30  ;;  %v714_v31 = vrot.slane %v10758_v10, 7  ;;  %v932_v33 = vrot.slane %v10768_v22, 1  ;;  %v10780_v35 = vsel %vm670_vm1, %v657_v23, 0.0  ;;  %v10783_v36 = vsel %vm670_vm1, %v658_v24, 0.0 }
  0xb1   : > { %v9028_v37 = vunpack.i.h.bf16 %v9026_v9  ;;  %v9032_v38 = vunpack.i.l.bf16 %v9031_v28  ;;  %v10786_v39 = vsel %vm670_vm1, %v659_v25, 0.0  ;;  %v10789_v40 = vsel %vm670_vm1, %v660_v30, 0.0 }
  0xb2   : > { %v9121_v41 = vpack.i.bf16 %v10768_v22, %v754_v27  ;;  %v9116_v42 = vpack.i.bf16 %v932_v33, %v714_v31  ;;  %v864_v43 = vrot.slane %v10780_v35, 3  ;;  %v824_v44 = vrot.slane %v10780_v35, 4 }
  0xb3   : > { %v933_v46 = vrot.slane %v10783_v36, 1  ;;  %v662_v49 = vsel %vm641_vm0, 0.0, %v9028_v37  ;;  %v9033_v50 = vunpack.i.h.bf16 %v9031_v28  ;;  %v661_v52 = vsel %vm641_vm0, 0.0, %v9032_v38 }
  0xb4   : > { %9102 = vrot.lane.b32.xlu1 %v9101_v16, %s15150_s26  ;;  %9097 = vrot.lane.b32.xlu0 %v9096_v18, %s15144_s30  ;;  %v755_v54 = vrot.slane %v10786_v39, 6  ;;  %v865_v55 = vrot.slane %v10789_v40, 3  ;;  %v715_v57 = vrot.slane %v10786_v39, 7  ;;  %v825_v60 = vrot.slane %v10789_v40, 4  ;;  %v9041_v16 = vpop.permute.xlu1 %9040 }
  0xb5   : > { %v9038_v62 = vunpack.i.h.bf16 %v9036_v47  ;;  %v9131_v63 = vpack.i.bf16 %v10783_v36, %v864_v43  ;;  %v9126_v0 = vpack.i.bf16 %v933_v46, %v824_v44  ;;  %v664_v3 = vsel %vm641_vm0, 0.0, %v602_v48  ;;  %v612_v43 = vpop.permute.xlu0 %611 }
  0xb6   : > { %v9037_v4 = vunpack.i.l.bf16 %v9036_v47  ;;  %v10808_v5 = vsel %vm670_vm1, %v662_v49, 0.0  ;;  %v10811_v6 = vsel %vm670_vm1, %v661_v52, 0.0  ;;  %v663_v7 = vsel %vm641_vm0, 0.0, %v9033_v50 }
  0xb7   : > { %v9141_v9 = vpack.i.bf16 %v865_v55, %v755_v54  ;;  %v9136_v11 = vpack.i.bf16 %v825_v60, %v715_v57  ;;  %v10815_v13 = vsel %vm670_vm1, %v664_v3, 0.0  ;;  %v666_v15 = vsel %vm641_vm0, 0.0, %v9038_v62 }
  0xb8   : > { %9112 = vrot.lane.b32.xlu1 %v9111_v26, %s15150_s26  ;;  %9107 = vrot.lane.b32.xlu0 %v9106_v29, %s15144_s30  ;;  %v665_v18 = vsel %vm641_vm0, 0.0, %v9037_v4  ;;  %v756_v19 = vrot.slane %v10808_v5, 6  ;;  %v716_v20 = vrot.slane %v10808_v5, 7  ;;  %v934_v21 = vrot.slane %v10811_v6, 1 }
  0xb9   : > { %v10825_v23 = vsel %vm670_vm1, %v663_v7, 0.0  ;;  %v9043_v24 = vunpack.i.h.bf16 %v9041_v16  ;;  %v9042_v25 = vunpack.i.l.bf16 %v9041_v16  ;;  %v935_v26 = vrot.slane %v10815_v13, 1 }
  0xba   : > { %v10829_v27 = vsel %vm670_vm1, %v666_v15, 0.0  ;;  %v10832_v28 = vsel %vm670_vm1, %v665_v18, 0.0  ;;  %v9151_v29 = vpack.i.bf16 %v10811_v6, %v756_v19  ;;  %v9146_v30 = vpack.i.bf16 %v934_v21, %v716_v20 }
  0xbb   : > { %v866_v31 = vrot.slane %v10825_v23, 3  ;;  %v826_v33 = vrot.slane %v10825_v23, 4  ;;  %v667_v37 = vsel %vm641_vm0, 0.0, %v9043_v24  ;;  %v668_v38 = vsel %vm641_vm0, 0.0, %v9042_v25 }
  0xbc   : > { %9122 = vrot.lane.b32.xlu1 %v9121_v41, %s15150_s26  ;;  %9117 = vrot.lane.b32.xlu0 %v9116_v42, %s15144_s30  ;;  %v717_v41 = vrot.slane %v10832_v28, 7  ;;  %v827_v42 = vrot.slane %v10829_v27, 4  ;;  %v757_v47 = vrot.slane %v10832_v28, 6  ;;  %v867_v48 = vrot.slane %v10829_v27, 3 }
  0xbd   : > { %v9161_v44 = vpack.i.bf16 %v10815_v13, %v866_v31  ;;  %v9156_v46 = vpack.i.bf16 %v935_v26, %v826_v33  ;;  %v10853_v49 = vsel %vm670_vm1, %v667_v37, 0.0  ;;  %v10856_v50 = vsel %vm670_vm1, %v668_v38, 0.0 }
  0xbe   : > { %v669_v52 = vsel %vm641_vm0, 0.0, %v612_v43  ;;  %v9166_v54 = vpack.i.bf16 %v827_v42, %v717_v41  ;;  %v9171_v55 = vpack.i.bf16 %v867_v48, %v757_v47  ;;  %v718_v57 = vrot.slane %v10856_v50, 7 }
  0xbf   : > { %v936_v60 = vrot.slane %v10853_v49, 1  ;;  %v758_v62 = vrot.slane %v10856_v50, 6  ;;  %v799_v25 = vrot.slane %v10675_v53, 5  ;;  %v908_v42 = vrot.slane %v10696_v14, 2 }
  0xc0   : > { %9132 = vrot.lane.b32.xlu1 %v9131_v63, %s15150_s26  ;;  %9127 = vrot.lane.b32.xlu0 %v9126_v0, %s15144_s30  ;;  %v10865_v63 = vsel %vm670_vm1, %v669_v52, 0.0  ;;  %v937_v0 = vrot.slane %v15121_v2, 1  ;;  %v800_v53 = vrot.slane %v10692_v12, 5  ;;  %vm2217_vm1 = vcmask 56320  }
  0xc1   : > { %v828_v3 = vrot.slane %v10865_v63, 4  ;;  %v868_v4 = vrot.slane %v10865_v63, 3  ;;  %v9176_v7 = vpack.i.bf16 %v936_v60, %v718_v57  ;;  %v10878_v16 = vpop.permute.xlu1 %2281  ;;  %v10478_v57 = vmov 65535  }
  0xc2   : > { %v1090_v60 = vsel %vm1031_vm6, 4294967295, %v10478_v57 }
  0xc3   : > { %v9191_v15 = vpack.i.bf16 %v15121_v2, %v868_v4 }
  0xc4   : > { %9142 = vrot.lane.b32.xlu1 %v9141_v9, %s15150_s26  ;;  %9137 = vrot.lane.b32.xlu0 %v9136_v11, %s15144_s30  ;;  %v9181_v9 = vpack.i.bf16 %v10853_v49, %v758_v62  ;;  %v9186_v11 = vpack.i.bf16 %v937_v0, %v828_v3  ;;  %v10880_v18 = vpop.permute.xlu0 %2286 }
  0xc8   : > { %9152 = vrot.lane.b32.xlu1 %v9151_v29, %s15150_s26  ;;  %9147 = vrot.lane.b32.xlu0 %v9146_v30, %s15144_s30 }
  0xcc   : > { %9162 = vrot.lane.b32.xlu1 %v9161_v44, %s15150_s26  ;;  %9157 = vrot.lane.b32.xlu0 %v9156_v46, %s15144_s30 }
  0xd0   : > { %9167 = vrot.lane.b32.xlu1 %v9166_v54, %s15144_s30  ;;  %9172 = vrot.lane.b32.xlu0 %v9171_v55, %s15150_s26 }
  0xd4   : > { %9177 = vrot.lane.b32.xlu1 %v9176_v7, %s15144_s30  ;;  %9182 = vrot.lane.b32.xlu0 %v9181_v9, %s15150_s26 }
  0xd8   : > { %9187 = vrot.lane.b32.xlu1 %v9186_v11, %s15144_s30  ;;  %9192 = vrot.lane.b32.xlu0 %v9191_v15, %s15150_s26  ;;  %v10900_v15 = vsel %vm1042_vm7, %v1090_v60, 0 }
 0x112   : > { %v9053_v19 = vpop.permute.xlu1 %9052  ;;  %v9048_v20 = vpop.permute.xlu0 %9047 }
 0x113   : > { %v9054_v21 = vunpack.i.l.bf16 %v9053_v19  ;;  %v9049_v24 = vunpack.i.l.bf16 %v9048_v20  ;;  %v9050_v29 = vunpack.i.h.bf16 %v9048_v20  ;;  %v9055_v37 = vunpack.i.h.bf16 %v9053_v19 }
 0x114   : > { %v801_v19 = vrot.slane %v10703_v17, 5 }
 0x115   : > { %v999_v26 = vsel %vm998_vm3, 0.0, %v9049_v24 }
 0x116   : > { %v1010_v30 = vsel %vm1009_vm4, %v999_v26, %v9054_v21  ;;  %v9063_v31 = vpop.permute.xlu1 %9062  ;;  %v9058_v33 = vpop.permute.xlu0 %9057  ;;  %v413_v26 = vld [vmem:[%s15183_s1] sm:$0xff] }
 0x117   : > { %v1021_v38 = vsel %vm1020_vm5, %v1010_v30, %v799_v25  ;;  %v9064_v41 = vunpack.i.l.bf16 %v9063_v31  ;;  %v9059_v44 = vunpack.i.l.bf16 %v9058_v33  ;;  %v9060_v47 = vunpack.i.h.bf16 %v9058_v33 }
 0x118   : > { %v1032_v43 = vsel %vm1031_vm6, %v1021_v38, %v9050_v29  ;;  %v9065_v14 = vunpack.i.h.bf16 %v9063_v31  ;;  %v909_v29 = vrot.slane %v10716_v32, 2 }
 0x119   : > { %v1043_v46 = vsel %vm1042_vm7, %v1032_v43, %v9055_v37  ;;  %v1000_v48 = vsel %vm998_vm3, %v10680_v58, %v9059_v44 }
 0x11a   : > { %v9073_v52 = vpop.permute.xlu1 %9072  ;;  %v9068_v54 = vpop.permute.xlu0 %9067  ;;  %v1054_v55 = vsel %vm1053_vm8, %v1043_v46, %v908_v42  ;;  %v1011_v62 = vsel %vm1009_vm4, %v1000_v48, %v9064_v41 }
 0x11b   : > { %v9075_v0 = vunpack.i.h.bf16 %v9073_v52  ;;  %v9070_v3 = vunpack.i.h.bf16 %v9068_v54  ;;  %v9074_v12 = vunpack.i.l.bf16 %v9073_v52  ;;  %v9069_v4 = vunpack.i.l.bf16 %v9068_v54 }
 0x11c   : > { %v1022_v7 = vsel %vm1020_vm5, %v1011_v62, %v800_v53  ;;  %v1065_v9 = vsel %vm1064_vm9, %v1054_v55, %v9060_v47  ;;  %v910_v53 = vrot.slane %v10728_v45, 2 }
 0x11d   : > { %v1001_v58 = vsel %vm998_vm3, %v10689_v8, %v9070_v3  ;;  %v1075_v11 = vpack.c.bf16 %v9065_v14, %v1065_v9  ;;  %v1033_v21 = vsel %vm1031_vm6, %v1022_v7, %v9069_v4  ;;  %v414_v8 = vld [vmem:[%s15183_s1 + $0x8] sm:$0xff]  ;;  %s15273_s1 = smov 123  }
 0x11e   : > { %v1012_v20 = vsel %vm1009_vm4, %v1001_v58, %v9075_v0  ;;  %v9083_v24 = vpop.permute.xlu1 %9082  ;;  %v9078_v25 = vpop.permute.xlu0 %9077  ;;  %v1044_v41 = vsel %vm1042_vm7, %v1033_v21, %v9074_v12  ;;  %v10916_v43 = vpack.c.bf16 %v414_v8, %v413_v26  ;;  %v802_v0 = vrot.slane %v10736_v51, 5 }
 0x11f   : > { %v9085_v30 = vunpack.i.h.bf16 %v9083_v24  ;;  %v9080_v31 = vunpack.i.h.bf16 %v9078_v25  ;;  %v9079_v33 = vunpack.i.l.bf16 %v9078_v25  ;;  %v9084_v17 = vunpack.i.l.bf16 %v9083_v24 }
 0x120   : > { %v1023_v37 = vsel %vm1020_vm5, %v1012_v20, %v801_v19  ;;  %v1093_v38 = vand.u32 %v10900_v15, %v1075_v11  ;;  %v1055_v44 = vsel %vm1053_vm8, %v1044_v41, %v909_v29  ;;  %v911_v51 = vrot.slane %v10745_v59, 2 }
 0x121   : > { %v1034_v42 = vsel %vm1031_vm6, %v1023_v37, %v9080_v31  ;;  %v1066_v48 = vsel %vm1064_vm9, %v1055_v44, %v9079_v33  ;;  %v803_v37 = vrot.slane %v10750_v61, 5  ;;  %v912_v61 = vrot.slane %v10768_v22, 2 }
 0x122   : > { %v1045_v32 = vsel %vm1042_vm7, %v1034_v42, %v9085_v30  ;;  %8556 = vmatpush3.bf16.msra.mxu0 %v1093_v38  ;;  %v9093_v46 = vpop.permute.xlu1 %9092  ;;  %v9088_v47 = vpop.permute.xlu0 %9087  ;;  %v1076_v14 = vpack.c.bf16 %v9084_v17, %v1066_v48 }
 0x123   : > { %v9095_v52 = vunpack.i.h.bf16 %v9093_v46  ;;  %v9094_v54 = vunpack.i.l.bf16 %v9093_v46  ;;  %v9090_v55 = vunpack.i.h.bf16 %v9088_v47  ;;  %v9089_v57 = vunpack.i.l.bf16 %v9088_v47  ;;  %8567 = vmatprep.subr.bf16.mxu0 %v15121_v2 }
 0x124   : > { %v1056_v60 = vsel %vm1053_vm8, %v1045_v32, %v910_v53  ;;  %v1137_v9 = vand.u32 %v10900_v15, %v1076_v14 }
 0x125   : > { %v1002_v45 = vsel %vm998_vm3, %v10719_v34, %v9089_v57  ;;  %v1067_v62 = vsel %vm1064_vm9, %v1056_v60, %v9090_v55  ;;  %8558 = vmatmul.mubr.msk.bf16.vlgmr.msra.gmra.mrb[0].mxu0 %vm1086_vm10, %v10916_v43 }
 0x126   : > { %v1013_v3 = vsel %vm1009_vm4, %v1002_v45, %v9094_v54  ;;  %v1077_v12 = vpack.c.bf16 %v9095_v52, %v1067_v62  ;;  %v9103_v4 = vpop.permute.xlu1 %9102  ;;  %v9098_v7 = vpop.permute.xlu0 %9097  ;;  %8569 = vmatprep.mubr.msk.bf16.mxu0 %vm15164_vm2, %v15121_v2  ;;  %8562 = vmatpush3.bf16.msra.mxu1 %v1137_v9 }
 0x127   : > { %v9104_v58 = vunpack.i.l.bf16 %v9103_v4  ;;  %v9099_v11 = vunpack.i.l.bf16 %v9098_v7  ;;  %v9100_v34 = vunpack.i.h.bf16 %v9098_v7  ;;  %v1024_v19 = vsel %vm1020_vm5, %v1013_v3, %v802_v0  ;;  %8573 = vmatprep.subr.bf16.mxu1 %v15121_v2 }
 0x128   : > { %v1181_v20 = vand.u32 %v10900_v15, %v1077_v12  ;;  %v9105_v21 = vunpack.i.h.bf16 %v9103_v4 }
 0x129   : > { %v1035_v24 = vsel %vm1031_vm6, %v1024_v19, %v9099_v11  ;;  %8564 = vmatmul.mubr.msk.bf16.vlgmr.msra.gmra.mrb[0].mxu1 %vm1086_vm10, %v10916_v43 }
 0x12a   : > { %v1046_v25 = vsel %vm1042_vm7, %v1035_v24, %v9104_v58  ;;  %v9113_v26 = vpop.permute.xlu1 %9112  ;;  %v9108_v8 = vpop.permute.xlu0 %9107  ;;  %8568 = vmatpush3.bf16.msra.mxu0 %v1181_v20  ;;  %8575 = vmatprep.mubr.msk.bf16.mxu1 %vm15164_vm2, %v15121_v2 }
 0x12b   : > { %v1057_v29 = vsel %vm1053_vm8, %v1046_v25, %v911_v51  ;;  %v9114_v30 = vunpack.i.l.bf16 %v9113_v26  ;;  %8579 = vmatprep.subr.bf16.mxu0 %v15121_v2  ;;  %v9109_v31 = vunpack.i.l.bf16 %v9108_v8  ;;  %v9110_v17 = vunpack.i.h.bf16 %v9108_v8 }
 0x12c   : > { %v1068_v59 = vsel %vm1064_vm9, %v1057_v29, %v9100_v34  ;;  %v9115_v38 = vunpack.i.h.bf16 %v9113_v26 }
 0x12d   : > { %v1078_v33 = vpack.c.bf16 %v9105_v21, %v1068_v59  ;;  %8570 = vmatmul.mubr.msk.bf16.vlgmr.msra.gmra.mrb[4].mxu0 %vm1086_vm10, %v10916_v43  ;;  %v1003_v41 = vsel %vm998_vm3, %v10741_v56, %v9109_v31  ;;  %v804_v56 = vrot.slane %v10780_v35, 5 }
 0x12e   : > { %v9123_v42 = vpop.permute.xlu1 %9122  ;;  %v9118_v44 = vpop.permute.xlu0 %9117  ;;  %8581 = vmatprep.mubr.msk.bf16.mxu0 %vm15164_vm2, %v15121_v2  ;;  %v1014_v53 = vsel %vm1009_vm4, %v1003_v41, %v9114_v30 }
 0x12f   : > { %v9124_v32 = vunpack.i.l.bf16 %v9123_v42  ;;  %v1025_v46 = vsel %vm1020_vm5, %v1014_v53, %v803_v37  ;;  %v9120_v47 = vunpack.i.h.bf16 %v9118_v44  ;;  %v9119_v48 = vunpack.i.l.bf16 %v9118_v44 }
 0x130   : > { %v1225_v52 = vand.u32 %v10900_v15, %v1078_v33  ;;  %v1036_v54 = vsel %vm1031_vm6, %v1025_v46, %v9110_v17  ;;  %v9125_v55 = vunpack.i.h.bf16 %v9123_v42 }
 0x131   : > { %v1047_v57 = vsel %vm1042_vm7, %v1036_v54, %v9115_v38  ;;  %v1004_v60 = vsel %vm998_vm3, %v10758_v10, %v9119_v48  ;;  %v913_v10 = vrot.slane %v10783_v36, 2  ;;  %v805_v36 = vrot.slane %v10789_v40, 5 }
 0x132   : > { %8574 = vmatpush3.bf16.msra.mxu1 %v1225_v52  ;;  %v9133_v14 = vpop.permute.xlu1 %9132  ;;  %v9128_v45 = vpop.permute.xlu0 %9127  ;;  %v1015_v62 = vsel %vm1009_vm4, %v1004_v60, %v9124_v32  ;;  %v1058_v0 = vsel %vm1053_vm8, %v1047_v57, %v912_v61  ;;  %v914_v40 = vrot.slane %v10811_v6, 2  ;;  %v915_v57 = vrot.slane %v10815_v13, 2 }
 0x133   : > { %v9134_v3 = vunpack.i.l.bf16 %v9133_v14  ;;  %8585 = vmatprep.subr.bf16.mxu1 %v15121_v2  ;;  %v1069_v22 = vsel %vm1064_vm9, %v1058_v0, %v9120_v47  ;;  %v9129_v12 = vunpack.i.l.bf16 %v9128_v45  ;;  %v1026_v35 = vsel %vm1020_vm5, %v1015_v62, %v804_v56 }
 0x134   : > { %v1079_v4 = vpack.c.bf16 %v9125_v55, %v1069_v22  ;;  %v9130_v7 = vunpack.i.h.bf16 %v9128_v45  ;;  %v9135_v9 = vunpack.i.h.bf16 %v9133_v14 }
 0x135   : > { %8576 = vmatmul.mubr.msk.bf16.vlgmr.msra.gmra.mrb[4].mxu1 %vm1086_vm10, %v10916_v43  ;;  %v1037_v58 = vsel %vm1031_vm6, %v1026_v35, %v9129_v12 }
 0x136   : > { %v9143_v11 = vpop.permute.xlu1 %9142  ;;  %v9138_v34 = vpop.permute.xlu0 %9137  ;;  %8587 = vmatprep.mubr.msk.bf16.mxu1 %vm15164_vm2, %v15121_v2  ;;  %v1048_v19 = vsel %vm1042_vm7, %v1037_v58, %v9134_v3  ;;  %v1269_v24 = vand.u32 %v10900_v15, %v1079_v4 }
 0x137   : > { %v9144_v20 = vunpack.i.l.bf16 %v9143_v11  ;;  %v1059_v51 = vsel %vm1053_vm8, %v1048_v19, %v913_v10  ;;  %v9139_v21 = vunpack.i.l.bf16 %v9138_v34  ;;  %v9140_v26 = vunpack.i.h.bf16 %v9138_v34 }
 0x138   : > { %v1070_v25 = vsel %vm1064_vm9, %v1059_v51, %v9130_v7  ;;  %v9145_v29 = vunpack.i.h.bf16 %v9143_v11  ;;  %8580 = vmatpush3.bf16.msra.mxu0 %v1269_v24  ;;  %v807_v7 = vrot.slane %v10829_v27, 5 }
 0x139   : > { %v1080_v8 = vpack.c.bf16 %v9135_v9, %v1070_v25  ;;  %v1005_v30 = vsel %vm998_vm3, %v10786_v39, %v9139_v21  ;;  %8591 = vmatprep.subr.bf16.mxu0 %v15121_v2  ;;  %v806_v39 = vrot.slane %v10825_v23, 5 }
 0x13a   : > { %v9153_v59 = vpop.permute.xlu1 %9152  ;;  %v9148_v31 = vpop.permute.xlu0 %9147  ;;  %v1016_v33 = vsel %vm1009_vm4, %v1005_v30, %v9144_v20  ;;  %v916_v20 = vrot.slane %v10853_v49, 2 }
 0x13b   : > { %v9154_v17 = vunpack.i.l.bf16 %v9153_v59  ;;  %v1027_v37 = vsel %vm1020_vm5, %v1016_v33, %v805_v36  ;;  %v9150_v38 = vunpack.i.h.bf16 %v9148_v31  ;;  %v9149_v41 = vunpack.i.l.bf16 %v9148_v31  ;;  %8582 = vmatmul.mubr.msk.bf16.vlgmr.msra.gmra.mrb[8].mxu0 %vm1086_vm10, %v10916_v43 }
 0x13c   : > { %v1313_v42 = vand.u32 %v10900_v15, %v1080_v8  ;;  %v1038_v44 = vsel %vm1031_vm6, %v1027_v37, %v9140_v26  ;;  %v9155_v53 = vunpack.i.h.bf16 %v9153_v59  ;;  %8593 = vmatprep.mubr.msk.bf16.mxu0 %vm15164_vm2, %v15121_v2  ;;  %v808_v36 = vrot.slane %v10865_v63, 5 }
 0x13d   : > { %v1049_v32 = vsel %vm1042_vm7, %v1038_v44, %v9145_v29  ;;  %v1006_v46 = vsel %vm998_vm3, %v10808_v5, %v9149_v41 }
 0x13e   : > { %8586 = vmatpush3.bf16.msra.mxu1 %v1313_v42  ;;  %v9163_v47 = vpop.permute.xlu1 %9162  ;;  %v9158_v48 = vpop.permute.xlu0 %9157  ;;  %v1017_v6 = vsel %vm1009_vm4, %v1006_v46, %v9154_v17  ;;  %v1060_v52 = vsel %vm1053_vm8, %v1049_v32, %v914_v40 }
 0x13f   : > { %v9164_v61 = vunpack.i.l.bf16 %v9163_v47  ;;  %8597 = vmatprep.subr.bf16.mxu1 %v15121_v2  ;;  %v1071_v23 = vsel %vm1064_vm9, %v1060_v52, %v9150_v38  ;;  %v9159_v54 = vunpack.i.l.bf16 %v9158_v48  ;;  %v1028_v55 = vsel %vm1020_vm5, %v1017_v6, %v806_v39 }
 0x140   : > { %v1081_v56 = vpack.c.bf16 %v9155_v53, %v1071_v23  ;;  %v9160_v5 = vunpack.i.h.bf16 %v9158_v48  ;;  %v9165_v60 = vunpack.i.h.bf16 %v9163_v47 }
 0x141   : > { %8588 = vmatmul.mubr.msk.bf16.vlgmr.msra.gmra.mrb[8].mxu1 %vm1086_vm10, %v10916_v43  ;;  %v1039_v14 = vsel %vm1031_vm6, %v1028_v55, %v9159_v54 }
 0x142   : > { %v9168_v45 = vpop.permute.xlu1 %9167  ;;  %v9173_v62 = vpop.permute.xlu0 %9172  ;;  %8599 = vmatprep.mubr.msk.bf16.mxu1 %vm15164_vm2, %v15121_v2  ;;  %v1050_v0 = vsel %vm1042_vm7, %v1039_v14, %v9164_v61  ;;  %v1357_v4 = vand.u32 %v10900_v15, %v1081_v56 }
 0x143   : > { %v9169_v3 = vunpack.i.l.bf16 %v9168_v45  ;;  %v1061_v22 = vsel %vm1053_vm8, %v1050_v0, %v915_v57  ;;  %v9170_v12 = vunpack.i.h.bf16 %v9168_v45  ;;  %v9174_v35 = vunpack.i.l.bf16 %v9173_v62 }
 0x144   : > { %v1072_v13 = vsel %vm1064_vm9, %v1061_v22, %v9160_v5  ;;  %v9175_v9 = vunpack.i.h.bf16 %v9173_v62  ;;  %8592 = vmatpush3.bf16.msra.mxu0 %v1357_v4 }
 0x145   : > { %v1007_v10 = vsel %vm998_vm3, %v10832_v28, %v9169_v3  ;;  %v1082_v58 = vpack.c.bf16 %v9165_v60, %v1072_v13  ;;  %8603 = vmatprep.subr.bf16.mxu0 %v15121_v2 }
 0x146   : > { %v1018_v11 = vsel %vm1009_vm4, %v1007_v10, %v9174_v35  ;;  %v9178_v34 = vpop.permute.xlu1 %9177  ;;  %v9183_v19 = vpop.permute.xlu0 %9182 }
 0x147   : > { %v1029_v51 = vsel %vm1020_vm5, %v1018_v11, %v807_v7  ;;  %v9180_v21 = vunpack.i.h.bf16 %v9178_v34  ;;  %v9179_v24 = vunpack.i.l.bf16 %v9178_v34  ;;  %v9185_v25 = vunpack.i.h.bf16 %v9183_v19  ;;  %8594 = vmatmul.mubr.msk.bf16.vlgmr.msra.gmra.mrb[12].mxu0 %vm1086_vm10, %v10916_v43 }
 0x148   : > { %v1040_v27 = vsel %vm1031_vm6, %v1029_v51, %v9170_v12  ;;  %v9184_v26 = vunpack.i.l.bf16 %v9183_v19  ;;  %v1401_v28 = vand.u32 %v10900_v15, %v1082_v58  ;;  %8605 = vmatprep.mubr.msk.bf16.mxu0 %vm15164_vm2, %v15121_v2 }
 0x149   : > { %v1051_v8 = vsel %vm1042_vm7, %v1040_v27, %v9175_v9  ;;  %v1008_v29 = vsel %vm998_vm3, %v10856_v50, %v9179_v24  ;;  %v917_v50 = vrot.slane %v15121_v2, 2  ;;  %vm2238_vm3 = vcmask 64512  }
 0x14a   : > { %v1019_v49 = vsel %vm1009_vm4, %v1008_v29, %v9184_v26  ;;  %v1062_v30 = vsel %vm1053_vm8, %v1051_v8, %v916_v20  ;;  %8598 = vmatpush3.bf16.msra.mxu1 %v1401_v28  ;;  %v9188_v59 = vpop.permute.xlu1 %9187  ;;  %v9193_v31 = vpop.permute.xlu0 %9192  ;;  %vm12167_vm4 = vmpackc.low %vm15171_vm15, %vm15171_vm15 }
 0x14b   : > { %v1073_v63 = vsel %vm1064_vm9, %v1062_v30, %v9180_v21  ;;  %v9189_v33 = vunpack.i.l.bf16 %v9188_v59  ;;  %v1030_v17 = vsel %vm1020_vm5, %v1019_v49, %v808_v36  ;;  %8609 = vmatprep.subr.bf16.mxu1 %v15121_v2  ;;  %v9190_v38 = vunpack.i.h.bf16 %v9188_v59 }
 0x14c   : > { %v1083_v37 = vpack.c.bf16 %v9185_v25, %v1073_v63  ;;  %v9194_v41 = vunpack.i.l.bf16 %v9193_v31  ;;  %v11034_v40 = vunpack.i.h.bf16 %v9193_v31  ;;  %vm15173_vm5 = vcmask 130048  }
 0x14d   : > { %v1041_v42 = vsel %vm1031_vm6, %v1030_v17, %v9189_v33  ;;  %8600 = vmatmul.mubr.msk.bf16.vlgmr.msra.gmra.mrb[12].mxu1 %vm1086_vm10, %v10916_v43 }
 0x14e   : > { %15184 = vst [vmem:[#allocation6_spill] sm:$0xff] %v11034_v40  ;;  %v1052_v44 = vsel %vm1042_vm7, %v1041_v42, %v9194_v41  ;;  %v1445_v53 = vand.u32 %v10900_v15, %v1083_v37  ;;  %8611 = vmatprep.mubr.msk.bf16.mxu1 %vm15164_vm2, %v15121_v2  ;;  %vm10490_vm7 = vmmov 1  }
 0x14f   : > { %v1063_v39 = vsel %vm1053_vm8, %v1052_v44, %v917_v50  ;;  %vm12402_vm8 = vmpackc.low %vm10490_vm7, %vm15170_vm14 }
 0x150   : > { %8604 = vmatpush3.bf16.msra.mxu0 %v1445_v53  ;;  %v1074_v32 = vsel %vm1064_vm9, %v1063_v39, %v9190_v38  ;;  %vm12420_vm9 = vmpackc.low %vm15170_vm14, %vm10490_vm7  ;;  %vm3503_vm7 = vcmask 89088  }
 0x151   : > { %v1084_v46 = vpack.c.bf16 %v11034_v40, %v1074_v32  ;;  %2769 = vmatprep.subr.bf16.mxu0 %v15123_v1 }
 0x153   : > { %v1489_v47 = vand.u32 %v10900_v15, %v1084_v46  ;;  %8606 = vmatmul.mubr.msk.bf16.vlgmr.msra.gmra.mrb[16].mxu0 %vm1086_vm10, %v10916_v43 }
 0x155   : > { %8610 = vmatpush3.bf16.msra.mxu1 %v1489_v47 }
 0x156   : > { %2809 = vmatprep.subr.bf16.mxu1 %v15123_v1 }
 0x158   : > { %8612 = vmatmul.mubr.msk.bf16.vlgmr.msra.gmra.mrb[16].mxu1 %vm1086_vm10, %v10916_v43 }
 0x1f8   : > { %v11052_v48 = vpop.f32.mrb[0].mxu0 }
 0x1f9   : > { %1552 = vrot.lane.b32.xlu0 %v11052_v48, %s15150_s26  ;;  %v8559_v6 = vpop.f32.mrb[1].mxu0 }
 0x1fa   : > { %v11056_v52 = vpop.f32.mrb[2].mxu0 }
 0x1fb   : > { %1554 = vrot.lane.b32.xlu1 %v11056_v52, %s15150_s26  ;;  %v8560_v15 = vpop.f32.mrb[3].mxu0 }
 0x1fc   : > { %v11062_v61 = vpop.f32.mrb[0].mxu1 }
 0x1fd   : > { %1612 = vrot.lane.b32.xlu0 %v11052_v48, %s15148_s17  ;;  %v8565_v43 = vpop.f32.mrb[1].mxu1 }
 0x1fe   : > { %v11066_v23 = vpop.f32.mrb[2].mxu1 }
 0x1ff   : > { %1614 = vrot.lane.b32.xlu1 %v11056_v52, %s15148_s17  ;;  %v8566_v55 = vpop.f32.mrb[3].mxu1 }
 0x200   : > { %v11068_v54 = vpop.f32.mrb[4].mxu0 }
 0x201   : > { %1672 = vrot.lane.b32.xlu0 %v11052_v48, %s15136_s18  ;;  %v8571_v56 = vpop.f32.mrb[5].mxu0 }
 0x202   : > { %v11072_v5 = vpop.f32.mrb[6].mxu0 }
 0x203   : > { %1674 = vrot.lane.b32.xlu1 %v11056_v52, %s15136_s18  ;;  %v8572_v57 = vpop.f32.mrb[7].mxu0 }
 0x205   : > { %1732 = vrot.lane.b32.xlu0 %v11052_v48, %s15138_s23 }
 0x207   : > { %1734 = vrot.lane.b32.xlu1 %v11056_v52, %s15138_s23 }
 0x208   : > { %v11080_v60 = vpop.f32.mrb[4].mxu1 }
 0x209   : > { %15185 = vst [vmem:[#allocation7_spill] sm:$0xff] %v11080_v60  ;;  %1792 = vrot.lane.b32.xlu0 %v11052_v48, %s10482_s25  ;;  %v8577_v14 = vpop.f32.mrb[5].mxu1 }
 0x20a   : > { %v11084_v45 = vpop.f32.mrb[6].mxu1 }
 0x20b   : > { %1794 = vrot.lane.b32.xlu1 %v11056_v52, %s10482_s25  ;;  %v8578_v62 = vpop.f32.mrb[7].mxu1 }
 0x20d   : > { %1852 = vrot.lane.b32.xlu0 %v11052_v48, %s10483_s12 }
 0x20e   : > { %v11092_v0 = vpop.f32.mrb[8].mxu0 }
 0x20f   : > { %1854 = vrot.lane.b32.xlu1 %v11056_v52, %s10483_s12  ;;  %15186 = vst [vmem:[#allocation8_spill] sm:$0xff] %v11092_v0  ;;  %v8583_v3 = vpop.f32.mrb[9].mxu0 }
 0x210   : > { %v11096_v22 = vpop.f32.mrb[10].mxu0 }
 0x211   : > { %1912 = vrot.lane.b32.xlu0 %v11052_v48, %s10484_s13  ;;  %15187 = vst [vmem:[#allocation9_spill] sm:$0xff] %v11096_v22  ;;  %v8584_v12 = vpop.f32.mrb[11].mxu0 }
 0x213   : > { %1914 = vrot.lane.b32.xlu1 %v11056_v52, %s10484_s13 }
 0x214   : > { %v11120_v35 = vpop.f32.mrb[8].mxu1 }
 0x215   : > { %1972 = vrot.lane.b32.xlu0 %v11052_v48, %s10485_s14  ;;  %15188 = vst [vmem:[#allocation10_spill] sm:$0xff] %v11120_v35  ;;  %v8589_v4 = vpop.f32.mrb[9].mxu1 }
 0x216   : > { %v11128_v7 = vpop.f32.mrb[10].mxu1 }
 0x217   : > { %1974 = vrot.lane.b32.xlu1 %v11056_v52, %s10485_s14  ;;  %15189 = vst [vmem:[#allocation11_spill] sm:$0xff] %v11128_v7  ;;  %v8590_v13 = vpop.f32.mrb[11].mxu1 }
 0x219   : > { %2032 = vrot.lane.b32.xlu0 %v11052_v48, %s10486_s15 }
 0x21a   : > { %v11160_v10 = vpop.f32.mrb[12].mxu0 }
 0x21b   : > { %2034 = vrot.lane.b32.xlu1 %v11056_v52, %s10486_s15  ;;  %15190 = vst [vmem:[#allocation12_spill] sm:$0xff] %v11160_v10  ;;  %v8595_v9 = vpop.f32.mrb[13].mxu0 }
 0x21c   : > { %v11170_v58 = vpop.f32.mrb[14].mxu0 }
 0x21d   : > { %1556 = vrot.lane.b32.xlu0 %v11062_v61, %s15150_s26  ;;  %v8596_v11 = vpop.f32.mrb[15].mxu0 }
 0x21f   : > { %1558 = vrot.lane.b32.xlu1 %v11066_v23, %s15150_s26 }
 0x220   : > { %v11206_v51 = vpop.f32.mrb[12].mxu1 }
 0x221   : > { %1616 = vrot.lane.b32.xlu0 %v11062_v61, %s15148_s17  ;;  %v8601_v24 = vpop.f32.mrb[13].mxu1 }
 0x222   : > { %v11224_v28 = vpop.f32.mrb[14].mxu1 }
 0x223   : > { %1618 = vrot.lane.b32.xlu1 %v11066_v23, %s15148_s17  ;;  %v8602_v36 = vpop.f32.mrb[15].mxu1 }
 0x225   : > { %1676 = vrot.lane.b32.xlu0 %v11062_v61, %s15136_s18 }
 0x227   : > { %1678 = vrot.lane.b32.xlu1 %v11066_v23, %s15136_s18 }
 0x229   : > { %1736 = vrot.lane.b32.xlu0 %v11062_v61, %s15138_s23 }
 0x22b   : > { %1738 = vrot.lane.b32.xlu1 %v11066_v23, %s15138_s23 }
 0x22d   : > { %1796 = vrot.lane.b32.xlu0 %v11062_v61, %s10482_s25 }
 0x22f   : > { %1798 = vrot.lane.b32.xlu1 %v11066_v23, %s10482_s25 }
 0x231   : > { %1856 = vrot.lane.b32.xlu0 %v11062_v61, %s10483_s12 }
 0x233   : > { %1858 = vrot.lane.b32.xlu1 %v11066_v23, %s10483_s12 }
 0x235   : > { %1916 = vrot.lane.b32.xlu0 %v11062_v61, %s10484_s13 }
 0x237   : > { %1918 = vrot.lane.b32.xlu1 %v11066_v23, %s10484_s13 }
 0x239   : > { %1976 = vrot.lane.b32.xlu0 %v11062_v61, %s10485_s14 }
 0x23b   : > { %1978 = vrot.lane.b32.xlu1 %v11066_v23, %s10485_s14 }
 0x23d   : > { %2036 = vrot.lane.b32.xlu0 %v11062_v61, %s10486_s15 }
 0x23f   : > { %2038 = vrot.lane.b32.xlu1 %v11066_v23, %s10486_s15 }
 0x241   : > { %1800 = vrot.lane.b32.xlu0 %v11068_v54, %s10482_s25 }
 0x243   : > { %1560 = vrot.lane.b32.xlu1 %v11068_v54, %s15150_s26 }
 0x245   : > { %1860 = vrot.lane.b32.xlu0 %v11068_v54, %s10483_s12 }
 0x247   : > { %1620 = vrot.lane.b32.xlu1 %v11068_v54, %s15148_s17 }
 0x249   : > { %1920 = vrot.lane.b32.xlu0 %v11068_v54, %s10484_s13 }
 0x24b   : > { %1680 = vrot.lane.b32.xlu1 %v11068_v54, %s15136_s18 }
 0x24d   : > { %1980 = vrot.lane.b32.xlu0 %v11068_v54, %s10485_s14 }
 0x24f   : > { %1740 = vrot.lane.b32.xlu1 %v11068_v54, %s15138_s23 }
 0x251   : > { %2040 = vrot.lane.b32.xlu0 %v11068_v54, %s10486_s15 }
 0x253   : > { %1742 = vrot.lane.b32.xlu1 %v11072_v5, %s15138_s23 }
 0x255   : > { %1562 = vrot.lane.b32.xlu0 %v11072_v5, %s15150_s26 }
 0x257   : > { %1802 = vrot.lane.b32.xlu1 %v11072_v5, %s10482_s25 }
 0x259   : > { %1622 = vrot.lane.b32.xlu0 %v11072_v5, %s15148_s17 }
 0x25b   : > { %1862 = vrot.lane.b32.xlu1 %v11072_v5, %s10483_s12 }
 0x25d   : > { %1682 = vrot.lane.b32.xlu0 %v11072_v5, %s15136_s18 }
 0x25f   : > { %1922 = vrot.lane.b32.xlu1 %v11072_v5, %s10484_s13 }
 0x261   : > { %1564 = vrot.lane.b32.xlu0 %v11080_v60, %s15150_s26 }
 0x263   : > { %1982 = vrot.lane.b32.xlu1 %v11072_v5, %s10485_s14 }
 0x265   : > { %1624 = vrot.lane.b32.xlu0 %v11080_v60, %s15148_s17 }
 0x267   : > { %2042 = vrot.lane.b32.xlu1 %v11072_v5, %s10486_s15 }
 0x269   : > { %1684 = vrot.lane.b32.xlu0 %v11080_v60, %s15136_s18 }
 0x26b   : > { %v11194_v34 = vpop.permute.xlu0 %1552  ;;  %1566 = vrot.lane.b32.xlu1 %v11084_v45, %s15150_s26 }
 0x26d   : > { %v11198_v19 = vpop.permute.xlu1 %1554  ;;  %1744 = vrot.lane.b32.xlu0 %v11080_v60, %s15138_s23 }
 0x26f   : > { %v11202_v20 = vpop.permute.xlu0 %1612  ;;  %1626 = vrot.lane.b32.xlu1 %v11084_v45, %s15148_s17 }
 0x271   : > { %v11208_v21 = vpop.permute.xlu1 %1614  ;;  %1804 = vrot.lane.b32.xlu0 %v11080_v60, %s10482_s25 }
 0x273   : > { %v11212_v27 = vpop.permute.xlu0 %1672  ;;  %1686 = vrot.lane.b32.xlu1 %v11084_v45, %s15136_s18 }
 0x275   : > { %v11216_v25 = vpop.permute.xlu1 %1674  ;;  %1864 = vrot.lane.b32.xlu0 %v11080_v60, %s10483_s12 }
 0x277   : > { %v11220_v26 = vpop.permute.xlu0 %1732  ;;  %1746 = vrot.lane.b32.xlu1 %v11084_v45, %s15138_s23 }
 0x279   : > { %v11226_v8 = vpop.permute.xlu1 %1734  ;;  %1924 = vrot.lane.b32.xlu0 %v11080_v60, %s10484_s13 }
 0x27b   : > { %v11230_v29 = vpop.permute.xlu0 %1792  ;;  %1806 = vrot.lane.b32.xlu1 %v11084_v45, %s10482_s25 }
 0x27d   : > { %v11234_v49 = vpop.permute.xlu1 %1794  ;;  %1984 = vrot.lane.b32.xlu0 %v11080_v60, %s10485_s14 }
 0x27f   : > { %v11238_v30 = vpop.permute.xlu0 %1852  ;;  %1866 = vrot.lane.b32.xlu1 %v11084_v45, %s10483_s12 }
 0x281   : > { %v11242_v59 = vpop.permute.xlu1 %1854  ;;  %2044 = vrot.lane.b32.xlu0 %v11080_v60, %s10486_s15 }
 0x283   : > { %v11246_v31 = vpop.permute.xlu0 %1912  ;;  %1926 = vrot.lane.b32.xlu1 %v11084_v45, %s10484_s13 }
 0x285   : > { %v11250_v63 = vpop.permute.xlu1 %1914  ;;  %1568 = vrot.lane.b32.xlu0 %v11092_v0, %s15150_s26 }
 0x287   : > { %v11254_v33 = vpop.permute.xlu0 %1972  ;;  %1986 = vrot.lane.b32.xlu1 %v11084_v45, %s10485_s14 }
 0x289   : > { %v11258_v17 = vpop.permute.xlu1 %1974  ;;  %1628 = vrot.lane.b32.xlu0 %v11092_v0, %s15148_s17 }
 0x28b   : > { %v11262_v50 = vpop.permute.xlu0 %2032  ;;  %2046 = vrot.lane.b32.xlu1 %v11084_v45, %s10486_s15 }
 0x28d   : > { %v11266_v37 = vpop.permute.xlu1 %2034  ;;  %1688 = vrot.lane.b32.xlu0 %v11092_v0, %s15136_s18 }
 0x28f   : > { %v11270_v38 = vpop.permute.xlu0 %1556  ;;  %1570 = vrot.lane.b32.xlu1 %v11096_v22, %s15150_s26 }
 0x291   : > { %v11274_v41 = vpop.permute.xlu1 %1558  ;;  %1748 = vrot.lane.b32.xlu0 %v11092_v0, %s15138_s23 }
 0x293   : > { %v11278_v42 = vpop.permute.xlu0 %1616  ;;  %1630 = vrot.lane.b32.xlu1 %v11096_v22, %s15148_s17 }
 0x295   : > { %v11282_v44 = vpop.permute.xlu1 %1618  ;;  %1808 = vrot.lane.b32.xlu0 %v11092_v0, %s10482_s25 }
 0x297   : > { %v11286_v53 = vpop.permute.xlu0 %1676  ;;  %1690 = vrot.lane.b32.xlu1 %v11096_v22, %s15136_s18 }
 0x299   : > { %v11290_v39 = vpop.permute.xlu1 %1678  ;;  %1868 = vrot.lane.b32.xlu0 %v11092_v0, %s10483_s12 }
 0x29b   : > { %v11294_v32 = vpop.permute.xlu0 %1736  ;;  %1750 = vrot.lane.b32.xlu1 %v11096_v22, %s15138_s23 }
 0x29d   : > { %v11298_v46 = vpop.permute.xlu1 %1738  ;;  %1928 = vrot.lane.b32.xlu0 %v11092_v0, %s10484_s13 }
 0x29f   : > { %v11302_v47 = vpop.permute.xlu0 %1796  ;;  %1810 = vrot.lane.b32.xlu1 %v11096_v22, %s10482_s25 }
 0x2a0   : > { %15191 = vst [vmem:[#allocation13_spill] sm:$0xff] %v11302_v47 }
 0x2a1   : > { %v11306_v6 = vpop.permute.xlu1 %1798  ;;  %1988 = vrot.lane.b32.xlu0 %v11092_v0, %s10485_s14 }
 0x2a2   : > { %15192 = vst [vmem:[#allocation14_spill] sm:$0xff] %v11306_v6 }
 0x2a3   : > { %v11310_v15 = vpop.permute.xlu0 %1856  ;;  %1870 = vrot.lane.b32.xlu1 %v11096_v22, %s10483_s12 }
 0x2a4   : > { %15193 = vst [vmem:[#allocation15_spill] sm:$0xff] %v11310_v15 }
 0x2a5   : > { %v11314_v43 = vpop.permute.xlu1 %1858  ;;  %2048 = vrot.lane.b32.xlu0 %v11092_v0, %s10486_s15 }
 0x2a6   : > { %15194 = vst [vmem:[#allocation16_spill] sm:$0xff] %v11314_v43 }
 0x2a7   : > { %v11318_v55 = vpop.permute.xlu0 %1916  ;;  %1930 = vrot.lane.b32.xlu1 %v11096_v22, %s10484_s13 }
 0x2a8   : > { %15195 = vst [vmem:[#allocation17_spill] sm:$0xff] %v11318_v55 }
 0x2a9   : > { %v11322_v56 = vpop.permute.xlu1 %1918  ;;  %1572 = vrot.lane.b32.xlu0 %v11120_v35, %s15150_s26 }
 0x2aa   : > { %15196 = vst [vmem:[#allocation18_spill] sm:$0xff] %v11322_v56 }
 0x2ab   : > { %v11326_v57 = vpop.permute.xlu0 %1976  ;;  %1990 = vrot.lane.b32.xlu1 %v11096_v22, %s10485_s14 }
 0x2ac   : > { %15197 = vst [vmem:[#allocation19_spill] sm:$0xff] %v11326_v57 }
 0x2ad   : > { %v11330_v14 = vpop.permute.xlu1 %1978  ;;  %1632 = vrot.lane.b32.xlu0 %v11120_v35, %s15148_s17 }
 0x2ae   : > { %15198 = vst [vmem:[#allocation20_spill] sm:$0xff] %v11330_v14 }
 0x2af   : > { %v11334_v62 = vpop.permute.xlu0 %2036  ;;  %2050 = vrot.lane.b32.xlu1 %v11096_v22, %s10486_s15 }
 0x2b0   : > { %15199 = vst [vmem:[#allocation21_spill] sm:$0xff] %v11334_v62 }
 0x2b1   : > { %v11338_v3 = vpop.permute.xlu1 %2038  ;;  %1692 = vrot.lane.b32.xlu0 %v11120_v35, %s15136_s18 }
 0x2b2   : > { %15200 = vst [vmem:[#allocation22_spill] sm:$0xff] %v11338_v3 }
 0x2b3   : > { %v11342_v12 = vpop.permute.xlu0 %1800  ;;  %1574 = vrot.lane.b32.xlu1 %v11128_v7, %s15150_s26 }
 0x2b5   : > { %v11346_v4 = vpop.permute.xlu1 %1560  ;;  %1752 = vrot.lane.b32.xlu0 %v11120_v35, %s15138_s23 }
 0x2b7   : > { %v11350_v13 = vpop.permute.xlu0 %1860  ;;  %1634 = vrot.lane.b32.xlu1 %v11128_v7, %s15148_s17 }
 0x2b9   : > { %v11354_v9 = vpop.permute.xlu1 %1620  ;;  %1812 = vrot.lane.b32.xlu0 %v11120_v35, %s10482_s25 }
 0x2bb   : > { %v11358_v11 = vpop.permute.xlu0 %1920  ;;  %1694 = vrot.lane.b32.xlu1 %v11128_v7, %s15136_s18 }
 0x2bd   : > { %v11362_v24 = vpop.permute.xlu1 %1680  ;;  %1872 = vrot.lane.b32.xlu0 %v11120_v35, %s10483_s12 }
 0x2bf   : > { %v11366_v36 = vpop.permute.xlu0 %1980  ;;  %1754 = vrot.lane.b32.xlu1 %v11128_v7, %s15138_s23 }
 0x2c1   : > { %v11370_v2 = vpop.permute.xlu1 %1740  ;;  %1932 = vrot.lane.b32.xlu0 %v11120_v35, %s10484_s13 }
 0x2c3   : > { %v11374_v1 = vpop.permute.xlu0 %2040  ;;  %1814 = vrot.lane.b32.xlu1 %v11128_v7, %s10482_s25 }
 0x2c5   : > { %v11378_v40 = vpop.permute.xlu1 %1742  ;;  %1992 = vrot.lane.b32.xlu0 %v11120_v35, %s10485_s14 }
 0x2c7   : > { %v1563_v22 = vpop.permute.xlu0 %1562  ;;  %1874 = vrot.lane.b32.xlu1 %v11128_v7, %s10483_s12 }
 0x2c9   : > { %v11384_v0 = vpop.permute.xlu1 %1802  ;;  %2052 = vrot.lane.b32.xlu0 %v11120_v35, %s10486_s15 }
 0x2cb   : > { %v1623_v62 = vpop.permute.xlu0 %1622  ;;  %1934 = vrot.lane.b32.xlu1 %v11128_v7, %s10484_s13 }
 0x2cd   : > { %v11390_v57 = vpop.permute.xlu1 %1862  ;;  %1576 = vrot.lane.b32.xlu0 %v11160_v10, %s15150_s26 }
 0x2cf   : > { %v1683_v3 = vpop.permute.xlu0 %1682  ;;  %1994 = vrot.lane.b32.xlu1 %v11128_v7, %s10485_s14 }
 0x2d1   : > { %v11396_v55 = vpop.permute.xlu1 %1922  ;;  %1636 = vrot.lane.b32.xlu0 %v11160_v10, %s15148_s17 }
 0x2d3   : > { %v11400_v14 = vpop.permute.xlu0 %1564  ;;  %2054 = vrot.lane.b32.xlu1 %v11128_v7, %s10486_s15 }
 0x2d4   : > { %15201 = vst [vmem:[#allocation23_spill] sm:$0xff] %v11400_v14 }
 0x2d5   : > { %v11404_v35 = vpop.permute.xlu1 %1982  ;;  %1696 = vrot.lane.b32.xlu0 %v11160_v10, %s15136_s18 }
 0x2d7   : > { %v11408_v56 = vpop.permute.xlu0 %1624  ;;  %1578 = vrot.lane.b32.xlu1 %v11170_v58, %s15150_s26 }
 0x2d8   : > { %15202 = vst [vmem:[#allocation24_spill] sm:$0xff] %v11408_v56 }
 0x2d9   : > { %v11412_v15 = vpop.permute.xlu1 %2042  ;;  %1756 = vrot.lane.b32.xlu0 %v11160_v10, %s15138_s23 }
 0x2db   : > { %v11416_v43 = vpop.permute.xlu0 %1684  ;;  %1638 = vrot.lane.b32.xlu1 %v11170_v58, %s15148_s17 }
 0x2dc   : > { %15203 = vst [vmem:[#allocation25_spill] sm:$0xff] %v11416_v43 }
 0x2dd   : > { %v11420_v7 = vpop.permute.xlu1 %1566  ;;  %1816 = vrot.lane.b32.xlu0 %v11160_v10, %s10482_s25 }
 0x2df   : > { %v11424_v60 = vpop.permute.xlu0 %1744  ;;  %1698 = vrot.lane.b32.xlu1 %v11170_v58, %s15136_s18 }
 0x2e0   : > { %15204 = vst [vmem:[#allocation26_spill] sm:$0xff] %v11424_v60 }
 0x2e1   : > { %v11428_v56 = vpop.permute.xlu1 %1626  ;;  %1876 = vrot.lane.b32.xlu0 %v11160_v10, %s10483_s12 }
 0x2e2   : > { %15205 = vst [vmem:[#allocation27_spill] sm:$0xff] %v11428_v56 }
 0x2e3   : > { %v11432_v14 = vpop.permute.xlu0 %1804  ;;  %1758 = vrot.lane.b32.xlu1 %v11170_v58, %s15138_s23 }
 0x2e4   : > { %15206 = vst [vmem:[#allocation28_spill] sm:$0xff] %v11432_v14 }
 0x2e5   : > { %v11436_v43 = vpop.permute.xlu1 %1686  ;;  %1936 = vrot.lane.b32.xlu0 %v11160_v10, %s10484_s13 }
 0x2e6   : > { %15207 = vst [vmem:[#allocation29_spill] sm:$0xff] %v11436_v43 }
 0x2e7   : > { %v11440_v6 = vpop.permute.xlu0 %1864  ;;  %1818 = vrot.lane.b32.xlu1 %v11170_v58, %s10482_s25 }
 0x2e8   : > { %15208 = vst [vmem:[#allocation30_spill] sm:$0xff] %v11440_v6 }
 0x2e9   : > { %v11444_v60 = vpop.permute.xlu1 %1746  ;;  %1996 = vrot.lane.b32.xlu0 %v11160_v10, %s10485_s14 }
 0x2ea   : > { %15209 = vst [vmem:[#allocation31_spill] sm:$0xff] %v11444_v60 }
 0x2eb   : > { %v11448_v47 = vpop.permute.xlu0 %1924  ;;  %1878 = vrot.lane.b32.xlu1 %v11170_v58, %s10483_s12 }
 0x2ec   : > { %15210 = vst [vmem:[#allocation32_spill] sm:$0xff] %v11448_v47  ;;  %v11468_v47 = vpop.f32.mrb[16].mxu0 }
 0x2ed   : > { %v11452_v14 = vpop.permute.xlu1 %1806  ;;  %2056 = vrot.lane.b32.xlu0 %v11160_v10, %s10486_s15  ;;  %15215 = vst [vmem:[#allocation37_spill] sm:$0xff] %v11468_v47  ;;  %v8607_v10 = vpop.f32.mrb[17].mxu0  ;;  %v2096_v47 = vsel %vm641_vm0, %v11068_v54, %v11346_v4 }
 0x2ee   : > { %15211 = vst [vmem:[#allocation33_spill] sm:$0xff] %v11452_v14  ;;  %v2117_v10 = vsel %vm2112_vm11, %v2096_v47, %v11354_v9 }
 0x2ef   : > { %v11456_v43 = vpop.permute.xlu0 %1984  ;;  %1938 = vrot.lane.b32.xlu1 %v11170_v58, %s10484_s13 }
 0x2f0   : > { %15212 = vst [vmem:[#allocation34_spill] sm:$0xff] %v11456_v43  ;;  %v2097_v43 = vsel %vm641_vm0, %v11072_v5, %v1563_v22  ;;  %v2138_v5 = vsel %vm2133_vm12, %v2117_v10, %v11362_v24 }
 0x2f1   : > { %v11460_v6 = vpop.permute.xlu1 %1866  ;;  %1580 = vrot.lane.b32.xlu0 %v11206_v51, %s15150_s26  ;;  %v2159_v22 = vsel %vm2154_vm13, %v2138_v5, %v11370_v2  ;;  %v2093_v2 = vsel %vm641_vm0, %v11056_v52, %v11198_v19 }
 0x2f2   : > { %15213 = vst [vmem:[#allocation35_spill] sm:$0xff] %v11460_v6  ;;  %v2118_v6 = vsel %vm2112_vm11, %v2097_v43, %v1623_v62 }
 0x2f3   : > { %v11464_v60 = vpop.permute.xlu0 %2044  ;;  %1998 = vrot.lane.b32.xlu1 %v11170_v58, %s10485_s14 }
 0x2f4   : > { %15214 = vst [vmem:[#allocation36_spill] sm:$0xff] %v11464_v60  ;;  %v2139_v60 = vsel %vm2133_vm12, %v2118_v6, %v1683_v3  ;;  %v2092_v6 = vsel %vm641_vm0, %v11052_v48, %v11194_v34  ;;  %v2114_v3 = vsel %vm2112_vm11, %v2093_v2, %v11208_v21  ;;  %v15220_v2 = vld [vmem:[#allocation23_spill] sm:$0xff] }
 0x2f5   : > { %v11470_v14 = vpop.permute.xlu1 %1926  ;;  %1640 = vrot.lane.b32.xlu0 %v11206_v51, %s15148_s17  ;;  %v2160_v54 = vsel %vm2154_vm13, %v2139_v60, %v11378_v40  ;;  %v2180_v40 = vsel %vm15170_vm14, %v2159_v22, %v11342_v12  ;;  %v2113_v62 = vsel %vm2112_vm11, %v2092_v6, %v11202_v20  ;;  %v2135_v52 = vsel %vm2133_vm12, %v2114_v3, %v11216_v25  ;;  %v15223_v3 = vld [vmem:[#allocation16_spill] sm:$0xff] }
 0x2f6   : > { %15216 = vst [vmem:[#allocation38_spill] sm:$0xff] %v11470_v14  ;;  %v2181_v60 = vsel %vm15170_vm14, %v2160_v54, %v11384_v0  ;;  %v2134_v48 = vsel %vm2133_vm12, %v2113_v62, %v11212_v27  ;;  %v2156_v34 = vsel %vm2154_vm13, %v2135_v52, %v11226_v8  ;;  %v2201_v19 = vsel %vm15171_vm15, %v2180_v40, %v11350_v13  ;;  %v11559_v13 = vpop.f32.mrb[16].mxu1  ;;  %v15221_v40 = vld [vmem:[#allocation7_spill] sm:$0xff] }
 0x2f7   : > { %v11477_v56 = vpop.permute.xlu0 %1568  ;;  %2058 = vrot.lane.b32.xlu1 %v11170_v58, %s10486_s15  ;;  %v2155_v0 = vsel %vm2154_vm13, %v2134_v48, %v11220_v26  ;;  %v2202_v20 = vsel %vm15171_vm15, %v2181_v60, %v11390_v57  ;;  %v2177_v25 = vsel %vm15170_vm14, %v2156_v34, %v11234_v49  ;;  %v2222_v49 = vsel %vm2217_vm1, %v2201_v19, %v11358_v11  ;;  %v15222_v60 = vld [vmem:[#allocation29_spill] sm:$0xff]  ;;  %v15225_v19 = vld [vmem:[#allocation31_spill] sm:$0xff] }
 0x2f8   : > { %v2176_v27 = vsel %vm15170_vm14, %v2155_v0, %v11230_v29  ;;  %v2198_v8 = vsel %vm15171_vm15, %v2177_v25, %v11242_v59  ;;  %v2243_v11 = vsel %vm2238_vm3, %v2222_v49, %v11366_v36  ;;  %v15224_v0 = vld [vmem:[#allocation24_spill] sm:$0xff]  ;;  %v15226_v25 = vld [vmem:[#allocation15_spill] sm:$0xff] }
 0x2f9   : > { %v11487_v14 = vpop.permute.xlu1 %1986  ;;  %1700 = vrot.lane.b32.xlu0 %v11206_v51, %s15136_s18  ;;  %v2197_v26 = vsel %vm15171_vm15, %v2176_v27, %v11238_v30  ;;  %v2219_v29 = vsel %vm2217_vm1, %v2198_v8, %v11250_v63  ;;  %v2223_v30 = vsel %vm2217_vm1, %v2202_v20, %v11396_v55  ;;  %v15227_v8 = vld [vmem:[#allocation18_spill] sm:$0xff] }
 0x2fa   : > { %v2218_v57 = vsel %vm2217_vm1, %v2197_v26, %v11246_v31  ;;  %v2240_v9 = vsel %vm2238_vm3, %v2219_v29, %v11258_v17  ;;  %v8613_v31 = vpop.f32.mrb[17].mxu1  ;;  %v2094_v17 = vsel %vm641_vm0, %v11062_v61, %v11270_v38  ;;  %v15228_v29 = vld [vmem:[#allocation25_spill] sm:$0xff] }
 0x2fb   : > { %v11497_v43 = vpop.permute.xlu0 %1628  ;;  %1582 = vrot.lane.b32.xlu1 %v11224_v28, %s15150_s26  ;;  %v2239_v59 = vsel %vm2238_vm3, %v2218_v57, %v11254_v33  ;;  %v2260_v55 = vsel %vm1086_vm10, %v2240_v9, %v11266_v37  ;;  %v2244_v33 = vsel %vm2238_vm3, %v2223_v30, %v11404_v35  ;;  %v2115_v5 = vsel %vm2112_vm11, %v2094_v17, %v11278_v42  ;;  %v15229_v30 = vld [vmem:[#allocation33_spill] sm:$0xff]  ;;  %v15230_v9 = vld [vmem:[#allocation20_spill] sm:$0xff] }
 0x2fc   : > { %v2259_v63 = vsel %vm1086_vm10, %v2239_v59, %v11262_v50  ;;  %v2095_v50 = vsel %vm641_vm0, %v11066_v23, %v11274_v41  ;;  %v2264_v37 = vsel %vm1086_vm10, %v2244_v33, %v11412_v15  ;;  %v11593_v35 = vadd.f32 %v10880_v18, %v2260_v55  ;;  %v15231_v55 = vld [vmem:[#allocation26_spill] sm:$0xff]  ;;  %v15232_v33 = vld [vmem:[#allocation35_spill] sm:$0xff] }
 0x2fd   : > { %v11501_v47 = vpop.permute.xlu1 %2046  ;;  %1760 = vrot.lane.b32.xlu0 %v11206_v51, %s15138_s23  ;;  %v11590_v36 = vadd.f32 %v10878_v16, %v2259_v63  ;;  %v2116_v22 = vsel %vm2112_vm11, %v2095_v50, %v11282_v44  ;;  %v2136_v23 = vsel %vm2133_vm12, %v2115_v5, %v11286_v53  ;;  %v2263_v41 = vsel %vm1086_vm10, %v2243_v11, %v11374_v1  ;;  %v15217_v53 = vld [vmem:[#allocation27_spill] sm:$0xff]  ;;  %v15218_v1 = vld [vmem:[#allocation13_spill] sm:$0xff] }
 0x2fe   : > { %v2137_v38 = vsel %vm2133_vm12, %v2116_v22, %v11290_v39  ;;  %v2099_v42 = vsel %vm641_vm0, %v11084_v45, %v11420_v7  ;;  %v2157_v44 = vsel %vm2154_vm13, %v2136_v23, %v11294_v32  ;;  %v11617_v54 = vadd.f32 %v10880_v18, %v2264_v37  ;;  %v15219_v7 = vld [vmem:[#allocation14_spill] sm:$0xff]  ;;  %v15233_v37 = vld [vmem:[#allocation17_spill] sm:$0xff] }
 0x2ff   : > { %v11519_v4 = vpop.permute.xlu0 %1688  ;;  %1642 = vrot.lane.b32.xlu1 %v11224_v28, %s15148_s17  ;;  %v2158_v15 = vsel %vm2154_vm13, %v2137_v38, %v11298_v46  ;;  %v2120_v6 = vsel %vm2112_vm11, %v2099_v42, %v15217_v53  ;;  %v2178_v45 = vsel %vm15170_vm14, %v2157_v44, %v15218_v1  ;;  %v2098_v46 = vsel %vm641_vm0, %v15221_v40, %v15220_v2  ;;  %v15234_v22 = vld [vmem:[#allocation22_spill] sm:$0xff]  ;;  %v15235_v38 = vld [vmem:[#allocation28_spill] sm:$0xff]  ;;  %v15239_v2 = vld [vmem:[#allocation21_spill] sm:$0xff] }
 0x300   : > { %v2179_v32 = vsel %vm15170_vm14, %v2158_v15, %v15219_v7  ;;  %v2141_v62 = vsel %vm2133_vm12, %v2120_v6, %v15222_v60  ;;  %v11637_v52 = vadd.f32 %v10878_v16, %v2263_v41  ;;  %v2119_v34 = vsel %vm2112_vm11, %v2098_v46, %v15224_v0  ;;  %v15236_v42 = vld [vmem:[#allocation38_spill] sm:$0xff]  ;;  %v15237_v15 = vld [vmem:[#allocation19_spill] sm:$0xff]  ;;  %v15240_v46 = vld [vmem:[#allocation32_spill] sm:$0xff] }
 0x301   : > { %v11535_v21 = vpop.permute.xlu1 %1570  ;;  %1820 = vrot.lane.b32.xlu0 %v11206_v51, %s10482_s25  ;;  %v2200_v48 = vsel %vm15171_vm15, %v2179_v32, %v15223_v3  ;;  %v2162_v20 = vsel %vm2154_vm13, %v2141_v62, %v15225_v19  ;;  %v2199_v26 = vsel %vm15171_vm15, %v2178_v45, %v15226_v25  ;;  %v2140_v49 = vsel %vm2133_vm12, %v2119_v34, %v15228_v29  ;;  %v15238_v1 = vld [vmem:[#allocation30_spill] sm:$0xff]  ;;  %v11701_v25 = vpop.f32.mrb[18].mxu0 }
 0x302   : > { %v2221_v57 = vsel %vm2217_vm1, %v2200_v48, %v15227_v8  ;;  %v2183_v59 = vsel %vm15170_vm14, %v2162_v20, %v15229_v30  ;;  %v2314_v63 = vmax.f32 %v11617_v54, 0.0  ;;  %v2161_v11 = vsel %vm2154_vm13, %v2140_v49, %v15231_v55  ;;  %v15241_v0 = vld [vmem:[#allocation34_spill] sm:$0xff]  ;;  %v15242_v20 = vld [vmem:[#allocation36_spill] sm:$0xff]  ;;  %v8608_v49 = vpop.f32.mrb[19].mxu0 }
 0x303   : > { %v11547_v12 = vpop.permute.xlu0 %1748  ;;  %1702 = vrot.lane.b32.xlu1 %v11224_v28, %s15136_s18  ;;  %v2242_v31 = vsel %vm2238_vm3, %v2221_v57, %v15230_v9  ;;  %v2204_v17 = vsel %vm15171_vm15, %v2183_v59, %v15232_v33  ;;  %v2220_v5 = vsel %vm2217_vm1, %v2199_v26, %v15233_v37  ;;  %v2182_v41 = vsel %vm15170_vm14, %v2161_v11, %v15235_v38  ;;  %v15243_v30 = vld [vmem:[#allocation8_spill] sm:$0xff] }
 0x304   : > { %v2262_v23 = vsel %vm1086_vm10, %v2242_v31, %v15234_v22  ;;  %v2225_v44 = vsel %vm2217_vm1, %v2204_v17, %v15236_v42  ;;  %v2241_v53 = vsel %vm2238_vm3, %v2220_v5, %v15237_v15  ;;  %v2313_v6 = vmax.f32 %v11637_v52, 0.0 }
 0x305   : > { %v11565_v24 = vpop.permute.xlu1 %1630  ;;  %1880 = vrot.lane.b32.xlu0 %v11206_v51, %s10483_s12  ;;  %v2203_v45 = vsel %vm15171_vm15, %v2182_v41, %v15238_v1  ;;  %v2246_v7 = vsel %vm2238_vm3, %v2225_v44, %v11487_v14  ;;  %v2261_v40 = vsel %vm1086_vm10, %v2241_v53, %v15239_v2  ;;  %v2310_v3 = vmax.f32 %v11593_v35, 0.0 }
 0x306   : > { %v2224_v60 = vsel %vm2217_vm1, %v2203_v45, %v15240_v46  ;;  %v2266_v62 = vsel %vm1086_vm10, %v2246_v7, %v11501_v47  ;;  %v11689_v48 = vadd.f32 %v10880_v18, %v2262_v23  ;;  %v9196_v14 = vpack.i.bf16 %v2314_v63, %v2313_v6  ;;  %v15244_v23 = vld [vmem:[#allocation9_spill] sm:$0xff] }
 0x307   : > { %v11577_v10 = vpop.permute.xlu0 %1808  ;;  %1762 = vrot.lane.b32.xlu1 %v11224_v28, %s15138_s23  ;;  %v2245_v34 = vsel %vm2238_vm3, %v2224_v60, %v15241_v0  ;;  %v2309_v26 = vmax.f32 %v11590_v36, 0.0  ;;  %v11705_v8 = vadd.f32 %v10878_v16, %v2261_v40  ;;  %v11708_v57 = vadd.f32 %v10880_v18, %v2266_v62  ;;  %v11770_v60 = vpop.f32.mrb[18].mxu1 }
 0x308   : > { %v2265_v47 = vsel %vm1086_vm10, %v2245_v34, %v15242_v20  ;;  %v2100_v59 = vsel %vm641_vm0, %v15243_v30, %v11477_v56  ;;  %v2312_v31 = vmax.f32 %v11689_v48, 0.0 }
 0x309   : > { %v11599_v61 = vpop.permute.xlu1 %1690  ;;  %1940 = vrot.lane.b32.xlu0 %v11206_v51, %s10484_s13  ;;  %v9206_v9 = vpack.i.bf16 %v2310_v3, %v2309_v26  ;;  %v11720_v55 = vadd.f32 %v10878_v16, %v2265_v47  ;;  %v2121_v11 = vsel %vm2112_vm11, %v2100_v59, %v11497_v43  ;;  %v2311_v17 = vmax.f32 %v11705_v8, 0.0 }
 0x30a   : > { %v2142_v56 = vsel %vm2133_vm12, %v2121_v11, %v11519_v4  ;;  %v2316_v37 = vmax.f32 %v11708_v57, 0.0  ;;  %v2101_v43 = vsel %vm641_vm0, %v15244_v23, %v11535_v21 }
 0x30b   : > { %v11621_v39 = vpop.permute.xlu0 %1868  ;;  %1822 = vrot.lane.b32.xlu1 %v11224_v28, %s10482_s25  ;;  %v2163_v5 = vsel %vm2154_vm13, %v2142_v56, %v11547_v12  ;;  %v9211_v4 = vpack.i.bf16 %v2312_v31, %v2311_v17  ;;  %v2315_v41 = vmax.f32 %v11720_v55, 0.0  ;;  %v2122_v12 = vsel %vm2112_vm11, %v2101_v43, %v11565_v24 }
 0x30c   : > { %v2184_v38 = vsel %vm15170_vm14, %v2163_v5, %v11577_v10  ;;  %v2143_v21 = vsel %vm2133_vm12, %v2122_v12, %v11599_v61 }
 0x30d   : > { %v11643_v27 = vpop.permute.xlu1 %1750  ;;  %2000 = vrot.lane.b32.xlu0 %v11206_v51, %s10485_s14  ;;  %v2205_v42 = vsel %vm15171_vm15, %v2184_v38, %v11621_v39  ;;  %v9201_v15 = vpack.i.bf16 %v2316_v37, %v2315_v41 }
 0x30e   : > { %v2164_v24 = vsel %vm2154_vm13, %v2143_v21, %v11643_v27  ;;  %v15246_v21 = vld [vmem:[#allocation11_spill] sm:$0xff] }
 0x30f   : > { %v1929_v50 = vpop.permute.xlu0 %1928  ;;  %1882 = vrot.lane.b32.xlu1 %v11224_v28, %s10483_s12 }
 0x310   : > { %v2226_v10 = vsel %vm2217_vm1, %v2205_v42, %v1929_v50 }
 0x311   : > { %v1811_v32 = vpop.permute.xlu1 %1810  ;;  %2060 = vrot.lane.b32.xlu0 %v11206_v51, %s10486_s15 }
 0x312   : > { %v2185_v1 = vsel %vm15170_vm14, %v2164_v24, %v1811_v32 }
 0x313   : > { %v1989_v19 = vpop.permute.xlu0 %1988  ;;  %1942 = vrot.lane.b32.xlu1 %v11224_v28, %s10484_s13 }
 0x314   : > { %v2247_v53 = vsel %vm2238_vm3, %v2226_v10, %v1989_v19 }
 0x315   : > { %v1871_v29 = vpop.permute.xlu1 %1870  ;;  %9197 = vrot.lane.b32.xlu0 %v9196_v14, %s15144_s30  ;;  %v8614_v14 = vpop.f32.mrb[19].mxu1 }
 0x316   : > { %v2206_v61 = vsel %vm15171_vm15, %v2185_v1, %v1871_v29 }
 0x317   : > { %v2049_v33 = vpop.permute.xlu0 %2048  ;;  %2002 = vrot.lane.b32.xlu1 %v11224_v28, %s10485_s14 }
 0x318   : > { %v2267_v45 = vsel %vm1086_vm10, %v2247_v53, %v2049_v33 }
 0x319   : > { %v1931_v22 = vpop.permute.xlu1 %1930  ;;  %9207 = vrot.lane.b32.xlu0 %v9206_v9, %s15144_s30  ;;  %v11766_v2 = vadd.f32 %v10878_v16, %v2267_v45 }
 0x31a   : > { %v2227_v7 = vsel %vm2217_vm1, %v2206_v61, %v1931_v22  ;;  %v15245_v22 = vld [vmem:[#allocation10_spill] sm:$0xff] }
 0x31b   : > { %v1573_v44 = vpop.permute.xlu0 %1572  ;;  %2062 = vrot.lane.b32.xlu1 %v11224_v28, %s10486_s15  ;;  %v2317_v0 = vmax.f32 %v11766_v2, 0.0 }
 0x31c   : > { %v2102_v23 = vsel %vm641_vm0, %v15245_v22, %v1573_v44 }
 0x31d   : > { %v1991_v39 = vpop.permute.xlu1 %1990  ;;  %9212 = vrot.lane.b32.xlu0 %v9211_v4, %s15144_s30 }
 0x31e   : > { %v2248_v27 = vsel %vm2238_vm3, %v2227_v7, %v1991_v39 }
 0x31f   : > { %v1633_v50 = vpop.permute.xlu0 %1632  ;;  %9202 = vrot.lane.b32.xlu1 %v9201_v15, %s15144_s30 }
 0x320   : > { %v2123_v43 = vsel %vm2112_vm11, %v2102_v23, %v1633_v50 }
 0x321   : > { %v2051_v40 = vpop.permute.xlu1 %2050 }
 0x322   : > { %v2268_v46 = vsel %vm1086_vm10, %v2248_v27, %v2051_v40 }
 0x323   : > { %v11773_v32 = vadd.f32 %v10880_v18, %v2268_v46  ;;  %v1693_v62 = vpop.permute.xlu0 %1692 }
 0x324   : > { %v2144_v4 = vsel %vm2133_vm12, %v2123_v43, %v1693_v62 }
 0x325   : > { %v2318_v34 = vmax.f32 %v11773_v32, 0.0  ;;  %v1575_v19 = vpop.permute.xlu1 %1574 }
 0x326   : > { %v2103_v10 = vsel %vm641_vm0, %v15246_v21, %v1575_v19  ;;  %v15247_v21 = vld [vmem:[#allocation12_spill] sm:$0xff] }
 0x327   : > { %v9216_v20 = vpack.i.bf16 %v2318_v34, %v2317_v0  ;;  %v1753_v47 = vpop.permute.xlu0 %1752 }
 0x328   : > { %v2165_v12 = vsel %vm2154_vm13, %v2144_v4, %v1753_v47 }
 0x329   : > { %v1635_v29 = vpop.permute.xlu1 %1634  ;;  %9217 = vrot.lane.b32.xlu1 %v9216_v20, %s15144_s30 }
 0x32a   : > { %v2124_v24 = vsel %vm2112_vm11, %v2103_v10, %v1635_v29 }
 0x32b   : > { %v1813_v49 = vpop.permute.xlu0 %1812 }
 0x32c   : > { %v2186_v15 = vsel %vm15170_vm14, %v2165_v12, %v1813_v49 }
 0x32d   : > { %v1695_v30 = vpop.permute.xlu1 %1694 }
 0x32e   : > { %v2145_v44 = vsel %vm2133_vm12, %v2124_v24, %v1695_v30 }
 0x32f   : > { %v1873_v59 = vpop.permute.xlu0 %1872 }
 0x330   : > { %v2207_v53 = vsel %vm15171_vm15, %v2186_v15, %v1873_v59 }
 0x331   : > { %v1755_v9 = vpop.permute.xlu1 %1754 }
 0x332   : > { %v2166_v45 = vsel %vm2154_vm13, %v2145_v44, %v1755_v9 }
 0x333   : > { %v1933_v11 = vpop.permute.xlu0 %1932 }
 0x334   : > { %v2228_v1 = vsel %vm2217_vm1, %v2207_v53, %v1933_v11 }
 0x335   : > { %v1815_v33 = vpop.permute.xlu1 %1814 }
 0x336   : > { %v2187_v7 = vsel %vm15170_vm14, %v2166_v45, %v1815_v33 }
 0x337   : > { %v1993_v56 = vpop.permute.xlu0 %1992 }
 0x338   : > { %v2249_v61 = vsel %vm2238_vm3, %v2228_v1, %v1993_v56 }
 0x339   : > { %v1875_v5 = vpop.permute.xlu1 %1874 }
 0x33a   : > { %v2208_v40 = vsel %vm15171_vm15, %v2187_v7, %v1875_v5 }
 0x33b   : > { %v2053_v38 = vpop.permute.xlu0 %2052 }
 0x33c   : > { %v2269_v27 = vsel %vm1086_vm10, %v2249_v61, %v2053_v38 }
 0x33d   : > { %v1935_v42 = vpop.permute.xlu1 %1934  ;;  %v11801_v14 = vadd.f32 %v10878_v16, %v2269_v27 }
 0x33e   : > { %v2229_v62 = vsel %vm2217_vm1, %v2208_v40, %v1935_v42 }
 0x33f   : > { %v1577_v39 = vpop.permute.xlu0 %1576  ;;  %v2319_v30 = vmax.f32 %v11801_v14, 0.0 }
 0x340   : > { %v2104_v10 = vsel %vm641_vm0, %v15247_v21, %v1577_v39 }
 0x341   : > { %v1995_v50 = vpop.permute.xlu1 %1994 }
 0x342   : > { %v2250_v19 = vsel %vm2238_vm3, %v2229_v62, %v1995_v50 }
 0x343   : > { %v1637_v46 = vpop.permute.xlu0 %1636 }
 0x344   : > { %v2125_v15 = vsel %vm2112_vm11, %v2104_v10, %v1637_v46 }
 0x345   : > { %v2055_v20 = vpop.permute.xlu1 %2054 }
 0x346   : > { %v2270_v47 = vsel %vm1086_vm10, %v2250_v19, %v2055_v20 }
 0x347   : > { %v11806_v29 = vadd.f32 %v10880_v18, %v2270_v47  ;;  %v1697_v49 = vpop.permute.xlu0 %1696 }
 0x348   : > { %v2146_v53 = vsel %vm2133_vm12, %v2125_v15, %v1697_v49 }
 0x349   : > { %v2320_v59 = vmax.f32 %v11806_v29, 0.0  ;;  %v1579_v9 = vpop.permute.xlu1 %1578 }
 0x34a   : > { %v2105_v45 = vsel %vm641_vm0, %v11170_v58, %v1579_v9 }
 0x34b   : > { %v9221_v11 = vpack.i.bf16 %v2320_v59, %v2319_v30  ;;  %v1757_v33 = vpop.permute.xlu0 %1756 }
 0x34c   : > { %v2167_v44 = vsel %vm2154_vm13, %v2146_v53, %v1757_v33 }
 0x34d   : > { %9222 = vrot.lane.b32.xlu1 %v9221_v11, %s15144_s30  ;;  %v1639_v56 = vpop.permute.xlu1 %1638 }
 0x34e   : > { %v2126_v50 = vsel %vm2112_vm11, %v2105_v45, %v1639_v56 }
 0x34f   : > { %v1817_v5 = vpop.permute.xlu0 %1816 }
 0x350   : > { %v2188_v61 = vsel %vm15170_vm14, %v2167_v44, %v1817_v5 }
 0x351   : > { %v1699_v22 = vpop.permute.xlu1 %1698 }
 0x352   : > { %v2147_v39 = vsel %vm2133_vm12, %v2126_v50, %v1699_v22 }
 0x353   : > { %v1877_v23 = vpop.permute.xlu0 %1876 }
 0x354   : > { %v2209_v7 = vsel %vm15171_vm15, %v2188_v61, %v1877_v23 }
 0x355   : > { %v1759_v43 = vpop.permute.xlu1 %1758 }
 0x356   : > { %v2168_v46 = vsel %vm2154_vm13, %v2147_v39, %v1759_v43 }
 0x357   : > { %v1937_v38 = vpop.permute.xlu0 %1936 }
 0x358   : > { %v2230_v40 = vsel %vm2217_vm1, %v2209_v7, %v1937_v38 }
 0x359   : > { %v1819_v4 = vpop.permute.xlu1 %1818 }
 0x35a   : > { %v2189_v20 = vsel %vm15170_vm14, %v2168_v46, %v1819_v4 }
 0x35b   : > { %v1997_v12 = vpop.permute.xlu0 %1996 }
 0x35c   : > { %v2251_v62 = vsel %vm2238_vm3, %v2230_v40, %v1997_v12 }
 0x35d   : > { %v1879_v42 = vpop.permute.xlu1 %1878 }
 0x35e   : > { %v2210_v47 = vsel %vm15171_vm15, %v2189_v20, %v1879_v42 }
 0x35f   : > { %v2057_v24 = vpop.permute.xlu0 %2056 }
 0x360   : > { %v2271_v58 = vsel %vm1086_vm10, %v2251_v62, %v2057_v24  ;;  %v15248_v24 = vld [vmem:[#allocation37_spill] sm:$0xff] }
 0x361   : > { %v1939_v1 = vpop.permute.xlu1 %1938  ;;  %v11834_v11 = vadd.f32 %v10878_v16, %v2271_v58 }
 0x362   : > { %v2231_v9 = vsel %vm2217_vm1, %v2210_v47, %v1939_v1 }
 0x363   : > { %v1581_v27 = vpop.permute.xlu0 %1580  ;;  %v2321_v43 = vmax.f32 %v11834_v11, 0.0 }
 0x364   : > { %v2106_v7 = vsel %vm641_vm0, %v11206_v51, %v1581_v27 }
 0x365   : > { %v1999_v19 = vpop.permute.xlu1 %1998 }
 0x366   : > { %v2252_v33 = vsel %vm2238_vm3, %v2231_v9, %v1999_v19 }
 0x367   : > { %v1641_v49 = vpop.permute.xlu0 %1640 }
 0x368   : > { %v2127_v39 = vsel %vm2112_vm11, %v2106_v7, %v1641_v49 }
 0x369   : > { %v2059_v56 = vpop.permute.xlu1 %2058 }
 0x36a   : > { %v2272_v5 = vsel %vm1086_vm10, %v2252_v33, %v2059_v56 }
 0x36b   : > { %v11839_v22 = vadd.f32 %v10880_v18, %v2272_v5  ;;  %v1701_v23 = vpop.permute.xlu0 %1700 }
 0x36c   : > { %v2148_v46 = vsel %vm2133_vm12, %v2127_v39, %v1701_v23 }
 0x36d   : > { %v2322_v38 = vmax.f32 %v11839_v22, 0.0  ;;  %v1583_v4 = vpop.permute.xlu1 %1582 }
 0x36e   : > { %v2107_v20 = vsel %vm641_vm0, %v11224_v28, %v1583_v4 }
 0x36f   : > { %v9226_v12 = vpack.i.bf16 %v2322_v38, %v2321_v43  ;;  %v1761_v42 = vpop.permute.xlu0 %1760 }
 0x370   : > { %v2169_v62 = vsel %vm2154_vm13, %v2148_v46, %v1761_v42 }
 0x371   : > { %9227 = vrot.lane.b32.xlu0 %v9226_v12, %s15144_s30  ;;  %v1643_v21 = vpop.permute.xlu1 %1642 }
 0x372   : > { %v2128_v47 = vsel %vm2112_vm11, %v2107_v20, %v1643_v21 }
 0x373   : > { %v1821_v10 = vpop.permute.xlu0 %1820 }
 0x374   : > { %v2190_v58 = vsel %vm15170_vm14, %v2169_v62, %v1821_v10 }
 0x375   : > { %v1703_v15 = vpop.permute.xlu1 %1702  ;;  %1584 = vrot.lane.b32.xlu0 %v15248_v24, %s15150_s26 }
 0x376   : > { %v2149_v49 = vsel %vm2133_vm12, %v2128_v47, %v1703_v15 }
 0x377   : > { %v1881_v53 = vpop.permute.xlu0 %1880 }
 0x378   : > { %v2211_v51 = vsel %vm15171_vm15, %v2190_v58, %v1881_v53 }
 0x379   : > { %v1763_v44 = vpop.permute.xlu1 %1762  ;;  %1644 = vrot.lane.b32.xlu0 %v15248_v24, %s15148_s17 }
 0x37a   : > { %v2170_v33 = vsel %vm2154_vm13, %v2149_v49, %v1763_v44 }
 0x37b   : > { %v1941_v1 = vpop.permute.xlu0 %1940 }
 0x37c   : > { %v2232_v9 = vsel %vm2217_vm1, %v2211_v51, %v1941_v1 }
 0x37d   : > { %v1823_v45 = vpop.permute.xlu1 %1822  ;;  %1704 = vrot.lane.b32.xlu0 %v15248_v24, %s15136_s18 }
 0x37e   : > { %v2191_v28 = vsel %vm15170_vm14, %v2170_v33, %v1823_v45 }
 0x37f   : > { %v2001_v61 = vpop.permute.xlu0 %2000 }
 0x380   : > { %v2253_v56 = vsel %vm2238_vm3, %v2232_v9, %v2001_v61 }
 0x381   : > { %v1883_v50 = vpop.permute.xlu1 %1882  ;;  %1764 = vrot.lane.b32.xlu0 %v15248_v24, %s15138_s23 }
 0x382   : > { %v2212_v4 = vsel %vm15171_vm15, %v2191_v28, %v1883_v50 }
 0x383   : > { %v2061_v40 = vpop.permute.xlu0 %2060 }
 0x384   : > { %v2273_v23 = vsel %vm1086_vm10, %v2253_v56, %v2061_v40 }
 0x385   : > { %v1943_v19 = vpop.permute.xlu1 %1942  ;;  %1588 = vrot.lane.b32.xlu0 %v11559_v13, %s15150_s26  ;;  %v11879_v15 = vadd.f32 %v10878_v16, %v2273_v23 }
 0x386   : > { %v2233_v42 = vsel %vm2217_vm1, %v2212_v4, %v1943_v19 }
 0x387   : > { %v9198_v27 = vpop.permute.xlu0 %9197  ;;  %v2323_v35 = vmax.f32 %v11879_v15, 0.0 }
 0x388   : > { %v9200_v53 = vunpack.i.h.bf16 %v9198_v27  ;;  %v9199_v45 = vunpack.i.l.bf16 %v9198_v27 }
 0x389   : > { %v2003_v5 = vpop.permute.xlu1 %2002  ;;  %1824 = vrot.lane.b32.xlu0 %v15248_v24, %s10482_s25 }
 0x38a   : > { %v2254_v44 = vsel %vm2238_vm3, %v2233_v42, %v2003_v5  ;;  %v2371_v58 = vmax.f32 %v2313_v6, %v9199_v45 }
 0x38b   : > { %v9208_v12 = vpop.permute.xlu0 %9207 }
 0x38c   : > { %v9210_v21 = vunpack.i.h.bf16 %v9208_v12  ;;  %v9209_v10 = vunpack.i.l.bf16 %v9208_v12  ;;  %v2381_v54 = vmax.f32 %v2371_v58, %v2315_v41 }
 0x38d   : > { %v2063_v1 = vpop.permute.xlu1 %2062  ;;  %1648 = vrot.lane.b32.xlu0 %v11559_v13, %s15148_s17 }
 0x38e   : > { %v2370_v61 = vmax.f32 %v2310_v3, %v9210_v21  ;;  %v2369_v50 = vmax.f32 %v2309_v26, %v9209_v10  ;;  %v2274_v7 = vsel %vm1086_vm10, %v2254_v44, %v2063_v1  ;;  %v2372_v26 = vmax.f32 %v2314_v63, %v9200_v53 }
 0x38f   : > { %v11890_v39 = vadd.f32 %v10880_v18, %v2274_v7  ;;  %v9213_v40 = vpop.permute.xlu0 %9212 }
 0x390   : > { %v9215_v46 = vunpack.i.h.bf16 %v9213_v40  ;;  %v9214_v62 = vunpack.i.l.bf16 %v9213_v40  ;;  %v2379_v19 = vmax.f32 %v2369_v50, %v2311_v17  ;;  %v2380_v20 = vmax.f32 %v2370_v61, %v2312_v31 }
 0x391   : > { %v2324_v3 = vmax.f32 %v11890_v39, 0.0  ;;  %v9203_v36 = vpop.permute.xlu1 %9202  ;;  %v2382_v52 = vmax.f32 %v2372_v26, %v2316_v37 }
 0x392   : > { %v11902_v47 = vmax.f32 %v2379_v19, %v9214_v62  ;;  %v11904_v51 = vmax.f32 %v2380_v20, %v9215_v46  ;;  %v9205_v8 = vunpack.i.h.bf16 %v9203_v36  ;;  %v9204_v31 = vunpack.i.l.bf16 %v9203_v36 }
 0x393   : > { %v9231_v48 = vpack.i.bf16 %v2324_v3, %v2323_v35 }
 0x394   : > { %v9236_v17 = vpack.i.bf16 %v11904_v51, %v11902_v47  ;;  %v11918_v63 = vmax.f32 %v2382_v52, %v9205_v8  ;;  %v11920_v6 = vmax.f32 %v2381_v54, %v9204_v31 }
 0x395   : > { %9232 = vrot.lane.b32.xlu1 %v9231_v48, %s15144_s30 }
 0x396   : > { %9237 = vrot.lane.b32.xlu0 %v9236_v17, %s15144_s30  ;;  %v9256_v27 = vpack.i.bf16 %v11918_v63, %v11920_v6 }
 0x399   : > { %1586 = vrot.lane.b32.xlu1 %v11701_v25, %s15150_s26 }
 0x39a   : > { %9247 = vrot.lane.b32.xlu0 %v9236_v17, %s15142_s16 }
 0x39b   : > { %v9218_v57 = vpop.permute.xlu1 %9217 }
 0x39c   : > { %v9220_v55 = vunpack.i.h.bf16 %v9218_v57  ;;  %v9219_v37 = vunpack.i.l.bf16 %v9218_v57 }
 0x39d   : > { %1646 = vrot.lane.b32.xlu1 %v11701_v25, %s15148_s17 }
 0x39e   : > { %9257 = vrot.lane.b32.xlu0 %v9256_v27, %s15144_s30  ;;  %v2374_v41 = vmax.f32 %v2318_v34, %v9220_v55  ;;  %v2373_v49 = vmax.f32 %v2317_v0, %v9219_v37 }
 0x3a0   : > { %v2383_v5 = vmax.f32 %v2373_v49, %v2319_v30  ;;  %v2384_v28 = vmax.f32 %v2374_v41, %v2320_v59 }
 0x3a1   : > { %1706 = vrot.lane.b32.xlu1 %v11701_v25, %s15136_s18 }
 0x3a2   : > { %9267 = vrot.lane.b32.xlu0 %v9256_v27, %s15142_s16 }
 0x3a5   : > { %1766 = vrot.lane.b32.xlu1 %v11701_v25, %s15138_s23 }
 0x3a6   : > { %1884 = vrot.lane.b32.xlu0 %v15248_v24, %s10483_s12 }
 0x3a9   : > { %1590 = vrot.lane.b32.xlu1 %v11770_v60, %s15150_s26 }
 0x3ad   : > { %1826 = vrot.lane.b32.xlu1 %v11701_v25, %s10482_s25 }
 0x3b1   : > { %9242 = vrot.lane.b32.xlu1 %v9236_v17, %s15150_s26 }
 0x3b5   : > { %9252 = vrot.lane.b32.xlu1 %v9236_v17, %s15148_s17 }
 0x3b9   : > { %9262 = vrot.lane.b32.xlu1 %v9256_v27, %s15150_s26 }
 0x3bd   : > { %9272 = vrot.lane.b32.xlu1 %v9256_v27, %s15148_s17 }
 0x3bf   : > { %v9223_v9 = vpop.permute.xlu1 %9222 }
 0x3c0   : > { %v9225_v33 = vunpack.i.h.bf16 %v9223_v9  ;;  %v9224_v56 = vunpack.i.l.bf16 %v9223_v9 }
 0x3c1   : > { %1650 = vrot.lane.b32.xlu1 %v11770_v60, %s15148_s17 }
 0x3c2   : > { %v11955_v23 = vmax.f32 %v2383_v5, %v9224_v56  ;;  %v11957_v32 = vmax.f32 %v2384_v28, %v9225_v33 }
 0x3c4   : > { %v9276_v2 = vpack.i.bf16 %v11957_v32, %v11955_v23 }
 0x3c6   : > { %9277 = vrot.lane.b32.xlu0 %v9276_v2, %s15144_s30  ;;  %9282 = vrot.lane.b32.xlu1 %v9276_v2, %s15150_s26 }
 0x3ca   : > { %9287 = vrot.lane.b32.xlu0 %v9276_v2, %s15142_s16  ;;  %9292 = vrot.lane.b32.xlu1 %v9276_v2, %s15148_s17 }
 0x3ce   : > { %1708 = vrot.lane.b32.xlu0 %v11559_v13, %s15136_s18  ;;  %1886 = vrot.lane.b32.xlu1 %v11701_v25, %s10483_s12 }
 0x3e3   : > { %v9228_v0 = vpop.permute.xlu0 %9227 }
 0x3e4   : > { %v9230_v30 = vunpack.i.h.bf16 %v9228_v0  ;;  %v9229_v59 = vunpack.i.l.bf16 %v9228_v0 }
 0x3e6   : > { %v2376_v4 = vmax.f32 %v2322_v38, %v9230_v30  ;;  %v2375_v12 = vmax.f32 %v2321_v43, %v9229_v59 }
 0x3e7   : > { %v11969_v34 = vpop.permute.xlu0 %1584 }
 0x3e8   : > { %v2385_v10 = vmax.f32 %v2375_v12, %v2323_v35  ;;  %v2386_v53 = vmax.f32 %v2376_v4, %v2324_v3 }
 0x3eb   : > { %v11971_v14 = vpop.permute.xlu0 %1644 }
 0x3ef   : > { %v11973_v29 = vpop.permute.xlu0 %1704 }
 0x3f3   : > { %v11979_v42 = vpop.permute.xlu0 %1764 }
 0x3f7   : > { %v11985_v45 = vpop.permute.xlu0 %1588 }
 0x3fb   : > { %v11999_v15 = vpop.permute.xlu0 %1824 }
 0x3ff   : > { %v12005_v7 = vpop.permute.xlu0 %1648 }
 0x407   : > { %v9233_v21 = vpop.permute.xlu1 %9232 }
 0x408   : > { %v9235_v44 = vunpack.i.h.bf16 %v9233_v21  ;;  %v9234_v1 = vunpack.i.l.bf16 %v9233_v21  ;;  %v9238_v40 = vpop.permute.xlu0 %9237 }
 0x409   : > { %v9240_v41 = vunpack.i.h.bf16 %v9238_v40  ;;  %v9239_v49 = vunpack.i.l.bf16 %v9238_v40 }
 0x40a   : > { %v11987_v61 = vmax.f32 %v2386_v53, %v9235_v44  ;;  %v11989_v22 = vmax.f32 %v2385_v10, %v9234_v1 }
 0x40b   : > { %v11991_v38 = vpop.permute.xlu1 %1586  ;;  %v2570_v59 = vsel %vm641_vm0, %v11904_v51, %v9240_v41  ;;  %v2569_v4 = vsel %vm641_vm0, %v11902_v47, %v9239_v49 }
 0x40c   : > { %v9296_v11 = vpack.i.bf16 %v11987_v61, %v11989_v22  ;;  %v9248_v19 = vpop.permute.xlu0 %9247 }
 0x40d   : > { %v9250_v1 = vunpack.i.h.bf16 %v9248_v19 }
 0x40e   : > { %9297 = vrot.lane.b32.xlu0 %v9296_v11, %s15144_s30  ;;  %9302 = vrot.lane.b32.xlu1 %v9296_v11, %s15150_s26 }
 0x40f   : > { %v11997_v43 = vpop.permute.xlu1 %1646 }
 0x410   : > { %v9258_v35 = vpop.permute.xlu0 %9257 }
 0x411   : > { %v9260_v36 = vunpack.i.h.bf16 %v9258_v35  ;;  %v9259_v26 = vunpack.i.l.bf16 %v9258_v35 }
 0x412   : > { %9307 = vrot.lane.b32.xlu0 %v9296_v11, %s15142_s16  ;;  %9312 = vrot.lane.b32.xlu1 %v9296_v11, %s15148_s17  ;;  %v9249_v11 = vunpack.i.l.bf16 %v9248_v19 }
 0x413   : > { %v12003_v50 = vpop.permute.xlu1 %1706  ;;  %v2572_v17 = vsel %vm641_vm0, %v11918_v63, %v9260_v36  ;;  %v2571_v54 = vsel %vm641_vm0, %v11920_v6, %v9259_v26 }
 0x414   : > { %v9268_v48 = vpop.permute.xlu0 %9267 }
 0x415   : > { %v9270_v57 = vunpack.i.h.bf16 %v9268_v48  ;;  %v9269_v55 = vunpack.i.l.bf16 %v9268_v48 }
 0x416   : > { %1944 = vrot.lane.b32.xlu0 %v15248_v24, %s10484_s13  ;;  %1710 = vrot.lane.b32.xlu1 %v11770_v60, %s15136_s18  ;;  %s15162_s18 = smov 4  }
 0x417   : > { %v12011_v39 = vpop.permute.xlu1 %1766 }
 0x418   : > { %v12061_v12 = vpop.permute.xlu0 %1884 }
 0x41a   : > { %1768 = vrot.lane.b32.xlu0 %v11559_v13, %s15138_s23  ;;  %1946 = vrot.lane.b32.xlu1 %v11701_v25, %s10484_s13 }
 0x41b   : > { %v12017_v46 = vpop.permute.xlu1 %1590 }
 0x41e   : > { %2004 = vrot.lane.b32.xlu0 %v15248_v24, %s10485_s14  ;;  %1770 = vrot.lane.b32.xlu1 %v11770_v60, %s15138_s23  ;;  %s15261_s23 = smov 3  }
 0x41f   : > { %v12023_v62 = vpop.permute.xlu1 %1826 }
 0x422   : > { %1828 = vrot.lane.b32.xlu0 %v11559_v13, %s10482_s25  ;;  %2006 = vrot.lane.b32.xlu1 %v11701_v25, %s10485_s14 }
 0x423   : > { %v9243_v20 = vpop.permute.xlu1 %9242 }
 0x424   : > { %v9245_v33 = vunpack.i.h.bf16 %v9243_v20  ;;  %v9244_v56 = vunpack.i.l.bf16 %v9243_v20 }
 0x426   : > { %2064 = vrot.lane.b32.xlu0 %v15248_v24, %s10486_s15  ;;  %1830 = vrot.lane.b32.xlu1 %v11770_v60, %s10482_s25  ;;  %v2580_v21 = vsel %vm2112_vm11, %v2570_v59, %v9245_v33  ;;  %v2579_v10 = vsel %vm2112_vm11, %v2569_v4, %v9244_v56  ;;  %s15249_s25 = smov 1  }
 0x427   : > { %v9253_v3 = vpop.permute.xlu1 %9252  ;;  %v2589_v51 = vsel %vm2133_vm12, %v2579_v10, %v9249_v11  ;;  %v2590_v40 = vsel %vm2133_vm12, %v2580_v21, %v9250_v1 }
 0x428   : > { %v9255_v53 = vunpack.i.h.bf16 %v9253_v3  ;;  %v9254_v44 = vunpack.i.l.bf16 %v9253_v3 }
 0x42a   : > { %1888 = vrot.lane.b32.xlu0 %v11559_v13, %s10483_s12  ;;  %2066 = vrot.lane.b32.xlu1 %v11701_v25, %s10486_s15  ;;  %v2599_v35 = vsel %vm2154_vm13, %v2589_v51, %v9254_v44  ;;  %v2600_v36 = vsel %vm2154_vm13, %v2590_v40, %v9255_v53 }
 0x42b   : > { %v9263_v58 = vpop.permute.xlu1 %9262 }
 0x42c   : > { %v9265_v8 = vunpack.i.h.bf16 %v9263_v58  ;;  %v9264_v31 = vunpack.i.l.bf16 %v9263_v58 }
 0x42e   : > { %v2582_v52 = vsel %vm2112_vm11, %v2572_v17, %v9265_v8  ;;  %v2581_v27 = vsel %vm2112_vm11, %v2571_v54, %v9264_v31  ;;  %1950 = vrot.lane.b32.xlu0 %v11770_v60, %s10484_s13  ;;  %1890 = vrot.lane.b32.xlu1 %v11770_v60, %s10483_s12  ;;  %v9321_v54 = vpack.i.bf16 %v2600_v36, %v2599_v35  ;;  %s15158_s12 = smov 6  }
 0x42f   : > { %v9273_v37 = vpop.permute.xlu1 %9272  ;;  %v2591_v6 = vsel %vm2133_vm12, %v2581_v27, %v9269_v55  ;;  %v2592_v5 = vsel %vm2133_vm12, %v2582_v52, %v9270_v57 }
 0x430   : > { %v9275_v9 = vunpack.i.h.bf16 %v9273_v37  ;;  %v9274_v63 = vunpack.i.l.bf16 %v9273_v37 }
 0x432   : > { %v2601_v28 = vsel %vm2154_vm13, %v2591_v6, %v9274_v63  ;;  %v2602_v2 = vsel %vm2154_vm13, %v2592_v5, %v9275_v9  ;;  %2010 = vrot.lane.b32.xlu0 %v11770_v60, %s10485_s14  ;;  %1948 = vrot.lane.b32.xlu1 %v11559_v13, %s10484_s13  ;;  %s15140_s13 = smov 3  }
 0x433   : > { %v12055_v0 = vpop.permute.xlu1 %1650  ;;  %v9316_v30 = vpack.i.bf16 %v2602_v2, %v2601_v28 }
 0x436   : > { %2008 = vrot.lane.b32.xlu1 %v11559_v13, %s10485_s14  ;;  %9317 = vrot.lane.b32.xlu0 %v9316_v30, %s15249_s25  ;;  %s15152_s14 = smov 2  }
 0x438   : > { %v9278_v47 = vpop.permute.xlu0 %9277  ;;  %v9283_v20 = vpop.permute.xlu1 %9282 }
 0x439   : > { %v9280_v26 = vunpack.i.h.bf16 %v9278_v47  ;;  %v9279_v58 = vunpack.i.l.bf16 %v9278_v47  ;;  %v9285_v3 = vunpack.i.h.bf16 %v9283_v20  ;;  %v9284_v48 = vunpack.i.l.bf16 %v9283_v20 }
 0x43a   : > { %2068 = vrot.lane.b32.xlu1 %v11559_v13, %s10486_s15  ;;  %2070 = vrot.lane.b32.xlu0 %v11770_v60, %s10486_s15  ;;  %s10492_s15 = smov 8  }
 0x43b   : > { %v2574_v19 = vsel %vm641_vm0, %v11957_v32, %v9280_v26  ;;  %v2573_v8 = vsel %vm641_vm0, %v11955_v23, %v9279_v58 }
 0x43c   : > { %v9288_v31 = vpop.permute.xlu0 %9287  ;;  %v9293_v17 = vpop.permute.xlu1 %9292  ;;  %v2584_v37 = vsel %vm2112_vm11, %v2574_v19, %v9285_v3  ;;  %v2583_v41 = vsel %vm2112_vm11, %v2573_v8, %v9284_v48 }
 0x43d   : > { %v9290_v52 = vunpack.i.h.bf16 %v9288_v31  ;;  %v9289_v27 = vunpack.i.l.bf16 %v9288_v31  ;;  %v9295_v57 = vunpack.i.h.bf16 %v9293_v17  ;;  %v9294_v55 = vunpack.i.l.bf16 %v9293_v17 }
 0x43e   : > { %9322 = vrot.lane.b32.xlu1 %v9321_v54, %s15249_s25 }
 0x43f   : > { %v2593_v49 = vsel %vm2133_vm12, %v2583_v41, %v9289_v27  ;;  %v2594_v32 = vsel %vm2133_vm12, %v2584_v37, %v9290_v52  ;;  %v2108_v27 = vsel %vm641_vm0, %v15248_v24, %v11969_v34 }
 0x440   : > { %v2603_v9 = vsel %vm2154_vm13, %v2593_v49, %v9294_v55  ;;  %v2604_v23 = vsel %vm2154_vm13, %v2594_v32, %v9295_v57  ;;  %v12088_v33 = vpop.permute.xlu0 %1708  ;;  %v1887_v56 = vpop.permute.xlu1 %1886  ;;  %v2129_v57 = vsel %vm2112_vm11, %v2108_v27, %v11971_v14 }
 0x441   : > { %v9326_v63 = vpack.i.bf16 %v2604_v23, %v2603_v9  ;;  %v2150_v41 = vsel %vm2133_vm12, %v2129_v57, %v11973_v29  ;;  %v2109_v9 = vsel %vm641_vm0, %v11701_v25, %v11991_v38  ;;  %v2111_v25 = vsel %vm641_vm0, %v11770_v60, %v12017_v46 }
 0x442   : > { %v2171_v49 = vsel %vm2154_vm13, %v2150_v41, %v11979_v42  ;;  %v2130_v24 = vsel %vm2112_vm11, %v2109_v9, %v11997_v43  ;;  %v15250_v60 = vmov 0   ;;  %v2110_v46 = vsel %vm641_vm0, %v11559_v13, %v11985_v45 }
 0x443   : > { %9327 = vrot.lane.b32.xlu0 %v9326_v63, %s15249_s25  ;;  %v2192_v32 = vsel %vm15170_vm14, %v2171_v49, %v11999_v15  ;;  %v2151_v29 = vsel %vm2133_vm12, %v2130_v24, %v12003_v50  ;;  %v10488_v50 = vmov 0.0|0.0  }
 0x444   : > { %v2213_v34 = vsel %vm15171_vm15, %v2192_v32, %v12061_v12  ;;  %v2172_v15 = vsel %vm2154_vm13, %v2151_v29, %v12011_v39  ;;  %v2132_v12 = vsel %vm2112_vm11, %v2111_v25, %v12055_v0  ;;  %2770 = vmatpush1.bf16.msra.mxu0 %v10488_v50 }
 0x445   : > { %v2193_v43 = vsel %vm15170_vm14, %v2172_v15, %v12023_v62  ;;  %2771 = vmatprep.subr.bf16.mxu0 %v15250_v60 }
 0x480   : > { %v9298_v6 = vpop.permute.xlu0 %9297  ;;  %v9303_v5 = vpop.permute.xlu1 %9302 }
 0x481   : > { %v9300_v28 = vunpack.i.h.bf16 %v9298_v6  ;;  %v9299_v2 = vunpack.i.l.bf16 %v9298_v6  ;;  %v9305_v30 = vunpack.i.h.bf16 %v9303_v5  ;;  %v9304_v59 = vunpack.i.l.bf16 %v9303_v5 }
 0x482   : > { %v2214_v6 = vsel %vm15171_vm15, %v2193_v43, %v1887_v56 }
 0x483   : > { %v2576_v4 = vsel %vm641_vm0, %v11987_v61, %v9300_v28  ;;  %v2575_v21 = vsel %vm641_vm0, %v11989_v22, %v9299_v2  ;;  %v2131_v2 = vsel %vm2112_vm11, %v2110_v46, %v12005_v7 }
 0x484   : > { %v9308_v10 = vpop.permute.xlu0 %9307  ;;  %v9313_v53 = vpop.permute.xlu1 %9312  ;;  %v2586_v40 = vsel %vm2112_vm11, %v2576_v4, %v9305_v30  ;;  %v2585_v47 = vsel %vm2112_vm11, %v2575_v21, %v9304_v59  ;;  %v2152_v4 = vsel %vm2133_vm12, %v2131_v2, %v12088_v33 }
 0x485   : > { %v9310_v44 = vunpack.i.h.bf16 %v9308_v10  ;;  %v9309_v1 = vunpack.i.l.bf16 %v9308_v10  ;;  %v9315_v11 = vunpack.i.h.bf16 %v9313_v53  ;;  %v9314_v51 = vunpack.i.l.bf16 %v9313_v53 }
 0x487   : > { %v2595_v20 = vsel %vm2133_vm12, %v2585_v47, %v9309_v1  ;;  %v2596_v35 = vsel %vm2133_vm12, %v2586_v40, %v9310_v44 }
 0x488   : > { %v2605_v36 = vsel %vm2154_vm13, %v2595_v20, %v9314_v51  ;;  %v2606_v61 = vsel %vm2154_vm13, %v2596_v35, %v9315_v11  ;;  %v1945_v26 = vpop.permute.xlu0 %1944  ;;  %v1711_v22 = vpop.permute.xlu1 %1710 }
 0x489   : > { %v9331_v58 = vpack.i.bf16 %v2606_v61, %v2605_v36  ;;  %v2234_v42 = vsel %vm2217_vm1, %v2213_v34, %v1945_v26  ;;  %v2153_v39 = vsel %vm2133_vm12, %v2132_v12, %v1711_v22 }
 0x48b   : > { %9332 = vrot.lane.b32.xlu1 %v9331_v58, %s15249_s25 }
 0x48c   : > { %v1769_v3 = vpop.permute.xlu0 %1768  ;;  %v1947_v48 = vpop.permute.xlu1 %1946 }
 0x48d   : > { %v2235_v62 = vsel %vm2217_vm1, %v2214_v6, %v1947_v48  ;;  %v2173_v45 = vsel %vm2154_vm13, %v2152_v4, %v1769_v3 }
 0x490   : > { %v2005_v19 = vpop.permute.xlu0 %2004  ;;  %v1771_v8 = vpop.permute.xlu1 %1770 }
 0x491   : > { %v2255_v38 = vsel %vm2238_vm3, %v2234_v42, %v2005_v19  ;;  %v2174_v0 = vsel %vm2154_vm13, %v2153_v39, %v1771_v8 }
 0x494   : > { %v1829_v31 = vpop.permute.xlu0 %1828  ;;  %v2007_v17 = vpop.permute.xlu1 %2006 }
 0x495   : > { %v2256_v30 = vsel %vm2238_vm3, %v2235_v62, %v2007_v17  ;;  %v2194_v7 = vsel %vm15170_vm14, %v2173_v45, %v1829_v31  ;;  %v15253_v17 = vmov 0.0   ;;  %v2610_v62 = vld [vmem:[%s15254_s3 + $0x8] sm:$0xff] }
 0x498   : > { %v2065_v54 = vpop.permute.xlu0 %2064  ;;  %v1831_v52 = vpop.permute.xlu1 %1830 }
 0x499   : > { %v2275_v63 = vsel %vm1086_vm10, %v2255_v38, %v2065_v54  ;;  %v2195_v59 = vsel %vm15170_vm14, %v2174_v0, %v1831_v52  ;;  %v12232_v0 = vpack.c.bf16 %v2610_v62, %v2610_v62 }
 0x49a   : > { %v12146_v56 = vadd.f32 %v10878_v16, %v2275_v63 }
 0x49b   : > { %7886 = vmatprep.mubr.msk.bf16.mxu0 %vm15173_vm5, %v12232_v0  ;;  %7896 = vmatprep.mubr.msk.bf16.mxu1 %vm15173_vm5, %v12232_v0 }
 0x49c   : > { %v1889_v55 = vpop.permute.xlu0 %1888  ;;  %v2067_v37 = vpop.permute.xlu1 %2066  ;;  %v2325_v11 = vmax.f32 %v12146_v56, 0.0 }
 0x49d   : > { %v2276_v21 = vsel %vm1086_vm10, %v2256_v30, %v2067_v37  ;;  %v2215_v51 = vsel %vm15171_vm15, %v2194_v7, %v1889_v55 }
 0x49e   : > { %v12158_v40 = vadd.f32 %v10880_v18, %v2276_v21 }
 0x4a0   : > { %v1951_v14 = vpop.permute.xlu0 %1950  ;;  %v1891_v23 = vpop.permute.xlu1 %1890  ;;  %v2326_v55 = vmax.f32 %v12158_v40, 0.0 }
 0x4a1   : > { %v2216_v13 = vsel %vm15171_vm15, %v2195_v59, %v1891_v23 }
 0x4a2   : > { %v2237_v33 = vsel %vm2217_vm1, %v2216_v13, %v1951_v14 }
 0x4a4   : > { %v2011_v5 = vpop.permute.xlu0 %2010  ;;  %v1949_v28 = vpop.permute.xlu1 %1948 }
 0x4a5   : > { %v2258_v47 = vsel %vm2238_vm3, %v2237_v33, %v2011_v5  ;;  %v2236_v20 = vsel %vm2217_vm1, %v2215_v51, %v1949_v28 }
 0x4a8   : > { %v2009_v10 = vpop.permute.xlu1 %2008  ;;  %v9318_v53 = vpop.permute.xlu0 %9317 }
 0x4a9   : > { %v9320_v44 = vunpack.i.h.bf16 %v9318_v53  ;;  %v9319_v1 = vunpack.i.l.bf16 %v9318_v53  ;;  %v2257_v26 = vsel %vm2238_vm3, %v2236_v20, %v2009_v10 }
 0x4ab   : > { %v2655_v35 = vsel %vm641_vm0, 0.0, %v9320_v44  ;;  %v2654_v36 = vsel %vm641_vm0, 0.0, %v9319_v1 }
 0x4ac   : > { %v2665_v22 = vsel %vm15171_vm15, %v2655_v35, 0.0  ;;  %v2664_v58 = vsel %vm15171_vm15, %v2654_v36, 0.0  ;;  %v12174_v3 = vpack.c.bf16 %v2655_v35, %v2654_v36  ;;  %v2069_v48 = vpop.permute.xlu1 %2068  ;;  %v2071_v19 = vpop.permute.xlu0 %2070 }
 0x4ad   : > { %v2277_v8 = vsel %vm1086_vm10, %v2257_v26, %v2069_v48  ;;  %v2278_v31 = vsel %vm1086_vm10, %v2258_v47, %v2071_v19  ;;  %v9336_v54 = vpack.i.bf16 %v2664_v58, %v15253_v17  ;;  %v9351_v52 = vpack.i.bf16 %v2325_v11, %v2665_v22  ;;  %v15255_v19 = vld [vmem:[#allocation6_spill] sm:$0xff] }
 0x4ae   : > { %v12182_v27 = vadd.f32 %v10878_v16, %v2277_v8  ;;  %7889 = vmatpush1.bf16.msk.msra.mxu1 %vm12167_vm4, %v12174_v3  ;;  %v12188_v57 = vadd.f32 %v10880_v18, %v2278_v31  ;;  %v9356_v32 = vpack.i.bf16 %v2665_v22, %v2664_v58  ;;  %v12263_v8 = vpack.c.bf16 %v15255_v19, %v15255_v19 }
 0x4af   : > { %9337 = vrot.lane.b32.xlu0 %v9336_v54, %s15144_s30  ;;  %9352 = vrot.lane.b32.xlu1 %v9351_v52, %s15144_s30 }
 0x4b0   : > { %v2327_v37 = vmax.f32 %v12182_v27, 0.0  ;;  %v9323_v41 = vpop.permute.xlu1 %9322  ;;  %2811 = vmatprep.subr.bf16.mxu1 %v15250_v60  ;;  %v2328_v9 = vmax.f32 %v12188_v57, 0.0 }
 0x4b1   : > { %v9325_v16 = vunpack.i.h.bf16 %v9323_v41  ;;  %v9324_v49 = vunpack.i.l.bf16 %v9323_v41 }
 0x4b2   : > { %v9341_v18 = vpack.i.bf16 %v2327_v37, %v2326_v55 }
 0x4b3   : > { %v12201_v24 = vsel %vm641_vm0, 0.0, %v9325_v16  ;;  %v12204_v34 = vsel %vm641_vm0, 0.0, %v9324_v49  ;;  %9357 = vrot.lane.b32.xlu1 %v9356_v32, %s15150_s26 }
 0x4b4   : > { %v2662_v14 = vsel %vm15171_vm15, %v12204_v34, 0.0  ;;  %v7881_v23 = vpack.c.bf16 %v12201_v24, %v12204_v34  ;;  %9342 = vrot.lane.b32.xlu0 %v9341_v18, %s15144_s30  ;;  %v2663_v12 = vsel %vm15171_vm15, %v12201_v24, 0.0 }
 0x4b5   : > { %v9328_v29 = vpop.permute.xlu0 %9327  ;;  %v9346_v42 = vpack.i.bf16 %v2662_v14, %v2328_v9  ;;  %v9366_v46 = vpack.i.bf16 %v2663_v12, %v2662_v14 }
 0x4b6   : > { %v9330_v15 = vunpack.i.h.bf16 %v9328_v29  ;;  %v9329_v25 = vunpack.i.l.bf16 %v9328_v29 }
 0x4b8   : > { %v12215_v38 = vsel %vm641_vm0, 0.0, %v9329_v25  ;;  %9347 = vrot.lane.b32.xlu0 %v9346_v42, %s15144_s30  ;;  %v2657_v43 = vsel %vm641_vm0, 0.0, %v9330_v15 }
 0x4b9   : > { %v2666_v63 = vsel %vm15171_vm15, %v12215_v38, 0.0  ;;  %v7891_v6 = vpack.c.bf16 %v2657_v43, %v12215_v38  ;;  %v2667_v5 = vsel %vm15171_vm15, %v2657_v43, 0.0 }
 0x4ba   : > { %v9361_v39 = vpack.i.bf16 %v2666_v63, %v2663_v12  ;;  %v9371_v28 = vpack.i.bf16 %v2667_v5, %v2666_v63  ;;  %v2609_v12 = vld [vmem:[%s15254_s3] sm:$0xff]  ;;  %s15276_s3 = smov 16  }
 0x4bb   : > { %v12310_v63 = vpack.c.bf16 %v2609_v12, %v2609_v12 }
 0x4bc   : > { %9362 = vrot.lane.b32.xlu1 %v9361_v39, %s15144_s30  ;;  %2715 = vrot.lane.b32.xlu0 %v2667_v5, %s15144_s30 }
 0x4c0   : > { %9367 = vrot.lane.b32.xlu1 %v9366_v46, %s15150_s26  ;;  %9372 = vrot.lane.b32.xlu0 %v9371_v28, %s15150_s26 }
 0x4fd   : > { %v9333_v2 = vpop.permute.xlu1 %9332 }
 0x4fe   : > { %v9335_v30 = vunpack.i.h.bf16 %v9333_v2  ;;  %v9334_v59 = vunpack.i.l.bf16 %v9333_v2 }
 0x500   : > { %v12239_v4 = vsel %vm641_vm0, 0.0, %v9335_v30  ;;  %v12242_v21 = vsel %vm641_vm0, 0.0, %v9334_v59  ;;  %v3000_v30 = vpack.c.bf16 %v15253_v17, %v15255_v19 }
 0x501   : > { %v2669_v13 = vsel %vm15171_vm15, %v12239_v4, 0.0  ;;  %v2668_v45 = vsel %vm15171_vm15, %v12242_v21, 0.0  ;;  %v7894_v43 = vpack.c.bf16 %v12239_v4, %v12242_v21 }
 0x502   : > { %v9376_v10 = vpack.i.bf16 %v2669_v13, %v2668_v45 }
 0x504   : > { %9377 = vrot.lane.b32.xlu1 %v9376_v10, %s15144_s30  ;;  %9382 = vrot.lane.b32.xlu0 %v9376_v10, %s15150_s26 }
 0x521   : > { %v9338_v53 = vpop.permute.xlu0 %9337  ;;  %v9353_v7 = vpop.permute.xlu1 %9352 }
 0x522   : > { %v9340_v44 = vunpack.i.h.bf16 %v9338_v53  ;;  %v12250_v1 = vunpack.i.l.bf16 %v9338_v53  ;;  %v9355_v51 = vunpack.i.h.bf16 %v9353_v7  ;;  %v9354_v33 = vunpack.i.l.bf16 %v9353_v7 }
 0x524   : > { %v12254_v47 = vpack.c.bf16 %v12250_v1, %v12250_v1  ;;  %v2752_v20 = vpack.c.bf16 %v9354_v33, %v9340_v44  ;;  %v2377_v35 = vmax.f32 %v2325_v11, %v9355_v51  ;;  %v12337_v59 = vpack.c.bf16 %v15255_v19, %v12250_v1 }
 0x525   : > { %v9358_v36 = vpop.permute.xlu1 %9357 }
 0x526   : > { %v9360_v26 = vunpack.i.h.bf16 %v9358_v36  ;;  %v9359_v22 = vunpack.i.l.bf16 %v9358_v36  ;;  %v9343_v58 = vpop.permute.xlu0 %9342  ;;  %2772 = vmatpush1.bf16.msra.mxu0 %v12254_v47  ;;  %2812 = vmatpush1.bf16.msra.mxu1 %v2752_v20  ;;  %v2387_v11 = vmax.f32 %v2377_v35, %v2327_v37 }
 0x527   : > { %v9344_v48 = vunpack.i.l.bf16 %v9343_v58  ;;  %2773 = vmatprep.subr.bf16.mxu0 %v15250_v60  ;;  %2813 = vmatprep.subr.bf16.mxu1 %v15250_v60  ;;  %v9345_v54 = vunpack.i.h.bf16 %v9343_v58 }
 0x528   : > { %v2753_v31 = vpack.c.bf16 %v9360_v26, %v9359_v22 }
 0x529   : > { %v2378_v56 = vmax.f32 %v2326_v55, %v9344_v48  ;;  %v12274_v49 = vmax.f32 %v2387_v11, %v9345_v54 }
 0x52a   : > { %2774 = vmatpush1.bf16.msra.mxu0 %v12263_v8  ;;  %2814 = vmatpush1.bf16.msra.mxu1 %v2753_v31  ;;  %v9348_v52 = vpop.permute.xlu0 %9347 }
 0x52b   : > { %v2388_v41 = vmax.f32 %v2378_v56, %v2328_v9  ;;  %v9349_v16 = vunpack.i.l.bf16 %v9348_v52  ;;  %2775 = vmatprep.subr.bf16.mxu0 %v15250_v60  ;;  %2815 = vmatprep.subr.bf16.mxu1 %v15250_v60  ;;  %v9350_v40 = vunpack.i.h.bf16 %v9348_v52 }
 0x52d   : > { %v12276_v32 = vmax.f32 %v2388_v41, %v9349_v16 }
 0x52e   : > { %7892 = vmatpush1.bf16.msk.msra.mxu1 %vm12167_vm4, %v7891_v6  ;;  %v9363_v27 = vpop.permute.xlu1 %9362  ;;  %7882 = vmatpush1.bf16.msk.msra.mxu0 %vm12167_vm4, %v7881_v23  ;;  %v2716_v57 = vpop.permute.xlu0 %2715 }
 0x52f   : > { %v9365_v55 = vunpack.i.h.bf16 %v9363_v27  ;;  %v9364_v37 = vunpack.i.l.bf16 %v9363_v27  ;;  %v9391_v18 = vpack.i.bf16 %v12276_v32, %v12274_v49  ;;  %2777 = vmatprep.subr.bf16.mxu0 %v15250_v60  ;;  %2817 = vmatprep.subr.bf16.mxu1 %v15250_v60 }
 0x531   : > { %v2749_v9 = vpack.c.bf16 %v9364_v37, %v9350_v40  ;;  %v2755_v14 = vpack.c.bf16 %v2716_v57, %v9365_v55  ;;  %9392 = vrot.lane.b32.xlu0 %v9391_v18, %s15150_s26  ;;  %9387 = vrot.lane.b32.xlu1 %v9391_v18, %s15144_s30 }
 0x532   : > { %v9368_v24 = vpop.permute.xlu1 %9367  ;;  %v9373_v34 = vpop.permute.xlu0 %9372 }
 0x533   : > { %v9370_v29 = vunpack.i.h.bf16 %v9368_v24  ;;  %v9369_v23 = vunpack.i.l.bf16 %v9368_v24  ;;  %v9375_v42 = vunpack.i.h.bf16 %v9373_v34  ;;  %v9374_v15 = vunpack.i.l.bf16 %v9373_v34  ;;  %2778 = vmatpush1.bf16.msra.mxu0 %v2749_v9  ;;  %2818 = vmatpush1.bf16.msra.mxu1 %v2755_v14  ;;  %v2611_v24 = vld [vmem:[%s15256_s4] sm:$0xff]  ;;  %s15277_s4 = smov 4  }
 0x534   : > { %2779 = vmatprep.subr.bf16.mxu0 %v15250_v60  ;;  %2819 = vmatprep.subr.bf16.mxu1 %v15250_v60 }
 0x535   : > { %v2750_v25 = vpack.c.bf16 %v9370_v29, %v9369_v23  ;;  %v2756_v38 = vpack.c.bf16 %v9375_v42, %v9374_v15  ;;  %9402 = vrot.lane.b32.xlu0 %v9391_v18, %s15148_s17  ;;  %9397 = vrot.lane.b32.xlu1 %v9391_v18, %s15142_s16 }
 0x537   : > { %2780 = vmatpush1.bf16.msra.mxu0 %v2750_v25  ;;  %2820 = vmatpush1.bf16.msra.mxu1 %v2756_v38 }
 0x538   : > { %2781 = vmatprep.subr.bf16.mxu0 %v15250_v60  ;;  %2821 = vmatprep.subr.bf16.mxu1 %v15250_v60 }
 0x53b   : > { %7885 = vmatpush1.bf16.msk.msra.mxu0 %vm12167_vm4, %v12174_v3  ;;  %7895 = vmatpush1.bf16.msk.msra.mxu1 %vm12167_vm4, %v7894_v43 }
 0x53c   : > { %2783 = vmatprep.subr.bf16.mxu0 %v15250_v60  ;;  %2823 = vmatprep.subr.bf16.mxu1 %v15250_v60 }
 0x53f   : > { %2784 = vmatpush1.bf16.msra.mxu0 %v2752_v20 }
 0x540   : > { %2785 = vmatprep.subr.bf16.mxu0 %v15250_v60 }
 0x543   : > { %2786 = vmatpush1.bf16.msra.mxu0 %v2753_v31 }
 0x544   : > { %2849 = vmatprep.subr.bf16.mxu0 %v15250_v60 }
 0x546   : > { %2802 = vmatmul.mubr.bf16.vlgmr.msra.gmra.mrb[20].mxu0 %v12310_v63 }
 0x547   : > { %7899 = vmatpush1.bf16.msk.msra.mxu0 %vm12167_vm4, %v7894_v43  ;;  %7903 = vmatprep.mubr.msk.bf16.mxu0 %vm15173_vm5, %v12232_v0  ;;  %v12325_v0 = vpack.c.bf16 %v12250_v1, %v15253_v17 }
 0x548   : > { %2851 = vmatprep.subr.bf16.mxu0 %v15250_v60 }
 0x576   : > { %v9378_v3 = vpop.permute.xlu1 %9377  ;;  %v9383_v6 = vpop.permute.xlu0 %9382 }
 0x577   : > { %v9380_v39 = vunpack.i.h.bf16 %v9378_v3  ;;  %v9379_v5 = vunpack.i.l.bf16 %v9378_v3  ;;  %v9385_v46 = vunpack.i.h.bf16 %v9383_v6  ;;  %v9384_v62 = vunpack.i.l.bf16 %v9383_v6 }
 0x579   : > { %v2758_v28 = vpack.c.bf16 %v9380_v39, %v9379_v5  ;;  %v2759_v2 = vpack.c.bf16 %v9385_v46, %v9384_v62 }
 0x57b   : > { %2824 = vmatpush1.bf16.msra.mxu1 %v2758_v28  ;;  %2852 = vmatpush1.bf16.msra.mxu0 %v2758_v28 }
 0x57c   : > { %2825 = vmatprep.subr.bf16.mxu1 %v15250_v60  ;;  %2853 = vmatprep.subr.bf16.mxu0 %v15250_v60 }
 0x57f   : > { %2826 = vmatpush1.bf16.msra.mxu1 %v2759_v2  ;;  %2854 = vmatpush1.bf16.msra.mxu0 %v2759_v2 }
 0x580   : > { %8615 = vmatprep.subr.bf16.mxu1 %v15253_v17  ;;  %2855 = vmatprep.subr.bf16.mxu0 %v15250_v60 }
 0x582   : > { %2842 = vmatmul.mubr.bf16.vlgmr.msra.gmra.mrb[20].mxu1 %v12310_v63 }
 0x583   : > { %8616 = vmatpush3.bf16.msra.mxu1 %v12325_v0  ;;  %8625 = vmatprep.mubr.msk.bf16.mxu1 %vm15164_vm2, %v15253_v17 }
 0x584   : > { %8617 = vmatprep.subr.bf16.mxu1 %v15253_v17 }
 0x587   : > { %8618 = vmatpush3.bf16.msra.mxu1 %v3000_v30 }
 0x588   : > { %8619 = vmatprep.subr.bf16.mxu1 %v15253_v17 }
 0x58b   : > { %8620 = vmatpush3.bf16.msra.mxu1 %v12337_v59 }
 0x58c   : > { %8621 = vmatprep.subr.bf16.mxu1 %v15253_v17 }
 0x5a3   : > { %v9393_v4 = vpop.permute.xlu0 %9392  ;;  %v9388_v21 = vpop.permute.xlu1 %9387 }
 0x5a4   : > { %v9390_v13 = vunpack.i.h.bf16 %v9388_v21  ;;  %v9389_v45 = vunpack.i.l.bf16 %v9388_v21  ;;  %v9395_v10 = vunpack.i.h.bf16 %v9393_v4  ;;  %v9394_v53 = vunpack.i.l.bf16 %v9393_v4 }
 0x5a6   : > { %v2578_v7 = vsel %vm641_vm0, %v12276_v32, %v9390_v13  ;;  %v2577_v44 = vsel %vm641_vm0, %v12274_v49, %v9389_v45 }
 0x5a7   : > { %v9403_v51 = vpop.permute.xlu0 %9402  ;;  %v9398_v33 = vpop.permute.xlu1 %9397  ;;  %v2587_v22 = vsel %vm2112_vm11, %v2577_v44, %v9394_v53  ;;  %v2588_v58 = vsel %vm2112_vm11, %v2578_v7, %v9395_v10 }
 0x5a8   : > { %v9405_v20 = vunpack.i.h.bf16 %v9403_v51  ;;  %v9404_v35 = vunpack.i.l.bf16 %v9403_v51  ;;  %v9400_v36 = vunpack.i.h.bf16 %v9398_v33  ;;  %v9399_v26 = vunpack.i.l.bf16 %v9398_v33 }
 0x5aa   : > { %v2597_v48 = vsel %vm2133_vm12, %v2587_v22, %v9399_v26  ;;  %v2598_v31 = vsel %vm2133_vm12, %v2588_v58, %v9400_v36 }
 0x5ab   : > { %v2607_v54 = vsel %vm2154_vm13, %v2597_v48, %v9404_v35  ;;  %v2608_v56 = vsel %vm2154_vm13, %v2598_v31, %v9405_v20 }
 0x5ac   : > { %v9406_v11 = vpack.i.bf16 %v2608_v56, %v2607_v54 }
 0x5ae   : > { %9407 = vrot.lane.b32.xlu1 %v9406_v11, %s15249_s25 }
 0x619   : > { %v2803_v52 = vpop.f32.mrb[20].mxu0 }
 0x61a   : > { %v2805_v41 = vpop.f32.mrb[21].mxu0 }
 0x61b   : > { %v2806_v16 = vpop.f32.mrb[22].mxu0 }
 0x61c   : > { %v2807_v49 = vpop.f32.mrb[23].mxu0 }
 0x620   : > { %v9408_v32 = vpop.permute.xlu1 %9407 }
 0x621   : > { %v9410_v40 = vunpack.i.h.bf16 %v9408_v32  ;;  %v9409_v27 = vunpack.i.l.bf16 %v9408_v32 }
 0x623   : > { %v2661_v57 = vsel %vm641_vm0, 0.0, %v9410_v40  ;;  %v2660_v55 = vsel %vm641_vm0, 0.0, %v9409_v27 }
 0x624   : > { %v2671_v37 = vsel %vm15171_vm15, %v2661_v57, 0.0  ;;  %v2670_v18 = vsel %vm15171_vm15, %v2660_v55, 0.0  ;;  %v7901_v9 = vpack.c.bf16 %v2661_v57, %v2660_v55 }
 0x625   : > { %v9416_v14 = vpack.i.bf16 %v2671_v37, %v2670_v18 }
 0x626   : > { %7902 = vmatpush1.bf16.msk.msra.mxu0 %vm12167_vm4, %v7901_v9  ;;  %vm3016_vm4 = vcmask 588800  }
 0x627   : > { %9417 = vrot.lane.b32.xlu1 %v9416_v14, %s15150_s26  ;;  %9412 = vrot.lane.b32.xlu0 %v9416_v14, %s15144_s30 }
 0x628   : > { %2857 = vmatprep.subr.bf16.mxu0 %v15250_v60 }
 0x62b   : > { %2918 = vperm.xlu0 %9045, %v2611_v24   ;;  %2892 = vrot.lane.b32.xlu1 %v2803_v52, %s15144_s30 }
 0x62f   : > { %2901 = vrot.lane.b32.xlu0 %v2803_v52, %s15150_s26 }
 0x655   : > { %v2843_v34 = vpop.f32.mrb[20].mxu1 }
 0x656   : > { %2894 = vrot.lane.b32.xlu1 %v2843_v34, %s15144_s30  ;;  %2903 = vrot.lane.b32.xlu0 %v2843_v34, %s15150_s26  ;;  %v2845_v61 = vpop.f32.mrb[21].mxu1 }
 0x657   : > { %v2846_v29 = vpop.f32.mrb[22].mxu1  ;;  %v2946_v61 = vld [vmem:[%s15114_s5 + $0x8] sm:$0xff] }
 0x658   : > { %v2847_v23 = vpop.f32.mrb[23].mxu1 }
 0x699   : > { %v9418_v42 = vpop.permute.xlu1 %9417  ;;  %v9413_v15 = vpop.permute.xlu0 %9412 }
 0x69a   : > { %v9415_v25 = vunpack.i.h.bf16 %v9413_v15  ;;  %v9414_v38 = vunpack.i.l.bf16 %v9413_v15  ;;  %v9420_v43 = vunpack.i.h.bf16 %v9418_v42  ;;  %v9419_v12 = vunpack.i.l.bf16 %v9418_v42 }
 0x69c   : > { %v2761_v3 = vpack.c.bf16 %v9415_v25, %v9414_v38  ;;  %v2762_v6 = vpack.c.bf16 %v9420_v43, %v9419_v12 }
 0x69d   : > { %v2893_v5 = vpop.permute.xlu1 %2892 }
 0x69e   : > { %2858 = vmatpush1.bf16.msra.mxu0 %v2761_v3  ;;  %v2910_v28 = vsel %vm641_vm0, %v2803_v52, %v2893_v5 }
 0x69f   : > { %2859 = vmatprep.subr.bf16.mxu0 %v15250_v60 }
 0x6a2   : > { %2860 = vmatpush1.bf16.msra.mxu0 %v2762_v6 }
 0x6a3   : > { %2861 = vmatprep.subr.bf16.mxu0 %v15250_v60 }
 0x6a6   : > { %2862 = vmatpush1.bf16.msra.mxu0 %v10488_v50 }
 0x6a7   : > { %2863 = vmatprep.subr.bf16.mxu0 %v15250_v60 }
 0x6aa   : > { %v2919_v39 = vpop.permute.xlu0 %2918  ;;  %2864 = vmatpush1.bf16.msra.mxu0 %v12254_v47 }
 0x6ab   : > { %2865 = vmatprep.subr.bf16.mxu0 %v15250_v60 }
 0x6ae   : > { %2866 = vmatpush1.bf16.msra.mxu0 %v12263_v8  ;;  %v2902_v46 = vpop.permute.xlu0 %2901 }
 0x6af   : > { %v2913_v62 = vsel %vm2112_vm11, %v2910_v28, %v2902_v46  ;;  %8643 = vmatprep.subr.bf16.mxu0 %v15253_v17 }
 0x6b0   : > { %v2921_v2 = vadd.f32 %v2919_v39, %v2913_v62 }
 0x6b1   : > { %2882 = vmatmul.mubr.bf16.vlgmr.msra.gmra.mrb[24].mxu0 %v12310_v63 }
 0x6b2   : > { %v2924_v30 = vmax.f32 %v2921_v2, 0.0  ;;  %8653 = vmatprep.mubr.msk.bf16.mxu0 %vm15164_vm2, %v15253_v17 }
 0x6b4   : > { %2929 = vrot.lane.b32.xlu1 %v2924_v30, %s15144_s30 }
 0x6c8   : > { %v2895_v4 = vpop.permute.xlu1 %2894  ;;  %v2904_v21 = vpop.permute.xlu0 %2903 }
 0x6c9   : > { %v2911_v13 = vsel %vm641_vm0, %v2843_v34, %v2895_v4  ;;  %v2945_v34 = vld [vmem:[%s15114_s5] sm:$0xff] }
 0x6ca   : > { %v2914_v45 = vsel %vm2112_vm11, %v2911_v13, %v2904_v21  ;;  %v12426_v43 = vpack.c.bf16 %v2946_v61, %v2945_v34 }
 0x6cb   : > { %v2922_v10 = vadd.f32 %v2919_v39, %v2914_v45 }
 0x6cd   : > { %v2925_v53 = vmax.f32 %v2922_v10, 0.0 }
 0x6cf   : > { %2931 = vrot.lane.b32.xlu0 %v2925_v53, %s15144_s30 }
 0x726   : > { %v2930_v7 = vpop.permute.xlu1 %2929 }
 0x727   : > { %v2935_v44 = vmax.f32 %v2924_v30, %v2930_v7  ;;  %v2947_v7 = vld [vmem:[%s15115_s6] sm:$0xff] }
 0x729   : > { %v2937_v51 = vmax.f32 %v2935_v44, %v2925_v53 }
 0x741   : > { %v2932_v63 = vpop.permute.xlu0 %2931 }
 0x742   : > { %v2943_v33 = vmax.f32 %v2937_v51, %v2932_v63  ;;  %v2936_v40 = vmax.f32 %v2925_v53, %v2932_v63  ;;  %v2948_v53 = vld [vmem:[%s15115_s6 + $0x8] sm:$0xff] }
 0x744   : > { %2951 = vrot.lane.b32.xlu1 %v2943_v33, %s15249_s25  ;;  %v2957_v58 = vsel %vm641_vm0, %v2943_v33, 0.0 }
 0x784   : > { %v2883_v20 = vpop.f32.mrb[24].mxu0 }
 0x785   : > { %2905 = vrot.lane.b32.xlu1 %v2883_v20, %s15150_s26  ;;  %2896 = vrot.lane.b32.xlu0 %v2883_v20, %s15144_s30  ;;  %v2885_v35 = vpop.f32.mrb[25].mxu0 }
 0x786   : > { %v2886_v36 = vpop.f32.mrb[26].mxu0 }
 0x787   : > { %v2887_v26 = vpop.f32.mrb[27].mxu0 }
 0x7b6   : > { %v2952_v22 = vpop.permute.xlu1 %2951 }
 0x7b7   : > { %v2959_v48 = vsel %vm2112_vm11, %v2957_v58, %v2952_v22 }
 0x7b8   : > { %2963 = vrot.lane.b32.xlu0 %v2959_v48, %s15152_s14  ;;  %v3153_v48 = vsel %vm1031_vm6, %v12263_v8, 0 }
 0x7f7   : > { %v2906_v31 = vpop.permute.xlu1 %2905  ;;  %v2897_v54 = vpop.permute.xlu0 %2896 }
 0x7f8   : > { %v2912_v56 = vsel %vm641_vm0, %v2883_v20, %v2897_v54 }
 0x7f9   : > { %v2915_v11 = vsel %vm2112_vm11, %v2912_v56, %v2906_v31 }
 0x7fa   : > { %v2923_v52 = vadd.f32 %v2919_v39, %v2915_v11 }
 0x7fc   : > { %v2926_v41 = vmax.f32 %v2923_v52, 0.0 }
 0x7fe   : > { %2940 = vrot.lane.b32.xlu1 %v2926_v41, %s15144_s30  ;;  %v2938_v27 = vmax.f32 %v2936_v40, %v2926_v41 }
 0x82a   : > { %v2964_v16 = vpop.permute.xlu0 %2963 }
 0x82b   : > { %v2972_v49 = vsel %vm2112_vm11, 0.0, %v2964_v16 }
 0x82c   : > { %v2975_v32 = vsel %vm15170_vm14, %v2972_v49, 0.0  ;;  %v7909_v12 = vpack.c.bf16 %v2972_v49, %v15255_v19 }
 0x82d   : > { %2990 = vrot.lane.b32.xlu1 %v2975_v32, %s15150_s26  ;;  %2981 = vrot.lane.b32.xlu0 %v2975_v32, %s15144_s30 }
 0x831   : > { %2965 = vrot.lane.b32.xlu0 %v15253_v17, %s15152_s14 }
 0x870   : > { %v2941_v57 = vpop.permute.xlu1 %2940 }
 0x871   : > { %v2944_v55 = vmax.f32 %v2938_v27, %v2941_v57 }
 0x873   : > { %2953 = vrot.lane.b32.xlu1 %v2944_v55, %s15249_s25  ;;  %v2958_v6 = vsel %vm641_vm0, %v2944_v55, 0.0 }
 0x89f   : > { %v2991_v37 = vpop.permute.xlu1 %2990  ;;  %v2982_v18 = vpop.permute.xlu0 %2981 }
 0x8a0   : > { %v7905_v14 = vpack.c.bf16 %v2982_v18, %v2972_v49  ;;  %v3003_v24 = vpack.c.bf16 %v2991_v37, %v2991_v37  ;;  %v3005_v3 = vpack.c.bf16 %v2991_v37, %v2982_v18 }
 0x8a2   : > { %8622 = vmatpush3.bf16.msk.msra.mxu1 %vm12402_vm8, %v7905_v14  ;;  %8644 = vmatpush3.bf16.msk.msra.mxu0 %vm12402_vm8, %v7905_v14  ;;  %v3021_v25 = vsel %vm1031_vm6, %v3003_v24, 0 }
 0x8a3   : > { %v2966_v29 = vpop.permute.xlu0 %2965  ;;  %8623 = vmatprep.subr.bf16.mxu1 %v15253_v17  ;;  %8645 = vmatprep.subr.bf16.mxu0 %v15253_v17 }
 0x8a4   : > { %v2973_v23 = vsel %vm2112_vm11, 0.0, %v2966_v29 }
 0x8a5   : > { %v7919_v15 = vpack.c.bf16 %v2973_v23, %v2991_v37  ;;  %v2976_v38 = vsel %vm15170_vm14, %v2973_v23, 0.0 }
 0x8a6   : > { %8624 = vmatpush3.bf16.msra.mxu1 %v3021_v25  ;;  %2983 = vrot.lane.b32.xlu0 %v2976_v38, %s15144_s30 }
 0x8a7   : > { %8646 = vmatpush3.bf16.msk.msra.mxu0 %vm12420_vm9, %v7919_v15  ;;  %8629 = vmatprep.subr.bf16.mxu1 %v15253_v17 }
 0x8a8   : > { %2992 = vrot.lane.b32.xlu1 %v2976_v38, %s15150_s26  ;;  %8647 = vmatprep.subr.bf16.mxu0 %v15253_v17 }
 0x8a9   : > { %8626 = vmatmul.mubr.msk.bf16.vlgmr.msra.gmra.mrb[24].mxu1 %vm3016_vm4, %v12426_v43 }
 0x8aa   : > { %8630 = vmatpush3.bf16.msra.mxu1 %v12325_v0  ;;  %8639 = vmatprep.mubr.msk.bf16.mxu1 %vm15164_vm2, %v15253_v17 }
 0x8ab   : > { %8631 = vmatprep.subr.bf16.mxu1 %v15253_v17 }
 0x8ae   : > { %8632 = vmatpush3.bf16.msk.msra.mxu1 %vm12420_vm9, %v7909_v12 }
 0x8af   : > { %8633 = vmatprep.subr.bf16.mxu1 %v15253_v17 }
 0x8b2   : > { %8634 = vmatpush3.bf16.msra.mxu1 %v3005_v3 }
 0x8b3   : > { %8635 = vmatprep.subr.bf16.mxu1 %v15253_v17 }
 0x8e5   : > { %v2954_v39 = vpop.permute.xlu1 %2953 }
 0x8e6   : > { %v2960_v5 = vsel %vm2112_vm11, %v2958_v6, %v2954_v39 }
 0x8e7   : > { %2967 = vrot.lane.b32.xlu0 %v2960_v5, %s15152_s14 }
 0x918   : > { %v2984_v28 = vpop.permute.xlu0 %2983 }
 0x919   : > { %v7912_v46 = vpack.c.bf16 %v2984_v28, %v2973_v23 }
 0x91a   : > { %v2993_v62 = vpop.permute.xlu1 %2992 }
 0x91b   : > { %v3009_v2 = vpack.c.bf16 %v2993_v62, %v2984_v28  ;;  %8636 = vmatpush3.bf16.msk.msra.mxu1 %vm12402_vm8, %v7912_v46  ;;  %v3007_v30 = vpack.c.bf16 %v2993_v62, %v2993_v62 }
 0x91c   : > { %8637 = vmatprep.subr.bf16.mxu1 %v15253_v17 }
 0x91d   : > { %v3065_v4 = vsel %vm1031_vm6, %v3007_v30, 0  ;;  %8648 = vmatpush3.bf16.msra.mxu0 %v3009_v2 }
 0x91e   : > { %8649 = vmatprep.subr.bf16.mxu0 %v15253_v17 }
 0x91f   : > { %8638 = vmatpush3.bf16.msra.mxu1 %v3065_v4 }
 0x920   : > { %8657 = vmatprep.subr.bf16.mxu1 %v15253_v17 }
 0x922   : > { %8640 = vmatmul.mubr.msk.bf16.vlgmr.msra.gmra.mrb[28].mxu1 %vm3016_vm4, %v12426_v43 }
 0x923   : > { %8658 = vmatpush3.bf16.msk.msra.mxu1 %vm12402_vm8, %v7912_v46  ;;  %8667 = vmatprep.mubr.msk.bf16.mxu1 %vm15164_vm2, %v15253_v17 }
 0x924   : > { %8659 = vmatprep.subr.bf16.mxu1 %v15253_v17 }
 0x959   : > { %v2968_v21 = vpop.permute.xlu0 %2967 }
 0x95a   : > { %v2974_v13 = vsel %vm2112_vm11, 0.0, %v2968_v21 }
 0x95b   : > { %v7929_v45 = vpack.c.bf16 %v2974_v13, %v2993_v62  ;;  %v2977_v10 = vsel %vm15170_vm14, %v2974_v13, 0.0 }
 0x95c   : > { %2994 = vrot.lane.b32.xlu0 %v2977_v10, %s15150_s26  ;;  %2985 = vrot.lane.b32.xlu1 %v2977_v10, %s15144_s30 }
 0x95d   : > { %8660 = vmatpush3.bf16.msk.msra.mxu1 %vm12420_vm9, %v7929_v45  ;;  %vm12782_vm9 = vmpackc.low %vm15173_vm5, %vm15173_vm5 }
 0x95e   : > { %8661 = vmatprep.subr.bf16.mxu1 %v15253_v17 }
 0x960   : > { %3244 = vperm.xlu0 %9045, %v2948_v53   ;;  %3239 = vperm.xlu1 %9044, %v2947_v7  }
 0x97c   : > { %v3057_v44 = vpop.f32.mrb[24].mxu1 }
 0x97d   : > { %v8627_v51 = vpop.f32.mrb[25].mxu1 }
 0x97e   : > { %v3060_v63 = vpop.f32.mrb[26].mxu1 }
 0x97f   : > { %v8628_v33 = vpop.f32.mrb[27].mxu1 }
 0x9ce   : > { %v2995_v20 = vpop.permute.xlu0 %2994  ;;  %v2986_v35 = vpop.permute.xlu1 %2985 }
 0x9cf   : > { %v3013_v36 = vpack.c.bf16 %v2995_v20, %v2986_v35  ;;  %v7922_v26 = vpack.c.bf16 %v2986_v35, %v2974_v13  ;;  %v3011_v22 = vpack.c.bf16 %v2995_v20, %v2995_v20  ;;  %v3014_v31 = vpack.c.bf16 %v15253_v17, %v2995_v20 }
 0x9d1   : > { %8650 = vmatpush3.bf16.msk.msra.mxu0 %vm12402_vm8, %v7922_v26  ;;  %8662 = vmatpush3.bf16.msra.mxu1 %v3013_v36  ;;  %v3109_v58 = vsel %vm1031_vm6, %v3011_v22, 0  ;;  %vm3492_vm6 = vcmask 80896  }
 0x9d2   : > { %8651 = vmatprep.subr.bf16.mxu0 %v15253_v17  ;;  %8663 = vmatprep.subr.bf16.mxu1 %v15253_v17 }
 0x9d5   : > { %8652 = vmatpush3.bf16.msra.mxu0 %v3109_v58  ;;  %8664 = vmatpush3.bf16.msra.mxu1 %v12325_v0 }
 0x9d6   : > { %8665 = vmatprep.subr.bf16.mxu1 %v15253_v17  ;;  %8671 = vmatprep.subr.bf16.mxu0 %v15253_v17 }
 0x9d8   : > { %8654 = vmatmul.mubr.msk.bf16.vlgmr.msra.gmra.mrb[28].mxu0 %vm3016_vm4, %v12426_v43 }
 0x9d9   : > { %8666 = vmatpush3.bf16.msra.mxu1 %v3153_v48  ;;  %8672 = vmatpush3.bf16.msk.msra.mxu0 %vm12402_vm8, %v7922_v26  ;;  %vm3514_vm8 = vcmask 97280  }
 0x9da   : > { %8673 = vmatprep.subr.bf16.mxu0 %v15253_v17  ;;  %8681 = vmatprep.mubr.msk.bf16.mxu0 %vm15164_vm2, %v15253_v17 }
 0x9dc   : > { %8668 = vmatmul.mubr.msk.bf16.vlgmr.msra.gmra.mrb[32].mxu1 %vm3016_vm4, %v12426_v43 }
 0x9dd   : > { %8674 = vmatpush3.bf16.msra.mxu0 %v3014_v31 }
 0x9de   : > { %8675 = vmatprep.subr.bf16.mxu0 %v15253_v17 }
 0x9df   : > { %v12495_v54 = vpop.permute.xlu0 %3244  ;;  %v12497_v56 = vpop.permute.xlu1 %3239 }
 0x9e0   : > { %v3248_v11 = vadd.f32 %v12495_v54, %v3060_v63  ;;  %v3247_v52 = vadd.f32 %v12497_v56, %v3057_v44 }
 0x9e1   : > { %8676 = vmatpush3.bf16.msra.mxu0 %v12337_v59 }
 0x9e2   : > { %v3258_v41 = vmax.f32 %v3248_v11, 0.0  ;;  %v3257_v16 = vmax.f32 %v3247_v52, 0.0  ;;  %8677 = vmatprep.subr.bf16.mxu0 %v15253_v17 }
 0x9e4   : > { %v9426_v49 = vpack.i.bf16 %v3258_v41, %v3257_v16  ;;  %v3403_v14 = vsel %vm641_vm0, %v3258_v41, 0.0  ;;  %v3402_v24 = vsel %vm641_vm0, %v3257_v16, 0.0 }
 0x9e5   : > { %8678 = vmatpush3.bf16.msra.mxu0 %v12325_v0  ;;  %v3413_v42 = vsel %vm2112_vm11, %v3403_v14, 0.0  ;;  %v3412_v15 = vsel %vm2112_vm11, %v3402_v24, 0.0 }
 0x9e6   : > { %9427 = vrot.lane.b32.xlu0 %v9426_v49, %s15162_s18  ;;  %9422 = vrot.lane.b32.xlu1 %v9426_v49, %s15152_s14 }
 0x9e7   : > { %8679 = vmatprep.subr.bf16.mxu0 %v15253_v17 }
 0x9e9   : > { %8680 = vmatpush3.bf16.msra.mxu0 %v3153_v48 }
 0x9ea   : > { %9437 = vrot.lane.b32.xlu0 %v9426_v49, %s10492_s15  ;;  %9432 = vrot.lane.b32.xlu1 %v9426_v49, %s15158_s12 }
 0x9eb   : > { %4003 = vmatprep.subr.bf16.mxu0 %v15250_v60 }
 0x9ec   : > { %8682 = vmatmul.mubr.msk.bf16.vlgmr.msra.gmra.mrb[32].mxu0 %vm3016_vm4, %v12426_v43  ;;  %vm15169_vm4 = vcmask 105472  }
 0x9ee   : > { %3539 = vrot.lane.b32.xlu0 %v15253_v17, %s15140_s13 }
 0x9f5   : > { %v3101_v59 = vpop.f32.mrb[28].mxu1 }
 0x9f6   : > { %v12515_v32 = vadd.f32 %v12497_v56, %v3101_v59  ;;  %v8641_v40 = vpop.f32.mrb[29].mxu1 }
 0x9f7   : > { %v3104_v27 = vpop.f32.mrb[30].mxu1 }
 0x9f8   : > { %v12518_v57 = vadd.f32 %v12495_v54, %v3104_v27  ;;  %v8642_v55 = vpop.f32.mrb[31].mxu1  ;;  %v3259_v37 = vmax.f32 %v12515_v32, 0.0 }
 0x9fa   : > { %v3260_v18 = vmax.f32 %v12518_v57, 0.0 }
 0x9fc   : > { %v9451_v9 = vpack.i.bf16 %v3260_v18, %v3259_v37 }
 0x9fe   : > { %9452 = vrot.lane.b32.xlu0 %v9451_v9, %s15162_s18 }
 0xa02   : > { %9462 = vrot.lane.b32.xlu0 %v9451_v9, %s10492_s15 }
 0xa58   : > { %v9423_v34 = vpop.permute.xlu1 %9422  ;;  %v9428_v61 = vpop.permute.xlu0 %9427 }
 0xa59   : > { %v9425_v29 = vunpack.i.h.bf16 %v9423_v34  ;;  %v9424_v23 = vunpack.i.l.bf16 %v9423_v34  ;;  %v9430_v43 = vunpack.i.h.bf16 %v9428_v61  ;;  %v9429_v12 = vunpack.i.l.bf16 %v9428_v61 }
 0xa5b   : > { %v3423_v25 = vsel %vm2133_vm12, %v3413_v42, %v9425_v29  ;;  %v3422_v38 = vsel %vm2133_vm12, %v3412_v15, %v9424_v23 }
 0xa5c   : > { %v3433_v3 = vsel %vm2154_vm13, %v3423_v25, 0.0  ;;  %v3432_v6 = vsel %vm2154_vm13, %v3422_v38, 0.0  ;;  %v9433_v39 = vpop.permute.xlu1 %9432  ;;  %v9438_v2 = vpop.permute.xlu0 %9437 }
 0xa5d   : > { %v3443_v5 = vsel %vm15170_vm14, %v3433_v3, 0.0  ;;  %v3442_v28 = vsel %vm15170_vm14, %v3432_v6, 0.0  ;;  %v9435_v30 = vunpack.i.h.bf16 %v9433_v39  ;;  %v9434_v4 = vunpack.i.l.bf16 %v9433_v39 }
 0xa5e   : > { %v3452_v46 = vsel %vm15171_vm15, %v3442_v28, %v9429_v12  ;;  %v3453_v62 = vsel %vm15171_vm15, %v3443_v5, %v9430_v43  ;;  %v9440_v44 = vunpack.i.h.bf16 %v9438_v2  ;;  %v9439_v51 = vunpack.i.l.bf16 %v9438_v2 }
 0xa5f   : > { %v3462_v21 = vsel %vm2217_vm1, %v3452_v46, 0.0  ;;  %v3463_v13 = vsel %vm2217_vm1, %v3453_v62, 0.0  ;;  %v3404_v62 = vsel %vm641_vm0, %v3259_v37, 0.0  ;;  %v3405_v2 = vsel %vm641_vm0, %v3260_v18, 0.0 }
 0xa60   : > { %v3472_v45 = vsel %vm2238_vm3, %v3462_v21, 0.0  ;;  %v3473_v10 = vsel %vm2238_vm3, %v3463_v13, 0.0  ;;  %v3540_v39 = vpop.permute.xlu0 %3539  ;;  %v3414_v32 = vsel %vm2112_vm11, %v3404_v62, 0.0  ;;  %v3415_v37 = vsel %vm2112_vm11, %v3405_v2, 0.0 }
 0xa61   : > { %v3482_v53 = vsel %vm1086_vm10, %v3472_v45, %v9434_v4  ;;  %v3483_v7 = vsel %vm1086_vm10, %v3473_v10, %v9435_v30  ;;  %v12614_v57 = vsel %vm2133_vm12, 0.0, %v3540_v39 }
 0xa62   : > { %v3493_v63 = vsel %vm3492_vm6, %v3482_v53, 0.0  ;;  %v3494_v33 = vsel %vm3492_vm6, %v3483_v7, 0.0 }
 0xa63   : > { %v3504_v20 = vsel %vm3503_vm7, %v3493_v63, 0.0  ;;  %v3505_v35 = vsel %vm3503_vm7, %v3494_v33, 0.0 }
 0xa64   : > { %v3515_v36 = vsel %vm3514_vm8, %v3504_v20, %v9439_v51  ;;  %v3516_v26 = vsel %vm3514_vm8, %v3505_v35, %v9440_v44 }
 0xa65   : > { %v9441_v22 = vpack.i.bf16 %v3516_v26, %v3515_v36 }
 0xa67   : > { %9442 = vrot.lane.b32.xlu1 %v9441_v22, %s15140_s13  ;;  %v12628_v22 = vsel %vm15173_vm5, %v12614_v57, 0.0 }
 0xa6b   : > { %9447 = vrot.lane.b32.xlu1 %v9451_v9, %s15152_s14 }
 0xa6f   : > { %9457 = vrot.lane.b32.xlu1 %v9451_v9, %s15158_s12 }
 0xa70   : > { %v9453_v45 = vpop.permute.xlu0 %9452 }
 0xa71   : > { %v9455_v51 = vunpack.i.h.bf16 %v9453_v45  ;;  %v9454_v63 = vunpack.i.l.bf16 %v9453_v45 }
 0xaab   : > { %v3145_v58 = vpop.f32.mrb[28].mxu0 }
 0xaac   : > { %v12556_v48 = vadd.f32 %v12497_v56, %v3145_v58  ;;  %v8655_v31 = vpop.f32.mrb[29].mxu0 }
 0xaad   : > { %v3148_v11 = vpop.f32.mrb[30].mxu0 }
 0xaae   : > { %v12559_v52 = vadd.f32 %v12495_v54, %v3148_v11  ;;  %v8656_v41 = vpop.f32.mrb[31].mxu0  ;;  %v3261_v49 = vmax.f32 %v12556_v48, 0.0  ;;  %v9463_v11 = vpop.permute.xlu0 %9462 }
 0xaaf   : > { %v3189_v16 = vpop.f32.mrb[32].mxu1  ;;  %v9464_v39 = vunpack.i.l.bf16 %v9463_v11 }
 0xab0   : > { %v3262_v59 = vmax.f32 %v12559_v52, 0.0  ;;  %v12564_v40 = vadd.f32 %v12497_v56, %v3189_v16  ;;  %v8669_v27 = vpop.f32.mrb[33].mxu1 }
 0xab1   : > { %v3192_v55 = vpop.f32.mrb[34].mxu1 }
 0xab2   : > { %v12567_v9 = vadd.f32 %v12495_v54, %v3192_v55  ;;  %v12573_v14 = vpack.i.bf16 %v3262_v59, %v3261_v49  ;;  %v8670_v24 = vpop.f32.mrb[35].mxu1  ;;  %v3263_v34 = vmax.f32 %v12564_v40, 0.0 }
 0xab4   : > { %v3264_v61 = vmax.f32 %v12567_v9, 0.0 }
 0xab6   : > { %v12581_v29 = vpack.i.bf16 %v3264_v61, %v3263_v34 }
 0xabf   : > { %v3230_v23 = vpop.f32.mrb[32].mxu0 }
 0xac0   : > { %v12584_v42 = vadd.f32 %v12497_v56, %v3230_v23  ;;  %v8683_v15 = vpop.f32.mrb[33].mxu0 }
 0xac1   : > { %v3233_v25 = vpop.f32.mrb[34].mxu0 }
 0xac2   : > { %v12587_v38 = vadd.f32 %v12495_v54, %v3233_v25  ;;  %v8684_v43 = vpop.f32.mrb[35].mxu0  ;;  %v3265_v12 = vmax.f32 %v12584_v42, 0.0 }
 0xac3   : > { %v9465_v43 = vunpack.i.h.bf16 %v9463_v11 }
 0xac4   : > { %v3266_v3 = vmax.f32 %v12587_v38, 0.0 }
 0xac6   : > { %v12595_v6 = vpack.i.bf16 %v3266_v3, %v3265_v12 }
 0xad9   : > { %v9443_v5 = vpop.permute.xlu1 %9442 }
 0xada   : > { %v9445_v56 = vunpack.i.h.bf16 %v9443_v5  ;;  %v9444_v28 = vunpack.i.l.bf16 %v9443_v5 }
 0xadc   : > { %v3569_v46 = vsel %vm2133_vm12, 0.0, %v9445_v56  ;;  %v3568_v54 = vsel %vm2133_vm12, 0.0, %v9444_v28 }
 0xadd   : > { %v3580_v30 = vsel %vm15173_vm5, %v3569_v46, 0.0  ;;  %v3579_v4 = vsel %vm15173_vm5, %v3568_v54, 0.0  ;;  %v12607_v21 = vpack.c.bf16 %v3569_v46, %v3568_v54  ;;  %v9448_v13 = vpop.permute.xlu1 %9447 }
 0xade   : > { %v9450_v10 = vunpack.i.h.bf16 %v9448_v13  ;;  %v9449_v53 = vunpack.i.l.bf16 %v9448_v13  ;;  %v12609_v7 = vpack.i.bf16 %v3580_v30, %v3579_v4  ;;  %v3268_v30 = vld [vmem:[%s15116_s7 + $0x8] sm:$0xff] }
 0xadf   : > { %v12670_v4 = vpack.c.bf16 %v3268_v30, %v3268_v30 }
 0xae0   : > { %v3425_v18 = vsel %vm2133_vm12, %v3415_v37, %v9450_v10  ;;  %v3424_v44 = vsel %vm2133_vm12, %v3414_v32, %v9449_v53  ;;  %9472 = vrot.lane.b32.xlu0 %v12609_v7, %s15150_s26  ;;  %9467 = vrot.lane.b32.xlu1 %v12609_v7, %s15144_s30 }
 0xae1   : > { %v3435_v33 = vsel %vm2154_vm13, %v3425_v18, 0.0  ;;  %v3434_v20 = vsel %vm2154_vm13, %v3424_v44, 0.0  ;;  %v9458_v35 = vpop.permute.xlu1 %9457  ;;  %3995 = vmatprep.mubr.bf16.mxu1 %v12670_v4 }
 0xae2   : > { %v3445_v36 = vsel %vm15170_vm14, %v3435_v33, 0.0  ;;  %v3444_v26 = vsel %vm15170_vm14, %v3434_v20, 0.0  ;;  %v9460_v41 = vunpack.i.h.bf16 %v9458_v35  ;;  %v9459_v16 = vunpack.i.l.bf16 %v9458_v35 }
 0xae3   : > { %v3454_v58 = vsel %vm15171_vm15, %v3444_v26, %v9454_v63  ;;  %v3455_v31 = vsel %vm15171_vm15, %v3445_v36, %v9455_v51 }
 0xae4   : > { %v3464_v27 = vsel %vm2217_vm1, %v3454_v58, 0.0  ;;  %v3465_v55 = vsel %vm2217_vm1, %v3455_v31, 0.0  ;;  %3739 = vrot.lane.b32.xlu0 %v12628_v22, %s15249_s25  ;;  %9477 = vrot.lane.b32.xlu1 %v12609_v7, %s15142_s16 }
 0xae5   : > { %v3474_v24 = vsel %vm2238_vm3, %v3464_v27, 0.0  ;;  %v3475_v23 = vsel %vm2238_vm3, %v3465_v55, 0.0 }
 0xae6   : > { %v3484_v15 = vsel %vm1086_vm10, %v3474_v24, %v9459_v16  ;;  %v3485_v25 = vsel %vm1086_vm10, %v3475_v23, %v9460_v41  ;;  %v3406_v23 = vsel %vm641_vm0, %v3261_v49, 0.0 }
 0xae7   : > { %v3495_v5 = vsel %vm3492_vm6, %v3484_v15, 0.0  ;;  %v3496_v56 = vsel %vm3492_vm6, %v3485_v25, 0.0  ;;  %v3407_v15 = vsel %vm641_vm0, %v3262_v59, 0.0 }
 0xae8   : > { %v3506_v28 = vsel %vm3503_vm7, %v3495_v5, 0.0  ;;  %v3507_v46 = vsel %vm3503_vm7, %v3496_v56, 0.0  ;;  %3603 = vrot.lane.b32.xlu1 %v12628_v22, %s15144_s30 }
 0xae9   : > { %v3517_v54 = vsel %vm3514_vm8, %v3506_v28, %v9464_v39  ;;  %v3518_v62 = vsel %vm3514_vm8, %v3507_v46, %v9465_v43  ;;  %v3416_v28 = vsel %vm2112_vm11, %v3406_v23, 0.0  ;;  %v3417_v46 = vsel %vm2112_vm11, %v3407_v15, 0.0 }
 0xaea   : > { %v9481_v2 = vpack.i.bf16 %v3518_v62, %v3517_v54 }
 0xaec   : > { %9482 = vrot.lane.b32.xlu0 %v9481_v2, %s15140_s13  ;;  %3630 = vrot.lane.b32.xlu1 %v12628_v22, %s15150_s26  ;;  %s15265_s13 = smov 120  }
 0xaf0   : > { %3653 = vrot.lane.b32.xlu0 %v15253_v17, %s15142_s16  ;;  %3659 = vrot.lane.b32.xlu1 %v12628_v22, %s15142_s16 }
 0xaf4   : > { %3683 = vrot.lane.b32.xlu0 %v15253_v17, %s15148_s17  ;;  %9487 = vrot.lane.b32.xlu1 %v12573_v14, %s15152_s14 }
 0xaf8   : > { %9492 = vrot.lane.b32.xlu0 %v12573_v14, %s15162_s18  ;;  %9497 = vrot.lane.b32.xlu1 %v12573_v14, %s15158_s12 }
 0xafc   : > { %9502 = vrot.lane.b32.xlu0 %v12573_v14, %s10492_s15 }
 0xb52   : > { %v12673_v13 = vpop.permute.xlu0 %9472  ;;  %v9468_v45 = vpop.permute.xlu1 %9467 }
 0xb53   : > { %v9475_v10 = vunpack.i.h.bf16 %v12673_v13  ;;  %v9474_v53 = vunpack.i.l.bf16 %v12673_v13  ;;  %v9470_v32 = vunpack.i.h.bf16 %v9468_v45  ;;  %v9469_v37 = vunpack.i.l.bf16 %v9468_v45  ;;  %9512 = vrot.lane.b32.xlu0 %v12673_v13, %s15144_s30  ;;  %9507 = vrot.lane.b32.xlu1 %v9468_v45, %s15144_s30 }
 0xb55   : > { %v12677_v18 = vpack.c.bf16 %v9470_v32, %v9469_v37  ;;  %v3270_v37 = vld [vmem:[%s15116_s7 + $0x18] sm:$0xff] }
 0xb56   : > { %v12679_v14 = vpop.permute.xlu1 %9477  ;;  %v3740_v63 = vpop.permute.xlu0 %3739 }
 0xb57   : > { %v9480_v44 = vunpack.i.h.bf16 %v12679_v14  ;;  %v9479_v51 = vunpack.i.l.bf16 %v12679_v14  ;;  %4004 = vmatpush1.bf16.msra.mxu0 %v12677_v18  ;;  %3771 = vrot.lane.b32.xlu0 %v3740_v63, %s15144_s30  ;;  %v12749_v63 = vpack.c.bf16 %v3270_v37, %v3270_v37 }
 0xb58   : > { %4005 = vmatprep.subr.bf16.mxu0 %v15250_v60  ;;  %9517 = vrot.lane.b32.xlu1 %v12679_v14, %s15144_s30 }
 0xb59   : > { %7939 = vmatprep.mubr.msk.bf16.mxu0 %vm15173_vm5, %v12749_v63 }
 0xb5a   : > { %v12688_v33 = vpop.permute.xlu1 %3603 }
 0xb5b   : > { %9522 = vrot.lane.b32.xlu0 %v12609_v7, %s15148_s17 }
 0xb5c   : > { %3773 = vrot.lane.b32.xlu1 %v12688_v33, %s15144_s30 }
 0xb5e   : > { %v9483_v20 = vpop.permute.xlu0 %9482  ;;  %v12693_v35 = vpop.permute.xlu1 %3630 }
 0xb5f   : > { %v9485_v36 = vunpack.i.h.bf16 %v9483_v20  ;;  %v9484_v26 = vunpack.i.l.bf16 %v9483_v20 }
 0xb60   : > { %3775 = vrot.lane.b32.xlu1 %v12693_v35, %s15144_s30 }
 0xb61   : > { %v3572_v58 = vsel %vm2133_vm12, 0.0, %v9485_v36  ;;  %v3571_v31 = vsel %vm2133_vm12, 0.0, %v9484_v26 }
 0xb62   : > { %v3583_v11 = vsel %vm15173_vm5, %v3572_v58, 0.0  ;;  %v3582_v41 = vsel %vm15173_vm5, %v3571_v31, 0.0  ;;  %v12703_v16 = vpack.c.bf16 %v3572_v58, %v3571_v31  ;;  %v12705_v27 = vpop.permute.xlu0 %3653  ;;  %v12707_v55 = vpop.permute.xlu1 %3659 }
 0xb63   : > { %v12711_v7 = vpack.c.bf16 %v12705_v27, %v12705_v27  ;;  %v12713_v24 = vpack.i.bf16 %v3583_v11, %v3582_v41 }
 0xb64   : > { %3777 = vrot.lane.b32.xlu1 %v12707_v55, %s15144_s30 }
 0xb65   : > { %8185 = vmatprep.subr.bf16.mxu1 %v12711_v7  ;;  %9527 = vrot.lane.b32.xlu0 %v12713_v24, %s15249_s25 }
 0xb66   : > { %8186 = vmatpush3.bf16.msra.mxu1 %v10488_v50  ;;  %v3684_v25 = vpop.permute.xlu0 %3683  ;;  %v9488_v43 = vpop.permute.xlu1 %9487 }
 0xb67   : > { %v12727_v39 = vpack.c.bf16 %v3684_v25, %v3684_v25  ;;  %v9490_v5 = vunpack.i.h.bf16 %v9488_v43  ;;  %v9489_v56 = vunpack.i.l.bf16 %v9488_v43 }
 0xb68   : > { %9537 = vrot.lane.b32.xlu1 %v12713_v24, %s15150_s26 }
 0xb69   : > { %v3426_v48 = vsel %vm2133_vm12, %v3416_v28, %v9489_v56  ;;  %v3427_v52 = vsel %vm2133_vm12, %v3417_v46, %v9490_v5  ;;  %8187 = vmatprep.subr.bf16.mxu1 %v12727_v39  ;;  %9532 = vrot.lane.b32.xlu0 %v12713_v24, %s15144_s30 }
 0xb6a   : > { %v3436_v49 = vsel %vm2154_vm13, %v3426_v48, 0.0  ;;  %v3437_v59 = vsel %vm2154_vm13, %v3427_v52, 0.0  ;;  %8188 = vmatpush3.bf16.msra.mxu1 %v12254_v47  ;;  %v9493_v54 = vpop.permute.xlu0 %9492  ;;  %v9498_v32 = vpop.permute.xlu1 %9497 }
 0xb6b   : > { %v3446_v62 = vsel %vm15170_vm14, %v3436_v49, 0.0  ;;  %v3447_v2 = vsel %vm15170_vm14, %v3437_v59, 0.0  ;;  %v9495_v30 = vunpack.i.h.bf16 %v9493_v54  ;;  %v9494_v45 = vunpack.i.l.bf16 %v9493_v54  ;;  %8189 = vmatprep.subr.bf16.mxu1 %v10488_v50 }
 0xb6c   : > { %v9500_v31 = vunpack.i.h.bf16 %v9498_v32  ;;  %v9499_v11 = vunpack.i.l.bf16 %v9498_v32  ;;  %3689 = vrot.lane.b32.xlu1 %v12628_v22, %s15148_s17 }
 0xb6d   : > { %v3456_v20 = vsel %vm15171_vm15, %v3446_v62, %v9494_v45  ;;  %v3457_v36 = vsel %vm15171_vm15, %v3447_v2, %v9495_v30  ;;  %9542 = vrot.lane.b32.xlu0 %v12713_v24, %s15142_s16  ;;  %v3267_v62 = vld [vmem:[%s15116_s7] sm:$0xff]  ;;  %v12811_v30 = vpack.c.bf16 %v9475_v10, %v9474_v53  ;;  %v12819_v45 = vpack.c.bf16 %v9480_v44, %v9479_v51  ;;  %s15264_s16 = smov 125  }
 0xb6e   : > { %v3466_v26 = vsel %vm2217_vm1, %v3456_v20, 0.0  ;;  %v3467_v58 = vsel %vm2217_vm1, %v3457_v36, 0.0  ;;  %8190 = vmatpush3.bf16.msra.mxu1 %v12263_v8  ;;  %v9503_v41 = vpop.permute.xlu0 %9502  ;;  %v12793_v2 = vpack.c.bf16 %v3267_v62, %v3267_v62 }
 0xb6f   : > { %v3476_v23 = vsel %vm2238_vm3, %v3466_v26, 0.0  ;;  %v3477_v15 = vsel %vm2238_vm3, %v3467_v58, 0.0  ;;  %8191 = vmatprep.subr.bf16.mxu1 %v12254_v47  ;;  %v9505_v28 = vunpack.i.h.bf16 %v9503_v41  ;;  %v9504_v46 = vunpack.i.l.bf16 %v9503_v41 }
 0xb70   : > { %v3486_v25 = vsel %vm1086_vm10, %v3476_v23, %v9499_v11  ;;  %v3487_v43 = vsel %vm1086_vm10, %v3477_v15, %v9500_v31 }
 0xb71   : > { %v3497_v5 = vsel %vm3492_vm6, %v3486_v25, 0.0  ;;  %v3498_v56 = vsel %vm3492_vm6, %v3487_v43, 0.0  ;;  %v12830_v43 = vpack.c.bf16 %v12614_v57, %v12614_v57 }
 0xb72   : > { %v3508_v48 = vsel %vm3503_vm7, %v3497_v5, 0.0  ;;  %v3509_v52 = vsel %vm3503_vm7, %v3498_v56, 0.0  ;;  %8192 = vmatpush3.bf16.msra.mxu1 %v12711_v7 }
 0xb73   : > { %v3519_v49 = vsel %vm3514_vm8, %v3508_v48, %v9504_v46  ;;  %v3520_v59 = vsel %vm3514_vm8, %v3509_v52, %v9505_v28  ;;  %8193 = vmatprep.subr.bf16.mxu1 %v12263_v8 }
 0xb74   : > { %v9546_v54 = vpack.i.bf16 %v3520_v59, %v3519_v49  ;;  %v12846_v49 = vpack.c.bf16 %v12688_v33, %v12688_v33 }
 0xb76   : > { %8194 = vmatpush3.bf16.msra.mxu1 %v12727_v39  ;;  %9547 = vrot.lane.b32.xlu0 %v9546_v54, %s15261_s23 }
 0xb77   : > { %8195 = vmatprep.subr.bf16.mxu1 %v12711_v7 }
 0xb7a   : > { %8196 = vmatpush3.bf16.msra.mxu1 %v10488_v50 }
 0xb7b   : > { %8197 = vmatprep.subr.bf16.mxu1 %v12727_v39 }
 0xb7e   : > { %8198 = vmatpush3.bf16.msra.mxu1 %v12254_v47 }
 0xb7f   : > { %8199 = vmatprep.subr.msk.bf16.mxu1 %vm12782_vm9, %v12607_v21 }
 0xb82   : > { %8200 = vmatpush3.bf16.msra.mxu1 %v12263_v8 }
 0xb83   : > { %8207 = vmatprep.subr.bf16.mxu1 %v12711_v7 }
 0xb85   : > { %3996 = vmatmul.mubr.bf16.vlgmr.msra.gmra.mrb[36].mxu1 %v12793_v2 }
 0xb86   : > { %8208 = vmatpush3.bf16.msra.mxu1 %v10488_v50  ;;  %4075 = vmatprep.mubr.bf16.mxu1 %v12670_v4 }
 0xb87   : > { %8209 = vmatprep.subr.bf16.mxu1 %v12727_v39 }
 0xb8a   : > { %8210 = vmatpush3.bf16.msra.mxu1 %v12254_v47 }
 0xb8b   : > { %8211 = vmatprep.subr.msk.bf16.mxu1 %vm12782_vm9, %v12607_v21 }
 0xb8e   : > { %8212 = vmatpush3.bf16.msra.mxu1 %v12263_v8 }
 0xb8f   : > { %8213 = vmatprep.subr.bf16.mxu1 %v12677_v18 }
 0xb92   : > { %8214 = vmatpush3.bf16.msra.mxu1 %v12711_v7 }
 0xb93   : > { %8215 = vmatprep.subr.bf16.mxu1 %v12811_v30 }
 0xb96   : > { %8216 = vmatpush3.bf16.msra.mxu1 %v12727_v39 }
 0xb97   : > { %8217 = vmatprep.subr.bf16.mxu1 %v12819_v45 }
 0xb9a   : > { %8218 = vmatpush3.bf16.msra.mxu1 %v10488_v50 }
 0xbc5   : > { %v9513_v32 = vpop.permute.xlu0 %9512  ;;  %v9508_v13 = vpop.permute.xlu1 %9507 }
 0xbc6   : > { %v9510_v10 = vunpack.i.h.bf16 %v9508_v13  ;;  %v9509_v53 = vunpack.i.l.bf16 %v9508_v13  ;;  %v9515_v37 = vunpack.i.h.bf16 %v9513_v32  ;;  %v9514_v20 = vunpack.i.l.bf16 %v9513_v32 }
 0xbc8   : > { %v3901_v36 = vpack.c.bf16 %v9510_v10, %v9509_v53  ;;  %v3902_v14 = vpack.c.bf16 %v9515_v37, %v9514_v20 }
 0xbc9   : > { %v3772_v26 = vpop.permute.xlu0 %3771 }
 0xbca   : > { %v9518_v58 = vpop.permute.xlu1 %9517  ;;  %4006 = vmatpush1.bf16.msra.mxu0 %v3901_v36  ;;  %v12838_v28 = vpack.c.bf16 %v3772_v26, %v3772_v26  ;;  %v3269_v26 = vld [vmem:[%s15116_s7 + $0x10] sm:$0xff] }
 0xbcb   : > { %4007 = vmatprep.subr.bf16.mxu0 %v15250_v60  ;;  %v9520_v44 = vunpack.i.h.bf16 %v9518_v58  ;;  %v9519_v51 = vunpack.i.l.bf16 %v9518_v58 }
 0xbcd   : > { %v9523_v31 = vpop.permute.xlu0 %9522  ;;  %v3903_v25 = vpack.c.bf16 %v9520_v44, %v9519_v51 }
 0xbce   : > { %v9525_v11 = vunpack.i.h.bf16 %v9523_v31  ;;  %v9524_v41 = vunpack.i.l.bf16 %v9523_v31  ;;  %v3774_v23 = vpop.permute.xlu1 %3773  ;;  %4008 = vmatpush1.bf16.msra.mxu0 %v3902_v14  ;;  %v12887_v31 = vpack.c.bf16 %v3269_v26, %v3269_v26 }
 0xbcf   : > { %4009 = vmatprep.subr.bf16.mxu0 %v15250_v60  ;;  %v12856_v33 = vpack.c.bf16 %v3774_v23, %v3774_v23 }
 0xbd0   : > { %v12826_v15 = vpack.c.bf16 %v9525_v11, %v9524_v41  ;;  %v12891_v11 = vpack.c.bf16 %v12693_v35, %v12693_v35 }
 0xbd2   : > { %v3776_v5 = vpop.permute.xlu1 %3775  ;;  %8219 = vmatprep.subr.bf16.mxu1 %v12826_v15  ;;  %4010 = vmatpush1.bf16.msra.mxu0 %v3903_v25 }
 0xbd3   : > { %8220 = vmatpush3.bf16.msra.mxu1 %v12254_v47  ;;  %4011 = vmatprep.subr.bf16.mxu0 %v15250_v60  ;;  %v12868_v36 = vpack.c.bf16 %v3776_v5, %v3776_v5 }
 0xbd4   : > { %8221 = vmatprep.subr.msk.bf16.mxu1 %vm12782_vm9, %v12830_v43 }
 0xbd6   : > { %v3778_v46 = vpop.permute.xlu1 %3777  ;;  %4012 = vmatpush1.bf16.msra.mxu0 %v12838_v28 }
 0xbd7   : > { %v9528_v56 = vpop.permute.xlu0 %9527  ;;  %8222 = vmatpush3.bf16.msra.mxu1 %v12263_v8  ;;  %4013 = vmatprep.subr.bf16.mxu0 %v15250_v60  ;;  %v12883_v14 = vpack.c.bf16 %v3778_v46, %v3778_v46  ;;  %v12912_v46 = vpack.c.bf16 %v12707_v55, %v12707_v55 }
 0xbd8   : > { %8229 = vmatprep.subr.bf16.mxu1 %v12819_v45  ;;  %9552 = vrot.lane.b32.xlu1 %v9528_v56, %s15144_s30 }
 0xbda   : > { %v9538_v54 = vpop.permute.xlu1 %9537  ;;  %4076 = vmatmul.mubr.bf16.vlgmr.msra.gmra.mrb[40].mxu1 %v12793_v2  ;;  %4014 = vmatpush1.bf16.msra.mxu0 %v12846_v49 }
 0xbdb   : > { %v9533_v57 = vpop.permute.xlu0 %9532  ;;  %v9540_v62 = vunpack.i.h.bf16 %v9538_v54  ;;  %v9539_v32 = vunpack.i.l.bf16 %v9538_v54  ;;  %8230 = vmatpush3.bf16.msra.mxu1 %v10488_v50  ;;  %4015 = vmatprep.subr.bf16.mxu0 %v15250_v60 }
 0xbdc   : > { %v9535_v48 = vunpack.i.h.bf16 %v9533_v57  ;;  %v9534_v52 = vunpack.i.l.bf16 %v9533_v57  ;;  %8231 = vmatprep.subr.bf16.mxu1 %v12826_v15  ;;  %9557 = vrot.lane.b32.xlu0 %v9533_v57, %s15144_s30 }
 0xbdd   : > { %4155 = vmatprep.mubr.bf16.mxu1 %v12670_v4  ;;  %v12860_v37 = vpack.c.bf16 %v9540_v62, %v9539_v32  ;;  %9562 = vrot.lane.b32.xlu1 %v9538_v54, %s15144_s30  ;;  %v3408_v54 = vsel %vm641_vm0, %v3263_v34, 0.0  ;;  %v3409_v62 = vsel %vm641_vm0, %v3264_v61, 0.0 }
 0xbde   : > { %v12849_v59 = vpack.c.bf16 %v9535_v48, %v9534_v52  ;;  %4016 = vmatpush1.bf16.msra.mxu0 %v12856_v33  ;;  %v3690_v57 = vpop.permute.xlu1 %3689  ;;  %v3418_v26 = vsel %vm2112_vm11, %v3408_v54, 0.0 }
 0xbdf   : > { %v9543_v13 = vpop.permute.xlu0 %9542  ;;  %8232 = vmatpush3.bf16.msra.mxu1 %v12254_v47  ;;  %4017 = vmatprep.subr.bf16.mxu0 %v15250_v60 }
 0xbe0   : > { %v9545_v10 = vunpack.i.h.bf16 %v9543_v13  ;;  %v9544_v53 = vunpack.i.l.bf16 %v9543_v13  ;;  %9567 = vrot.lane.b32.xlu0 %v9543_v13, %s15144_s30  ;;  %8233 = vmatprep.subr.msk.bf16.mxu1 %vm12782_vm9, %v12830_v43 }
 0xbe1   : > { %9572 = vrot.lane.b32.xlu1 %v12581_v29, %s15152_s14 }
 0xbe2   : > { %v12862_v20 = vpack.c.bf16 %v9545_v10, %v9544_v53  ;;  %4018 = vmatpush1.bf16.msra.mxu0 %v12868_v36 }
 0xbe3   : > { %8234 = vmatpush3.bf16.msra.mxu1 %v12263_v8  ;;  %4019 = vmatprep.subr.bf16.mxu0 %v15250_v60 }
 0xbe4   : > { %9577 = vrot.lane.b32.xlu0 %v12581_v29, %s15162_s18  ;;  %8235 = vmatprep.subr.bf16.mxu1 %v12846_v49 }
 0xbe5   : > { %9582 = vrot.lane.b32.xlu1 %v12581_v29, %s15158_s12 }
 0xbe6   : > { %4020 = vmatpush1.bf16.msra.mxu0 %v12883_v14 }
 0xbe7   : > { %8236 = vmatpush3.bf16.msra.mxu1 %v12711_v7  ;;  %4083 = vmatprep.subr.bf16.mxu0 %v15250_v60 }
 0xbe8   : > { %v9548_v58 = vpop.permute.xlu0 %9547  ;;  %9587 = vrot.lane.b32.xlu0 %v12581_v29, %s10492_s15  ;;  %8237 = vmatprep.subr.bf16.mxu1 %v12891_v11  ;;  %v12924_v29 = vpack.c.bf16 %v3690_v57, %v3690_v57 }
 0xbe9   : > { %v9550_v44 = vunpack.i.h.bf16 %v9548_v58  ;;  %v9549_v51 = vunpack.i.l.bf16 %v9548_v58  ;;  %4036 = vmatmul.mubr.bf16.vlgmr.msra.gmra.mrb[36].mxu0 %v12887_v31  ;;  %v3419_v58 = vsel %vm2112_vm11, %v3409_v62, 0.0 }
 0xbea   : > { %4084 = vmatpush1.bf16.msra.mxu0 %v12846_v49  ;;  %7946 = vmatprep.mubr.msk.bf16.mxu0 %vm15173_vm5, %v12749_v63 }
 0xbeb   : > { %v3574_v41 = vsel %vm2133_vm12, 0.0, %v9550_v44  ;;  %v3573_v23 = vsel %vm2133_vm12, 0.0, %v9549_v51  ;;  %8238 = vmatpush3.bf16.msra.mxu1 %v12727_v39  ;;  %4085 = vmatprep.subr.bf16.mxu0 %v15250_v60 }
 0xbec   : > { %v3585_v25 = vsel %vm15173_vm5, %v3574_v41, 0.0  ;;  %v3584_v5 = vsel %vm15173_vm5, %v3573_v23, 0.0  ;;  %v12900_v56 = vpack.c.bf16 %v3574_v41, %v3573_v23  ;;  %9597 = vrot.lane.b32.xlu0 %v12713_v24, %s15148_s17  ;;  %8239 = vmatprep.subr.bf16.mxu1 %v12912_v46 }
 0xbed   : > { %v12907_v35 = vpack.i.bf16 %v3585_v25, %v3584_v5 }
 0xbee   : > { %4086 = vmatpush1.bf16.msra.mxu0 %v12856_v33 }
 0xbef   : > { %9592 = vrot.lane.b32.xlu1 %v12907_v35, %s15249_s25  ;;  %8240 = vmatpush3.bf16.msk.msra.mxu1 %vm12782_vm9, %v12607_v21 }
 0xbf0   : > { %9607 = vrot.lane.b32.xlu0 %v12907_v35, %s15150_s26  ;;  %8241 = vmatprep.subr.bf16.mxu1 %v12924_v29 }
 0xbf1   : > { %4087 = vmatprep.subr.bf16.mxu0 %v15250_v60 }
 0xbf2   : > { %4088 = vmatpush1.bf16.msra.mxu0 %v12868_v36 }
 0xbf3   : > { %9602 = vrot.lane.b32.xlu1 %v12907_v35, %s15144_s30  ;;  %8242 = vmatpush3.bf16.msra.mxu1 %v12677_v18 }
 0xbf4   : > { %4089 = vmatprep.subr.bf16.mxu0 %v15250_v60  ;;  %8243 = vmatprep.subr.msk.bf16.mxu1 %vm12782_vm9, %v12830_v43 }
 0xbf6   : > { %4090 = vmatpush1.bf16.msra.mxu0 %v12883_v14 }
 0xbf7   : > { %9612 = vrot.lane.b32.xlu1 %v12907_v35, %s15264_s16  ;;  %8244 = vmatpush3.bf16.msra.mxu1 %v12811_v30 }
 0xbf8   : > { %4091 = vmatprep.subr.bf16.mxu0 %v15250_v60  ;;  %8251 = vmatprep.subr.bf16.mxu1 %v12912_v46 }
 0xbfa   : > { %4092 = vmatpush1.bf16.msra.mxu0 %v12838_v28  ;;  %4156 = vmatmul.mubr.bf16.vlgmr.msra.gmra.mrb[44].mxu1 %v12793_v2 }
 0xbfb   : > { %8252 = vmatpush3.bf16.msk.msra.mxu1 %vm12782_vm9, %v12607_v21  ;;  %4093 = vmatprep.subr.bf16.mxu0 %v15250_v60 }
 0xbfc   : > { %8253 = vmatprep.subr.bf16.mxu1 %v12924_v29  ;;  %4235 = vmatprep.mubr.bf16.mxu1 %v12670_v4 }
 0xbfe   : > { %4094 = vmatpush1.bf16.msra.mxu0 %v12846_v49 }
 0xbff   : > { %8254 = vmatpush3.bf16.msra.mxu1 %v12677_v18  ;;  %4095 = vmatprep.subr.bf16.mxu0 %v15250_v60 }
 0xc00   : > { %8255 = vmatprep.subr.msk.bf16.mxu1 %vm12782_vm9, %v12830_v43 }
 0xc02   : > { %4096 = vmatpush1.bf16.msra.mxu0 %v12856_v33 }
 0xc03   : > { %8256 = vmatpush3.bf16.msra.mxu1 %v12811_v30  ;;  %4097 = vmatprep.subr.bf16.mxu0 %v15250_v60 }
 0xc04   : > { %8257 = vmatprep.subr.bf16.mxu1 %v12846_v49 }
 0xc06   : > { %4098 = vmatpush1.bf16.msra.mxu0 %v12868_v36 }
 0xc07   : > { %8258 = vmatpush3.bf16.msra.mxu1 %v12819_v45  ;;  %4099 = vmatprep.subr.bf16.mxu0 %v15250_v60 }
 0xc08   : > { %8259 = vmatprep.subr.bf16.mxu1 %v12891_v11 }
 0xc0a   : > { %4100 = vmatpush1.bf16.msra.mxu0 %v12883_v14 }
 0xc0b   : > { %8260 = vmatpush3.bf16.msra.mxu1 %v12826_v15  ;;  %4163 = vmatprep.subr.bf16.mxu0 %v15250_v60 }
 0xc0c   : > { %8261 = vmatprep.subr.bf16.mxu1 %v12912_v46 }
 0xc0d   : > { %4116 = vmatmul.mubr.bf16.vlgmr.msra.gmra.mrb[40].mxu0 %v12887_v31 }
 0xc0e   : > { %4164 = vmatpush1.bf16.msra.mxu0 %v12846_v49  ;;  %7956 = vmatprep.mubr.msk.bf16.mxu0 %vm15173_vm5, %v12749_v63 }
 0xc0f   : > { %8262 = vmatpush3.bf16.msk.msra.mxu1 %vm12782_vm9, %v12830_v43  ;;  %4165 = vmatprep.subr.bf16.mxu0 %v15250_v60 }
 0xc10   : > { %8263 = vmatprep.subr.bf16.mxu1 %v12924_v29 }
 0xc12   : > { %4166 = vmatpush1.bf16.msra.mxu0 %v12856_v33 }
 0xc13   : > { %8264 = vmatpush3.bf16.msra.mxu1 %v12846_v49  ;;  %4167 = vmatprep.subr.bf16.mxu0 %v15250_v60 }
 0xc14   : > { %8265 = vmatprep.subr.msk.bf16.mxu1 %vm12782_vm9, %v12703_v16 }
 0xc16   : > { %4168 = vmatpush1.bf16.msra.mxu0 %v12868_v36 }
 0xc17   : > { %8266 = vmatpush3.bf16.msra.mxu1 %v12891_v11  ;;  %4169 = vmatprep.subr.bf16.mxu0 %v15250_v60 }
 0xc18   : > { %8273 = vmatprep.subr.bf16.mxu1 %v12912_v46 }
 0xc1a   : > { %4170 = vmatpush1.bf16.msra.mxu0 %v12883_v14  ;;  %4236 = vmatmul.mubr.bf16.vlgmr.msra.gmra.mrb[48].mxu1 %v12793_v2 }
 0xc1b   : > { %8274 = vmatpush3.bf16.msk.msra.mxu1 %vm12782_vm9, %v12830_v43  ;;  %4171 = vmatprep.subr.bf16.mxu0 %v15250_v60 }
 0xc1c   : > { %8275 = vmatprep.subr.bf16.mxu1 %v12924_v29  ;;  %4315 = vmatprep.mubr.bf16.mxu1 %v12670_v4 }
 0xc1f   : > { %8276 = vmatpush3.bf16.msra.mxu1 %v12846_v49 }
 0xc20   : > { %8277 = vmatprep.subr.msk.bf16.mxu1 %vm12782_vm9, %v12703_v16 }
 0xc23   : > { %8278 = vmatpush3.bf16.msra.mxu1 %v12891_v11 }
 0xc24   : > { %8279 = vmatprep.subr.bf16.mxu1 %v12849_v59 }
 0xc27   : > { %8280 = vmatpush3.bf16.msra.mxu1 %v12912_v46 }
 0xc28   : > { %8281 = vmatprep.subr.bf16.mxu1 %v12860_v37 }
 0xc2b   : > { %8282 = vmatpush3.bf16.msra.mxu1 %v12924_v29 }
 0xc2c   : > { %8283 = vmatprep.subr.bf16.mxu1 %v12862_v20 }
 0xc2f   : > { %8284 = vmatpush3.bf16.msk.msra.mxu1 %vm12782_vm9, %v12830_v43 }
 0xc4a   : > { %v9553_v21 = vpop.permute.xlu1 %9552 }
 0xc4b   : > { %v9555_v18 = vunpack.i.h.bf16 %v9553_v21  ;;  %v9554_v55 = vunpack.i.l.bf16 %v9553_v21 }
 0xc4d   : > { %v3916_v24 = vpack.c.bf16 %v9555_v18, %v9554_v55 }
 0xc4e   : > { %v9558_v30 = vpop.permute.xlu0 %9557 }
 0xc4f   : > { %4172 = vmatpush1.bf16.msra.mxu0 %v3916_v24  ;;  %v9560_v45 = vunpack.i.h.bf16 %v9558_v30  ;;  %v9559_v15 = vunpack.i.l.bf16 %v9558_v30  ;;  %v9563_v48 = vpop.permute.xlu1 %9562 }
 0xc50   : > { %4173 = vmatprep.subr.bf16.mxu0 %v15250_v60  ;;  %v9565_v13 = vunpack.i.h.bf16 %v9563_v48  ;;  %v9564_v10 = vunpack.i.l.bf16 %v9563_v48 }
 0xc51   : > { %v13023_v32 = vpack.c.bf16 %v9560_v45, %v9559_v15 }
 0xc52   : > { %v9568_v52 = vpop.permute.xlu0 %9567  ;;  %v3919_v5 = vpack.c.bf16 %v9565_v13, %v9564_v10 }
 0xc53   : > { %4174 = vmatpush1.bf16.msra.mxu0 %v12849_v59  ;;  %v9573_v53 = vpop.permute.xlu1 %9572  ;;  %v9570_v41 = vunpack.i.h.bf16 %v9568_v52  ;;  %v9569_v34 = vunpack.i.l.bf16 %v9568_v52 }
 0xc54   : > { %4175 = vmatprep.subr.bf16.mxu0 %v15250_v60  ;;  %v9575_v44 = vunpack.i.h.bf16 %v9573_v53  ;;  %v9574_v51 = vunpack.i.l.bf16 %v9573_v53 }
 0xc55   : > { %v13035_v45 = vpack.c.bf16 %v9570_v41, %v9569_v34 }
 0xc56   : > { %v9578_v40 = vpop.permute.xlu0 %9577  ;;  %v3429_v61 = vsel %vm2133_vm12, %v3419_v58, %v9575_v44  ;;  %v3428_v25 = vsel %vm2133_vm12, %v3418_v26, %v9574_v51 }
 0xc57   : > { %v9580_v23 = vunpack.i.h.bf16 %v9578_v40  ;;  %v9579_v9 = vunpack.i.l.bf16 %v9578_v40  ;;  %4176 = vmatpush1.bf16.msra.mxu0 %v13023_v32  ;;  %v3439_v57 = vsel %vm2154_vm13, %v3429_v61, 0.0  ;;  %v3438_v21 = vsel %vm2154_vm13, %v3428_v25, 0.0  ;;  %v9583_v18 = vpop.permute.xlu1 %9582 }
 0xc58   : > { %4177 = vmatprep.subr.bf16.mxu0 %v15250_v60  ;;  %v3449_v55 = vsel %vm15170_vm14, %v3439_v57, 0.0  ;;  %v3448_v24 = vsel %vm15170_vm14, %v3438_v21, 0.0  ;;  %v9585_v62 = vunpack.i.h.bf16 %v9583_v18  ;;  %v9584_v13 = vunpack.i.l.bf16 %v9583_v18 }
 0xc59   : > { %v3459_v15 = vsel %vm15171_vm15, %v3449_v55, %v9580_v23  ;;  %v3458_v48 = vsel %vm15171_vm15, %v3448_v24, %v9579_v9 }
 0xc5a   : > { %v9588_v30 = vpop.permute.xlu0 %9587  ;;  %v3469_v52 = vsel %vm2217_vm1, %v3459_v15, 0.0  ;;  %v3468_v54 = vsel %vm2217_vm1, %v3458_v48, 0.0 }
 0xc5b   : > { %4178 = vmatpush1.bf16.msra.mxu0 %v3919_v5  ;;  %v3479_v10 = vsel %vm2238_vm3, %v3469_v52, 0.0  ;;  %v3478_v53 = vsel %vm2238_vm3, %v3468_v54, 0.0  ;;  %v9590_v26 = vunpack.i.h.bf16 %v9588_v30  ;;  %v9589_v58 = vunpack.i.l.bf16 %v9588_v30 }
 0xc5c   : > { %4179 = vmatprep.subr.bf16.mxu0 %v15250_v60  ;;  %v3488_v51 = vsel %vm1086_vm10, %v3478_v53, %v9584_v13  ;;  %v3489_v40 = vsel %vm1086_vm10, %v3479_v10, %v9585_v62 }
 0xc5d   : > { %v3499_v34 = vsel %vm3492_vm6, %v3488_v51, 0.0  ;;  %v3500_v23 = vsel %vm3492_vm6, %v3489_v40, 0.0 }
 0xc5e   : > { %v9598_v41 = vpop.permute.xlu0 %9597  ;;  %v3510_v25 = vsel %vm3503_vm7, %v3499_v34, 0.0  ;;  %v3511_v57 = vsel %vm3503_vm7, %v3500_v23, 0.0 }
 0xc5f   : > { %v9600_v9 = vunpack.i.h.bf16 %v9598_v41  ;;  %v9599_v61 = vunpack.i.l.bf16 %v9598_v41  ;;  %4180 = vmatpush1.bf16.msra.mxu0 %v13035_v45  ;;  %v3521_v21 = vsel %vm3514_vm8, %v3510_v25, %v9589_v58  ;;  %v3522_v18 = vsel %vm3514_vm8, %v3511_v57, %v9590_v26 }
 0xc60   : > { %4243 = vmatprep.subr.bf16.mxu0 %v15250_v60  ;;  %v9616_v52 = vpack.i.bf16 %v3522_v18, %v3521_v21  ;;  %v3411_v21 = vsel %vm641_vm0, %v3266_v3, 0.0 }
 0xc61   : > { %v9593_v44 = vpop.permute.xlu1 %9592  ;;  %v13054_v24 = vpack.c.bf16 %v9600_v9, %v9599_v61  ;;  %v3410_v9 = vsel %vm641_vm0, %v3265_v12, 0.0  ;;  %v3421_v3 = vsel %vm2112_vm11, %v3411_v21, 0.0 }
 0xc62   : > { %v9608_v48 = vpop.permute.xlu0 %9607  ;;  %9622 = vrot.lane.b32.xlu1 %v9593_v44, %s15144_s30  ;;  %4196 = vmatmul.mubr.bf16.vlgmr.msra.gmra.mrb[44].mxu0 %v12887_v31  ;;  %v3420_v38 = vsel %vm2112_vm11, %v3410_v9, 0.0 }
 0xc63   : > { %v9610_v54 = vunpack.i.h.bf16 %v9608_v48  ;;  %v9609_v62 = vunpack.i.l.bf16 %v9608_v48  ;;  %4244 = vmatpush1.bf16.msra.mxu0 %v12849_v59  ;;  %8285 = vmatprep.subr.bf16.mxu1 %v13054_v24 }
 0xc64   : > { %9617 = vrot.lane.b32.xlu0 %v9616_v52, %s15261_s23  ;;  %8286 = vmatpush3.bf16.msra.mxu1 %v12846_v49 }
 0xc65   : > { %v9603_v55 = vpop.permute.xlu1 %9602  ;;  %8287 = vmatprep.subr.msk.bf16.mxu1 %vm12782_vm9, %v12830_v43  ;;  %4245 = vmatprep.subr.bf16.mxu0 %v15250_v60  ;;  %v13068_v53 = vpack.c.bf16 %v9610_v54, %v9609_v62 }
 0xc66   : > { %v9605_v30 = vunpack.i.h.bf16 %v9603_v55  ;;  %v9604_v15 = vunpack.i.l.bf16 %v9603_v55  ;;  %7969 = vmatprep.mubr.msk.bf16.mxu0 %vm15173_vm5, %v12749_v63  ;;  %9632 = vrot.lane.b32.xlu1 %v9608_v48, %s15144_s30 }
 0xc67   : > { %4246 = vmatpush1.bf16.msra.mxu0 %v13023_v32 }
 0xc68   : > { %v13060_v13 = vpack.c.bf16 %v9605_v30, %v9604_v15  ;;  %9627 = vrot.lane.b32.xlu0 %v9603_v55, %s15144_s30  ;;  %8288 = vmatpush3.bf16.msra.mxu1 %v12891_v11 }
 0xc69   : > { %v9613_v10 = vpop.permute.xlu1 %9612  ;;  %8295 = vmatprep.subr.bf16.mxu1 %v12862_v20  ;;  %4247 = vmatprep.subr.bf16.mxu0 %v15250_v60 }
 0xc6a   : > { %v9615_v26 = vunpack.i.h.bf16 %v9613_v10  ;;  %v9614_v58 = vunpack.i.l.bf16 %v9613_v10  ;;  %9642 = vrot.lane.b32.xlu1 %v12595_v6, %s15152_s14 }
 0xc6b   : > { %4248 = vmatpush1.bf16.msra.mxu0 %v3919_v5  ;;  %4316 = vmatmul.mubr.bf16.vlgmr.msra.gmra.mrb[52].mxu1 %v12793_v2 }
 0xc6c   : > { %v13076_v44 = vpack.c.bf16 %v9615_v26, %v9614_v58  ;;  %9637 = vrot.lane.b32.xlu0 %v9613_v10, %s15144_s30  ;;  %8296 = vmatpush3.bf16.msk.msra.mxu1 %vm12782_vm9, %v12830_v43 }
 0xc6d   : > { %4249 = vmatprep.subr.bf16.mxu0 %v15250_v60  ;;  %8297 = vmatprep.subr.bf16.mxu1 %v13054_v24 }
 0xc6e   : > { %4395 = vmatprep.mubr.bf16.mxu1 %v12670_v4  ;;  %9652 = vrot.lane.b32.xlu1 %v12595_v6, %s15158_s12 }
 0xc6f   : > { %4250 = vmatpush1.bf16.msra.mxu0 %v13035_v45 }
 0xc70   : > { %9647 = vrot.lane.b32.xlu0 %v12595_v6, %s15162_s18  ;;  %4251 = vmatprep.subr.bf16.mxu0 %v15250_v60 }
 0xc71   : > { %8298 = vmatpush3.bf16.msra.mxu1 %v12846_v49 }
 0xc72   : > { %8299 = vmatprep.subr.msk.bf16.mxu1 %vm12782_vm9, %v12830_v43  ;;  %9662 = vrot.lane.b32.xlu1 %v12907_v35, %s15148_s17 }
 0xc73   : > { %4252 = vmatpush1.bf16.msra.mxu0 %v12838_v28 }
 0xc74   : > { %9657 = vrot.lane.b32.xlu0 %v12595_v6, %s10492_s15  ;;  %4253 = vmatprep.subr.bf16.mxu0 %v15250_v60  ;;  %s15146_s15 = smov 121  }
 0xc75   : > { %8300 = vmatpush3.bf16.msra.mxu1 %v12891_v11 }
 0xc76   : > { %8301 = vmatprep.subr.bf16.mxu1 %v12846_v49 }
 0xc77   : > { %4254 = vmatpush1.bf16.msra.mxu0 %v12846_v49 }
 0xc78   : > { %4255 = vmatprep.subr.bf16.mxu0 %v15250_v60 }
 0xc79   : > { %8302 = vmatpush3.bf16.msra.mxu1 %v12912_v46 }
 0xc7a   : > { %8303 = vmatprep.subr.bf16.mxu1 %v12891_v11 }
 0xc7b   : > { %4256 = vmatpush1.bf16.msra.mxu0 %v12856_v33 }
 0xc7c   : > { %4257 = vmatprep.subr.bf16.mxu0 %v15250_v60 }
 0xc7d   : > { %8304 = vmatpush3.bf16.msra.mxu1 %v12924_v29 }
 0xc7e   : > { %8305 = vmatprep.subr.bf16.mxu1 %v12912_v46 }
 0xc7f   : > { %4258 = vmatpush1.bf16.msra.mxu0 %v12868_v36 }
 0xc80   : > { %4259 = vmatprep.subr.bf16.mxu0 %v15250_v60 }
 0xc81   : > { %8306 = vmatpush3.bf16.msk.msra.mxu1 %vm12782_vm9, %v12703_v16 }
 0xc82   : > { %8307 = vmatprep.subr.bf16.mxu1 %v12924_v29 }
 0xc83   : > { %4260 = vmatpush1.bf16.msra.mxu0 %v12883_v14 }
 0xc84   : > { %4323 = vmatprep.subr.bf16.mxu0 %v15250_v60 }
 0xc85   : > { %8308 = vmatpush3.bf16.msra.mxu1 %v12849_v59 }
 0xc86   : > { %8309 = vmatprep.subr.msk.bf16.mxu1 %vm12782_vm9, %v12830_v43  ;;  %4276 = vmatmul.mubr.bf16.vlgmr.msra.gmra.mrb[48].mxu0 %v12887_v31 }
 0xc87   : > { %4324 = vmatpush1.bf16.msra.mxu0 %v12846_v49  ;;  %7982 = vmatprep.mubr.msk.bf16.mxu0 %vm15173_vm5, %v12749_v63 }
 0xc88   : > { %4325 = vmatprep.subr.bf16.mxu0 %v15250_v60 }
 0xc89   : > { %8310 = vmatpush3.bf16.msra.mxu1 %v12860_v37 }
 0xc8a   : > { %4403 = vmatprep.subr.bf16.mxu1 %v15250_v60 }
 0xc8b   : > { %4326 = vmatpush1.bf16.msra.mxu0 %v12856_v33 }
 0xc8c   : > { %4396 = vmatmul.mubr.bf16.vlgmr.msra.gmra.mrb[56].mxu1 %v12793_v2  ;;  %4327 = vmatprep.subr.bf16.mxu0 %v15250_v60 }
 0xc8d   : > { %4404 = vmatpush1.bf16.msra.mxu1 %v12846_v49  ;;  %7995 = vmatprep.mubr.msk.bf16.mxu1 %vm15173_vm5, %v12749_v63 }
 0xc8e   : > { %4405 = vmatprep.subr.bf16.mxu1 %v15250_v60 }
 0xc8f   : > { %4328 = vmatpush1.bf16.msra.mxu0 %v12868_v36 }
 0xc90   : > { %4329 = vmatprep.subr.bf16.mxu0 %v15250_v60 }
 0xc91   : > { %4406 = vmatpush1.bf16.msra.mxu1 %v12856_v33 }
 0xc92   : > { %4407 = vmatprep.subr.bf16.mxu1 %v15250_v60 }
 0xc93   : > { %4330 = vmatpush1.bf16.msra.mxu0 %v12883_v14 }
 0xc94   : > { %4331 = vmatprep.subr.bf16.mxu0 %v15250_v60 }
 0xc95   : > { %4408 = vmatpush1.bf16.msra.mxu1 %v12868_v36 }
 0xc96   : > { %4409 = vmatprep.subr.bf16.mxu1 %v15250_v60 }
 0xc97   : > { %4332 = vmatpush1.bf16.msra.mxu0 %v12838_v28 }
 0xc98   : > { %4333 = vmatprep.subr.bf16.mxu0 %v15250_v60 }
 0xc99   : > { %4410 = vmatpush1.bf16.msra.mxu1 %v12883_v14 }
 0xc9a   : > { %4411 = vmatprep.subr.bf16.mxu1 %v15250_v60 }
 0xc9b   : > { %4334 = vmatpush1.bf16.msra.mxu0 %v12846_v49 }
 0xc9c   : > { %4335 = vmatprep.subr.bf16.mxu0 %v15250_v60 }
 0xc9f   : > { %4336 = vmatpush1.bf16.msra.mxu0 %v12856_v33 }
 0xca0   : > { %4337 = vmatprep.subr.bf16.mxu0 %v15250_v60 }
 0xca3   : > { %4338 = vmatpush1.bf16.msra.mxu0 %v12868_v36 }
 0xca4   : > { %4339 = vmatprep.subr.bf16.mxu0 %v15250_v60 }
 0xca7   : > { %4340 = vmatpush1.bf16.msra.mxu0 %v12883_v14 }
 0xca8   : > { %8317 = vmatprep.subr.bf16.mxu0 %v12912_v46 }
 0xcaa   : > { %4356 = vmatmul.mubr.bf16.vlgmr.msra.gmra.mrb[52].mxu0 %v12887_v31 }
 0xcab   : > { %8318 = vmatpush3.bf16.msk.msra.mxu0 %vm12782_vm9, %v12703_v16  ;;  %4475 = vmatprep.mubr.bf16.mxu0 %v12670_v4 }
 0xcac   : > { %8319 = vmatprep.subr.bf16.mxu0 %v12924_v29 }
 0xcaf   : > { %8320 = vmatpush3.bf16.msra.mxu0 %v12849_v59 }
 0xcb0   : > { %8321 = vmatprep.subr.msk.bf16.mxu0 %vm12782_vm9, %v12830_v43 }
 0xcb3   : > { %8322 = vmatpush3.bf16.msra.mxu0 %v12860_v37 }
 0xcb4   : > { %8323 = vmatprep.subr.bf16.mxu0 %v12846_v49 }
 0xcb7   : > { %8324 = vmatpush3.bf16.msra.mxu0 %v12862_v20 }
 0xcb8   : > { %8325 = vmatprep.subr.bf16.mxu0 %v12891_v11 }
 0xcbb   : > { %8326 = vmatpush3.bf16.msra.mxu0 %v13054_v24 }
 0xcbc   : > { %8327 = vmatprep.subr.bf16.mxu0 %v12912_v46 }
 0xcbf   : > { %8328 = vmatpush3.bf16.msk.msra.mxu0 %vm12782_vm9, %v12830_v43 }
 0xcc0   : > { %8329 = vmatprep.subr.bf16.mxu0 %v12924_v29 }
 0xcc3   : > { %8330 = vmatpush3.bf16.msra.mxu0 %v12846_v49 }
 0xcc4   : > { %8331 = vmatprep.subr.msk.bf16.mxu0 %vm12782_vm9, %v12900_v56 }
 0xcc7   : > { %8332 = vmatpush3.bf16.msra.mxu0 %v12891_v11 }
 0xcc8   : > { %4483 = vmatprep.subr.bf16.mxu0 %v15250_v60 }
 0xcca   : > { %4476 = vmatmul.mubr.bf16.vlgmr.msra.gmra.mrb[56].mxu0 %v12793_v2 }
 0xccb   : > { %4484 = vmatpush1.bf16.msra.mxu0 %v13060_v13  ;;  %8008 = vmatprep.mubr.msk.bf16.mxu0 %vm15173_vm5, %v12749_v63 }
 0xccc   : > { %4485 = vmatprep.subr.bf16.mxu0 %v15250_v60 }
 0xcd4   : > { %v9623_v6 = vpop.permute.xlu1 %9622 }
 0xcd5   : > { %v9625_v16 = vunpack.i.h.bf16 %v9623_v6  ;;  %v9624_v59 = vunpack.i.l.bf16 %v9623_v6 }
 0xcd6   : > { %v9618_v37 = vpop.permute.xlu0 %9617 }
 0xcd7   : > { %v3925_v20 = vpack.c.bf16 %v9625_v16, %v9624_v59  ;;  %v9620_v35 = vunpack.i.h.bf16 %v9618_v37  ;;  %v9619_v32 = vunpack.i.l.bf16 %v9618_v37 }
 0xcd8   : > { %v9633_v51 = vpop.permute.xlu1 %9632 }
 0xcd9   : > { %v3576_v5 = vsel %vm2133_vm12, 0.0, %v9620_v35  ;;  %v3575_v45 = vsel %vm2133_vm12, 0.0, %v9619_v32  ;;  %4412 = vmatpush1.bf16.msra.mxu1 %v3925_v20  ;;  %v9635_v18 = vunpack.i.h.bf16 %v9633_v51  ;;  %v9634_v55 = vunpack.i.l.bf16 %v9633_v51 }
 0xcda   : > { %v3587_v40 = vsel %vm15173_vm5, %v3576_v5, 0.0  ;;  %v3586_v41 = vsel %vm15173_vm5, %v3575_v45, 0.0  ;;  %v13197_v34 = vpack.c.bf16 %v3576_v5, %v3575_v45  ;;  %v9628_v23 = vpop.permute.xlu0 %9627  ;;  %4413 = vmatprep.subr.bf16.mxu1 %v15250_v60 }
 0xcdb   : > { %v9630_v61 = vunpack.i.h.bf16 %v9628_v23  ;;  %v9629_v25 = vunpack.i.l.bf16 %v9628_v23  ;;  %v13203_v57 = vpack.i.bf16 %v3587_v40, %v3586_v41  ;;  %v3928_v48 = vpack.c.bf16 %v9635_v18, %v9634_v55 }
 0xcdc   : > { %v9643_v30 = vpop.permute.xlu1 %9642 }
 0xcdd   : > { %v3927_v24 = vpack.c.bf16 %v9630_v61, %v9629_v25  ;;  %9667 = vrot.lane.b32.xlu0 %v13203_v57, %s15249_s25  ;;  %4414 = vmatpush1.bf16.msra.mxu1 %v13060_v13  ;;  %v9645_v12 = vunpack.i.h.bf16 %v9643_v30  ;;  %v9644_v15 = vunpack.i.l.bf16 %v9643_v30 }
 0xcde   : > { %9672 = vrot.lane.b32.xlu1 %v13203_v57, %s15144_s30  ;;  %v9638_v42 = vpop.permute.xlu0 %9637  ;;  %4415 = vmatprep.subr.bf16.mxu1 %v15250_v60 }
 0xcdf   : > { %4486 = vmatpush1.bf16.msra.mxu0 %v3927_v24  ;;  %v3430_v52 = vsel %vm2133_vm12, %v3420_v38, %v9644_v15  ;;  %v3431_v54 = vsel %vm2133_vm12, %v3421_v3, %v9645_v12  ;;  %v9640_v62 = vunpack.i.h.bf16 %v9638_v42  ;;  %v9639_v10 = vunpack.i.l.bf16 %v9638_v42 }
 0xce0   : > { %4487 = vmatprep.subr.bf16.mxu0 %v15250_v60  ;;  %v3440_v26 = vsel %vm2154_vm13, %v3430_v52, 0.0  ;;  %v3441_v58 = vsel %vm2154_vm13, %v3431_v54, 0.0  ;;  %v9653_v35 = vpop.permute.xlu1 %9652  ;;  %v8201_v52 = vpop.f32.mrb[36].mxu1 }
 0xce1   : > { %9677 = vrot.lane.b32.xlu0 %v13203_v57, %s15150_s26  ;;  %4416 = vmatpush1.bf16.msra.mxu1 %v3927_v24  ;;  %v3450_v6 = vsel %vm15170_vm14, %v3440_v26, 0.0  ;;  %v3451_v16 = vsel %vm15170_vm14, %v3441_v58, 0.0  ;;  %v3929_v32 = vpack.c.bf16 %v9640_v62, %v9639_v10  ;;  %v9655_v41 = vunpack.i.h.bf16 %v9653_v35  ;;  %v4037_v54 = vpop.f32.mrb[36].mxu0  ;;  %v8202_v62 = vpop.f32.mrb[37].mxu1 }
 0xce2   : > { %9682 = vrot.lane.b32.xlu1 %v13203_v57, %s15264_s16  ;;  %v9648_v59 = vpop.permute.xlu0 %9647  ;;  %4417 = vmatprep.subr.bf16.mxu1 %v15250_v60  ;;  %v9654_v23 = vunpack.i.l.bf16 %v9653_v35  ;;  %v4039_v10 = vpop.f32.mrb[37].mxu0  ;;  %v8203_v26 = vadd.f32 %v8202_v62, %v8201_v52 }
 0xce3   : > { %v9650_v37 = vunpack.i.h.bf16 %v9648_v59  ;;  %v9649_v20 = vunpack.i.l.bf16 %v9648_v59  ;;  %4488 = vmatpush1.bf16.msra.mxu0 %v3928_v48  ;;  %v8204_v58 = vpop.f32.mrb[38].mxu1 }
 0xce4   : > { %4489 = vmatprep.subr.bf16.mxu0 %v15250_v60 }
 0xce5   : > { %v3460_v5 = vsel %vm15171_vm15, %v3450_v6, %v9649_v20  ;;  %v3461_v45 = vsel %vm15171_vm15, %v3451_v16, %v9650_v37  ;;  %4418 = vmatpush1.bf16.msra.mxu1 %v3928_v48  ;;  %v4040_v6 = vpop.f32.mrb[38].mxu0  ;;  %v8205_v16 = vpop.f32.mrb[39].mxu1  ;;  %v13262_v37 = vadd.f32 %v8203_v26, %v4037_v54 }
 0xce6   : > { %v3470_v51 = vsel %vm2217_vm1, %v3460_v5, 0.0  ;;  %v3471_v40 = vsel %vm2217_vm1, %v3461_v45, 0.0  ;;  %v9658_v9 = vpop.permute.xlu0 %9657  ;;  %4419 = vmatprep.subr.bf16.mxu1 %v15250_v60  ;;  %v4041_v59 = vpop.f32.mrb[39].mxu0 }
 0xce7   : > { %v3480_v61 = vsel %vm2238_vm3, %v3470_v51, 0.0  ;;  %v3481_v25 = vsel %vm2238_vm3, %v3471_v40, 0.0  ;;  %4490 = vmatpush1.bf16.msra.mxu0 %v3929_v32  ;;  %v9660_v30 = vunpack.i.h.bf16 %v9658_v9  ;;  %v9659_v42 = vunpack.i.l.bf16 %v9658_v9  ;;  %v9663_v20 = vpop.permute.xlu1 %9662  ;;  %v4117_v51 = vpop.f32.mrb[40].mxu0 }
 0xce8   : > { %v3490_v21 = vsel %vm1086_vm10, %v3480_v61, %v9654_v23  ;;  %v3491_v18 = vsel %vm1086_vm10, %v3481_v25, %v9655_v41  ;;  %4491 = vmatprep.subr.bf16.mxu0 %v15250_v60  ;;  %v9665_v35 = vunpack.i.h.bf16 %v9663_v20  ;;  %v4119_v23 = vpop.f32.mrb[41].mxu0 }
 0xce9   : > { %v3501_v55 = vsel %vm3492_vm6, %v3490_v21, 0.0  ;;  %v3502_v24 = vsel %vm3492_vm6, %v3491_v18, 0.0  ;;  %4420 = vmatpush1.bf16.msra.mxu1 %v3929_v32  ;;  %v9664_v32 = vunpack.i.l.bf16 %v9663_v20  ;;  %v4120_v61 = vpop.f32.mrb[42].mxu0 }
 0xcea   : > { %v3512_v12 = vsel %vm3503_vm7, %v3501_v55, 0.0  ;;  %v3513_v15 = vsel %vm3503_vm7, %v3502_v24, 0.0  ;;  %8339 = vmatprep.subr.bf16.mxu1 %v12912_v46  ;;  %v4121_v18 = vpop.f32.mrb[43].mxu0 }
 0xceb   : > { %v3523_v38 = vsel %vm3514_vm8, %v3512_v12, %v9659_v42  ;;  %v3524_v3 = vsel %vm3514_vm8, %v3513_v15, %v9660_v30  ;;  %4492 = vmatpush1.bf16.msra.mxu0 %v12838_v28  ;;  %v13276_v5 = vpack.c.bf16 %v9665_v35, %v9664_v32 }
 0xcec   : > { %4436 = vmatmul.mubr.bf16.vlgmr.msra.gmra.mrb[60].mxu1 %v12887_v31  ;;  %4493 = vmatprep.subr.bf16.mxu0 %v15250_v60  ;;  %v9686_v48 = vpack.i.bf16 %v3524_v3, %v3523_v38 }
 0xced   : > { %8340 = vmatpush3.bf16.msk.msra.mxu1 %vm12782_vm9, %v12830_v43  ;;  %4555 = vmatprep.mubr.bf16.mxu1 %v12670_v4 }
 0xcee   : > { %9687 = vrot.lane.b32.xlu0 %v9686_v48, %s15261_s23  ;;  %8341 = vmatprep.subr.bf16.mxu1 %v12924_v29 }
 0xcef   : > { %4494 = vmatpush1.bf16.msra.mxu0 %v12846_v49 }
 0xcf0   : > { %4495 = vmatprep.subr.bf16.mxu0 %v15250_v60 }
 0xcf1   : > { %8342 = vmatpush3.bf16.msra.mxu1 %v12846_v49 }
 0xcf2   : > { %8343 = vmatprep.subr.msk.bf16.mxu1 %vm12782_vm9, %v12900_v56 }
 0xcf3   : > { %4496 = vmatpush1.bf16.msra.mxu0 %v12856_v33 }
 0xcf4   : > { %4497 = vmatprep.subr.bf16.mxu0 %v15250_v60 }
 0xcf5   : > { %8344 = vmatpush3.bf16.msra.mxu1 %v12891_v11 }
 0xcf6   : > { %8345 = vmatprep.subr.bf16.mxu1 %v13060_v13 }
 0xcf7   : > { %4498 = vmatpush1.bf16.msra.mxu0 %v12868_v36 }
 0xcf8   : > { %4499 = vmatprep.subr.bf16.mxu0 %v15250_v60 }
 0xcf9   : > { %8346 = vmatpush3.bf16.msra.mxu1 %v12912_v46 }
 0xcfa   : > { %8347 = vmatprep.subr.bf16.mxu1 %v13068_v53 }
 0xcfb   : > { %4500 = vmatpush1.bf16.msra.mxu0 %v12883_v14 }
 0xcfc   : > { %8361 = vmatprep.subr.bf16.mxu0 %v13076_v44 }
 0xcfd   : > { %8348 = vmatpush3.bf16.msra.mxu1 %v12924_v29 }
 0xcfe   : > { %4516 = vmatmul.mubr.bf16.vlgmr.msra.gmra.mrb[60].mxu0 %v12887_v31  ;;  %8349 = vmatprep.subr.bf16.mxu1 %v13076_v44 }
 0xcff   : > { %8362 = vmatpush3.bf16.msk.msra.mxu0 %vm12782_vm9, %v12830_v43  ;;  %4635 = vmatprep.mubr.bf16.mxu0 %v12670_v4 }
 0xd00   : > { %8363 = vmatprep.subr.bf16.mxu0 %v13276_v5 }
 0xd01   : > { %8350 = vmatpush3.bf16.msk.msra.mxu1 %vm12782_vm9, %v12830_v43 }
 0xd02   : > { %8351 = vmatprep.subr.bf16.mxu1 %v13276_v5 }
 0xd03   : > { %8364 = vmatpush3.bf16.msra.mxu0 %v12846_v49 }
 0xd04   : > { %8365 = vmatprep.subr.msk.bf16.mxu0 %vm12782_vm9, %v12830_v43 }
 0xd05   : > { %8352 = vmatpush3.bf16.msra.mxu1 %v12846_v49 }
 0xd06   : > { %8353 = vmatprep.subr.msk.bf16.mxu1 %vm12782_vm9, %v12830_v43 }
 0xd07   : > { %8366 = vmatpush3.bf16.msra.mxu0 %v12891_v11 }
 0xd08   : > { %8367 = vmatprep.subr.bf16.mxu0 %v12846_v49 }
 0xd09   : > { %8354 = vmatpush3.bf16.msra.mxu1 %v12891_v11 }
 0xd0a   : > { %4563 = vmatprep.subr.bf16.mxu1 %v15250_v60 }
 0xd0b   : > { %8368 = vmatpush3.bf16.msra.mxu0 %v12912_v46 }
 0xd0c   : > { %8369 = vmatprep.subr.bf16.mxu0 %v12891_v11  ;;  %4556 = vmatmul.mubr.bf16.vlgmr.msra.gmra.mrb[64].mxu1 %v12793_v2 }
 0xd0d   : > { %4564 = vmatpush1.bf16.msra.mxu1 %v12846_v49  ;;  %8021 = vmatprep.mubr.msk.bf16.mxu1 %vm15173_vm5, %v12749_v63 }
 0xd0e   : > { %4565 = vmatprep.subr.bf16.mxu1 %v15250_v60 }
 0xd0f   : > { %8370 = vmatpush3.bf16.msra.mxu0 %v12924_v29 }
 0xd10   : > { %8371 = vmatprep.subr.bf16.mxu0 %v12912_v46 }
 0xd11   : > { %4566 = vmatpush1.bf16.msra.mxu1 %v12856_v33 }
 0xd12   : > { %4567 = vmatprep.subr.bf16.mxu1 %v15250_v60 }
 0xd13   : > { %8372 = vmatpush3.bf16.msk.msra.mxu0 %vm12782_vm9, %v12900_v56 }
 0xd14   : > { %8373 = vmatprep.subr.bf16.mxu0 %v12924_v29 }
 0xd15   : > { %4568 = vmatpush1.bf16.msra.mxu1 %v12868_v36 }
 0xd16   : > { %4569 = vmatprep.subr.bf16.mxu1 %v15250_v60 }
 0xd17   : > { %8374 = vmatpush3.bf16.msra.mxu0 %v13060_v13 }
 0xd18   : > { %8375 = vmatprep.subr.msk.bf16.mxu0 %vm12782_vm9, %v12830_v43 }
 0xd19   : > { %4570 = vmatpush1.bf16.msra.mxu1 %v12883_v14 }
 0xd1a   : > { %4571 = vmatprep.subr.bf16.mxu1 %v15250_v60 }
 0xd1b   : > { %8376 = vmatpush3.bf16.msra.mxu0 %v13068_v53 }
 0xd1c   : > { %4643 = vmatprep.subr.bf16.mxu0 %v15250_v60 }
 0xd1d   : > { %4572 = vmatpush1.bf16.msra.mxu1 %v12838_v28 }
 0xd1e   : > { %4636 = vmatmul.mubr.bf16.vlgmr.msra.gmra.mrb[64].mxu0 %v12793_v2  ;;  %4573 = vmatprep.subr.bf16.mxu1 %v15250_v60 }
 0xd1f   : > { %4644 = vmatpush1.bf16.msra.mxu0 %v12846_v49  ;;  %8034 = vmatprep.mubr.msk.bf16.mxu0 %vm15173_vm5, %v12749_v63 }
 0xd20   : > { %4645 = vmatprep.subr.bf16.mxu0 %v15250_v60 }
 0xd21   : > { %4574 = vmatpush1.bf16.msra.mxu1 %v12846_v49 }
 0xd22   : > { %4575 = vmatprep.subr.bf16.mxu1 %v15250_v60 }
 0xd23   : > { %4646 = vmatpush1.bf16.msra.mxu0 %v12856_v33 }
 0xd24   : > { %4647 = vmatprep.subr.bf16.mxu0 %v15250_v60 }
 0xd25   : > { %4576 = vmatpush1.bf16.msra.mxu1 %v12856_v33 }
 0xd26   : > { %4577 = vmatprep.subr.bf16.mxu1 %v15250_v60 }
 0xd27   : > { %4648 = vmatpush1.bf16.msra.mxu0 %v12868_v36 }
 0xd28   : > { %4649 = vmatprep.subr.bf16.mxu0 %v15250_v60 }
 0xd29   : > { %4578 = vmatpush1.bf16.msra.mxu1 %v12868_v36 }
 0xd2a   : > { %4579 = vmatprep.subr.bf16.mxu1 %v15250_v60 }
 0xd2b   : > { %4650 = vmatpush1.bf16.msra.mxu0 %v12883_v14 }
 0xd2c   : > { %4651 = vmatprep.subr.bf16.mxu0 %v15250_v60 }
 0xd2d   : > { %4580 = vmatpush1.bf16.msra.mxu1 %v12883_v14 }
 0xd2e   : > { %8383 = vmatprep.subr.bf16.mxu1 %v12912_v46 }
 0xd30   : > { %4596 = vmatmul.mubr.bf16.vlgmr.msra.gmra.mrb[68].mxu1 %v12887_v31 }
 0xd31   : > { %8384 = vmatpush3.bf16.msk.msra.mxu1 %vm12782_vm9, %v12900_v56  ;;  %4715 = vmatprep.mubr.bf16.mxu1 %v12670_v4  ;;  %v8223_v56 = vpop.f32.mrb[40].mxu1 }
 0xd32   : > { %8385 = vmatprep.subr.bf16.mxu1 %v12924_v29 }
 0xd35   : > { %8386 = vmatpush3.bf16.msra.mxu1 %v13060_v13  ;;  %v8224_v13 = vpop.f32.mrb[41].mxu1 }
 0xd36   : > { %8387 = vmatprep.subr.msk.bf16.mxu1 %vm12782_vm9, %v12830_v43 }
 0xd39   : > { %8388 = vmatpush3.bf16.msra.mxu1 %v13068_v53  ;;  %v8225_v53 = vadd.f32 %v8224_v13, %v8223_v56  ;;  %v4197_v13 = vpop.f32.mrb[44].mxu0 }
 0xd3a   : > { %8389 = vmatprep.subr.bf16.mxu1 %v12846_v49 }
 0xd3b   : > { %v13371_v41 = vadd.f32 %v8225_v53, %v4117_v51 }
 0xd3d   : > { %8390 = vmatpush3.bf16.msra.mxu1 %v13076_v44  ;;  %v8226_v44 = vpop.f32.mrb[42].mxu1 }
 0xd3e   : > { %8391 = vmatprep.subr.bf16.mxu1 %v12891_v11  ;;  %v8227_v45 = vpop.f32.mrb[43].mxu1  ;;  %v4199_v44 = vpop.f32.mrb[45].mxu0 }
 0xd3f   : > { %v8245_v20 = vpop.f32.mrb[44].mxu1  ;;  %v4200_v45 = vpop.f32.mrb[46].mxu0 }
 0xd40   : > { %v8246_v35 = vpop.f32.mrb[45].mxu1  ;;  %v4201_v51 = vpop.f32.mrb[47].mxu0 }
 0xd41   : > { %8392 = vmatpush3.bf16.msra.mxu1 %v13276_v5  ;;  %v8247_v32 = vadd.f32 %v8246_v35, %v8245_v20  ;;  %v8248_v5 = vpop.f32.mrb[46].mxu1 }
 0xd42   : > { %8393 = vmatprep.subr.bf16.mxu1 %v12912_v46  ;;  %v8249_v56 = vpop.f32.mrb[47].mxu1 }
 0xd43   : > { %v13408_v53 = vadd.f32 %v8247_v32, %v4197_v13 }
 0xd45   : > { %8394 = vmatpush3.bf16.msk.msra.mxu1 %vm12782_vm9, %v12830_v43 }
 0xd46   : > { %8395 = vmatprep.subr.bf16.mxu1 %v12924_v29 }
 0xd49   : > { %8396 = vmatpush3.bf16.msra.mxu1 %v12846_v49 }
 0xd4a   : > { %8397 = vmatprep.subr.msk.bf16.mxu1 %vm12782_vm9, %v13197_v34 }
 0xd4d   : > { %8398 = vmatpush3.bf16.msra.mxu1 %v12891_v11 }
 0xd4e   : > { %4723 = vmatprep.subr.bf16.mxu1 %v15250_v60 }
 0xd4f   : > { %v9668_v40 = vpop.permute.xlu0 %9667 }
 0xd50   : > { %v9673_v9 = vpop.permute.xlu1 %9672  ;;  %4716 = vmatmul.mubr.bf16.vlgmr.msra.gmra.mrb[72].mxu1 %v12793_v2  ;;  %9692 = vrot.lane.b32.xlu1 %v9668_v40, %s15144_s30  ;;  %v8267_v40 = vpop.f32.mrb[48].mxu1 }
 0xd51   : > { %v9675_v25 = vunpack.i.h.bf16 %v9673_v9  ;;  %v9674_v21 = vunpack.i.l.bf16 %v9673_v9  ;;  %8047 = vmatprep.mubr.msk.bf16.mxu1 %vm15173_vm5, %v12749_v63  ;;  %9697 = vrot.lane.b32.xlu0 %v9673_v9, %s15144_s30 }
 0xd53   : > { %v13376_v55 = vpack.c.bf16 %v9675_v25, %v9674_v21  ;;  %v9678_v24 = vpop.permute.xlu0 %9677 }
 0xd54   : > { %v9680_v30 = vunpack.i.h.bf16 %v9678_v24  ;;  %v9679_v42 = vunpack.i.l.bf16 %v9678_v24  ;;  %v9683_v12 = vpop.permute.xlu1 %9682  ;;  %9702 = vrot.lane.b32.xlu1 %v9678_v24, %s15144_s30 }
 0xd55   : > { %v9685_v15 = vunpack.i.h.bf16 %v9683_v12  ;;  %v9684_v38 = vunpack.i.l.bf16 %v9683_v12  ;;  %4724 = vmatpush1.bf16.msra.mxu1 %v13376_v55  ;;  %9707 = vrot.lane.b32.xlu0 %v9683_v12, %s15144_s30 }
 0xd56   : > { %4725 = vmatprep.subr.bf16.mxu1 %v15250_v60  ;;  %v13382_v3 = vpack.c.bf16 %v9680_v30, %v9679_v42 }
 0xd57   : > { %v13384_v48 = vpack.c.bf16 %v9685_v15, %v9684_v38 }
 0xd59   : > { %v4277_v25 = vpop.f32.mrb[48].mxu0 }
 0xd5a   : > { %v4279_v18 = vpop.f32.mrb[49].mxu0 }
 0xd5b   : > { %v4280_v24 = vpop.f32.mrb[50].mxu0 }
 0xd5c   : > { %v4281_v30 = vpop.f32.mrb[51].mxu0 }
 0xd60   : > { %v9688_v52 = vpop.permute.xlu0 %9687 }
 0xd61   : > { %v9690_v54 = vunpack.i.h.bf16 %v9688_v52  ;;  %v9689_v62 = vunpack.i.l.bf16 %v9688_v52 }
 0xd63   : > { %v3578_v10 = vsel %vm2133_vm12, 0.0, %v9690_v54  ;;  %v3577_v26 = vsel %vm2133_vm12, 0.0, %v9689_v62 }
 0xd64   : > { %v3589_v58 = vsel %vm15173_vm5, %v3578_v10, 0.0  ;;  %v3588_v6 = vsel %vm15173_vm5, %v3577_v26, 0.0  ;;  %v13392_v16 = vpack.c.bf16 %v3578_v10, %v3577_v26 }
 0xd65   : > { %v13394_v59 = vpack.i.bf16 %v3589_v58, %v3588_v6 }
 0xd67   : > { %9717 = vrot.lane.b32.xlu0 %v13394_v59, %s15144_s30  ;;  %9712 = vrot.lane.b32.xlu1 %v13394_v59, %s15249_s25 }
 0xd6b   : > { %9727 = vrot.lane.b32.xlu0 %v13203_v57, %s15148_s17  ;;  %9722 = vrot.lane.b32.xlu1 %v13394_v59, %s15150_s26  ;;  %v8268_v57 = vpop.f32.mrb[49].mxu1 }
 0xd6c   : > { %v8269_v23 = vadd.f32 %v8268_v57, %v8267_v40  ;;  %v8270_v9 = vpop.f32.mrb[50].mxu1 }
 0xd6d   : > { %v8271_v61 = vpop.f32.mrb[51].mxu1 }
 0xd6e   : > { %v13410_v21 = vadd.f32 %v8269_v23, %v4277_v25  ;;  %v8289_v42 = vpop.f32.mrb[52].mxu1 }
 0xd6f   : > { %3757 = vrot.lane.b32.xlu0 %v15253_v17, %s15249_s25  ;;  %9732 = vrot.lane.b32.xlu1 %v13394_v59, %s15264_s16  ;;  %v8290_v12 = vpop.f32.mrb[53].mxu1 }
 0xd70   : > { %v8291_v15 = vadd.f32 %v8290_v12, %v8289_v42  ;;  %v8292_v38 = vpop.f32.mrb[54].mxu1 }
 0xd71   : > { %v8293_v52 = vpop.f32.mrb[55].mxu1 }
 0xd72   : > { %v8311_v6 = vpop.f32.mrb[56].mxu1 }
 0xd73   : > { %v8312_v20 = vpop.f32.mrb[57].mxu1 }
 0xd74   : > { %v8313_v32 = vadd.f32 %v8312_v20, %v8311_v6  ;;  %v8314_v5 = vpop.f32.mrb[58].mxu1 }
 0xd75   : > { %v8315_v45 = vpop.f32.mrb[59].mxu1 }
 0xd7d   : > { %v4357_v54 = vpop.f32.mrb[52].mxu0 }
 0xd7e   : > { %v13412_v62 = vadd.f32 %v8291_v15, %v4357_v54  ;;  %v4359_v10 = vpop.f32.mrb[53].mxu0 }
 0xd7f   : > { %v4360_v26 = vpop.f32.mrb[54].mxu0 }
 0xd80   : > { %v4361_v58 = vpop.f32.mrb[55].mxu0 }
 0xdbf   : > { %v4437_v57 = vpop.f32.mrb[60].mxu1 }
 0xdc0   : > { %v13414_v9 = vadd.f32 %v8313_v32, %v4437_v57  ;;  %v4439_v61 = vpop.f32.mrb[61].mxu1 }
 0xdc1   : > { %v4440_v24 = vpop.f32.mrb[62].mxu1 }
 0xdc2   : > { %v9693_v35 = vpop.permute.xlu1 %9692  ;;  %v4441_v15 = vpop.f32.mrb[63].mxu1 }
 0xdc3   : > { %v9695_v56 = vunpack.i.h.bf16 %v9693_v35  ;;  %v9694_v13 = vunpack.i.l.bf16 %v9693_v35  ;;  %v9698_v44 = vpop.permute.xlu0 %9697  ;;  %v9761_v15 = vpack.i.bf16 %v12705_v27, %v15255_v19  ;;  %v3271_v27 = vld [vmem:[%s15117_s8] sm:$0xff] }
 0xdc4   : > { %v9700_v51 = vunpack.i.h.bf16 %v9698_v44  ;;  %v9699_v40 = vunpack.i.l.bf16 %v9698_v44 }
 0xdc5   : > { %v3934_v23 = vpack.c.bf16 %v9695_v56, %v9694_v13 }
 0xdc6   : > { %v3936_v25 = vpack.c.bf16 %v9700_v51, %v9699_v40  ;;  %v9703_v18 = vpop.permute.xlu1 %9702 }
 0xdc7   : > { %v9705_v30 = vunpack.i.h.bf16 %v9703_v18  ;;  %v9704_v42 = vunpack.i.l.bf16 %v9703_v18  ;;  %v9708_v12 = vpop.permute.xlu0 %9707  ;;  %4652 = vmatpush1.bf16.msra.mxu0 %v3934_v23 }
 0xdc8   : > { %4726 = vmatpush1.bf16.msra.mxu1 %v3936_v25  ;;  %4653 = vmatprep.subr.bf16.mxu0 %v15250_v60  ;;  %v9710_v52 = vunpack.i.h.bf16 %v9708_v12  ;;  %v9709_v54 = vunpack.i.l.bf16 %v9708_v12 }
 0xdc9   : > { %v3937_v38 = vpack.c.bf16 %v9705_v30, %v9704_v42  ;;  %4727 = vmatprep.subr.bf16.mxu1 %v15250_v60 }
 0xdca   : > { %v3938_v10 = vpack.c.bf16 %v9710_v52, %v9709_v54 }
 0xdcb   : > { %4654 = vmatpush1.bf16.msra.mxu0 %v13376_v55 }
 0xdcc   : > { %4728 = vmatpush1.bf16.msra.mxu1 %v3937_v38  ;;  %4655 = vmatprep.subr.bf16.mxu0 %v15250_v60 }
 0xdcd   : > { %4729 = vmatprep.subr.bf16.mxu1 %v15250_v60 }
 0xdcf   : > { %4656 = vmatpush1.bf16.msra.mxu0 %v3936_v25  ;;  %v8333_v25 = vpop.f32.mrb[56].mxu0 }
 0xdd0   : > { %4730 = vmatpush1.bf16.msra.mxu1 %v3938_v10  ;;  %4657 = vmatprep.subr.bf16.mxu0 %v15250_v60  ;;  %v8334_v42 = vpop.f32.mrb[57].mxu0 }
 0xdd1   : > { %4731 = vmatprep.subr.bf16.mxu1 %v15250_v60  ;;  %v8336_v52 = vpop.f32.mrb[58].mxu0 }
 0xdd3   : > { %4658 = vmatpush1.bf16.msra.mxu0 %v3937_v38 }
 0xdd4   : > { %4732 = vmatpush1.bf16.msra.mxu1 %v12838_v28  ;;  %4659 = vmatprep.subr.bf16.mxu0 %v15250_v60 }
 0xdd5   : > { %4733 = vmatprep.subr.bf16.mxu1 %v15250_v60 }
 0xdd7   : > { %4660 = vmatpush1.bf16.msra.mxu0 %v3938_v10  ;;  %v8337_v10 = vpop.f32.mrb[59].mxu0 }
 0xdd8   : > { %4734 = vmatpush1.bf16.msra.mxu1 %v12846_v49  ;;  %8405 = vmatprep.subr.bf16.mxu0 %v12912_v46 }
 0xdd9   : > { %v9718_v26 = vpop.permute.xlu0 %9717  ;;  %v9713_v58 = vpop.permute.xlu1 %9712  ;;  %4735 = vmatprep.subr.bf16.mxu1 %v15250_v60 }
 0xdda   : > { %v9720_v6 = vunpack.i.h.bf16 %v9718_v26  ;;  %v9719_v20 = vunpack.i.l.bf16 %v9718_v26  ;;  %4676 = vmatmul.mubr.bf16.vlgmr.msra.gmra.mrb[68].mxu0 %v12887_v31  ;;  %9742 = vrot.lane.b32.xlu0 %v9718_v26, %s15144_s30 }
 0xddb   : > { %9737 = vrot.lane.b32.xlu1 %v9713_v58, %s15144_s30  ;;  %8406 = vmatpush3.bf16.msk.msra.mxu0 %vm12782_vm9, %v12830_v43  ;;  %v4517_v58 = vpop.f32.mrb[60].mxu0 }
 0xddc   : > { %v13426_v35 = vpack.c.bf16 %v9720_v6, %v9719_v20  ;;  %4736 = vmatpush1.bf16.msra.mxu1 %v12856_v33  ;;  %8407 = vmatprep.subr.bf16.mxu0 %v12924_v29  ;;  %v4519_v20 = vpop.f32.mrb[61].mxu0 }
 0xddd   : > { %v9728_v32 = vpop.permute.xlu0 %9727  ;;  %v9723_v5 = vpop.permute.xlu1 %9722  ;;  %4737 = vmatprep.subr.bf16.mxu1 %v15250_v60  ;;  %4795 = vmatprep.mubr.bf16.mxu0 %v12670_v4 }
 0xdde   : > { %v9725_v56 = vunpack.i.h.bf16 %v9723_v5  ;;  %v9724_v13 = vunpack.i.l.bf16 %v9723_v5  ;;  %v9730_v24 = vunpack.i.h.bf16 %v9728_v32  ;;  %v9729_v30 = vunpack.i.l.bf16 %v9728_v32  ;;  %v4520_v32 = vpop.f32.mrb[62].mxu0 }
 0xddf   : > { %9747 = vrot.lane.b32.xlu1 %v9723_v5, %s15144_s30  ;;  %8408 = vmatpush3.bf16.msra.mxu0 %v12846_v49  ;;  %v8355_v18 = vpop.f32.mrb[64].mxu1 }
 0xde0   : > { %v13437_v44 = vpack.c.bf16 %v9725_v56, %v9724_v13  ;;  %4738 = vmatpush1.bf16.msra.mxu1 %v12868_v36  ;;  %8409 = vmatprep.subr.msk.bf16.mxu0 %vm12782_vm9, %v13197_v34  ;;  %v8356_v12 = vpop.f32.mrb[65].mxu1  ;;  %v13465_v19 = vpack.c.bf16 %v9730_v24, %v9729_v30 }
 0xde1   : > { %v9733_v45 = vpop.permute.xlu1 %9732  ;;  %v3758_v51 = vpop.permute.xlu0 %3757  ;;  %4739 = vmatprep.subr.bf16.mxu1 %v15250_v60  ;;  %v8357_v38 = vadd.f32 %v8356_v12, %v8355_v18 }
 0xde2   : > { %v9735_v40 = vunpack.i.h.bf16 %v9733_v45  ;;  %v9734_v57 = vunpack.i.l.bf16 %v9733_v45  ;;  %v9756_v61 = vpack.i.bf16 %v12250_v1, %v3758_v51  ;;  %9752 = vrot.lane.b32.xlu0 %v9733_v45, %s15144_s30  ;;  %v8335_v1 = vadd.f32 %v8334_v42, %v8333_v25  ;;  %v8358_v54 = vpop.f32.mrb[66].mxu1 }
 0xde3   : > { %8410 = vmatpush3.bf16.msra.mxu0 %v12891_v11  ;;  %v8359_v26 = vpop.f32.mrb[67].mxu1 }
 0xde4   : > { %v13445_v23 = vpack.c.bf16 %v9735_v40, %v9734_v57  ;;  %9757 = vrot.lane.b32.xlu1 %v9756_v61, %s15144_s30  ;;  %4740 = vmatpush1.bf16.msra.mxu1 %v12883_v14  ;;  %v13470_v6 = vadd.f32 %v8335_v1, %v4517_v58 }
 0xde5   : > { %8411 = vmatprep.subr.bf16.mxu0 %v13376_v55  ;;  %8427 = vmatprep.subr.bf16.mxu1 %v13384_v48 }
 0xde6   : > { %9762 = vrot.lane.b32.xlu0 %v9761_v15, %s15144_s30  ;;  %s15154_s30 = smov 123  }
 0xde7   : > { %4756 = vmatmul.mubr.bf16.vlgmr.msra.gmra.mrb[76].mxu1 %v12887_v31  ;;  %8412 = vmatpush3.bf16.msra.mxu0 %v12912_v46 }
 0xde8   : > { %9767 = vrot.lane.b32.xlu1 %v13394_v59, %s15148_s17  ;;  %8428 = vmatpush3.bf16.msk.msra.mxu1 %vm12782_vm9, %v12830_v43  ;;  %v4521_v59 = vpop.f32.mrb[63].mxu0 }
 0xde9   : > { %8413 = vmatprep.subr.bf16.mxu0 %v13382_v3  ;;  %8429 = vmatprep.subr.bf16.mxu1 %v13465_v19 }
 0xdea   : > { %5165 = vperm.xlu0 %9045, %v3271_v27   ;;  %4875 = vmatprep.mubr.bf16.mxu1 %v12670_v4 }
 0xdeb   : > { %8414 = vmatpush3.bf16.msra.mxu0 %v12924_v29 }
 0xdec   : > { %8430 = vmatpush3.bf16.msra.mxu1 %v12846_v49  ;;  %8415 = vmatprep.subr.bf16.mxu0 %v13384_v48 }
 0xded   : > { %8431 = vmatprep.subr.msk.bf16.mxu1 %vm12782_vm9, %v12830_v43 }
 0xdef   : > { %8416 = vmatpush3.bf16.msk.msra.mxu0 %vm12782_vm9, %v12830_v43 }
 0xdf0   : > { %8432 = vmatpush3.bf16.msra.mxu1 %v12891_v11  ;;  %8417 = vmatprep.subr.bf16.mxu0 %v13465_v19 }
 0xdf1   : > { %8433 = vmatprep.subr.bf16.mxu1 %v12846_v49 }
 0xdf3   : > { %8418 = vmatpush3.bf16.msra.mxu0 %v12846_v49 }
 0xdf4   : > { %8434 = vmatpush3.bf16.msra.mxu1 %v12912_v46  ;;  %8419 = vmatprep.subr.msk.bf16.mxu0 %vm12782_vm9, %v12830_v43 }
 0xdf5   : > { %8435 = vmatprep.subr.bf16.mxu1 %v12891_v11 }
 0xdf7   : > { %8420 = vmatpush3.bf16.msra.mxu0 %v12891_v11 }
 0xdf8   : > { %8436 = vmatpush3.bf16.msra.mxu1 %v12924_v29  ;;  %4803 = vmatprep.subr.bf16.mxu0 %v15250_v60 }
 0xdf9   : > { %8437 = vmatprep.subr.bf16.mxu1 %v12912_v46 }
 0xdfa   : > { %4796 = vmatmul.mubr.bf16.vlgmr.msra.gmra.mrb[72].mxu0 %v12793_v2 }
 0xdfb   : > { %4804 = vmatpush1.bf16.msra.mxu0 %v12846_v49  ;;  %8060 = vmatprep.mubr.msk.bf16.mxu0 %vm15173_vm5, %v12749_v63 }
 0xdfc   : > { %8438 = vmatpush3.bf16.msk.msra.mxu1 %vm12782_vm9, %v13197_v34  ;;  %4805 = vmatprep.subr.bf16.mxu0 %v15250_v60 }
 0xdfd   : > { %8439 = vmatprep.subr.bf16.mxu1 %v12924_v29 }
 0xdff   : > { %4806 = vmatpush1.bf16.msra.mxu0 %v12856_v33 }
 0xe00   : > { %8440 = vmatpush3.bf16.msra.mxu1 %v13376_v55  ;;  %4807 = vmatprep.subr.bf16.mxu0 %v15250_v60 }
 0xe01   : > { %8441 = vmatprep.subr.msk.bf16.mxu1 %vm12782_vm9, %v12830_v43 }
 0xe03   : > { %v4597_v5 = vpop.f32.mrb[68].mxu1  ;;  %4808 = vmatpush1.bf16.msra.mxu0 %v12868_v36 }
 0xe04   : > { %v13512_v56 = vadd.f32 %v8357_v38, %v4597_v5  ;;  %v4599_v13 = vpop.f32.mrb[69].mxu1  ;;  %8442 = vmatpush3.bf16.msra.mxu1 %v13382_v3  ;;  %4809 = vmatprep.subr.bf16.mxu0 %v15250_v60 }
 0xe05   : > { %v4600_v45 = vpop.f32.mrb[70].mxu1  ;;  %4883 = vmatprep.subr.bf16.mxu1 %v15250_v60 }
 0xe06   : > { %v4601_v51 = vpop.f32.mrb[71].mxu1 }
 0xe07   : > { %4876 = vmatmul.mubr.bf16.vlgmr.msra.gmra.mrb[80].mxu1 %v12793_v2  ;;  %4810 = vmatpush1.bf16.msra.mxu0 %v12883_v14 }
 0xe08   : > { %4884 = vmatpush1.bf16.msra.mxu1 %v12846_v49  ;;  %4811 = vmatprep.subr.bf16.mxu0 %v15250_v60 }
 0xe09   : > { %4885 = vmatprep.subr.bf16.mxu1 %v15250_v60  ;;  %8073 = vmatprep.mubr.msk.bf16.mxu1 %vm15173_vm5, %v12749_v63 }
 0xe0b   : > { %4812 = vmatpush1.bf16.msra.mxu0 %v12838_v28  ;;  %v8377_v28 = vpop.f32.mrb[64].mxu0 }
 0xe0c   : > { %4886 = vmatpush1.bf16.msra.mxu1 %v12856_v33  ;;  %4813 = vmatprep.subr.bf16.mxu0 %v15250_v60 }
 0xe0d   : > { %4887 = vmatprep.subr.bf16.mxu1 %v15250_v60 }
 0xe0f   : > { %4814 = vmatpush1.bf16.msra.mxu0 %v12846_v49 }
 0xe10   : > { %4888 = vmatpush1.bf16.msra.mxu1 %v12868_v36  ;;  %4815 = vmatprep.subr.bf16.mxu0 %v15250_v60 }
 0xe11   : > { %4889 = vmatprep.subr.bf16.mxu1 %v15250_v60 }
 0xe13   : > { %4816 = vmatpush1.bf16.msra.mxu0 %v12856_v33  ;;  %v8378_v33 = vpop.f32.mrb[65].mxu0 }
 0xe14   : > { %4890 = vmatpush1.bf16.msra.mxu1 %v12883_v14  ;;  %4817 = vmatprep.subr.bf16.mxu0 %v15250_v60 }
 0xe15   : > { %4891 = vmatprep.subr.bf16.mxu1 %v15250_v60 }
 0xe17   : > { %4818 = vmatpush1.bf16.msra.mxu0 %v12868_v36  ;;  %v13558_v36 = vadd.f32 %v8378_v33, %v8377_v28 }
 0xe18   : > { %4819 = vmatprep.subr.bf16.mxu0 %v15250_v60 }
 0xe1b   : > { %4820 = vmatpush1.bf16.msra.mxu0 %v12883_v14  ;;  %v8380_v14 = vpop.f32.mrb[66].mxu0 }
 0xe1c   : > { %8449 = vmatprep.subr.bf16.mxu0 %v12912_v46 }
 0xe1e   : > { %4836 = vmatmul.mubr.bf16.vlgmr.msra.gmra.mrb[76].mxu0 %v12887_v31 }
 0xe1f   : > { %8450 = vmatpush3.bf16.msk.msra.mxu0 %vm12782_vm9, %v13197_v34  ;;  %4955 = vmatprep.mubr.bf16.mxu0 %v12670_v4  ;;  %v8381_v34 = vpop.f32.mrb[67].mxu0 }
 0xe20   : > { %8451 = vmatprep.subr.bf16.mxu0 %v12924_v29 }
 0xe23   : > { %8452 = vmatpush3.bf16.msra.mxu0 %v13376_v55  ;;  %v8399_v55 = vpop.f32.mrb[72].mxu1 }
 0xe24   : > { %8453 = vmatprep.subr.msk.bf16.mxu0 %vm12782_vm9, %v12830_v43 }
 0xe27   : > { %8454 = vmatpush3.bf16.msra.mxu0 %v13382_v3  ;;  %v8400_v3 = vpop.f32.mrb[73].mxu1 }
 0xe28   : > { %8455 = vmatprep.subr.bf16.mxu0 %v12846_v49  ;;  %v8402_v40 = vpop.f32.mrb[74].mxu1 }
 0xe29   : > { %v8403_v57 = vpop.f32.mrb[75].mxu1 }
 0xe2b   : > { %8456 = vmatpush3.bf16.msra.mxu0 %v13384_v48  ;;  %v13568_v48 = vadd.f32 %v8400_v3, %v8399_v55 }
 0xe2c   : > { %8457 = vmatprep.subr.bf16.mxu0 %v12891_v11 }
 0xe2f   : > { %8458 = vmatpush3.bf16.msra.mxu0 %v13465_v19 }
 0xe30   : > { %8459 = vmatprep.subr.bf16.mxu0 %v12912_v46 }
 0xe33   : > { %8460 = vmatpush3.bf16.msk.msra.mxu0 %vm12782_vm9, %v12830_v43 }
 0xe34   : > { %8461 = vmatprep.subr.bf16.mxu0 %v12924_v29 }
 0xe37   : > { %8462 = vmatpush3.bf16.msra.mxu0 %v12846_v49 }
 0xe38   : > { %8463 = vmatprep.subr.msk.bf16.mxu0 %vm12782_vm9, %v13392_v16 }
 0xe3b   : > { %8464 = vmatpush3.bf16.msra.mxu0 %v12891_v11 }
 0xe3c   : > { %4963 = vmatprep.subr.bf16.mxu0 %v15250_v60 }
 0xe3e   : > { %4956 = vmatmul.mubr.bf16.vlgmr.msra.gmra.mrb[80].mxu0 %v12793_v2 }
 0xe3f   : > { %4964 = vmatpush1.bf16.msra.mxu0 %v13426_v35  ;;  %8086 = vmatprep.mubr.msk.bf16.mxu0 %vm15173_vm5, %v12749_v63 }
 0xe40   : > { %4965 = vmatprep.subr.bf16.mxu0 %v15250_v60 }
 0xe4c   : > { %v9743_v61 = vpop.permute.xlu0 %9742 }
 0xe4d   : > { %v9745_v25 = vunpack.i.h.bf16 %v9743_v61  ;;  %v9744_v18 = vunpack.i.l.bf16 %v9743_v61  ;;  %v9738_v24 = vpop.permute.xlu1 %9737 }
 0xe4e   : > { %v9740_v30 = vunpack.i.h.bf16 %v9738_v24  ;;  %v9739_v42 = vunpack.i.l.bf16 %v9738_v24 }
 0xe4f   : > { %v3945_v12 = vpack.c.bf16 %v9745_v25, %v9744_v18 }
 0xe50   : > { %v3943_v15 = vpack.c.bf16 %v9740_v30, %v9739_v42 }
 0xe51   : > { %v9748_v1 = vpop.permute.xlu1 %9747  ;;  %4966 = vmatpush1.bf16.msra.mxu0 %v3945_v12 }
 0xe52   : > { %v9750_v38 = vunpack.i.h.bf16 %v9748_v1  ;;  %v9749_v52 = vunpack.i.l.bf16 %v9748_v1  ;;  %4892 = vmatpush1.bf16.msra.mxu1 %v3943_v15  ;;  %4967 = vmatprep.subr.bf16.mxu0 %v15250_v60 }
 0xe53   : > { %4893 = vmatprep.subr.bf16.mxu1 %v15250_v60 }
 0xe54   : > { %v3946_v54 = vpack.c.bf16 %v9750_v38, %v9749_v52  ;;  %v9753_v10 = vpop.permute.xlu0 %9752 }
 0xe55   : > { %v9755_v26 = vunpack.i.h.bf16 %v9753_v10  ;;  %v9754_v58 = vunpack.i.l.bf16 %v9753_v10 }
 0xe56   : > { %v9758_v19 = vpop.permute.xlu1 %9757  ;;  %4894 = vmatpush1.bf16.msra.mxu1 %v13426_v35  ;;  %4968 = vmatpush1.bf16.msra.mxu0 %v3946_v54 }
 0xe57   : > { %v3947_v27 = vpack.c.bf16 %v9755_v26, %v9754_v58  ;;  %4895 = vmatprep.subr.bf16.mxu1 %v15250_v60  ;;  %4969 = vmatprep.subr.bf16.mxu0 %v15250_v60  ;;  %v9759_v20 = vunpack.i.l.bf16 %v9758_v19  ;;  %v9760_v59 = vunpack.i.h.bf16 %v9758_v19 }
 0xe58   : > { %v9763_v5 = vpop.permute.xlu0 %9762 }
 0xe59   : > { %v13587_v32 = vpack.c.bf16 %v9759_v20, %v9759_v20  ;;  %v13595_v13 = vpack.c.bf16 %v9760_v59, %v9760_v59  ;;  %v9764_v45 = vunpack.i.l.bf16 %v9763_v5  ;;  %v9765_v51 = vunpack.i.h.bf16 %v9763_v5 }
 0xe5a   : > { %4896 = vmatpush1.bf16.msra.mxu1 %v3945_v12  ;;  %4970 = vmatpush1.bf16.msra.mxu0 %v3947_v27  ;;  %v9768_v15 = vpop.permute.xlu1 %9767 }
 0xe5b   : > { %4897 = vmatprep.subr.bf16.mxu1 %v15250_v60  ;;  %4971 = vmatprep.subr.bf16.mxu0 %v15250_v60  ;;  %v13604_v28 = vpack.c.bf16 %v9764_v45, %v9764_v45  ;;  %v13626_v40 = vpack.c.bf16 %v9765_v51, %v9765_v51  ;;  %v9770_v1 = vunpack.i.h.bf16 %v9768_v15  ;;  %v9769_v38 = vunpack.i.l.bf16 %v9768_v15 }
 0xe5e   : > { %4898 = vmatpush1.bf16.msra.mxu1 %v3946_v54  ;;  %4972 = vmatpush1.bf16.msra.mxu0 %v13587_v32 }
 0xe5f   : > { %4899 = vmatprep.subr.bf16.mxu1 %v15250_v60  ;;  %4973 = vmatprep.subr.bf16.mxu0 %v15250_v60 }
 0xe62   : > { %4900 = vmatpush1.bf16.msra.mxu1 %v3947_v27  ;;  %4974 = vmatpush1.bf16.msra.mxu0 %v12254_v47 }
 0xe63   : > { %4975 = vmatprep.subr.bf16.mxu0 %v15250_v60  ;;  %5003 = vmatprep.subr.bf16.mxu1 %v15250_v60 }
 0xe65   : > { %4916 = vmatmul.mubr.bf16.vlgmr.msra.gmra.mrb[84].mxu1 %v12887_v31 }
 0xe66   : > { %4976 = vmatpush1.bf16.msra.mxu0 %v13595_v13  ;;  %8089 = vmatpush1.bf16.msk.msra.mxu1 %vm12782_vm9, %v12830_v43 }
 0xe67   : > { %4977 = vmatprep.subr.bf16.mxu0 %v15250_v60  ;;  %5005 = vmatprep.subr.bf16.mxu1 %v15250_v60 }
 0xe68   : > { %5035 = vmatprep.mubr.bf16.mxu1 %v12670_v4 }
 0xe69   : > { %v13607_v33 = vpop.permute.xlu0 %5165 }
 0xe6a   : > { %v13611_v14 = vadd.f32 %v13607_v33, %v13262_v37  ;;  %v13615_v34 = vadd.f32 %v13607_v33, %v13371_v41  ;;  %v13619_v55 = vadd.f32 %v13607_v33, %v13408_v53  ;;  %v13623_v3 = vadd.f32 %v13607_v33, %v13410_v21  ;;  %4978 = vmatpush1.bf16.msra.mxu0 %v13604_v28 }
 0xe6b   : > { %v13630_v37 = vadd.f32 %v13607_v33, %v13412_v62  ;;  %5006 = vmatpush1.bf16.msra.mxu1 %v12846_v49  ;;  %4979 = vmatprep.subr.bf16.mxu0 %v15250_v60  ;;  %v13641_v21 = vadd.f32 %v13607_v33, %v13414_v9  ;;  %v13645_v62 = vadd.f32 %v13607_v33, %v13470_v6 }
 0xe6c   : > { %v5183_v41 = vmax.f32 %v13611_v14, 0.0  ;;  %v5184_v57 = vmax.f32 %v13615_v34, 0.0  ;;  %v5185_v53 = vmax.f32 %v13619_v55, 0.0  ;;  %v5186_v61 = vmax.f32 %v13623_v3, 0.0  ;;  %5007 = vmatprep.subr.bf16.mxu1 %v15250_v60 }
 0xe6d   : > { %v13649_v25 = vadd.f32 %v13607_v33, %v13512_v56  ;;  %v5187_v9 = vmax.f32 %v13630_v37, 0.0  ;;  %v5188_v56 = vmax.f32 %v13641_v21, 0.0  ;;  %v5189_v24 = vmax.f32 %v13645_v62, 0.0 }
 0xe6e   : > { %4980 = vmatpush1.bf16.msra.mxu0 %v13626_v40  ;;  %v13656_v18 = vpack.i.bf16 %v5184_v57, %v5183_v41  ;;  %v13668_v6 = vpack.i.bf16 %v5186_v61, %v5185_v53 }
 0xe6f   : > { %5008 = vmatpush1.bf16.msra.mxu1 %v12891_v11  ;;  %5043 = vmatprep.subr.bf16.mxu0 %v15250_v60  ;;  %v5190_v30 = vmax.f32 %v13649_v25, 0.0  ;;  %v13690_v42 = vpack.i.bf16 %v5188_v56, %v5187_v9 }
 0xe70   : > { %5009 = vmatprep.subr.bf16.mxu1 %v15250_v60  ;;  %9777 = vrot.lane.b32.xlu0 %v13656_v18, %s15146_s15  ;;  %s15266_s15 = smov 122  }
 0xe71   : > { %4996 = vmatmul.mubr.bf16.vlgmr.msra.gmra.mrb[84].mxu0 %v12887_v31  ;;  %9772 = vrot.lane.b32.xlu1 %v13656_v18, %s15265_s13  ;;  %v13705_v12 = vpack.i.bf16 %v5190_v30, %v5189_v24 }
 0xe72   : > { %5044 = vmatpush1.bf16.msra.mxu0 %v12254_v47  ;;  %8096 = vmatprep.mubr.msk.bf16.mxu0 %vm15173_vm5, %v12749_v63 }
 0xe73   : > { %5010 = vmatpush1.bf16.msra.mxu1 %v12912_v46  ;;  %5045 = vmatprep.subr.bf16.mxu0 %v15250_v60 }
 0xe74   : > { %5011 = vmatprep.subr.bf16.mxu1 %v15250_v60  ;;  %9787 = vrot.lane.b32.xlu0 %v13656_v18, %s15154_s30 }
 0xe75   : > { %9782 = vrot.lane.b32.xlu1 %v13656_v18, %s15266_s15 }
 0xe76   : > { %5046 = vmatpush1.bf16.msra.mxu0 %v13595_v13 }
 0xe77   : > { %5012 = vmatpush1.bf16.msra.mxu1 %v12924_v29  ;;  %5047 = vmatprep.subr.bf16.mxu0 %v15250_v60 }
 0xe78   : > { %5013 = vmatprep.subr.bf16.mxu1 %v15250_v60  ;;  %9797 = vrot.lane.b32.xlu0 %v13656_v18, %s15264_s16 }
 0xe79   : > { %9792 = vrot.lane.b32.xlu1 %v13656_v18, %s15148_s17 }
 0xe7a   : > { %5048 = vmatpush1.bf16.msra.mxu0 %v13604_v28 }
 0xe7b   : > { %8092 = vmatpush1.bf16.msk.msra.mxu1 %vm12782_vm9, %v12830_v43  ;;  %5049 = vmatprep.subr.bf16.mxu0 %v15250_v60 }
 0xe7c   : > { %5015 = vmatprep.subr.bf16.mxu1 %v15250_v60  ;;  %9832 = vrot.lane.b32.xlu0 %v13656_v18, %s15158_s12 }
 0xe7d   : > { %9802 = vrot.lane.b32.xlu1 %v13656_v18, %s15150_s26 }
 0xe7e   : > { %5050 = vmatpush1.bf16.msra.mxu0 %v13626_v40 }
 0xe7f   : > { %5016 = vmatpush1.bf16.msra.mxu1 %v12846_v49  ;;  %5051 = vmatprep.subr.bf16.mxu0 %v15250_v60 }
 0xe80   : > { %5017 = vmatprep.subr.bf16.mxu1 %v15250_v60  ;;  %9842 = vrot.lane.b32.xlu0 %v13668_v6, %s15265_s13 }
 0xe81   : > { %9807 = vrot.lane.b32.xlu1 %v13656_v18, %s15249_s25 }
 0xe82   : > { %5052 = vmatpush1.bf16.msra.mxu0 %v13587_v32 }
 0xe83   : > { %5018 = vmatpush1.bf16.msra.mxu1 %v12891_v11  ;;  %5053 = vmatprep.subr.bf16.mxu0 %v15250_v60 }
 0xe84   : > { %5019 = vmatprep.subr.bf16.mxu1 %v15250_v60  ;;  %9852 = vrot.lane.b32.xlu0 %v13668_v6, %s15266_s15 }
 0xe85   : > { %9812 = vrot.lane.b32.xlu1 %v13656_v18, %s15152_s14 }
 0xe86   : > { %5054 = vmatpush1.bf16.msra.mxu0 %v12254_v47 }
 0xe87   : > { %5020 = vmatpush1.bf16.msra.mxu1 %v12912_v46  ;;  %5055 = vmatprep.subr.bf16.mxu0 %v15250_v60 }
 0xe88   : > { %5021 = vmatprep.subr.bf16.mxu1 %v15250_v60  ;;  %9862 = vrot.lane.b32.xlu0 %v13668_v6, %s15148_s17  ;;  %s15160_s17 = smov 5  }
 0xe89   : > { %9817 = vrot.lane.b32.xlu1 %v13656_v18, %s15261_s23 }
 0xe8a   : > { %5056 = vmatpush1.bf16.msra.mxu0 %v13595_v13 }
 0xe8b   : > { %5022 = vmatpush1.bf16.msra.mxu1 %v12924_v29  ;;  %5057 = vmatprep.subr.bf16.mxu0 %v15250_v60 }
 0xe8c   : > { %5023 = vmatprep.subr.bf16.mxu1 %v15250_v60  ;;  %9872 = vrot.lane.b32.xlu0 %v13668_v6, %s15150_s26  ;;  %s15156_s26 = smov 7  }
 0xe8d   : > { %9822 = vrot.lane.b32.xlu1 %v13656_v18, %s15162_s18 }
 0xe8e   : > { %5058 = vmatpush1.bf16.msra.mxu0 %v13604_v28 }
 0xe8f   : > { %8095 = vmatpush1.bf16.msk.msra.mxu1 %vm12782_vm9, %v13392_v16  ;;  %5059 = vmatprep.subr.bf16.mxu0 %v15250_v60 }
 0xe90   : > { %5025 = vmatprep.subr.bf16.mxu1 %v15250_v60  ;;  %9877 = vrot.lane.b32.xlu0 %v13668_v6, %s15249_s25 }
 0xe91   : > { %9827 = vrot.lane.b32.xlu1 %v13656_v18, %s15160_s17 }
 0xe92   : > { %5060 = vmatpush1.bf16.msra.mxu0 %v13626_v40 }
 0xe93   : > { %5026 = vmatpush1.bf16.msra.mxu1 %v13426_v35  ;;  %5123 = vmatprep.subr.bf16.mxu0 %v15250_v60 }
 0xe94   : > { %5027 = vmatprep.subr.bf16.mxu1 %v15250_v60  ;;  %9882 = vrot.lane.b32.xlu0 %v13668_v6, %s15152_s14  ;;  %s15267_s14 = smov 121  }
 0xe95   : > { %9837 = vrot.lane.b32.xlu1 %v13656_v18, %s15156_s26  ;;  %5076 = vmatmul.mubr.bf16.vlgmr.msra.gmra.mrb[88].mxu0 %v12887_v31 }
 0xe96   : > { %5124 = vmatpush1.bf16.msra.mxu0 %v12254_v47  ;;  %8103 = vmatprep.mubr.msk.bf16.mxu0 %vm15173_vm5, %v12749_v63  ;;  %v13783_v63 = vpack.c.bf16 %v9770_v1, %v9769_v38 }
 0xe97   : > { %5028 = vmatpush1.bf16.msra.mxu1 %v13437_v44  ;;  %5125 = vmatprep.subr.bf16.mxu0 %v15250_v60 }
 0xe98   : > { %5029 = vmatprep.subr.bf16.mxu1 %v15250_v60  ;;  %9887 = vrot.lane.b32.xlu0 %v13668_v6, %s15261_s23 }
 0xe99   : > { %9847 = vrot.lane.b32.xlu1 %v13668_v6, %s15267_s14 }
 0xe9a   : > { %5126 = vmatpush1.bf16.msra.mxu0 %v13595_v13 }
 0xe9b   : > { %5030 = vmatpush1.bf16.msra.mxu1 %v13445_v23  ;;  %5127 = vmatprep.subr.bf16.mxu0 %v15250_v60 }
 0xe9c   : > { %5031 = vmatprep.subr.bf16.mxu1 %v15250_v60  ;;  %9897 = vrot.lane.b32.xlu0 %v13668_v6, %s15160_s17 }
 0xe9d   : > { %9857 = vrot.lane.b32.xlu1 %v13668_v6, %s15154_s30 }
 0xe9e   : > { %5128 = vmatpush1.bf16.msra.mxu0 %v13604_v28 }
 0xe9f   : > { %5032 = vmatpush1.bf16.msra.mxu1 %v13783_v63  ;;  %5129 = vmatprep.subr.bf16.mxu0 %v15250_v60 }
 0xea0   : > { %5083 = vmatprep.subr.bf16.mxu1 %v15250_v60  ;;  %9917 = vrot.lane.b32.xlu0 %v13690_v42, %s15267_s14 }
 0xea1   : > { %9867 = vrot.lane.b32.xlu1 %v13668_v6, %s15264_s16 }
 0xea2   : > { %5036 = vmatmul.mubr.bf16.vlgmr.msra.gmra.mrb[88].mxu1 %v12793_v2  ;;  %5130 = vmatpush1.bf16.msra.mxu0 %v13626_v40 }
 0xea3   : > { %8099 = vmatpush1.bf16.msk.msra.mxu1 %vm12782_vm9, %v12830_v43  ;;  %5131 = vmatprep.subr.bf16.mxu0 %v15250_v60 }
 0xea4   : > { %5085 = vmatprep.subr.bf16.mxu1 %v15250_v60  ;;  %9927 = vrot.lane.b32.xlu0 %v13690_v42, %s15154_s30  ;;  %s15268_s30 = smov 124  }
 0xea5   : > { %9892 = vrot.lane.b32.xlu1 %v13668_v6, %s15162_s18  ;;  %5115 = vmatprep.mubr.bf16.mxu1 %v12670_v4 }
 0xea6   : > { %5132 = vmatpush1.bf16.msra.mxu0 %v13587_v32 }
 0xea7   : > { %5086 = vmatpush1.bf16.msra.mxu1 %v12846_v49  ;;  %5133 = vmatprep.subr.bf16.mxu0 %v15250_v60 }
 0xea8   : > { %5087 = vmatprep.subr.bf16.mxu1 %v15250_v60  ;;  %9937 = vrot.lane.b32.xlu0 %v13690_v42, %s15264_s16 }
 0xea9   : > { %9902 = vrot.lane.b32.xlu1 %v13668_v6, %s15158_s12 }
 0xeaa   : > { %5134 = vmatpush1.bf16.msra.mxu0 %v12254_v47 }
 0xeab   : > { %5088 = vmatpush1.bf16.msra.mxu1 %v12891_v11  ;;  %5135 = vmatprep.subr.bf16.mxu0 %v15250_v60 }
 0xeac   : > { %5089 = vmatprep.subr.bf16.mxu1 %v15250_v60  ;;  %9962 = vrot.lane.b32.xlu0 %v13690_v42, %s15162_s18 }
 0xead   : > { %9907 = vrot.lane.b32.xlu1 %v13668_v6, %s15156_s26  ;;  %v4677_v4 = vpop.f32.mrb[68].mxu0 }
 0xeae   : > { %v4678_v43 = vadd.f32 %v13558_v36, %v4677_v4  ;;  %5136 = vmatpush1.bf16.msra.mxu0 %v13595_v13  ;;  %v4679_v49 = vpop.f32.mrb[69].mxu0 }
 0xeaf   : > { %5090 = vmatpush1.bf16.msra.mxu1 %v12912_v46  ;;  %5137 = vmatprep.subr.bf16.mxu0 %v15250_v60  ;;  %v4680_v11 = vpop.f32.mrb[70].mxu0 }
 0xeb0   : > { %5091 = vmatprep.subr.bf16.mxu1 %v15250_v60  ;;  %9972 = vrot.lane.b32.xlu0 %v13690_v42, %s15158_s12  ;;  %v4681_v52 = vpop.f32.mrb[71].mxu0  ;;  %s15270_s12 = smov 2  }
 0xeb1   : > { %9912 = vrot.lane.b32.xlu1 %v13690_v42, %s15265_s13 }
 0xeb2   : > { %5138 = vmatpush1.bf16.msra.mxu0 %v13604_v28 }
 0xeb3   : > { %5092 = vmatpush1.bf16.msra.mxu1 %v12924_v29  ;;  %5139 = vmatprep.subr.bf16.mxu0 %v15250_v60  ;;  %v13852_v29 = vadd.f32 %v13607_v33, %v4678_v43 }
 0xeb4   : > { %5093 = vmatprep.subr.bf16.mxu1 %v15250_v60  ;;  %9977 = vrot.lane.b32.xlu0 %v13690_v42, %s15156_s26  ;;  %s15269_s26 = smov 126  }
 0xeb5   : > { %9922 = vrot.lane.b32.xlu1 %v13690_v42, %s15266_s15  ;;  %v5191_v10 = vmax.f32 %v13852_v29, 0.0 }
 0xeb6   : > { %5140 = vmatpush1.bf16.msra.mxu0 %v13626_v40 }
 0xeb7   : > { %8102 = vmatpush1.bf16.msk.msra.mxu1 %vm12782_vm9, %v13392_v16  ;;  %8685 = vmatprep.subr.bf16.mxu0 %v15253_v17  ;;  %vm15168_vm9 = vcmask 113664  }
 0xeb8   : > { %5095 = vmatprep.subr.bf16.mxu1 %v15250_v60 }
 0xeb9   : > { %9932 = vrot.lane.b32.xlu1 %v13690_v42, %s15268_s30  ;;  %5156 = vmatmul.mubr.bf16.vlgmr.msra.gmra.mrb[92].mxu0 %v12887_v31 }
 0xeba   : > { %v4757_v46 = vpop.f32.mrb[76].mxu1  ;;  %8689 = vmatprep.mubr.msk.bf16.mxu0 %vm15164_vm2, %v15253_v17 }
 0xebb   : > { %v4758_v36 = vadd.f32 %v13568_v48, %v4757_v46  ;;  %5096 = vmatpush1.bf16.msra.mxu1 %v13426_v35  ;;  %v4759_v22 = vpop.f32.mrb[77].mxu1 }
 0xebc   : > { %5097 = vmatprep.subr.bf16.mxu1 %v15250_v60  ;;  %v4760_v16 = vpop.f32.mrb[78].mxu1 }
 0xebd   : > { %v13858_v54 = vadd.f32 %v13607_v33, %v4758_v36  ;;  %9942 = vrot.lane.b32.xlu1 %v13690_v42, %s15269_s26  ;;  %v4761_v31 = vpop.f32.mrb[79].mxu1 }
 0xebf   : > { %v5192_v26 = vmax.f32 %v13858_v54, 0.0  ;;  %5098 = vmatpush1.bf16.msra.mxu1 %v13437_v44 }
 0xec0   : > { %5099 = vmatprep.subr.bf16.mxu1 %v15250_v60 }
 0xec1   : > { %9947 = vrot.lane.b32.xlu1 %v13690_v42, %s15249_s25  ;;  %v13872_v35 = vpack.i.bf16 %v5192_v26, %v5191_v10 }
 0xec3   : > { %5100 = vmatpush1.bf16.msra.mxu1 %v13445_v23 }
 0xec4   : > { %5101 = vmatprep.subr.bf16.mxu1 %v15250_v60 }
 0xec5   : > { %9952 = vrot.lane.b32.xlu1 %v13690_v42, %s15270_s12 }
 0xec7   : > { %5102 = vmatpush1.bf16.msra.mxu1 %v13783_v63 }
 0xec8   : > { %5103 = vmatprep.subr.bf16.mxu1 %v15250_v60 }
 0xec9   : > { %9957 = vrot.lane.b32.xlu1 %v13690_v42, %s15261_s23 }
 0xecb   : > { %5104 = vmatpush1.bf16.msra.mxu1 %v10488_v50 }
 0xecc   : > { %5105 = vmatprep.subr.bf16.mxu1 %v15250_v60 }
 0xecd   : > { %9967 = vrot.lane.b32.xlu1 %v13690_v42, %s15160_s17  ;;  %v8421_v44 = vpop.f32.mrb[72].mxu0  ;;  %s15271_s17 = smov 6  }
 0xece   : > { %v8422_v23 = vpop.f32.mrb[73].mxu0 }
 0xecf   : > { %5106 = vmatpush1.bf16.msra.mxu1 %v12254_v47  ;;  %v13888_v48 = vadd.f32 %v8422_v23, %v8421_v44  ;;  %v8424_v58 = vpop.f32.mrb[74].mxu0 }
 0xed0   : > { %5107 = vmatprep.subr.bf16.mxu1 %v15250_v60  ;;  %v8425_v19 = vpop.f32.mrb[75].mxu0 }
 0xed1   : > { %9992 = vrot.lane.b32.xlu1 %v13705_v12, %s15267_s14 }
 0xed3   : > { %5108 = vmatpush1.bf16.msra.mxu1 %v12263_v8 }
 0xed4   : > { %5109 = vmatprep.subr.bf16.mxu1 %v15250_v60 }
 0xed5   : > { %10037 = vrot.lane.b32.xlu1 %v13705_v12, %s15162_s18  ;;  %s15166_s18 = smov 16  }
 0xed7   : > { %5110 = vmatpush1.bf16.msra.mxu1 %v12711_v7 }
 0xed8   : > { %5111 = vmatprep.subr.bf16.mxu1 %v15250_v60 }
 0xed9   : > { %10047 = vrot.lane.b32.xlu1 %v13705_v12, %s15271_s17 }
 0xeda   : > { %v8443_v50 = vpop.f32.mrb[80].mxu1 }
 0xedb   : > { %5112 = vmatpush1.bf16.msra.mxu1 %v12727_v39  ;;  %v8444_v47 = vpop.f32.mrb[81].mxu1 }
 0xedc   : > { %v13901_v27 = vadd.f32 %v8444_v47, %v8443_v50  ;;  %v8446_v20 = vpop.f32.mrb[82].mxu1  ;;  %8701 = vmatprep.subr.bf16.mxu1 %v15253_v17 }
 0xedd   : > { %10052 = vrot.lane.b32.xlu1 %v13705_v12, %s15272_s0  ;;  %v8447_v8 = vpop.f32.mrb[83].mxu1 }
 0xede   : > { %5116 = vmatmul.mubr.bf16.vlgmr.msra.gmra.mrb[92].mxu1 %v12793_v2 }
 0xedf   : > { %8705 = vmatprep.mubr.msk.bf16.mxu1 %vm15164_vm2, %v15253_v17  ;;  %vm5742_vm2 = vcmask 121856  }
 0xee2   : > { %v9778_v60 = vpop.permute.xlu0 %9777 }
 0xee3   : > { %v9780_v7 = vunpack.i.h.bf16 %v9778_v60  ;;  %v9779_v32 = vunpack.i.l.bf16 %v9778_v60  ;;  %v9773_v59 = vpop.permute.xlu1 %9772 }
 0xee4   : > { %v9775_v39 = vunpack.i.h.bf16 %v9773_v59  ;;  %v9774_v5 = vunpack.i.l.bf16 %v9773_v59 }
 0xee6   : > { %v6074_v13 = vsel %vm641_vm0, %v9775_v39, 0.0  ;;  %v6073_v45 = vsel %vm641_vm0, %v9774_v5, 0.0  ;;  %v9788_v51 = vpop.permute.xlu0 %9787 }
 0xee7   : > { %v6089_v28 = vsel %vm2112_vm11, %v6074_v13, %v9780_v7  ;;  %v6088_v40 = vsel %vm2112_vm11, %v6073_v45, %v9779_v32  ;;  %v9783_v18 = vpop.permute.xlu1 %9782  ;;  %v9790_v1 = vunpack.i.h.bf16 %v9788_v51  ;;  %v9789_v38 = vunpack.i.l.bf16 %v9788_v51 }
 0xee8   : > { %v6104_v2 = vsel %vm2133_vm12, %v6089_v28, 0.0  ;;  %v6103_v6 = vsel %vm2133_vm12, %v6088_v40, 0.0  ;;  %v9785_v42 = vunpack.i.h.bf16 %v9783_v18  ;;  %v9784_v15 = vunpack.i.l.bf16 %v9783_v18 }
 0xeea   : > { %v6118_v63 = vsel %vm2154_vm13, %v6103_v6, %v9784_v15  ;;  %v6119_v4 = vsel %vm2154_vm13, %v6104_v2, %v9785_v42  ;;  %v9798_v43 = vpop.permute.xlu0 %9797 }
 0xeeb   : > { %v6133_v49 = vsel %vm15170_vm14, %v6118_v63, 0.0  ;;  %v6134_v11 = vsel %vm15170_vm14, %v6119_v4, 0.0  ;;  %v9793_v52 = vpop.permute.xlu1 %9792  ;;  %v9800_v23 = vunpack.i.h.bf16 %v9798_v43  ;;  %v9799_v58 = vunpack.i.l.bf16 %v9798_v43 }
 0xeec   : > { %v9795_v46 = vunpack.i.h.bf16 %v9793_v52  ;;  %v9794_v36 = vunpack.i.l.bf16 %v9793_v52  ;;  %v6148_v22 = vsel %vm15171_vm15, %v6133_v49, %v9789_v38  ;;  %v6149_v16 = vsel %vm15171_vm15, %v6134_v11, %v9790_v1 }
 0xeed   : > { %v6163_v31 = vsel %vm2217_vm1, %v6148_v22, 0.0  ;;  %v6164_v44 = vsel %vm2217_vm1, %v6149_v16, 0.0 }
 0xeee   : > { %v6178_v19 = vsel %vm2238_vm3, %v6163_v31, %v9794_v36  ;;  %v6179_v50 = vsel %vm2238_vm3, %v6164_v44, %v9795_v46  ;;  %v13925_v47 = vpop.permute.xlu0 %9832 }
 0xeef   : > { %v6193_v20 = vsel %vm1086_vm10, %v6178_v19, 0.0  ;;  %v6194_v8 = vsel %vm1086_vm10, %v6179_v50, 0.0  ;;  %v9803_v60 = vpop.permute.xlu1 %9802 }
 0xef0   : > { %v9805_v7 = vunpack.i.h.bf16 %v9803_v60  ;;  %v9804_v32 = vunpack.i.l.bf16 %v9803_v60  ;;  %v6208_v59 = vsel %vm3492_vm6, %v6193_v20, %v9799_v58  ;;  %v6209_v39 = vsel %vm3492_vm6, %v6194_v8, %v9800_v23 }
 0xef1   : > { %v6223_v5 = vsel %vm3503_vm7, %v6208_v59, 0.0  ;;  %v6224_v13 = vsel %vm3503_vm7, %v6209_v39, 0.0  ;;  %v4837_v28 = vpop.f32.mrb[76].mxu0 }
 0xef2   : > { %v6238_v45 = vsel %vm3514_vm8, %v6223_v5, %v9804_v32  ;;  %v6239_v51 = vsel %vm3514_vm8, %v6224_v13, %v9805_v7  ;;  %v9843_v40 = vpop.permute.xlu0 %9842  ;;  %v13936_v18 = vadd.f32 %v13888_v48, %v4837_v28  ;;  %v4839_v42 = vpop.f32.mrb[77].mxu0 }
 0xef3   : > { %v13938_v2 = vpop.permute.xlu1 %9807  ;;  %v9981_v6 = vpack.i.bf16 %v6239_v51, %v6238_v45  ;;  %v4840_v15 = vpop.f32.mrb[78].mxu0  ;;  %v9845_v36 = vunpack.i.h.bf16 %v9843_v40  ;;  %v9844_v22 = vunpack.i.l.bf16 %v9843_v40 }
 0xef4   : > { %v4841_v1 = vpop.f32.mrb[79].mxu0 }
 0xef5   : > { %9982 = vrot.lane.b32.xlu0 %v9981_v6, %s15166_s18  ;;  %v6076_v58 = vsel %vm641_vm0, %v9845_v36, 0.0  ;;  %v6075_v19 = vsel %vm641_vm0, %v9844_v22, 0.0 }
 0xef6   : > { %v9853_v38 = vpop.permute.xlu0 %9852 }
 0xef7   : > { %v13941_v63 = vpop.permute.xlu1 %9812  ;;  %v9855_v50 = vunpack.i.h.bf16 %v9853_v38  ;;  %v9854_v20 = vunpack.i.l.bf16 %v9853_v38 }
 0xef9   : > { %9987 = vrot.lane.b32.xlu0 %v13705_v12, %s15265_s13 }
 0xefa   : > { %v9863_v4 = vpop.permute.xlu0 %9862 }
 0xefb   : > { %v13945_v43 = vpop.permute.xlu1 %9817  ;;  %v9865_v40 = vunpack.i.h.bf16 %v9863_v4  ;;  %v9864_v6 = vunpack.i.l.bf16 %v9863_v4 }
 0xefc   : > { %v9820_v14 = vunpack.i.h.bf16 %v13945_v43 }
 0xefd   : > { %9997 = vrot.lane.b32.xlu0 %v13705_v12, %s15266_s15 }
 0xefe   : > { %v9873_v49 = vpop.permute.xlu0 %9872 }
 0xeff   : > { %v13949_v48 = vpop.permute.xlu1 %9822 }
 0xf01   : > { %10002 = vrot.lane.b32.xlu0 %v13705_v12, %s15273_s1 }
 0xf02   : > { %v13957_v52 = vpop.permute.xlu0 %9877 }
 0xf03   : > { %v13953_v11 = vpop.permute.xlu1 %9827 }
 0xf05   : > { %10007 = vrot.lane.b32.xlu0 %v13705_v12, %s15268_s30 }
 0xf06   : > { %v13963_v31 = vpop.permute.xlu0 %9882 }
 0xf07   : > { %v13959_v46 = vpop.permute.xlu1 %9837  ;;  %v9885_v3 = vunpack.i.h.bf16 %v13963_v31 }
 0xf09   : > { %10012 = vrot.lane.b32.xlu0 %v13705_v12, %s15264_s16 }
 0xf0a   : > { %v13979_v42 = vpop.permute.xlu0 %9887 }
 0xf0b   : > { %v9848_v16 = vpop.permute.xlu1 %9847  ;;  %v9889_v29 = vunpack.i.l.bf16 %v13979_v42 }
 0xf0c   : > { %v9850_v44 = vunpack.i.h.bf16 %v9848_v16  ;;  %v9849_v23 = vunpack.i.l.bf16 %v9848_v16 }
 0xf0d   : > { %10017 = vrot.lane.b32.xlu0 %v13705_v12, %s15269_s26 }
 0xf0e   : > { %v6091_v8 = vsel %vm2112_vm11, %v6076_v58, %v9850_v44  ;;  %v6090_v60 = vsel %vm2112_vm11, %v6075_v19, %v9849_v23 }
 0xf0f   : > { %v6106_v7 = vsel %vm2133_vm12, %v6091_v8, 0.0  ;;  %v6105_v32 = vsel %vm2133_vm12, %v6090_v60, 0.0  ;;  %v9858_v59 = vpop.permute.xlu1 %9857 }
 0xf10   : > { %v9860_v39 = vunpack.i.h.bf16 %v9858_v59  ;;  %v9859_v5 = vunpack.i.l.bf16 %v9858_v59  ;;  %v6120_v13 = vsel %vm2154_vm13, %v6105_v32, %v9854_v20  ;;  %v6121_v45 = vsel %vm2154_vm13, %v6106_v7, %v9855_v50 }
 0xf11   : > { %v6135_v51 = vsel %vm15170_vm14, %v6120_v13, 0.0  ;;  %v6136_v28 = vsel %vm15170_vm14, %v6121_v45, 0.0  ;;  %10022 = vrot.lane.b32.xlu0 %v13705_v12, %s15249_s25  ;;  %v8465_v38 = vpop.f32.mrb[80].mxu0  ;;  %v9875_v32 = vunpack.i.h.bf16 %v9873_v49  ;;  %v9874_v59 = vunpack.i.l.bf16 %v9873_v49 }
 0xf12   : > { %v6150_v15 = vsel %vm15171_vm15, %v6135_v51, %v9859_v5  ;;  %v6151_v1 = vsel %vm15171_vm15, %v6136_v28, %v9860_v39  ;;  %v8466_v44 = vpop.f32.mrb[81].mxu0 }
 0xf13   : > { %v6165_v36 = vsel %vm2217_vm1, %v6150_v15, 0.0  ;;  %v6166_v22 = vsel %vm2217_vm1, %v6151_v1, 0.0  ;;  %v9868_v16 = vpop.permute.xlu1 %9867  ;;  %v8468_v4 = vpop.f32.mrb[82].mxu0  ;;  %v13991_v60 = vadd.f32 %v8466_v44, %v8465_v38 }
 0xf14   : > { %v9870_v23 = vunpack.i.h.bf16 %v9868_v16  ;;  %v9869_v58 = vunpack.i.l.bf16 %v9868_v16  ;;  %v6180_v19 = vsel %vm2238_vm3, %v6165_v36, %v9864_v6  ;;  %v6181_v50 = vsel %vm2238_vm3, %v6166_v22, %v9865_v40  ;;  %v8469_v7 = vpop.f32.mrb[83].mxu0  ;;  %v14001_v6 = vpop.permute.xlu0 %9897 }
 0xf15   : > { %v6195_v20 = vsel %vm1086_vm10, %v6180_v19, 0.0  ;;  %v6196_v8 = vsel %vm1086_vm10, %v6181_v50, 0.0  ;;  %10027 = vrot.lane.b32.xlu0 %v13705_v12, %s15270_s12 }
 0xf16   : > { %v6210_v39 = vsel %vm3492_vm6, %v6195_v20, %v9869_v58  ;;  %v6211_v5 = vsel %vm3492_vm6, %v6196_v8, %v9870_v23 }
 0xf17   : > { %v6225_v13 = vsel %vm3503_vm7, %v6210_v39, 0.0  ;;  %v6226_v45 = vsel %vm3503_vm7, %v6211_v5, 0.0  ;;  %v13997_v51 = vpop.permute.xlu1 %9892 }
 0xf18   : > { %v6240_v28 = vsel %vm3514_vm8, %v6225_v13, %v9874_v59  ;;  %v6241_v40 = vsel %vm3514_vm8, %v6226_v45, %v9875_v32  ;;  %v9918_v1 = vpop.permute.xlu0 %9917 }
 0xf19   : > { %10032 = vrot.lane.b32.xlu0 %v13705_v12, %s15261_s23  ;;  %v10056_v49 = vpack.i.bf16 %v6241_v40, %v6240_v28  ;;  %v9920_v44 = vunpack.i.h.bf16 %v9918_v1  ;;  %v9919_v23 = vunpack.i.l.bf16 %v9918_v1 }
 0xf1b   : > { %v14005_v15 = vpop.permute.xlu1 %9902  ;;  %10057 = vrot.lane.b32.xlu1 %v10056_v49, %s15166_s18 }
 0xf1c   : > { %v9928_v58 = vpop.permute.xlu0 %9927 }
 0xf1d   : > { %10042 = vrot.lane.b32.xlu0 %v13705_v12, %s15274_s2  ;;  %v9930_v39 = vunpack.i.h.bf16 %v9928_v58  ;;  %v9929_v5 = vunpack.i.l.bf16 %v9928_v58 }
 0xf1f   : > { %v14010_v38 = vpop.permute.xlu1 %9907  ;;  %10072 = vrot.lane.b32.xlu1 %v13872_v35, %s15267_s14 }
 0xf20   : > { %v9938_v28 = vpop.permute.xlu0 %9937 }
 0xf23   : > { %v9913_v36 = vpop.permute.xlu1 %9912  ;;  %10077 = vrot.lane.b32.xlu1 %v13872_v35, %s15266_s15 }
 0xf24   : > { %v9915_v22 = vunpack.i.h.bf16 %v9913_v36  ;;  %v9914_v16 = vunpack.i.l.bf16 %v9913_v36 }
 0xf26   : > { %v6078_v19 = vsel %vm641_vm0, %v9915_v22, 0.0  ;;  %v6077_v50 = vsel %vm641_vm0, %v9914_v16, 0.0 }
 0xf27   : > { %v6093_v12 = vsel %vm2112_vm11, %v6078_v19, %v9920_v44  ;;  %v6092_v4 = vsel %vm2112_vm11, %v6077_v50, %v9919_v23  ;;  %v9923_v20 = vpop.permute.xlu1 %9922  ;;  %10087 = vrot.lane.b32.xlu1 %v13872_v35, %s15268_s30  ;;  %v9940_v19 = vunpack.i.h.bf16 %v9938_v28  ;;  %v9939_v50 = vunpack.i.l.bf16 %v9938_v28 }
 0xf28   : > { %v6108_v8 = vsel %vm2133_vm12, %v6093_v12, 0.0  ;;  %v6107_v7 = vsel %vm2133_vm12, %v6092_v4, 0.0  ;;  %v9925_v32 = vunpack.i.h.bf16 %v9923_v20  ;;  %v9924_v59 = vunpack.i.l.bf16 %v9923_v20 }
 0xf2a   : > { %v6122_v13 = vsel %vm2154_vm13, %v6107_v7, %v9924_v59  ;;  %v6123_v45 = vsel %vm2154_vm13, %v6108_v8, %v9925_v32 }
 0xf2b   : > { %v6137_v40 = vsel %vm15170_vm14, %v6122_v13, 0.0  ;;  %v6138_v49 = vsel %vm15170_vm14, %v6123_v45, 0.0  ;;  %v9933_v1 = vpop.permute.xlu1 %9932  ;;  %10092 = vrot.lane.b32.xlu1 %v13872_v35, %s15264_s16 }
 0xf2c   : > { %v9935_v36 = vunpack.i.h.bf16 %v9933_v1  ;;  %v9934_v22 = vunpack.i.l.bf16 %v9933_v1  ;;  %v6152_v16 = vsel %vm15171_vm15, %v6137_v40, %v9929_v5  ;;  %v6153_v44 = vsel %vm15171_vm15, %v6138_v49, %v9930_v39 }
 0xf2d   : > { %v6167_v23 = vsel %vm2217_vm1, %v6152_v16, 0.0  ;;  %v6168_v58 = vsel %vm2217_vm1, %v6153_v44, 0.0  ;;  %v5534_v16 = vsel %vm641_vm0, %v5187_v9, 0.0  ;;  %v5535_v44 = vsel %vm641_vm0, %v5188_v56, 0.0 }
 0xf2e   : > { %v6182_v12 = vsel %vm2238_vm3, %v6167_v23, %v9934_v22  ;;  %v6183_v4 = vsel %vm2238_vm3, %v6168_v58, %v9935_v36 }
 0xf2f   : > { %v6197_v20 = vsel %vm1086_vm10, %v6182_v12, 0.0  ;;  %v6198_v8 = vsel %vm1086_vm10, %v6183_v4, 0.0  ;;  %v9943_v7 = vpop.permute.xlu1 %9942  ;;  %10097 = vrot.lane.b32.xlu1 %v13872_v35, %s15269_s26 }
 0xf30   : > { %v9945_v32 = vunpack.i.h.bf16 %v9943_v7  ;;  %v9944_v59 = vunpack.i.l.bf16 %v9943_v7  ;;  %v6212_v39 = vsel %vm3492_vm6, %v6197_v20, %v9939_v50  ;;  %v6213_v5 = vsel %vm3492_vm6, %v6198_v8, %v9940_v19  ;;  %v9963_v20 = vpop.permute.xlu0 %9962 }
 0xf31   : > { %v6227_v13 = vsel %vm3503_vm7, %v6212_v39, 0.0  ;;  %v6228_v45 = vsel %vm3503_vm7, %v6213_v5, 0.0 }
 0xf32   : > { %v6242_v28 = vsel %vm3514_vm8, %v6227_v13, %v9944_v59  ;;  %v6243_v40 = vsel %vm3514_vm8, %v6228_v45, %v9945_v32 }
 0xf33   : > { %v10061_v49 = vpack.i.bf16 %v6243_v40, %v6242_v28  ;;  %v9948_v1 = vpop.permute.xlu1 %9947  ;;  %10102 = vrot.lane.b32.xlu1 %v13872_v35, %s15249_s25  ;;  %v9964_v40 = vunpack.i.l.bf16 %v9963_v20 }
 0xf34   : > { %v9950_v36 = vunpack.i.h.bf16 %v9948_v1  ;;  %v9949_v22 = vunpack.i.l.bf16 %v9948_v1 }
 0xf35   : > { %10062 = vrot.lane.b32.xlu0 %v10061_v49, %s15166_s18  ;;  %s15275_s18 = smov 127  }
 0xf36   : > { %v5550_v23 = vsel %vm2112_vm11, %v5535_v44, %v9950_v36  ;;  %v5549_v58 = vsel %vm2112_vm11, %v5534_v16, %v9949_v22 }
 0xf37   : > { %v9953_v19 = vpop.permute.xlu1 %9952  ;;  %10107 = vrot.lane.b32.xlu1 %v13872_v35, %s15270_s12  ;;  %v5565_v37 = vsel %vm2133_vm12, %v5550_v23, 0.0  ;;  %v5564_v9 = vsel %vm2133_vm12, %v5549_v58, 0.0 }
 0xf38   : > { %v9955_v50 = vunpack.i.h.bf16 %v9953_v19  ;;  %v9954_v12 = vunpack.i.l.bf16 %v9953_v19  ;;  %v4917_v4 = vpop.f32.mrb[84].mxu1 }
 0xf39   : > { %v14062_v21 = vadd.f32 %v13901_v27, %v4917_v4  ;;  %v4919_v56 = vpop.f32.mrb[85].mxu1  ;;  %10067 = vrot.lane.b32.xlu0 %v13872_v35, %s15265_s13  ;;  %v9965_v27 = vunpack.i.h.bf16 %v9963_v20 }
 0xf3a   : > { %v5579_v8 = vsel %vm2154_vm13, %v5564_v9, %v9954_v12  ;;  %v5580_v7 = vsel %vm2154_vm13, %v5565_v37, %v9955_v50  ;;  %v4920_v32 = vpop.f32.mrb[86].mxu1 }
 0xf3b   : > { %v4921_v59 = vpop.f32.mrb[87].mxu1  ;;  %v9958_v39 = vpop.permute.xlu1 %9957  ;;  %v5594_v45 = vsel %vm15170_vm14, %v5579_v8, 0.0  ;;  %v5595_v28 = vsel %vm15170_vm14, %v5580_v7, 0.0  ;;  %v9810_v8 = vunpack.i.h.bf16 %v13938_v2  ;;  %v9809_v7 = vunpack.i.l.bf16 %v13938_v2 }
 0xf3c   : > { %v9960_v5 = vunpack.i.h.bf16 %v9958_v39  ;;  %v9959_v13 = vunpack.i.l.bf16 %v9958_v39  ;;  %v5531_v39 = vsel %vm641_vm0, %v5184_v57, 0.0 }
 0xf3d   : > { %10082 = vrot.lane.b32.xlu0 %v13872_v35, %s15273_s1 }
 0xf3e   : > { %v5609_v49 = vsel %vm15171_vm15, %v5594_v45, %v9959_v13  ;;  %v5610_v1 = vsel %vm15171_vm15, %v5595_v28, %v9960_v5  ;;  %v5530_v5 = vsel %vm641_vm0, %v5183_v41, 0.0  ;;  %v5546_v13 = vsel %vm2112_vm11, %v5531_v39, %v9810_v8 }
 0xf3f   : > { %v5624_v36 = vsel %vm2217_vm1, %v5609_v49, 0.0  ;;  %v5625_v22 = vsel %vm2217_vm1, %v5610_v1, 0.0  ;;  %v9968_v16 = vpop.permute.xlu1 %9967  ;;  %v9815_v45 = vunpack.i.h.bf16 %v13941_v63  ;;  %v9814_v28 = vunpack.i.l.bf16 %v13941_v63 }
 0xf40   : > { %v9970_v44 = vunpack.i.h.bf16 %v9968_v16  ;;  %v9969_v23 = vunpack.i.l.bf16 %v9968_v16  ;;  %v5639_v58 = vsel %vm2238_vm3, %v5624_v36, %v9964_v40  ;;  %v5640_v19 = vsel %vm2238_vm3, %v5625_v22, %v9965_v27 }
 0xf41   : > { %v5654_v50 = vsel %vm1086_vm10, %v5639_v58, 0.0  ;;  %v5655_v12 = vsel %vm1086_vm10, %v5640_v19, 0.0  ;;  %v5561_v2 = vsel %vm2133_vm12, %v5546_v13, 0.0  ;;  %v9819_v41 = vunpack.i.l.bf16 %v13945_v43 }
 0xf42   : > { %v14081_v4 = vsel %vm3492_vm6, %v5654_v50, %v9969_v23  ;;  %v14084_v37 = vsel %vm3492_vm6, %v5655_v12, %v9970_v44  ;;  %v5576_v57 = vsel %vm2154_vm13, %v5561_v2, %v9815_v45  ;;  %v9825_v36 = vunpack.i.h.bf16 %v13949_v48 }
 0xf43   : > { %v5591_v49 = vsel %vm15170_vm14, %v5576_v57, 0.0  ;;  %v9824_v22 = vunpack.i.l.bf16 %v13949_v48  ;;  %v9830_v58 = vunpack.i.h.bf16 %v13953_v11  ;;  %v9829_v19 = vunpack.i.l.bf16 %v13953_v11 }
 0xf44   : > { %v4997_v9 = vpop.f32.mrb[84].mxu0  ;;  %v5606_v63 = vsel %vm15171_vm15, %v5591_v49, %v9820_v14  ;;  %v9839_v13 = vunpack.i.l.bf16 %v13959_v46 }
 0xf45   : > { %v14087_v56 = vadd.f32 %v13991_v60, %v4997_v9  ;;  %v4999_v20 = vpop.f32.mrb[85].mxu0  ;;  %v5545_v60 = vsel %vm2112_vm11, %v5530_v5, %v9809_v7  ;;  %v5621_v44 = vsel %vm2217_vm1, %v5606_v63, 0.0  ;;  %v14125_v7 = vpop.permute.xlu0 %9972  ;;  %v9840_v5 = vunpack.i.h.bf16 %v13959_v46 }
 0xf46   : > { %v5000_v32 = vpop.f32.mrb[86].mxu0  ;;  %v5560_v27 = vsel %vm2133_vm12, %v5545_v60, 0.0  ;;  %v5636_v43 = vsel %vm2238_vm3, %v5621_v44, %v9825_v36  ;;  %v9993_v63 = vpop.permute.xlu1 %9992 }
 0xf47   : > { %v5001_v59 = vpop.f32.mrb[87].mxu0  ;;  %v5575_v34 = vsel %vm2154_vm13, %v5560_v27, %v9814_v28  ;;  %v5651_v12 = vsel %vm1086_vm10, %v5636_v43, 0.0  ;;  %v9835_v32 = vunpack.i.h.bf16 %v13925_v47  ;;  %v14141_v27 = vadd.f32 %v13607_v33, %v14062_v21 }
 0xf48   : > { %v5590_v40 = vsel %vm15170_vm14, %v5575_v34, 0.0  ;;  %v5666_v48 = vsel %vm3492_vm6, %v5651_v12, %v9830_v58  ;;  %v9834_v59 = vunpack.i.l.bf16 %v13925_v47  ;;  %v9994_v12 = vunpack.i.l.bf16 %v9993_v63 }
 0xf49   : > { %v5605_v1 = vsel %vm15171_vm15, %v5590_v40, %v9819_v41  ;;  %v5681_v8 = vsel %vm3503_vm7, %v5666_v48, 0.0  ;;  %v14135_v28 = vpop.permute.xlu0 %9977  ;;  %v14145_v41 = vadd.f32 %v13607_v33, %v13936_v18 }
 0xf4a   : > { %v5620_v16 = vsel %vm2217_vm1, %v5605_v1, 0.0  ;;  %v5696_v39 = vsel %vm3514_vm8, %v5681_v8, %v9835_v32 }
 0xf4b   : > { %v5635_v23 = vsel %vm2238_vm3, %v5620_v16, %v9824_v22  ;;  %v5712_v45 = vsel %vm15169_vm4, %v5696_v39, 0.0  ;;  %v5194_v16 = vmax.f32 %v14141_v27, 0.0 }
 0xf4c   : > { %v5650_v50 = vsel %vm1086_vm10, %v5635_v23, 0.0  ;;  %v5728_v47 = vsel %vm15168_vm9, %v5712_v45, %v9840_v5 }
 0xf4d   : > { %v5665_v9 = vsel %vm3492_vm6, %v5650_v50, %v9829_v19  ;;  %v5744_v49 = vsel %vm5742_vm2, %v5728_v47, 0.0  ;;  %v5193_v19 = vmax.f32 %v14145_v41, 0.0  ;;  %v9995_v50 = vunpack.i.h.bf16 %v9993_v63 }
 0xf4e   : > { %v5680_v20 = vsel %vm3503_vm7, %v5665_v9, 0.0 }
 0xf4f   : > { %v5695_v11 = vsel %vm3514_vm8, %v5680_v20, %v9834_v59  ;;  %v14168_v59 = vpack.i.bf16 %v5194_v16, %v5193_v19 }
 0xf50   : > { %v5711_v60 = vsel %vm15169_vm4, %v5695_v11, 0.0 }
 0xf51   : > { %v5727_v2 = vsel %vm15168_vm9, %v5711_v60, %v9839_v13 }
 0xf52   : > { %v5743_v40 = vsel %vm5742_vm2, %v5727_v2, 0.0 }
 0xf67   : > { %v9983_v34 = vpop.permute.xlu0 %9982 }
 0xf68   : > { %v9985_v57 = vunpack.i.h.bf16 %v9983_v34  ;;  %v9984_v14 = vunpack.i.l.bf16 %v9983_v34  ;;  %v5077_v46 = vpop.f32.mrb[88].mxu0 }
 0xf69   : > { %v5079_v1 = vpop.f32.mrb[89].mxu0 }
 0xf6a   : > { %v14150_v36 = vsel %vm15173_vm5, %v5744_v49, %v9985_v57  ;;  %v14153_v21 = vsel %vm15173_vm5, %v5743_v40, %v9984_v14  ;;  %v5080_v22 = vpop.f32.mrb[90].mxu0 }
 0xf6b   : > { %v9988_v44 = vpop.permute.xlu0 %9987  ;;  %v10126_v18 = vpack.i.bf16 %v14150_v36, %v14153_v21  ;;  %v5081_v23 = vpop.f32.mrb[91].mxu0 }
 0xf6c   : > { %v9990_v43 = vunpack.i.h.bf16 %v9988_v44  ;;  %v9989_v58 = vunpack.i.l.bf16 %v9988_v44 }
 0xf6d   : > { %10127 = vrot.lane.b32.xlu0 %v10126_v18, %s15275_s18 }
 0xf6e   : > { %v6080_v9 = vsel %vm641_vm0, %v9990_v43, 0.0  ;;  %v6079_v48 = vsel %vm641_vm0, %v9989_v58, 0.0 }
 0xf6f   : > { %v6095_v20 = vsel %vm2112_vm11, %v6080_v9, %v9995_v50  ;;  %v6094_v8 = vsel %vm2112_vm11, %v6079_v48, %v9994_v12  ;;  %v9998_v32 = vpop.permute.xlu0 %9997 }
 0xf70   : > { %v6110_v11 = vsel %vm2133_vm12, %v6095_v20, 0.0  ;;  %v6109_v39 = vsel %vm2133_vm12, %v6094_v8, 0.0  ;;  %v10000_v5 = vunpack.i.h.bf16 %v9998_v32  ;;  %v9999_v13 = vunpack.i.l.bf16 %v9998_v32  ;;  %v14188_v32 = vpop.permute.xlu1 %10037 }
 0xf71   : > { %10132 = vrot.lane.b32.xlu0 %v14168_v59, %s15267_s14 }
 0xf72   : > { %v6124_v60 = vsel %vm2154_vm13, %v6109_v39, %v9999_v13  ;;  %v6125_v45 = vsel %vm2154_vm13, %v6110_v11, %v10000_v5 }
 0xf73   : > { %v10003_v2 = vpop.permute.xlu0 %10002  ;;  %v6139_v57 = vsel %vm15170_vm14, %v6124_v60, 0.0  ;;  %v6140_v14 = vsel %vm15170_vm14, %v6125_v45, 0.0 }
 0xf74   : > { %v10005_v47 = vunpack.i.h.bf16 %v10003_v2  ;;  %v10004_v34 = vunpack.i.l.bf16 %v10003_v2 }
 0xf75   : > { %v5037_v40 = vpop.f32.mrb[88].mxu1  ;;  %10137 = vrot.lane.b32.xlu0 %v14168_v59, %s15266_s15 }
 0xf76   : > { %v6154_v49 = vsel %vm15171_vm15, %v6139_v57, %v10004_v34  ;;  %v6155_v1 = vsel %vm15171_vm15, %v6140_v14, %v10005_v47  ;;  %v5078_v63 = vadd.f32 %v5077_v46, %v5037_v40  ;;  %v5039_v22 = vpop.f32.mrb[89].mxu1  ;;  %v5180_v34 = vadd.f32 %v13607_v33, %v14087_v56 }
 0xf77   : > { %v5040_v44 = vpop.f32.mrb[90].mxu1  ;;  %v10008_v18 = vpop.permute.xlu0 %10007  ;;  %v6169_v50 = vsel %vm2217_vm1, %v6154_v49, 0.0  ;;  %v6170_v12 = vsel %vm2217_vm1, %v6155_v1, 0.0 }
 0xf78   : > { %v5041_v23 = vpop.f32.mrb[91].mxu1  ;;  %v10010_v43 = vunpack.i.h.bf16 %v10008_v18  ;;  %v10009_v58 = vunpack.i.l.bf16 %v10008_v18  ;;  %v5181_v60 = vadd.f32 %v13607_v33, %v5078_v63  ;;  %v14205_v1 = vpop.permute.xlu1 %10047  ;;  %v14209_v56 = vmax.f32 %v5180_v34, 0.0 }
 0xf79   : > { %10142 = vrot.lane.b32.xlu0 %v14168_v59, %s15273_s1  ;;  %v10040_v34 = vunpack.i.h.bf16 %v14188_v32 }
 0xf7a   : > { %v6184_v9 = vsel %vm2238_vm3, %v6169_v50, %v10009_v58  ;;  %v6185_v48 = vsel %vm2238_vm3, %v6170_v12, %v10010_v43  ;;  %v14207_v63 = vmax.f32 %v5181_v60, 0.0  ;;  %v5536_v43 = vsel %vm641_vm0, %v5189_v24, 0.0 }
 0xf7b   : > { %v10013_v20 = vpop.permute.xlu0 %10012  ;;  %v6199_v11 = vsel %vm1086_vm10, %v6184_v9, 0.0  ;;  %v6200_v39 = vsel %vm1086_vm10, %v6185_v48, 0.0  ;;  %v5537_v58 = vsel %vm641_vm0, %v5190_v30, 0.0 }
 0xf7c   : > { %v10015_v8 = vunpack.i.h.bf16 %v10013_v20  ;;  %v10014_v46 = vunpack.i.l.bf16 %v10013_v20  ;;  %v14224_v48 = vpack.i.bf16 %v14207_v63, %v14209_v56  ;;  %v10053_v20 = vpop.permute.xlu1 %10052 }
 0xf7d   : > { %10147 = vrot.lane.b32.xlu0 %v14168_v59, %s15268_s30 }
 0xf7e   : > { %v6214_v5 = vsel %vm3492_vm6, %v6199_v11, %v10014_v46  ;;  %v6215_v13 = vsel %vm3492_vm6, %v6200_v39, %v10015_v8 }
 0xf7f   : > { %v10018_v45 = vpop.permute.xlu0 %10017  ;;  %v6229_v57 = vsel %vm3503_vm7, %v6214_v5, 0.0  ;;  %v6230_v14 = vsel %vm3503_vm7, %v6215_v13, 0.0 }
 0xf80   : > { %v10020_v2 = vunpack.i.h.bf16 %v10018_v45  ;;  %v10019_v47 = vunpack.i.l.bf16 %v10018_v45 }
 0xf81   : > { %10152 = vrot.lane.b32.xlu0 %v14168_v59, %s15264_s16 }
 0xf82   : > { %v6244_v40 = vsel %vm3514_vm8, %v6229_v57, %v10019_v47  ;;  %v6245_v49 = vsel %vm3514_vm8, %v6230_v14, %v10020_v2 }
 0xf83   : > { %v10111_v22 = vpack.i.bf16 %v6245_v49, %v6244_v40  ;;  %v10023_v44 = vpop.permute.xlu0 %10022  ;;  %v10039_v49 = vunpack.i.l.bf16 %v14188_v32  ;;  %v10050_v32 = vunpack.i.h.bf16 %v14205_v1 }
 0xf84   : > { %v10025_v18 = vunpack.i.h.bf16 %v10023_v44  ;;  %v10024_v23 = vunpack.i.l.bf16 %v10023_v44 }
 0xf85   : > { %10112 = vrot.lane.b32.xlu1 %v10111_v22, %s15276_s3  ;;  %10157 = vrot.lane.b32.xlu0 %v14168_v59, %s15269_s26 }
 0xf86   : > { %v5552_v50 = vsel %vm2112_vm11, %v5537_v58, %v10025_v18  ;;  %v5551_v12 = vsel %vm2112_vm11, %v5536_v43, %v10024_v23 }
 0xf87   : > { %v10028_v9 = vpop.permute.xlu0 %10027  ;;  %v5567_v25 = vsel %vm2133_vm12, %v5552_v50, 0.0  ;;  %v5566_v30 = vsel %vm2133_vm12, %v5551_v12, 0.0 }
 0xf88   : > { %v10030_v62 = vunpack.i.h.bf16 %v10028_v9  ;;  %v10029_v24 = vunpack.i.l.bf16 %v10028_v9 }
 0xf89   : > { %10117 = vrot.lane.b32.xlu1 %v14168_v59, %s15265_s13  ;;  %10162 = vrot.lane.b32.xlu0 %v14224_v48, %s15265_s13 }
 0xf8a   : > { %v5581_v8 = vsel %vm2154_vm13, %v5566_v30, %v10029_v24  ;;  %v5582_v46 = vsel %vm2154_vm13, %v5567_v25, %v10030_v62  ;;  %v10049_v25 = vunpack.i.l.bf16 %v14205_v1 }
 0xf8b   : > { %v10033_v11 = vpop.permute.xlu0 %10032  ;;  %v5596_v60 = vsel %vm15170_vm14, %v5581_v8, 0.0  ;;  %v5597_v45 = vsel %vm15170_vm14, %v5582_v46, 0.0 }
 0xf8c   : > { %v10035_v39 = vunpack.i.h.bf16 %v10033_v11  ;;  %v10034_v5 = vunpack.i.l.bf16 %v10033_v11  ;;  %v14234_v13 = vpop.f32.mrb[92].mxu0 }
 0xf8d   : > { %v14238_v2 = vpop.permute.xlu1 %10057  ;;  %10122 = vrot.lane.b32.xlu1 %v13872_v35, %s15261_s23  ;;  %10202 = vrot.lane.b32.xlu0 %v13872_v35, %s15274_s2  ;;  %v5159_v47 = vpop.f32.mrb[93].mxu0 }
 0xf8e   : > { %v5611_v57 = vsel %vm15171_vm15, %v5596_v60, %v10034_v5  ;;  %v5612_v14 = vsel %vm15171_vm15, %v5597_v45, %v10035_v39  ;;  %v5160_v40 = vpop.f32.mrb[94].mxu0  ;;  %v10055_v39 = vunpack.i.h.bf16 %v10053_v20  ;;  %v10054_v5 = vunpack.i.l.bf16 %v10053_v20 }
 0xf8f   : > { %v5626_v22 = vsel %vm2217_vm1, %v5611_v57, 0.0  ;;  %v5627_v44 = vsel %vm2217_vm1, %v5612_v14, 0.0  ;;  %v10043_v18 = vpop.permute.xlu0 %10042  ;;  %v5161_v23 = vpop.f32.mrb[95].mxu0  ;;  %v5684_v40 = vsel %vm3503_vm7, %v14081_v4, 0.0  ;;  %v9880_v4 = vunpack.i.h.bf16 %v13957_v52 }
 0xf90   : > { %v10045_v43 = vunpack.i.h.bf16 %v10043_v18  ;;  %v10044_v58 = vunpack.i.l.bf16 %v10043_v18  ;;  %v5641_v50 = vsel %vm2238_vm3, %v5626_v22, %v10039_v49  ;;  %v5642_v12 = vsel %vm2238_vm3, %v5627_v44, %v10040_v34 }
 0xf91   : > { %v14252_v9 = vpop.permute.xlu1 %10072  ;;  %10167 = vrot.lane.b32.xlu1 %v14224_v48, %s15267_s14  ;;  %10212 = vrot.lane.b32.xlu0 %v13872_v35, %s15272_s0  ;;  %v5656_v62 = vsel %vm1086_vm10, %v5641_v50, 0.0  ;;  %v5657_v24 = vsel %vm1086_vm10, %v5642_v12, 0.0  ;;  %v5685_v49 = vsel %vm3503_vm7, %v14084_v37, 0.0  ;;  %v9975_v44 = vunpack.i.h.bf16 %v14125_v7 }
 0xf92   : > { %v5671_v30 = vsel %vm3492_vm6, %v5656_v62, %v10044_v58  ;;  %v5672_v8 = vsel %vm3492_vm6, %v5657_v24, %v10045_v43  ;;  %v9974_v18 = vunpack.i.l.bf16 %v14125_v7  ;;  %v9879_v58 = vunpack.i.l.bf16 %v13957_v52 }
 0xf93   : > { %v5686_v46 = vsel %vm3503_vm7, %v5671_v30, 0.0  ;;  %v5687_v11 = vsel %vm3503_vm7, %v5672_v8, 0.0  ;;  %v5700_v43 = vsel %vm3514_vm8, %v5685_v49, %v9975_v44  ;;  %v5532_v7 = vsel %vm641_vm0, %v5185_v53, 0.0 }
 0xf94   : > { %v5701_v60 = vsel %vm3514_vm8, %v5686_v46, %v10049_v25  ;;  %v5702_v45 = vsel %vm3514_vm8, %v5687_v11, %v10050_v32  ;;  %v5699_v23 = vsel %vm3514_vm8, %v5684_v40, %v9974_v18  ;;  %v5716_v12 = vsel %vm15169_vm4, %v5700_v43, 0.0 }
 0xf95   : > { %v14268_v47 = vpop.permute.xlu1 %10077  ;;  %10172 = vrot.lane.b32.xlu1 %v14224_v48, %s15266_s15  ;;  %v5717_v1 = vsel %vm15169_vm4, %v5701_v60, 0.0  ;;  %v5718_v34 = vsel %vm15169_vm4, %v5702_v45, 0.0  ;;  %v5715_v37 = vsel %vm15169_vm4, %v5699_v23, 0.0  ;;  %v9980_v32 = vunpack.i.h.bf16 %v14135_v28 }
 0xf96   : > { %v14275_v57 = vsel %vm15168_vm9, %v5717_v1, %v10054_v5  ;;  %v14278_v14 = vsel %vm15168_vm9, %v5718_v34, %v10055_v39  ;;  %v9979_v62 = vunpack.i.l.bf16 %v14135_v28  ;;  %v5533_v24 = vsel %vm641_vm0, %v5186_v61, 0.0 }
 0xf97   : > { %v5547_v25 = vsel %vm2112_vm11, %v5532_v7, %v9879_v58  ;;  %v9884_v52 = vunpack.i.l.bf16 %v13963_v31  ;;  %v5548_v55 = vsel %vm2112_vm11, %v5533_v24, %v9880_v4  ;;  %v5732_v28 = vsel %vm15168_vm9, %v5716_v12, %v9980_v32 }
 0xf98   : > { %v5731_v8 = vsel %vm15168_vm9, %v5715_v37, %v9979_v62  ;;  %v5538_v61 = vsel %vm641_vm0, %v5191_v10, 0.0  ;;  %v5562_v11 = vsel %vm2133_vm12, %v5547_v25, 0.0  ;;  %v5563_v45 = vsel %vm2133_vm12, %v5548_v55, 0.0 }
 0xf99   : > { %v14280_v20 = vpop.permute.xlu1 %10087  ;;  %10177 = vrot.lane.b32.xlu1 %v14224_v48, %s15273_s1  ;;  %v5577_v1 = vsel %vm2154_vm13, %v5562_v11, %v9884_v52  ;;  %v5747_v34 = vsel %vm5742_vm2, %v5731_v8, 0.0  ;;  %v5748_v40 = vsel %vm5742_vm2, %v5732_v28, 0.0  ;;  %v5578_v18 = vsel %vm2154_vm13, %v5563_v45, %v9885_v3 }
 0xf9a   : > { %v5592_v12 = vsel %vm15170_vm14, %v5577_v1, 0.0  ;;  %v9890_v7 = vunpack.i.h.bf16 %v13979_v42  ;;  %v10075_v32 = vunpack.i.h.bf16 %v14252_v9  ;;  %v10074_v62 = vunpack.i.l.bf16 %v14252_v9 }
 0xf9b   : > { %v5593_v24 = vsel %vm15170_vm14, %v5578_v18, 0.0  ;;  %v5607_v25 = vsel %vm15171_vm15, %v5592_v12, %v9889_v29  ;;  %v10079_v8 = vunpack.i.l.bf16 %v14268_v47  ;;  %v9894_v1 = vunpack.i.l.bf16 %v13997_v51 }
 0xf9c   : > { %v10090_v18 = vunpack.i.h.bf16 %v14280_v20 }
 0xf9d   : > { %v14288_v22 = vpop.permute.xlu1 %10092  ;;  %10182 = vrot.lane.b32.xlu1 %v14224_v48, %s15268_s30 }
 0xfa1   : > { %v14297_v50 = vpop.permute.xlu1 %10097  ;;  %10187 = vrot.lane.b32.xlu1 %v14224_v48, %s15264_s16 }
 0xfa5   : > { %v14314_v30 = vpop.permute.xlu1 %10102  ;;  %10192 = vrot.lane.b32.xlu1 %v14224_v48, %s15269_s26 }
 0xfa6   : > { %v10104_v53 = vunpack.i.l.bf16 %v14314_v30 }
 0xfa7   : > { %v10063_v46 = vpop.permute.xlu0 %10062 }
 0xfa8   : > { %v5553_v39 = vsel %vm2112_vm11, %v5538_v61, %v10104_v53  ;;  %v10065_v5 = vunpack.i.h.bf16 %v10063_v46  ;;  %v10064_v60 = vunpack.i.l.bf16 %v10063_v46  ;;  %v10080_v53 = vunpack.i.h.bf16 %v14268_v47 }
 0xfa9   : > { %v14332_v31 = vpop.permute.xlu1 %10107  ;;  %v5568_v23 = vsel %vm2133_vm12, %v5553_v39, 0.0  ;;  %v5608_v39 = vsel %vm15171_vm15, %v5593_v24, %v9890_v7 }
 0xfaa   : > { %v14336_v10 = vsel %vm15173_vm5, %v5748_v40, %v10065_v5  ;;  %v14339_v49 = vsel %vm15173_vm5, %v5747_v34, %v10064_v60  ;;  %v10109_v44 = vunpack.i.l.bf16 %v14332_v31  ;;  %v9895_v5 = vunpack.i.h.bf16 %v13997_v51 }
 0xfab   : > { %v10068_v43 = vpop.permute.xlu0 %10067 }
 0xfac   : > { %v14345_v58 = vsel %vm2154_vm13, %v5568_v23, %v10109_v44  ;;  %v10070_v4 = vunpack.i.h.bf16 %v10068_v43  ;;  %v10069_v37 = vunpack.i.l.bf16 %v10068_v43  ;;  %v10089_v23 = vunpack.i.l.bf16 %v14280_v20 }
 0xfad   : > { %v5623_v20 = vsel %vm2217_vm1, %v5608_v39, 0.0 }
 0xfae   : > { %v6082_v52 = vsel %vm641_vm0, %v10070_v4, 0.0  ;;  %v6081_v55 = vsel %vm641_vm0, %v10069_v37, 0.0 }
 0xfaf   : > { %v6097_v28 = vsel %vm2112_vm11, %v6082_v52, %v10075_v32  ;;  %v6096_v42 = vsel %vm2112_vm11, %v6081_v55, %v10074_v62  ;;  %v10083_v3 = vpop.permute.xlu0 %10082  ;;  %v5622_v62 = vsel %vm2217_vm1, %v5607_v25, 0.0  ;;  %v10094_v25 = vunpack.i.l.bf16 %v14288_v22 }
 0xfb0   : > { %v6112_v61 = vsel %vm2133_vm12, %v6097_v28, 0.0  ;;  %v6111_v9 = vsel %vm2133_vm12, %v6096_v42, 0.0  ;;  %v10085_v46 = vunpack.i.h.bf16 %v10083_v3  ;;  %v10084_v11 = vunpack.i.l.bf16 %v10083_v3 }
 0xfb1   : > { %v6127_v60 = vsel %vm2154_vm13, %v6112_v61, %v10080_v53  ;;  %v6126_v45 = vsel %vm2154_vm13, %v6111_v9, %v10079_v8  ;;  %v5117_v47 = vpop.f32.mrb[92].mxu1  ;;  %v5638_v8 = vsel %vm2238_vm3, %v5623_v20, %v9895_v5  ;;  %v5637_v28 = vsel %vm2238_vm3, %v5622_v62, %v9894_v1 }
 0xfb2   : > { %v6141_v34 = vsel %vm15170_vm14, %v6126_v45, 0.0  ;;  %v6142_v40 = vsel %vm15170_vm14, %v6127_v60, 0.0  ;;  %v5158_v29 = vadd.f32 %v14234_v13, %v5117_v47  ;;  %v5119_v44 = vpop.f32.mrb[93].mxu1  ;;  %v5653_v61 = vsel %vm1086_vm10, %v5638_v8, 0.0 }
 0xfb3   : > { %v6156_v43 = vsel %vm15171_vm15, %v6141_v34, %v10084_v11  ;;  %v6157_v4 = vsel %vm15171_vm15, %v6142_v40, %v10085_v46  ;;  %v5120_v37 = vpop.f32.mrb[94].mxu1  ;;  %v5652_v9 = vsel %vm1086_vm10, %v5637_v28, 0.0  ;;  %v9900_v46 = vunpack.i.h.bf16 %v14001_v6 }
 0xfb4   : > { %v6171_v12 = vsel %vm2217_vm1, %v6156_v43, 0.0  ;;  %v6172_v51 = vsel %vm2217_vm1, %v6157_v4, 0.0  ;;  %v5182_v7 = vadd.f32 %v13607_v33, %v5158_v29  ;;  %v5121_v32 = vpop.f32.mrb[95].mxu1  ;;  %v10095_v33 = vunpack.i.h.bf16 %v14288_v22 }
 0xfb5   : > { %v6186_v13 = vsel %vm2238_vm3, %v6171_v12, %v10089_v23  ;;  %v6187_v24 = vsel %vm2238_vm3, %v6172_v51, %v10090_v18  ;;  %v9899_v11 = vunpack.i.l.bf16 %v14001_v6  ;;  %v5668_v60 = vsel %vm3492_vm6, %v5653_v61, %v9900_v46 }
 0xfb6   : > { %v6201_v52 = vsel %vm1086_vm10, %v6186_v13, 0.0  ;;  %v6202_v55 = vsel %vm1086_vm10, %v6187_v24, 0.0  ;;  %v14382_v53 = vmax.f32 %v5182_v7, 0.0  ;;  %v10100_v45 = vunpack.i.h.bf16 %v14297_v50 }
 0xfb7   : > { %v6216_v42 = vsel %vm3492_vm6, %v6201_v52, %v10094_v25  ;;  %v6217_v3 = vsel %vm3492_vm6, %v6202_v55, %v10095_v33  ;;  %v5667_v5 = vsel %vm3492_vm6, %v5652_v9, %v9899_v11  ;;  %v10099_v47 = vunpack.i.l.bf16 %v14297_v50  ;;  %v5198_v33 = vld [vmem:[%s15118_s9] sm:$0x1] }
 0xfb8   : > { %5786 = vrot.lane.b32.xlu1 %v14382_v53, %s15265_s13  ;;  %5831 = vrot.lane.b32.xlu0 %v14382_v53, %s15267_s14  ;;  %v6231_v22 = vsel %vm3503_vm7, %v6216_v42, 0.0  ;;  %v6232_v39 = vsel %vm3503_vm7, %v6217_v3, 0.0  ;;  %v9905_v6 = vunpack.i.h.bf16 %v14005_v15  ;;  %v9904_v1 = vunpack.i.l.bf16 %v14005_v15 }
 0xfb9   : > { %v6246_v34 = vsel %vm3514_vm8, %v6231_v22, %v10099_v47  ;;  %v6247_v40 = vsel %vm3514_vm8, %v6232_v39, %v10100_v45  ;;  %v5682_v29 = vsel %vm3503_vm7, %v5667_v5, 0.0  ;;  %v5683_v44 = vsel %vm3503_vm7, %v5668_v60, 0.0 }
 0xfba   : > { %v10216_v18 = vpack.i.bf16 %v6247_v40, %v6246_v34  ;;  %v5697_v50 = vsel %vm3514_vm8, %v5682_v29, %v9904_v1  ;;  %v5698_v23 = vsel %vm3514_vm8, %v5683_v44, %v9905_v6  ;;  %v9910_v15 = vunpack.i.h.bf16 %v14010_v38 }
 0xfbb   : > { %v9909_v43 = vunpack.i.l.bf16 %v14010_v38  ;;  %v5713_v4 = vsel %vm15169_vm4, %v5697_v50, 0.0  ;;  %v10060_v51 = vunpack.i.h.bf16 %v14238_v2  ;;  %v10059_v7 = vunpack.i.l.bf16 %v14238_v2 }
 0xfbc   : > { %10197 = vrot.lane.b32.xlu1 %v13872_v35, %s15277_s4  ;;  %5876 = vrot.lane.b32.xlu0 %v14382_v53, %s15266_s15  ;;  %v14475_v25 = vpack.c.bf16 %v5198_v33, %v5198_v33 }
 0xfbd   : > { %v5729_v37 = vsel %vm15168_vm9, %v5713_v4, %v9909_v43 }
 0xfbe   : > { %v5745_v38 = vsel %vm5742_vm2, %v5729_v37, 0.0 }
 0xfbf   : > { %v14441_v13 = vsel %vm15173_vm5, %v5745_v38, %v10059_v7 }
 0xfc0   : > { %10207 = vrot.lane.b32.xlu1 %v13872_v35, %s15271_s17  ;;  %5921 = vrot.lane.b32.xlu0 %v14382_v53, %s15273_s1  ;;  %v5714_v35 = vsel %vm15169_vm4, %v5698_v23, 0.0  ;;  %vm15278_vm4 = vmmov 0  }
 0xfc1   : > { %v5730_v12 = vsel %vm15168_vm9, %v5714_v35, %v9910_v15  ;;  %vm15172_vm9 = vcmask 261120  }
 0xfc2   : > { %v5746_v32 = vsel %vm5742_vm2, %v5730_v12, 0.0 }
 0xfc3   : > { %v14438_v62 = vsel %vm15173_vm5, %v5746_v32, %v10060_v51 }
 0xfc4   : > { %10217 = vrot.lane.b32.xlu1 %v10216_v18, %s15276_s3  ;;  %5966 = vrot.lane.b32.xlu0 %v14382_v53, %s15268_s30  ;;  %v10246_v2 = vpack.i.bf16 %v14438_v62, %v14441_v13  ;;  %s8911_s30 = smul.u32 448, %s10585_s10  ;;  %s10500_s10 = smov [#allocation3]  }
 0xfc5   : > { %s10412_s15 = sshll.u32 %s10500_s10, 4  ;;  %s10413_s15 = int_to_ptr.vmem [resolvable:$false] %s10412_s15 }
 0xfc6   : > { %s10414_s13 = scalar_lea.vmem %s10413_s15, 896 }
 0xfc8   : > { %10227 = vrot.lane.b32.xlu1 %v14168_v59, %s15270_s12  ;;  %6011 = vrot.lane.b32.xlu0 %v14382_v53, %s15264_s16 }
 0xfcc   : > { %10237 = vrot.lane.b32.xlu1 %v14168_v59, %s15277_s4  ;;  %6056 = vrot.lane.b32.xlu0 %v14382_v53, %s15269_s26 }
 0xfd0   : > { %10247 = vrot.lane.b32.xlu1 %v10246_v2, %s15275_s18  ;;  %10222 = vrot.lane.b32.xlu0 %v14168_v59, %s15249_s25 }
 0xfd4   : > { %10257 = vrot.lane.b32.xlu1 %v14168_v59, %s15272_s0  ;;  %10232 = vrot.lane.b32.xlu0 %v14168_v59, %s15261_s23 }
 0xfd8   : > { %10267 = vrot.lane.b32.xlu1 %v14224_v48, %s15249_s25  ;;  %10242 = vrot.lane.b32.xlu0 %v14168_v59, %s15274_s2 }
 0xfdc   : > { %10277 = vrot.lane.b32.xlu1 %v14224_v48, %s15261_s23  ;;  %10252 = vrot.lane.b32.xlu0 %v14168_v59, %s15271_s17 }
 0xfdf   : > { %v10128_v24 = vpop.permute.xlu0 %10127 }
 0xfe0   : > { %10287 = vrot.lane.b32.xlu1 %v14224_v48, %s15274_s2  ;;  %v10130_v20 = vunpack.i.h.bf16 %v10128_v24  ;;  %v10129_v52 = vunpack.i.l.bf16 %v10128_v24 }
 0xfe2   : > { %v6389_v55 = vpack.c.bf16 %v10130_v20, %v14150_v36  ;;  %v6388_v8 = vpack.c.bf16 %v10129_v52, %v14153_v21 }
 0xfe3   : > { %v10133_v28 = vpop.permute.xlu0 %10132 }
 0xfe4   : > { %5464 = vrot.lane.b32.xlu1 %v14209_v56, %s15271_s17  ;;  %8686 = vmatpush3.bf16.msra.mxu0 %v6388_v8  ;;  %v10135_v22 = vunpack.i.h.bf16 %v10133_v28  ;;  %v10134_v39 = vunpack.i.l.bf16 %v10133_v28 }
 0xfe5   : > { %8702 = vmatpush3.bf16.msra.mxu1 %v6389_v55  ;;  %8687 = vmatprep.subr.bf16.mxu0 %v15253_v17 }
 0xfe6   : > { %8703 = vmatprep.subr.bf16.mxu1 %v15253_v17 }
 0xfe7   : > { %v10138_v59 = vpop.permute.xlu0 %10137 }
 0xfe8   : > { %5288 = vrot.lane.b32.xlu1 %v14382_v53, %s15270_s12  ;;  %8688 = vmatpush3.bf16.msra.mxu0 %v12325_v0  ;;  %v10140_v47 = vunpack.i.h.bf16 %v10138_v59  ;;  %v10139_v6 = vunpack.i.l.bf16 %v10138_v59 }
 0xfe9   : > { %8704 = vmatpush3.bf16.msra.mxu1 %v12325_v0  ;;  %8693 = vmatprep.subr.bf16.mxu0 %v15253_v17 }
 0xfea   : > { %8717 = vmatprep.subr.bf16.mxu1 %v15253_v17 }
 0xfeb   : > { %v10143_v36 = vpop.permute.xlu0 %10142  ;;  %8690 = vmatmul.mubr.msk.bf16.vlgmr.msra.gmra.mrb[96].mxu0 %vm15172_vm9, %v14475_v25 }
 0xfec   : > { %5333 = vrot.lane.b32.xlu1 %v14382_v53, %s15261_s23  ;;  %8694 = vmatpush3.bf16.msra.mxu0 %v12325_v0  ;;  %v10145_v29 = vunpack.i.h.bf16 %v10143_v36  ;;  %v10144_v50 = vunpack.i.l.bf16 %v10143_v36 }
 0xfed   : > { %8695 = vmatprep.subr.bf16.mxu0 %v15253_v17  ;;  %8697 = vmatprep.mubr.msk.bf16.mxu0 %vm15278_vm4, %v15253_v17 }
 0xfee   : > { %8706 = vmatmul.mubr.msk.bf16.vlgmr.msra.gmra.mrb[96].mxu1 %vm15172_vm9, %v14475_v25 }
 0xfef   : > { %v10148_v21 = vpop.permute.xlu0 %10147  ;;  %8721 = vmatprep.mubr.msk.bf16.mxu1 %vm15278_vm4, %v15253_v17 }
 0xff0   : > { %8696 = vmatpush3.bf16.msra.mxu0 %v6389_v55  ;;  %v10150_v37 = vunpack.i.h.bf16 %v10148_v21  ;;  %v10149_v12 = vunpack.i.l.bf16 %v10148_v21 }
 0xff1   : > { %8709 = vmatprep.subr.bf16.mxu0 %v15253_v17 }
 0xff3   : > { %v10153_v42 = vpop.permute.xlu0 %10152  ;;  %8698 = vmatmul.mubr.msk.bf16.vlgmr.msra.gmra.mrb[100].mxu0 %vm15172_vm9, %v14475_v25 }
 0xff4   : > { %8710 = vmatpush3.bf16.msra.mxu0 %v12325_v0  ;;  %8713 = vmatprep.mubr.msk.bf16.mxu0 %vm15278_vm4, %v15253_v17  ;;  %v10155_v32 = vunpack.i.h.bf16 %v10153_v42  ;;  %v10154_v52 = vunpack.i.l.bf16 %v10153_v42 }
 0xff5   : > { %8711 = vmatprep.subr.bf16.mxu0 %v15253_v17 }
 0xff7   : > { %v14502_v3 = vpop.permute.xlu1 %10112  ;;  %v10158_v61 = vpop.permute.xlu0 %10157 }
 0xff8   : > { %v10160_v21 = vunpack.i.h.bf16 %v10158_v61 }
 0xffb   : > { %v10118_v9 = vpop.permute.xlu1 %10117  ;;  %v10163_v45 = vpop.permute.xlu0 %10162 }
 0xffc   : > { %v10120_v46 = vunpack.i.h.bf16 %v10118_v9  ;;  %v10119_v11 = vunpack.i.l.bf16 %v10118_v9  ;;  %v10164_v43 = vunpack.i.l.bf16 %v10163_v45  ;;  %v10159_v9 = vunpack.i.l.bf16 %v10158_v61 }
 0xffe   : > { %v6084_v5 = vsel %vm641_vm0, %v10120_v46, 0.0  ;;  %v6083_v60 = vsel %vm641_vm0, %v10119_v11, 0.0  ;;  %v6085_v55 = vsel %vm641_vm0, %v10164_v43, 0.0  ;;  %v10165_v43 = vunpack.i.h.bf16 %v10163_v45 }
 0xfff   : > { %v6098_v1 = vsel %vm2112_vm11, %v6083_v60, %v10134_v39  ;;  %v6099_v34 = vsel %vm2112_vm11, %v6084_v5, %v10135_v22  ;;  %v14508_v40 = vpop.permute.xlu1 %10122 }
0x1000   : > { %v6113_v44 = vsel %vm2133_vm12, %v6098_v1, 0.0  ;;  %v6114_v18 = vsel %vm2133_vm12, %v6099_v34, 0.0 }
0x1001   : > { %v6128_v23 = vsel %vm2154_vm13, %v6113_v44, %v10139_v6  ;;  %v6129_v15 = vsel %vm2154_vm13, %v6114_v18, %v10140_v47 }
0x1002   : > { %v6143_v4 = vsel %vm15170_vm14, %v6128_v23, 0.0  ;;  %v6144_v35 = vsel %vm15170_vm14, %v6129_v15, 0.0 }
0x1003   : > { %v6158_v51 = vsel %vm15171_vm15, %v6143_v4, %v10144_v50  ;;  %v6159_v7 = vsel %vm15171_vm15, %v6144_v35, %v10145_v29  ;;  %v10168_v38 = vpop.permute.xlu1 %10167 }
0x1004   : > { %v6173_v2 = vsel %vm2217_vm1, %v6158_v51, 0.0  ;;  %v6174_v24 = vsel %vm2217_vm1, %v6159_v7, 0.0  ;;  %v10169_v20 = vunpack.i.l.bf16 %v10168_v38  ;;  %v10170_v35 = vunpack.i.h.bf16 %v10168_v38 }
0x1005   : > { %v6188_v8 = vsel %vm2238_vm3, %v6173_v2, %v10149_v12  ;;  %v6189_v28 = vsel %vm2238_vm3, %v6174_v24, %v10150_v37  ;;  %v10291_v7 = vpack.i.bf16 %v14336_v10, %v14339_v49 }
0x1006   : > { %v6100_v33 = vsel %vm2112_vm11, %v6085_v55, %v10169_v20  ;;  %v6203_v59 = vsel %vm1086_vm10, %v6188_v8, 0.0  ;;  %v6204_v36 = vsel %vm1086_vm10, %v6189_v28, 0.0 }
0x1007   : > { %v10173_v46 = vpop.permute.xlu1 %10172  ;;  %v6218_v11 = vsel %vm3492_vm6, %v6203_v59, %v10154_v52  ;;  %v6219_v22 = vsel %vm3492_vm6, %v6204_v36, %v10155_v32  ;;  %v6115_v60 = vsel %vm2133_vm12, %v6100_v33, 0.0  ;;  %v6086_v32 = vsel %vm641_vm0, %v10165_v43, 0.0 }
0x1008   : > { %v10174_v42 = vunpack.i.l.bf16 %v10173_v46  ;;  %v6233_v39 = vsel %vm3503_vm7, %v6218_v11, 0.0  ;;  %v6234_v5 = vsel %vm3503_vm7, %v6219_v22, 0.0  ;;  %v6101_v24 = vsel %vm2112_vm11, %v6086_v32, %v10170_v35 }
0x1009   : > { %v6248_v47 = vsel %vm3514_vm8, %v6233_v39, %v10159_v9  ;;  %v6249_v6 = vsel %vm3514_vm8, %v6234_v5, %v10160_v21  ;;  %v10175_v45 = vunpack.i.h.bf16 %v10173_v46  ;;  %v10203_v21 = vpop.permute.xlu0 %10202  ;;  %v10105_v9 = vunpack.i.h.bf16 %v14314_v30 }
0x100a   : > { %v6130_v1 = vsel %vm2154_vm13, %v6115_v60, %v10174_v42  ;;  %v10261_v34 = vpack.i.bf16 %v6249_v6, %v6248_v47  ;;  %v5539_v42 = vsel %vm641_vm0, %v5192_v26, 0.0  ;;  %v10110_v5 = vunpack.i.h.bf16 %v14332_v31 }
0x100b   : > { %v10178_v61 = vpop.permute.xlu1 %10177  ;;  %v6145_v44 = vsel %vm15170_vm14, %v6130_v1, 0.0  ;;  %v5554_v39 = vsel %vm2112_vm11, %v5539_v42, %v10105_v9  ;;  %v10125_v1 = vunpack.i.h.bf16 %v14508_v40  ;;  %v10124_v31 = vunpack.i.l.bf16 %v14508_v40 }
0x100c   : > { %v10179_v29 = vunpack.i.l.bf16 %v10178_v61  ;;  %10262 = vrot.lane.b32.xlu0 %v10261_v34, %s15276_s3  ;;  %v10180_v28 = vunpack.i.h.bf16 %v10178_v61  ;;  %v5569_v54 = vsel %vm2133_vm12, %v5554_v39, 0.0 }
0x100d   : > { %v14575_v30 = vpop.permute.xlu0 %10212  ;;  %v5584_v26 = vsel %vm2154_vm13, %v5569_v54, %v10110_v5  ;;  %v5750_v5 = vsel %vm5742_vm2, %v14278_v14, 0.0 }
0x100e   : > { %v6160_v18 = vsel %vm15171_vm15, %v6145_v44, %v10179_v29  ;;  %v10114_v44 = vunpack.i.l.bf16 %v14502_v3  ;;  %v10215_v42 = vunpack.i.h.bf16 %v14575_v30 }
0x100f   : > { %v10183_v50 = vpop.permute.xlu1 %10182  ;;  %v6175_v15 = vsel %vm2217_vm1, %v6160_v18, 0.0 }
0x1010   : > { %v10184_v23 = vunpack.i.l.bf16 %v10183_v50  ;;  %10272 = vrot.lane.b32.xlu0 %v14224_v48, %s15270_s12  ;;  %v10185_v36 = vunpack.i.h.bf16 %v10183_v50  ;;  %s15057_s12 = scalar_lea.hbm %s15120_s11, %s8911_s30 }
0x1012   : > { %v6190_v4 = vsel %vm2238_vm3, %v6175_v15, %v10184_v23  ;;  %v5598_v23 = vsel %vm15170_vm14, %v14345_v58, 0.0  ;;  %v5599_v15 = vsel %vm15170_vm14, %v5584_v26, 0.0 }
0x1013   : > { %v10188_v37 = vpop.permute.xlu1 %10187  ;;  %v6205_v51 = vsel %vm1086_vm10, %v6190_v4, 0.0  ;;  %v5614_v40 = vsel %vm15171_vm15, %v5599_v15, %v10125_v1  ;;  %v5613_v4 = vsel %vm15171_vm15, %v5598_v23, %v10124_v31  ;;  %v10214_v23 = vunpack.i.l.bf16 %v14575_v30 }
0x1014   : > { %v10189_v12 = vunpack.i.l.bf16 %v10188_v37  ;;  %10282 = vrot.lane.b32.xlu0 %v14224_v48, %s15277_s4  ;;  %v6116_v48 = vsel %vm2133_vm12, %v6101_v24, 0.0  ;;  %v10190_v22 = vunpack.i.h.bf16 %v10188_v37  ;;  %v5629_v24 = vsel %vm2217_vm1, %v5614_v40, 0.0 }
0x1015   : > { %v6131_v8 = vsel %vm2154_vm13, %v6116_v48, %v10175_v45  ;;  %v5628_v45 = vsel %vm2217_vm1, %v5613_v4, 0.0  ;;  %v10115_v48 = vunpack.i.h.bf16 %v14502_v3 }
0x1016   : > { %v6220_v2 = vsel %vm3492_vm6, %v6205_v51, %v10189_v12  ;;  %v6146_v33 = vsel %vm15170_vm14, %v6131_v8, 0.0  ;;  %v5749_v51 = vsel %vm5742_vm2, %v14275_v57, 0.0 }
0x1017   : > { %v10193_v20 = vpop.permute.xlu1 %10192  ;;  %v6235_v38 = vsel %vm3503_vm7, %v6220_v2, 0.0  ;;  %v6161_v59 = vsel %vm15171_vm15, %v6146_v33, %v10180_v28  ;;  %v14603_v2 = vsel %vm15173_vm5, %v5749_v51, %v10114_v44  ;;  %v14629_v26 = vsel %vm15173_vm5, %v5750_v5, %v10115_v48 }
0x1018   : > { %v10194_v52 = vunpack.i.l.bf16 %v10193_v20  ;;  %10292 = vrot.lane.b32.xlu0 %v10291_v7, %s15275_s18  ;;  %v6176_v46 = vsel %vm2217_vm1, %v6161_v59, 0.0  ;;  %v10195_v6 = vunpack.i.h.bf16 %v10193_v20  ;;  %v10205_v20 = vunpack.i.h.bf16 %v10203_v21 }
0x1019   : > { %v6191_v11 = vsel %vm2238_vm3, %v6176_v46, %v10185_v36 }
0x101a   : > { %v6250_v55 = vsel %vm3514_vm8, %v6235_v38, %v10194_v52  ;;  %v6206_v60 = vsel %vm1086_vm10, %v6191_v11, 0.0  ;;  %v10204_v52 = vunpack.i.l.bf16 %v10203_v21 }
0x101b   : > { %6292 = vrot.lane.b32.xlu1 %v6250_v55, %s15276_s3  ;;  %v6221_v47 = vsel %vm3492_vm6, %v6206_v60, %v10190_v22 }
0x101c   : > { %5509 = vrot.lane.b32.xlu0 %v14209_v56, %s15272_s0  ;;  %v6236_v29 = vsel %vm3503_vm7, %v6221_v47, 0.0 }
0x101d   : > { %v6251_v50 = vsel %vm3514_vm8, %v6236_v29, %v10195_v6 }
0x101f   : > { %5378 = vrot.lane.b32.xlu1 %v14382_v53, %s15277_s4 }
0x1020   : > { %5466 = vrot.lane.b32.xlu0 %v14207_v63, %s15271_s17 }
0x1023   : > { %5423 = vrot.lane.b32.xlu1 %v14382_v53, %s15274_s2 }
0x1024   : > { %5511 = vrot.lane.b32.xlu0 %v14207_v63, %s15272_s0 }
0x1027   : > { %5468 = vrot.lane.b32.xlu1 %v14382_v53, %s15271_s17 }
0x1028   : > { %5243 = vrot.lane.b32.xlu0 %v14382_v53, %s15249_s25 }
0x102a   : > { %v5787_v34 = vpop.permute.xlu1 %5786  ;;  %v5832_v61 = vpop.permute.xlu0 %5831 }
0x102b   : > { %v6087_v18 = vsel %vm641_vm0, %v5787_v34, 0.0 }
0x102c   : > { %v6102_v43 = vsel %vm2112_vm11, %v6087_v18, %v5832_v61  ;;  %6294 = vrot.lane.b32.xlu0 %v6251_v50, %s15276_s3 }
0x102d   : > { %v6117_v35 = vsel %vm2133_vm12, %v6102_v43, 0.0 }
0x102e   : > { %v10198_v37 = vpop.permute.xlu1 %10197  ;;  %v5877_v12 = vpop.permute.xlu0 %5876 }
0x102f   : > { %v10200_v7 = vunpack.i.h.bf16 %v10198_v37  ;;  %v10199_v32 = vunpack.i.l.bf16 %v10198_v37  ;;  %v6132_v58 = vsel %vm2154_vm13, %v6117_v35, %v5877_v12 }
0x1030   : > { %6354 = vrot.lane.b32.xlu0 %v14603_v2, %s15275_s18  ;;  %v6147_v28 = vsel %vm15170_vm14, %v6132_v58, 0.0  ;;  %vm15279_vm14 = vcmask 105472  }
0x1031   : > { %v5643_v38 = vsel %vm2238_vm3, %v5628_v45, %v10199_v32  ;;  %v5644_v57 = vsel %vm2238_vm3, %v5629_v24, %v10200_v7 }
0x1032   : > { %v5658_v55 = vsel %vm1086_vm10, %v5643_v38, 0.0  ;;  %v5659_v8 = vsel %vm1086_vm10, %v5644_v57, 0.0  ;;  %v10208_v33 = vpop.permute.xlu1 %10207  ;;  %v5922_v59 = vpop.permute.xlu0 %5921  ;;  %v5540_v38 = vsel %vm641_vm0, %v5193_v19, 0.0  ;;  %v5541_v57 = vsel %vm641_vm0, %v5194_v16, 0.0 }
0x1033   : > { %v10210_v36 = vunpack.i.h.bf16 %v10208_v33  ;;  %v10209_v9 = vunpack.i.l.bf16 %v10208_v33  ;;  %v5673_v46 = vsel %vm3492_vm6, %v5658_v55, %v10204_v52  ;;  %v5674_v21 = vsel %vm3492_vm6, %v5659_v8, %v10205_v20 }
0x1034   : > { %v5688_v11 = vsel %vm3503_vm7, %v5673_v46, 0.0  ;;  %v5689_v22 = vsel %vm3503_vm7, %v5674_v21, 0.0  ;;  %v6162_v3 = vsel %vm15171_vm15, %v6147_v28, %v5922_v59  ;;  %5513 = vrot.lane.b32.xlu0 %v14382_v53, %s15272_s0  ;;  %vm15280_vm15 = vcmask 113664   ;;  %s377_s0 = sand.u32 1, %s10462_s20  }
0x1035   : > { %v5704_v39 = vsel %vm3514_vm8, %v5689_v22, %v10210_v36  ;;  %v6177_v47 = vsel %vm2217_vm1, %v6162_v3, 0.0  ;;  %v5703_v1 = vsel %vm3514_vm8, %v5688_v11, %v10209_v9  ;;  %s8909_s2 = smul.u32 28, %s377_s0  ;;  %s15065_s23 = scalar_lea.sflag [#allocation4], %s377_s0 }
0x1036   : > { %v5720_v60 = vsel %vm15279_vm14, %v5704_v39, 0.0  ;;  %v10218_v6 = vpop.permute.xlu1 %10217  ;;  %v5967_v54 = vpop.permute.xlu0 %5966  ;;  %v5719_v29 = vsel %vm15279_vm14, %v5703_v1, 0.0  ;;  %vm15281_vm14 = vcmask 39936  }
0x1037   : > { %v10220_v31 = vunpack.i.h.bf16 %v10218_v6  ;;  %v6192_v34 = vsel %vm2238_vm3, %v6177_v47, %v5967_v54  ;;  %v5736_v61 = vsel %vm15280_vm15, %v5720_v60, %v10215_v42  ;;  %v5735_v40 = vsel %vm15280_vm15, %v5719_v29, %v10214_v23  ;;  %vm15282_vm15 = vmmov %vm15281_vm14  ;;  %s14975_s4 = scalar_lea.vmem [#allocation3], %s8909_s2 }
0x1038   : > { %6356 = vrot.lane.b32.xlu0 %v14629_v26, %s15275_s18  ;;  %v5752_v14 = vsel %vm5742_vm2, %v5736_v61, 0.0  ;;  %v6207_v44 = vsel %vm1086_vm10, %v6192_v34, 0.0  ;;  %v10219_v12 = vunpack.i.l.bf16 %v10218_v6  ;;  %v5751_v30 = vsel %vm5742_vm2, %v5735_v40, 0.0  ;;  %s7776_s17 = sshll.u32 %s14975_s4, 4  ;;  %s15059_s17 = int_to_ptr.vmem [resolvable:$true] %s7776_s17 }
0x1039   : > { %v14642_v43 = vsel %vm15173_vm5, %v5752_v14, %v10220_v31  ;;  %s10408_s16 = scalar_lea.vmem %s15059_s17, 448  ;;  %p10415_p0 = scmp.lt.s32.totalorder %s15059_s17, %s10413_s15 }
0x103a   : > { %v10228_v18 = vpop.permute.xlu1 %10227  ;;  %v6012_v50 = vpop.permute.xlu0 %6011  ;;  %v14654_v58 = vsel %vm15173_vm5, %v5751_v30, %v10219_v12  ;;  %p10409_p11 = scmp.ne.s32.totalorder %s15059_s17, %s10408_s16  ;;  %p10416_p1 = scmp.lt.s32.totalorder %s10414_s13, %s10408_s16 }
0x103b   : > { %v6222_v15 = vsel %vm3492_vm6, %v6207_v44, %v6012_v50  ;;  %v10230_v33 = vunpack.i.h.bf16 %v10228_v18  ;;  %v10229_v59 = vunpack.i.l.bf16 %v10228_v18 }
0x103c   : > { %6360 = vrot.lane.b32.xlu0 %v14642_v43, %s15275_s18  ;;  %v6237_v4 = vsel %vm3503_vm7, %v6222_v15, 0.0  ;;  %p10410_p12 = pnand %p10409_p11, %p10602_p5  ;;  %p10417_p2 = por %p10416_p1, %p10415_p0 }
0x103e   : > { %v14648_v35 = vpop.permute.xlu1 %10237  ;;  %v6057_v37 = vpop.permute.xlu0 %6056  ;;  %p10411_p13 = pneg %p10410_p12 }
0x103f   : > { %v6252_v51 = vsel %vm3514_vm8, %v6237_v4, %v6057_v37  ;;  %v10240_v5 = vunpack.i.h.bf16 %v14648_v35  ;;  %v10239_v60 = vunpack.i.l.bf16 %v14648_v35 }
0x1040   : > { %6296 = vrot.lane.b32.xlu1 %v6252_v51, %s15276_s3  ;;  %p10418_p3 = pnand %p10417_p2, %p10411_p13 }
0x1042   : > { %v10248_v7 = vpop.permute.xlu1 %10247 }
0x1043   : > { %v10249_v32 = vunpack.i.l.bf16 %v10248_v7  ;;  %v10250_v45 = vunpack.i.h.bf16 %v10248_v7 }
0x1044   : > { %6358 = vrot.lane.b32.xlu1 %v14654_v58, %s15275_s18 }
0x1045   : > { %v6390_v24 = vpack.c.bf16 %v10249_v32, %v14441_v13  ;;  %v6391_v13 = vpack.c.bf16 %v10250_v45, %v14438_v62  ;;  %v10223_v62 = vpop.permute.xlu0 %10222 }
0x1046   : > { %v10225_v20 = vunpack.i.h.bf16 %v10223_v62  ;;  %v10224_v52 = vunpack.i.l.bf16 %v10223_v62  ;;  %v10258_v22 = vpop.permute.xlu1 %10257 }
0x1047   : > { %8712 = vmatpush3.bf16.msra.mxu0 %v6390_v24  ;;  %8718 = vmatpush3.bf16.msra.mxu1 %v6390_v24  ;;  %v10260_v30 = vunpack.i.h.bf16 %v10258_v22  ;;  %v10259_v7 = vunpack.i.l.bf16 %v10258_v22 }
0x1048   : > { %8719 = vmatprep.subr.bf16.mxu1 %v15253_v17  ;;  %8725 = vmatprep.subr.bf16.mxu0 %v15253_v17  ;;  %v5556_v48 = vsel %vm2112_vm11, %v5541_v57, %v10225_v20  ;;  %v5555_v55 = vsel %vm2112_vm11, %v5540_v38, %v10224_v52  ;;  %v5542_v38 = vsel %vm641_vm0, %v14209_v56, 0.0  ;;  %v5543_v57 = vsel %vm641_vm0, %v14207_v63, 0.0 }
0x1049   : > { %v5571_v8 = vsel %vm2133_vm12, %v5556_v48, 0.0  ;;  %v5570_v28 = vsel %vm2133_vm12, %v5555_v55, 0.0  ;;  %v10233_v36 = vpop.permute.xlu0 %10232 }
0x104a   : > { %8714 = vmatmul.mubr.msk.bf16.vlgmr.msra.gmra.mrb[104].mxu0 %vm15172_vm9, %v14475_v25  ;;  %v5585_v9 = vsel %vm2154_vm13, %v5570_v28, %v10229_v59  ;;  %v5586_v41 = vsel %vm2154_vm13, %v5571_v8, %v10230_v33  ;;  %v10235_v19 = vunpack.i.h.bf16 %v10233_v36  ;;  %v10234_v46 = vunpack.i.l.bf16 %v10233_v36  ;;  %v10268_v54 = vpop.permute.xlu1 %10267 }
0x104b   : > { %8720 = vmatpush3.bf16.msra.mxu1 %v12325_v0  ;;  %8726 = vmatpush3.bf16.msra.mxu0 %v12325_v0  ;;  %v5600_v27 = vsel %vm15281_vm14, %v5585_v9, 0.0  ;;  %v5601_v16 = vsel %vm15282_vm15, %v5586_v41, 0.0  ;;  %v10270_v32 = vunpack.i.h.bf16 %v10268_v54  ;;  %v10269_v24 = vunpack.i.l.bf16 %v10268_v54 }
0x104c   : > { %8727 = vmatprep.subr.bf16.mxu0 %v15253_v17  ;;  %8733 = vmatprep.subr.bf16.mxu1 %v15253_v17  ;;  %vm15287_vm14 = vcmask 113664  }
0x104d   : > { %8729 = vmatprep.mubr.msk.bf16.mxu0 %vm15278_vm4, %v15253_v17  ;;  %v10243_v39 = vpop.permute.xlu0 %10242  ;;  %vm15288_vm15 = vmmov %vm15287_vm14  ;;  %v5558_v28 = vsel %vm2112_vm11, %v5543_v57, %v10270_v32  ;;  %v5557_v33 = vsel %vm2112_vm11, %v5542_v38, %v10269_v24 }
0x104e   : > { %8722 = vmatmul.mubr.msk.bf16.vlgmr.msra.gmra.mrb[100].mxu1 %vm15172_vm9, %v14475_v25  ;;  %v10245_v1 = vunpack.i.h.bf16 %v10243_v39  ;;  %v10244_v31 = vunpack.i.l.bf16 %v10243_v39  ;;  %v10278_v23 = vpop.permute.xlu1 %10277  ;;  %v5573_v41 = vsel %vm2133_vm12, %v5558_v28, 0.0 }
0x104f   : > { %8728 = vmatpush3.bf16.msra.mxu0 %v6391_v13  ;;  %8734 = vmatpush3.bf16.msra.mxu1 %v6391_v13 }
0x1050   : > { %8735 = vmatprep.subr.bf16.mxu1 %v15253_v17  ;;  %8741 = vmatprep.subr.bf16.mxu0 %v15253_v17 }
0x1051   : > { %8737 = vmatprep.mubr.msk.bf16.mxu1 %vm15278_vm4, %v15253_v17  ;;  %v10253_v14 = vpop.permute.xlu0 %10252 }
0x1052   : > { %8730 = vmatmul.mubr.msk.bf16.vlgmr.msra.gmra.mrb[108].mxu0 %vm15172_vm9, %v14475_v25  ;;  %v10255_v18 = vunpack.i.h.bf16 %v10253_v14  ;;  %v10254_v50 = vunpack.i.l.bf16 %v10253_v14  ;;  %v14720_v51 = vpop.permute.xlu1 %10287 }
0x1053   : > { %8736 = vmatpush3.bf16.msra.mxu1 %v12325_v0  ;;  %8742 = vmatpush3.bf16.msra.mxu0 %v12325_v0 }
0x1054   : > { %8743 = vmatprep.subr.bf16.mxu0 %v15253_v17  ;;  %8749 = vmatprep.subr.bf16.mxu1 %v15253_v17 }
0x1055   : > { %8745 = vmatprep.mubr.msk.bf16.mxu0 %vm15278_vm4, %v15253_v17 }
0x1056   : > { %8738 = vmatmul.mubr.msk.bf16.vlgmr.msra.gmra.mrb[104].mxu1 %vm15172_vm9, %v14475_v25  ;;  %vm15283_vm9 = vcmask 48128   ;;  %v5465_v48 = vpop.permute.xlu1 %5464 }
0x1057   : > { %8753 = vmatprep.mubr.msk.bf16.mxu1 %vm15278_vm4, %v15253_v17  ;;  %v5615_v21 = vsel %vm15283_vm9, %v5600_v27, %v10234_v46  ;;  %vm15284_vm5 = vmmov %vm15283_vm9  ;;  %v10280_v46 = vunpack.i.h.bf16 %v10278_v23  ;;  %v10279_v27 = vunpack.i.l.bf16 %v10278_v23 }
0x1058   : > { %v5616_v11 = vsel %vm15284_vm5, %v5601_v16, %v10235_v19  ;;  %v5630_v3 = vsel %vm2217_vm1, %v5615_v21, 0.0  ;;  %vm15285_vm5 = vcmask 105472   ;;  %v5572_v19 = vsel %vm2133_vm12, %v5557_v33, 0.0 }
0x1059   : > { %v5631_v42 = vsel %vm2217_vm1, %v5616_v11, 0.0  ;;  %v5645_v47 = vsel %vm2238_vm3, %v5630_v3, %v10239_v60  ;;  %vm15286_vm9 = vmmov %vm15285_vm5 }
0x105a   : > { %v5646_v6 = vsel %vm2238_vm3, %v5631_v42, %v10240_v5  ;;  %v5660_v34 = vsel %vm1086_vm10, %v5645_v47, 0.0  ;;  %v14746_v11 = vpop.permute.xlu1 %5288 }
0x105b   : > { %v5661_v61 = vsel %vm1086_vm10, %v5646_v6, 0.0  ;;  %v5675_v29 = vsel %vm3492_vm6, %v5660_v34, %v10244_v31  ;;  %v10289_v6 = vunpack.i.l.bf16 %v14720_v51 }
0x105c   : > { %v5676_v44 = vsel %vm3492_vm6, %v5661_v61, %v10245_v1  ;;  %v5690_v15 = vsel %vm3503_vm7, %v5675_v29, 0.0 }
0x105d   : > { %v5691_v40 = vsel %vm3503_vm7, %v5676_v44, 0.0  ;;  %v5705_v4 = vsel %vm3514_vm8, %v5690_v15, %v10254_v50 }
0x105e   : > { %v5706_v35 = vsel %vm3514_vm8, %v5691_v40, %v10255_v18  ;;  %v5721_v37 = vsel %vm15285_vm5, %v5705_v4, 0.0  ;;  %vm15289_vm5 = vcmask 130048   ;;  %v5334_v44 = vpop.permute.xlu1 %5333 }
0x105f   : > { %v5722_v12 = vsel %vm15286_vm9, %v5706_v35, 0.0  ;;  %v5737_v13 = vsel %vm15288_vm15, %v5721_v37, %v10259_v7  ;;  %vm15290_vm9 = vmmov %vm15289_vm5 }
0x1060   : > { %v5738_v45 = vsel %vm15287_vm14, %v5722_v12, %v10260_v30  ;;  %v5753_v8 = vsel %vm5742_vm2, %v5737_v13, 0.0  ;;  %vm15291_vm14 = vcmask 39936  }
0x1061   : > { %v5754_v55 = vsel %vm5742_vm2, %v5738_v45, 0.0  ;;  %vm15292_vm15 = vmmov %vm15291_vm14 }
0x107e   : > { %v10263_v62 = vpop.permute.xlu0 %10262 }
0x107f   : > { %v10265_v20 = vunpack.i.h.bf16 %v10263_v62  ;;  %v10264_v52 = vunpack.i.l.bf16 %v10263_v62 }
0x1081   : > { %v14733_v59 = vsel %vm15289_vm5, %v5754_v55, %v10265_v20  ;;  %v14736_v36 = vsel %vm15290_vm9, %v5753_v8, %v10264_v52  ;;  %vm15293_vm5 = vcmask 48128   ;;  %v5544_v52 = vsel %vm641_vm0, %v14382_v53, 0.0 }
0x1082   : > { %v10273_v9 = vpop.permute.xlu0 %10272  ;;  %6364 = vrot.lane.b32.xlu0 %v14733_v59, %s15275_s18  ;;  %6362 = vrot.lane.b32.xlu1 %v14736_v36, %s15275_s18  ;;  %vm15294_vm9 = vmmov %vm15293_vm5  ;;  %vm15303_vm0 = vcmask 39936  }
0x1083   : > { %v10275_v63 = vunpack.i.h.bf16 %v10273_v9  ;;  %v10274_v56 = vunpack.i.l.bf16 %v10273_v9 }
0x1085   : > { %v5588_v16 = vsel %vm2154_vm13, %v5573_v41, %v10275_v63  ;;  %v5587_v21 = vsel %vm2154_vm13, %v5572_v19, %v10274_v56  ;;  %v5199_v19 = vld [vmem:[#allocation2] sm:$0x1] }
0x1086   : > { %v5603_v22 = vsel %vm15291_vm14, %v5588_v16, 0.0  ;;  %v5602_v3 = vsel %vm15292_vm15, %v5587_v21, 0.0  ;;  %v10283_v42 = vpop.permute.xlu0 %10282  ;;  %vm15295_vm14 = vcmask 105472   ;;  %vm15296_vm15 = vcmask 113664  }
0x1087   : > { %v10284_v39 = vunpack.i.l.bf16 %v10283_v42  ;;  %v5617_v5 = vsel %vm15293_vm5, %v5602_v3, %v10279_v27  ;;  %v5618_v60 = vsel %vm15294_vm9, %v5603_v22, %v10280_v46  ;;  %v10285_v54 = vunpack.i.h.bf16 %v10283_v42 }
0x1088   : > { %v5632_v47 = vsel %vm2217_vm1, %v5617_v5, 0.0  ;;  %v5633_v31 = vsel %vm2217_vm1, %v5618_v60, 0.0  ;;  %vm15297_vm5 = vcmask 130048   ;;  %vm15298_vm9 = vcmask 261120  }
0x1089   : > { %v5647_v1 = vsel %vm2238_vm3, %v5632_v47, %v10284_v39  ;;  %v5648_v50 = vsel %vm2238_vm3, %v5633_v31, %v10285_v54 }
0x108a   : > { %v5662_v34 = vsel %vm1086_vm10, %v5647_v1, 0.0  ;;  %v10293_v61 = vpop.permute.xlu0 %10292  ;;  %v5663_v30 = vsel %vm1086_vm10, %v5648_v50, 0.0 }
0x108b   : > { %v10294_v14 = vunpack.i.l.bf16 %v10293_v61  ;;  %v5677_v29 = vsel %vm3492_vm6, %v5662_v34, %v10289_v6  ;;  %v10295_v7 = vunpack.i.h.bf16 %v10293_v61 }
0x108c   : > { %v5692_v18 = vsel %vm3503_vm7, %v5677_v29, 0.0 }
0x108d   : > { %v6392_v23 = vpack.c.bf16 %v10294_v14, %v14339_v49  ;;  %v5707_v15 = vsel %vm3514_vm8, %v5692_v18, %v5465_v48  ;;  %v6293_v37 = vpop.permute.xlu1 %6292  ;;  %v10290_v49 = vunpack.i.h.bf16 %v14720_v51  ;;  %v6393_v51 = vpack.c.bf16 %v10295_v7, %v14336_v10 }
0x108e   : > { %v5510_v40 = vpop.permute.xlu0 %5509  ;;  %v5723_v4 = vsel %vm15295_vm14, %v5707_v15, 0.0  ;;  %vm15299_vm14 = vmmov %vm15298_vm9 }
0x108f   : > { %v5739_v35 = vsel %vm15296_vm15, %v5723_v4, %v5510_v40  ;;  %8744 = vmatpush3.bf16.msra.mxu0 %v6392_v23  ;;  %8750 = vmatpush3.bf16.msra.mxu1 %v6392_v23  ;;  %v5678_v45 = vsel %vm3492_vm6, %v5663_v30, %v10290_v49  ;;  %vm15300_vm15 = vcmask 105472  }
0x1090   : > { %v5755_v12 = vsel %vm5742_vm2, %v5739_v35, 0.0  ;;  %8751 = vmatprep.subr.bf16.mxu1 %v15253_v17  ;;  %8757 = vmatprep.subr.bf16.mxu0 %v15253_v17  ;;  %v5693_v13 = vsel %vm3503_vm7, %v5678_v45, 0.0  ;;  %v7533_v45 = vlaneseq }
0x1091   : > { %v14770_v32 = vsel %vm15297_vm5, %v5755_v12, %v6293_v37  ;;  %vm15301_vm5 = vmmov %vm15298_vm9  ;;  %v5379_v55 = vpop.permute.xlu1 %5378 }
0x1092   : > { %v5467_v24 = vpop.permute.xlu0 %5466  ;;  %6366 = vrot.lane.b32.xlu1 %v14770_v32, %s15275_s18  ;;  %8746 = vmatmul.mubr.msk.bf16.vlgmr.msra.gmra.mrb[112].mxu0 %vm15298_vm9, %v14475_v25  ;;  %vm15302_vm9 = vcmask 113664  }
0x1093   : > { %8752 = vmatpush3.bf16.msra.mxu1 %v12325_v0  ;;  %8758 = vmatpush3.bf16.msra.mxu0 %v12325_v0  ;;  %v5708_v20 = vsel %vm3514_vm8, %v5693_v13, %v5467_v24 }
0x1094   : > { %8759 = vmatprep.subr.bf16.mxu0 %v15253_v17  ;;  %8765 = vmatprep.subr.bf16.mxu1 %v15253_v17  ;;  %v5724_v10 = vsel %vm15300_vm15, %v5708_v20, 0.0 }
0x1095   : > { %8761 = vmatprep.mubr.msk.bf16.mxu0 %vm15278_vm4, %v15253_v17  ;;  %v5424_v27 = vpop.permute.xlu1 %5423 }
0x1096   : > { %v5512_v62 = vpop.permute.xlu0 %5511  ;;  %8754 = vmatmul.mubr.msk.bf16.vlgmr.msra.gmra.mrb[108].mxu1 %vm15299_vm14, %v14475_v25  ;;  %vm15305_vm14 = vcmask 48128  }
0x1097   : > { %8760 = vmatpush3.bf16.msra.mxu0 %v6393_v51  ;;  %8766 = vmatpush3.bf16.msra.mxu1 %v6393_v51  ;;  %v5740_v57 = vsel %vm15302_vm9, %v5724_v10, %v5512_v62  ;;  %v7534_v51 = vshrl.u32 %v7533_v45, 7 }
0x1098   : > { %8767 = vmatprep.subr.bf16.mxu1 %v15253_v17  ;;  %8773 = vmatprep.subr.bf16.mxu0 %v15253_v17  ;;  %v5756_v28 = vsel %vm5742_vm2, %v5740_v57, 0.0 }
0x1099   : > { %8769 = vmatprep.mubr.msk.bf16.mxu1 %vm15278_vm4, %v15253_v17  ;;  %v5469_v39 = vpop.permute.xlu1 %5468  ;;  %v7535_v10 = vsub.s32 0, %v7534_v51 }
0x109a   : > { %v5244_v38 = vpop.permute.xlu0 %5243  ;;  %8762 = vmatmul.mubr.msk.bf16.vlgmr.msra.gmra.mrb[116].mxu0 %vm15301_vm5, %v14475_v25 }
0x109b   : > { %v5559_v48 = vsel %vm2112_vm11, %v5544_v52, %v5244_v38  ;;  %8768 = vmatpush3.bf16.msra.mxu1 %v12325_v0  ;;  %8774 = vmatpush3.bf16.msra.mxu0 %v12325_v0  ;;  %vm15304_vm11 = vmmov %vm15301_vm5 }
0x109c   : > { %v5574_v8 = vsel %vm2133_vm12, %v5559_v48, 0.0  ;;  %8775 = vmatprep.subr.bf16.mxu0 %v15253_v17  ;;  %8781 = vmatprep.subr.bf16.mxu1 %v15253_v17  ;;  %vm15306_vm12 = vcmask 130048  }
0x109d   : > { %v5589_v53 = vsel %vm2154_vm13, %v5574_v8, %v14746_v11  ;;  %8777 = vmatprep.mubr.msk.bf16.mxu0 %vm15278_vm4, %v15253_v17  ;;  %vm15307_vm13 = vmmov %vm15301_vm5 }
0x109e   : > { %v5604_v33 = vsel %vm15303_vm0, %v5589_v53, 0.0  ;;  %v6295_v9 = vpop.permute.xlu0 %6294  ;;  %8770 = vmatmul.mubr.msk.bf16.vlgmr.msra.gmra.mrb[112].mxu1 %vm15304_vm11, %v14475_v25 }
0x109f   : > { %v5619_v63 = vsel %vm15305_vm14, %v5604_v33, %v5334_v44  ;;  %v14814_v56 = vsel %vm15306_vm12, %v5756_v28, %v6295_v9  ;;  %8785 = vmatprep.mubr.msk.bf16.mxu1 %vm15278_vm4, %v15253_v17 }
0x10a0   : > { %v5634_v41 = vsel %vm2217_vm1, %v5619_v63, 0.0  ;;  %6368 = vrot.lane.b32.xlu0 %v14814_v56, %s15275_s18  ;;  %vm15309_vm1 = vmmov %vm15301_vm5 }
0x10a1   : > { %v5649_v46 = vsel %vm2238_vm3, %v5634_v41, %v5379_v55  ;;  %vm15310_vm3 = vmmov %vm15302_vm9 }
0x10a2   : > { %v6355_v16 = vpop.permute.xlu0 %6354  ;;  %v5664_v21 = vsel %vm1086_vm10, %v5649_v46, 0.0  ;;  %vm15308_vm10 = vmmov %vm15300_vm15 }
0x10a3   : > { %v6394_v11 = vpack.c.bf16 %v6355_v16, %v14603_v2  ;;  %v5679_v22 = vsel %vm3492_vm6, %v5664_v21, %v5424_v27  ;;  %vm15311_vm6 = vmmov %vm15309_vm1 }
0x10a4   : > { %7530 = vperm.xlu0 %9045, %v5199_v19   ;;  %v5694_v3 = vsel %vm3503_vm7, %v5679_v22, 0.0  ;;  %vm15312_vm7 = vmmov %vm15306_vm12 }
0x10a5   : > { %8776 = vmatpush3.bf16.msra.mxu0 %v6394_v11  ;;  %8782 = vmatpush3.bf16.msra.mxu1 %v6394_v11  ;;  %v5709_v5 = vsel %vm3514_vm8, %v5694_v3, %v5469_v39  ;;  %vm15313_vm8 = vmmov %vm15309_vm1 }
0x10a6   : > { %v5514_v42 = vpop.permute.xlu0 %5513  ;;  %8783 = vmatprep.subr.bf16.mxu1 %v15253_v17  ;;  %8789 = vmatprep.subr.bf16.mxu0 %v15253_v17  ;;  %v5725_v47 = vsel %vm15308_vm10, %v5709_v5, 0.0  ;;  %vm15315_vm15 = vmmov %vm15309_vm1 }
0x10a7   : > { %v5741_v6 = vsel %vm15310_vm3, %v5725_v47, %v5514_v42  ;;  %vm15316_vm5 = vmmov %vm15309_vm1 }
0x10a8   : > { %8778 = vmatmul.mubr.msk.bf16.vlgmr.msra.gmra.mrb[120].mxu0 %vm15307_vm13, %v14475_v25  ;;  %vm15317_vm9 = vmmov %vm15309_vm1 }
0x10a9   : > { %8784 = vmatpush3.bf16.msra.mxu1 %v12325_v0  ;;  %8790 = vmatpush3.bf16.msra.mxu0 %v12325_v0  ;;  %vm15318_vm0 = vmmov %vm15309_vm1 }
0x10aa   : > { %v6357_v2 = vpop.permute.xlu0 %6356  ;;  %8791 = vmatprep.subr.bf16.mxu0 %v15253_v17  ;;  %8797 = vmatprep.subr.bf16.mxu1 %v15253_v17  ;;  %vm15319_vm11 = vmmov %vm15318_vm0 }
0x10ab   : > { %v6395_v60 = vpack.c.bf16 %v6357_v2, %v14629_v26  ;;  %8793 = vmatprep.mubr.msk.bf16.mxu0 %vm15278_vm4, %v15253_v17  ;;  %v5757_v26 = vsel %vm5742_vm2, %v5741_v6, 0.0  ;;  %vm15314_vm2 = vmmov %vm15309_vm1 }
0x10ac   : > { %8786 = vmatmul.mubr.msk.bf16.vlgmr.msra.gmra.mrb[116].mxu1 %vm15309_vm1, %v14475_v25  ;;  %vm15320_vm14 = vmmov %vm15318_vm0 }
0x10ad   : > { %8792 = vmatpush3.bf16.msra.mxu0 %v6395_v60  ;;  %8798 = vmatpush3.bf16.msra.mxu1 %v6395_v60  ;;  %vm15321_vm12 = vmmov %vm15318_vm0 }
0x10ae   : > { %8799 = vmatprep.subr.bf16.mxu1 %v15253_v17  ;;  %8805 = vmatprep.subr.bf16.mxu0 %v15253_v17  ;;  %v6361_v61 = vpop.permute.xlu0 %6360  ;;  %vm15322_vm13 = vmmov %vm15318_vm0 }
0x10af   : > { %8801 = vmatprep.mubr.msk.bf16.mxu1 %vm15278_vm4, %v15253_v17  ;;  %vm15323_vm10 = vmmov %vm15318_vm0 }
0x10b0   : > { %8794 = vmatmul.mubr.msk.bf16.vlgmr.msra.gmra.mrb[124].mxu0 %vm15311_vm6, %v14475_v25  ;;  %vm15324_vm1 = vmmov %vm15318_vm0  ;;  %vm7733_vm6 = vcmask 221184  }
0x10b1   : > { %8800 = vmatpush3.bf16.msra.mxu1 %v12325_v0  ;;  %8806 = vmatpush3.bf16.msra.mxu0 %v12325_v0  ;;  %vm15325_vm3 = vmmov %vm15318_vm0 }
0x10b2   : > { %v6297_v54 = vpop.permute.xlu1 %6296  ;;  %8807 = vmatprep.subr.bf16.mxu0 %v15253_v17  ;;  %8813 = vmatprep.subr.bf16.mxu1 %v15253_v17 }
0x10b3   : > { %v14854_v1 = vsel %vm15312_vm7, %v5757_v26, %v6297_v54  ;;  %8809 = vmatprep.mubr.msk.bf16.mxu0 %vm15278_vm4, %v15253_v17 }
0x10b4   : > { %6385 = vrot.lane.b32.xlu1 %v14854_v1, %s15275_s18  ;;  %8802 = vmatmul.mubr.msk.bf16.vlgmr.msra.gmra.mrb[120].mxu1 %vm15313_vm8, %v14475_v25 }
0x10b5   : > { %8817 = vmatprep.mubr.msk.bf16.mxu1 %vm15278_vm4, %v15253_v17 }
0x10b6   : > { %v6359_v31 = vpop.permute.xlu1 %6358 }
0x10b7   : > { %v6396_v34 = vpack.c.bf16 %v6359_v31, %v14654_v58  ;;  %v6397_v58 = vpack.c.bf16 %v6361_v61, %v14642_v43 }
0x10b9   : > { %8808 = vmatpush3.bf16.msra.mxu0 %v6396_v34  ;;  %8814 = vmatpush3.bf16.msra.mxu1 %v6396_v34 }
0x10ba   : > { %8815 = vmatprep.subr.bf16.mxu1 %v15253_v17  ;;  %8821 = vmatprep.subr.bf16.mxu0 %v15253_v17 }
0x10bc   : > { %8810 = vmatmul.mubr.msk.bf16.vlgmr.msra.gmra.mrb[128].mxu0 %vm15314_vm2, %v14475_v25 }
0x10bd   : > { %8816 = vmatpush3.bf16.msra.mxu1 %v12325_v0  ;;  %8822 = vmatpush3.bf16.msra.mxu0 %v12325_v0 }
0x10be   : > { %8823 = vmatprep.subr.bf16.mxu0 %v15253_v17  ;;  %8829 = vmatprep.subr.bf16.mxu1 %v15253_v17  ;;  %v14873_v14 = vpop.f32.mrb[96].mxu0 }
0x10bf   : > { %8825 = vmatprep.mubr.msk.bf16.mxu0 %vm15278_vm4, %v15253_v17  ;;  %v8691_v29 = vpop.f32.mrb[97].mxu0 }
0x10c0   : > { %8818 = vmatmul.mubr.msk.bf16.vlgmr.msra.gmra.mrb[124].mxu1 %vm15315_vm15, %v14475_v25  ;;  %v6445_v44 = vpop.f32.mrb[98].mxu0 }
0x10c1   : > { %8824 = vmatpush3.bf16.msra.mxu0 %v6397_v58  ;;  %8830 = vmatpush3.bf16.msra.mxu1 %v6397_v58  ;;  %v8692_v18 = vpop.f32.mrb[99].mxu0  ;;  %v14880_v50 = vpop.f32.mrb[96].mxu1 }
0x10c2   : > { %8831 = vmatprep.subr.bf16.mxu1 %v15253_v17  ;;  %8837 = vmatprep.subr.bf16.mxu0 %v15253_v17  ;;  %v8707_v23 = vpop.f32.mrb[97].mxu1 }
0x10c3   : > { %8833 = vmatprep.mubr.msk.bf16.mxu1 %vm15278_vm4, %v15253_v17  ;;  %v6525_v43 = vpop.f32.mrb[98].mxu1 }
0x10c4   : > { %8826 = vmatmul.mubr.msk.bf16.vlgmr.msra.gmra.mrb[132].mxu0 %vm15316_vm5, %v14475_v25  ;;  %v8708_v15 = vpop.f32.mrb[99].mxu1 }
0x10c5   : > { %8832 = vmatpush3.bf16.msra.mxu1 %v12325_v0  ;;  %8838 = vmatpush3.bf16.msra.mxu0 %v12325_v0 }
0x10c6   : > { %8839 = vmatprep.subr.bf16.mxu0 %v15253_v17  ;;  %8845 = vmatprep.subr.bf16.mxu1 %v15253_v17  ;;  %v14892_v40 = vpop.f32.mrb[100].mxu0 }
0x10c7   : > { %8841 = vmatprep.mubr.msk.bf16.mxu0 %vm15278_vm4, %v15253_v17  ;;  %v8699_v4 = vpop.f32.mrb[101].mxu0 }
0x10c8   : > { %8834 = vmatmul.mubr.msk.bf16.vlgmr.msra.gmra.mrb[128].mxu1 %vm15317_vm9, %v14475_v25  ;;  %v6485_v35 = vpop.f32.mrb[102].mxu0 }
0x10c9   : > { %8849 = vmatprep.mubr.msk.bf16.mxu1 %vm15278_vm4, %v15253_v17  ;;  %v8700_v37 = vpop.f32.mrb[103].mxu0 }
0x10f4   : > { %v6363_v12 = vpop.permute.xlu1 %6362  ;;  %v6365_v49 = vpop.permute.xlu0 %6364 }
0x10f5   : > { %v6398_v30 = vpack.c.bf16 %v6363_v12, %v14736_v36  ;;  %v6399_v36 = vpack.c.bf16 %v6365_v49, %v14733_v59 }
0x10f7   : > { %8840 = vmatpush3.bf16.msra.mxu0 %v6398_v30  ;;  %8846 = vmatpush3.bf16.msra.mxu1 %v6398_v30 }
0x10f8   : > { %8847 = vmatprep.subr.bf16.mxu1 %v15253_v17  ;;  %8853 = vmatprep.subr.bf16.mxu0 %v15253_v17 }
0x10fa   : > { %8842 = vmatmul.mubr.msk.bf16.vlgmr.msra.gmra.mrb[136].mxu0 %vm15318_vm0, %v14475_v25 }
0x10fb   : > { %8848 = vmatpush3.bf16.msra.mxu1 %v12325_v0  ;;  %8854 = vmatpush3.bf16.msra.mxu0 %v12325_v0 }
0x10fc   : > { %8855 = vmatprep.subr.bf16.mxu0 %v15253_v17  ;;  %8861 = vmatprep.subr.bf16.mxu1 %v15253_v17 }
0x10fd   : > { %8857 = vmatprep.mubr.msk.bf16.mxu0 %vm15278_vm4, %v15253_v17 }
0x10fe   : > { %8850 = vmatmul.mubr.msk.bf16.vlgmr.msra.gmra.mrb[132].mxu1 %vm15319_vm11, %v14475_v25 }
0x10ff   : > { %8856 = vmatpush3.bf16.msra.mxu0 %v6399_v36  ;;  %8862 = vmatpush3.bf16.msra.mxu1 %v6399_v36 }
0x1100   : > { %8863 = vmatprep.subr.bf16.mxu1 %v15253_v17  ;;  %8869 = vmatprep.subr.bf16.mxu0 %v15253_v17 }
0x1101   : > { %8865 = vmatprep.mubr.msk.bf16.mxu1 %vm15278_vm4, %v15253_v17 }
0x1102   : > { %8858 = vmatmul.mubr.msk.bf16.vlgmr.msra.gmra.mrb[140].mxu0 %vm15320_vm14, %v14475_v25 }
0x1103   : > { %8864 = vmatpush3.bf16.msra.mxu1 %v12325_v0  ;;  %8870 = vmatpush3.bf16.msra.mxu0 %v12325_v0 }
0x1104   : > { %v6367_v59 = vpop.permute.xlu1 %6366  ;;  %8871 = vmatprep.subr.bf16.mxu0 %v15253_v17  ;;  %8877 = vmatprep.subr.bf16.mxu1 %v15253_v17 }
0x1105   : > { %v6400_v7 = vpack.c.bf16 %v6367_v59, %v14770_v32  ;;  %8873 = vmatprep.mubr.msk.bf16.mxu0 %vm15278_vm4, %v15253_v17 }
0x1106   : > { %8866 = vmatmul.mubr.msk.bf16.vlgmr.msra.gmra.mrb[136].mxu1 %vm15321_vm12, %v14475_v25 }
0x1107   : > { %8872 = vmatpush3.bf16.msra.mxu0 %v6400_v7  ;;  %8878 = vmatpush3.bf16.msra.mxu1 %v6400_v7 }
0x1108   : > { %8879 = vmatprep.subr.bf16.mxu1 %v15253_v17  ;;  %8885 = vmatprep.subr.bf16.mxu0 %v15253_v17 }
0x1109   : > { %8881 = vmatprep.mubr.msk.bf16.mxu1 %vm15278_vm4, %v15253_v17 }
0x110a   : > { %8874 = vmatmul.mubr.msk.bf16.vlgmr.msra.gmra.mrb[144].mxu0 %vm15322_vm13, %v14475_v25 }
0x110b   : > { %8880 = vmatpush3.bf16.msra.mxu1 %v12325_v0  ;;  %8886 = vmatpush3.bf16.msra.mxu0 %v12325_v0 }
0x110c   : > { %8887 = vmatprep.subr.bf16.mxu0 %v15253_v17  ;;  %8893 = vmatprep.subr.bf16.mxu1 %v15253_v17 }
0x110d   : > { %8889 = vmatprep.mubr.msk.bf16.mxu0 %vm15278_vm4, %v15253_v17 }
0x110e   : > { %8882 = vmatmul.mubr.msk.bf16.vlgmr.msra.gmra.mrb[140].mxu1 %vm15323_vm10, %v14475_v25 }
0x110f   : > { %8897 = vmatprep.mubr.msk.bf16.mxu1 %vm15278_vm4, %v15253_v17 }
0x1112   : > { %v6369_v32 = vpop.permute.xlu0 %6368 }
0x1113   : > { %v6401_v24 = vpack.c.bf16 %v6369_v32, %v14814_v56 }
0x1115   : > { %8888 = vmatpush3.bf16.msra.mxu0 %v6401_v24  ;;  %8894 = vmatpush3.bf16.msra.mxu1 %v6401_v24 }
0x1116   : > { %8895 = vmatprep.subr.bf16.mxu1 %v15253_v17  ;;  %8901 = vmatprep.subr.bf16.mxu0 %v15253_v17 }
0x1118   : > { %8890 = vmatmul.mubr.msk.bf16.vlgmr.msra.gmra.mrb[148].mxu0 %vm15324_vm1, %v14475_v25 }
0x1119   : > { %8896 = vmatpush3.bf16.msra.mxu1 %v12325_v0  ;;  %8902 = vmatpush3.bf16.msra.mxu0 %v12325_v0 }
0x111a   : > { %8903 = vmatprep.subr.bf16.mxu0 %v15253_v17  ;;  %8905 = vmatprep.mubr.msk.bf16.mxu0 %vm15278_vm4, %v15253_v17  ;;  %vm15326_vm4 = vmmov %vm15318_vm0 }
0x111c   : > { %8898 = vmatmul.mubr.msk.bf16.vlgmr.msra.gmra.mrb[144].mxu1 %vm15325_vm3, %v14475_v25 }
0x111d   : > { %v6562_v13 = vpop.f32.mrb[104].mxu0 }
0x111e   : > { %v8715_v62 = vpop.f32.mrb[105].mxu0 }
0x111f   : > { %v6565_v20 = vpop.f32.mrb[106].mxu0 }
0x1120   : > { %v8716_v52 = vpop.f32.mrb[107].mxu0 }
0x1121   : > { %v6602_v38 = vpop.f32.mrb[100].mxu1 }
0x1122   : > { %v8723_v57 = vpop.f32.mrb[101].mxu1 }
0x1123   : > { %v7531_v48 = vpop.permute.xlu0 %7530  ;;  %v6605_v55 = vpop.f32.mrb[102].mxu1 }
0x1124   : > { %v14957_v8 = vrot.slane %v7531_v48, %v7535_v10  ;;  %v8724_v0 = vpop.f32.mrb[103].mxu1 }
0x1125   : > { %v6642_v53 = vpop.f32.mrb[108].mxu0 }
0x1126   : > { %v7541_v28 = vadd.f32 %v14957_v8, %v6602_v38  ;;  %v6386_v17 = vpop.permute.xlu1 %6385  ;;  %v7542_v33 = vadd.f32 %v14957_v8, %v6642_v53  ;;  %v8731_v9 = vpop.f32.mrb[109].mxu0  ;;  %v7537_v63 = vadd.f32 %v14957_v8, %v14873_v14  ;;  %v7538_v56 = vadd.f32 %v14957_v8, %v14892_v40 }
0x1127   : > { %v6402_v41 = vpack.c.bf16 %v6386_v17, %v14854_v1  ;;  %v6645_v19 = vpop.f32.mrb[110].mxu0  ;;  %v7539_v46 = vadd.f32 %v14957_v8, %v14880_v50  ;;  %v7540_v27 = vadd.f32 %v14957_v8, %v6562_v13 }
0x1128   : > { %v7569_v16 = vsub.f32 0.0, %v7541_v28  ;;  %v7570_v21 = vsub.f32 0.0, %v7542_v33  ;;  %v8732_v11 = vpop.f32.mrb[111].mxu0  ;;  %v7565_v22 = vsub.f32 0.0, %v7537_v63  ;;  %v7566_v3 = vsub.f32 0.0, %v7538_v56 }
0x1129   : > { %v6682_v42 = vpop.f32.mrb[104].mxu1  ;;  %8904 = vmatpush3.bf16.msra.mxu0 %v6402_v41  ;;  %v7567_v39 = vsub.f32 0.0, %v7539_v46  ;;  %v7568_v6 = vsub.f32 0.0, %v7540_v27 }
0x112a   : > { %v7601_v5 = vmul.f32 1.442695, %v7569_v16  ;;  %v7603_v2 = vmul.f32 1.442695, %v7570_v21  ;;  %v7543_v60 = vadd.f32 %v14957_v8, %v6682_v42  ;;  %v8739_v47 = vpop.f32.mrb[105].mxu1 }
0x112b   : > { %v6685_v26 = vpop.f32.mrb[106].mxu1  ;;  %v7593_v54 = vmul.f32 1.442695, %v7565_v22  ;;  %v7595_v1 = vmul.f32 1.442695, %v7566_v3 }
0x112c   : > { %10296 = vpow2.f32 %v7601_v5  ;;  %v7571_v31 = vsub.f32 0.0, %v7543_v60  ;;  %8906 = vmatmul.mubr.msk.bf16.vlgmr.msra.gmra.mrb[152].mxu0 %vm15326_vm4, %v14475_v25  ;;  %v8740_v34 = vpop.f32.mrb[107].mxu1  ;;  %v7597_v61 = vmul.f32 1.442695, %v7567_v39  ;;  %v7599_v58 = vmul.f32 1.442695, %v7568_v6 }
0x112d   : > { %10298 = vpow2.f32 %v7603_v2 }
0x112e   : > { %v7605_v14 = vmul.f32 1.442695, %v7571_v31  ;;  %10300 = vpow2.f32 %v7593_v54 }
0x112f   : > { %10302 = vpow2.f32 %v7595_v1 }
0x1130   : > { %10304 = vpow2.f32 %v7605_v14 }
0x1131   : > { %10306 = vpow2.f32 %v7597_v61 }
0x1132   : > { %10308 = vpow2.f32 %v7599_v58 }
0x1136   : > { %v10297_v29 = vpop.eup %10296 }
0x1137   : > { %v10299_v44 = vpop.eup %10298  ;;  %v7653_v18 = vadd.f32 1.0, %v10297_v29 }
0x1138   : > { %v10301_v50 = vpop.eup %10300  ;;  %v7654_v23 = vadd.f32 1.0, %v10299_v44 }
0x1139   : > { %v10303_v43 = vpop.eup %10302  ;;  %10310 = vrcp.f32 %v7653_v18  ;;  %v7649_v25 = vadd.f32 1.0, %v10301_v50 }
0x113a   : > { %v10305_v15 = vpop.eup %10304  ;;  %10312 = vrcp.f32 %v7654_v23  ;;  %v7650_v40 = vadd.f32 1.0, %v10303_v43 }
0x113b   : > { %v10307_v4 = vpop.eup %10306  ;;  %v7655_v35 = vadd.f32 1.0, %v10305_v15  ;;  %10314 = vrcp.f32 %v7649_v25 }
0x113c   : > { %v10309_v37 = vpop.eup %10308  ;;  %v7651_v12 = vadd.f32 1.0, %v10307_v4  ;;  %10316 = vrcp.f32 %v7650_v40 }
0x113d   : > { %10318 = vrcp.f32 %v7655_v35  ;;  %v7652_v30 = vadd.f32 1.0, %v10309_v37 }
0x113e   : > { %10320 = vrcp.f32 %v7651_v12 }
0x113f   : > { %10322 = vrcp.f32 %v7652_v30 }
0x1143   : > { %v10311_v49 = vpop.eup %10310 }
0x1144   : > { %v10313_v36 = vpop.eup %10312  ;;  %7738 = vst.msk [vmem:[%s14975_s4 + $0x4] sm:$0x1] %vm7733_vm6, %v10311_v49 }
0x1145   : > { %v10315_v59 = vpop.eup %10314  ;;  %7739 = vst.msk [vmem:[%s14975_s4 + $0x5] sm:$0x1] %vm7733_vm6, %v10313_v36 }
0x1146   : > { %v10317_v7 = vpop.eup %10316  ;;  %7734 = vst.msk [vmem:[%s14975_s4] sm:$0x1] %vm7733_vm6, %v10315_v59 }
0x1147   : > { %v10319_v32 = vpop.eup %10318  ;;  %7735 = vst.msk [vmem:[%s14975_s4 + $0x1] sm:$0x1] %vm7733_vm6, %v10317_v7 }
0x1148   : > { %v10321_v24 = vpop.eup %10320  ;;  %7740 = vst.msk [vmem:[%s14975_s4 + $0x6] sm:$0x1] %vm7733_vm6, %v10319_v32 }
0x1149   : > { %v10323_v45 = vpop.eup %10322  ;;  %7736 = vst.msk [vmem:[%s14975_s4 + $0x2] sm:$0x1] %vm7733_vm6, %v10321_v24 }
0x114a   : > { %7737 = vst.msk [vmem:[%s14975_s4 + $0x3] sm:$0x1] %vm7733_vm6, %v10323_v45 }
0x1165   : > { %v6722_v51 = vpop.f32.mrb[112].mxu0 }
0x1166   : > { %v7544_v13 = vadd.f32 %v14957_v8, %v6722_v51  ;;  %v8747_v62 = vpop.f32.mrb[113].mxu0 }
0x1167   : > { %v6725_v20 = vpop.f32.mrb[114].mxu0 }
0x1168   : > { %v7572_v10 = vsub.f32 0.0, %v7544_v13  ;;  %v8748_v52 = vpop.f32.mrb[115].mxu0 }
0x1169   : > { %v6762_v38 = vpop.f32.mrb[108].mxu1 }
0x116a   : > { %v7607_v57 = vmul.f32 1.442695, %v7572_v10  ;;  %v7545_v48 = vadd.f32 %v14957_v8, %v6762_v38  ;;  %v8755_v55 = vpop.f32.mrb[109].mxu1 }
0x116b   : > { %v6765_v0 = vpop.f32.mrb[110].mxu1 }
0x116c   : > { %10324 = vpow2.f32 %v7607_v57  ;;  %v7573_v53 = vsub.f32 0.0, %v7545_v48  ;;  %v8756_v28 = vpop.f32.mrb[111].mxu1 }
0x116d   : > { %v6802_v17 = vpop.f32.mrb[116].mxu0 }
0x116e   : > { %v7609_v33 = vmul.f32 1.442695, %v7573_v53  ;;  %v7546_v9 = vadd.f32 %v14957_v8, %v6802_v17  ;;  %v8763_v63 = vpop.f32.mrb[117].mxu0 }
0x116f   : > { %v6805_v56 = vpop.f32.mrb[118].mxu0 }
0x1170   : > { %10326 = vpow2.f32 %v7609_v33  ;;  %v7574_v41 = vsub.f32 0.0, %v7546_v9  ;;  %v8764_v19 = vpop.f32.mrb[119].mxu0 }
0x1171   : > { %v6842_v46 = vpop.f32.mrb[112].mxu1 }
0x1172   : > { %v7611_v27 = vmul.f32 1.442695, %v7574_v41  ;;  %v7547_v16 = vadd.f32 %v14957_v8, %v6842_v46  ;;  %v8771_v21 = vpop.f32.mrb[113].mxu1 }
0x1173   : > { %v6845_v11 = vpop.f32.mrb[114].mxu1 }
0x1174   : > { %10328 = vpow2.f32 %v7611_v27  ;;  %v7575_v22 = vsub.f32 0.0, %v7547_v16  ;;  %v8772_v3 = vpop.f32.mrb[115].mxu1 }
0x1176   : > { %v10325_v42 = vpop.eup %10324  ;;  %v7613_v39 = vmul.f32 1.442695, %v7575_v22 }
0x1177   : > { %v7656_v5 = vadd.f32 1.0, %v10325_v42 }
0x1178   : > { %10330 = vpow2.f32 %v7613_v39 }
0x1179   : > { %10332 = vrcp.f32 %v7656_v5 }
0x117a   : > { %v10327_v2 = vpop.eup %10326 }
0x117b   : > { %v7657_v60 = vadd.f32 1.0, %v10327_v2  ;;  %v6882_v47 = vpop.f32.mrb[120].mxu0 }
0x117c   : > { %v7548_v6 = vadd.f32 %v14957_v8, %v6882_v47  ;;  %v8779_v26 = vpop.f32.mrb[121].mxu0 }
0x117d   : > { %10334 = vrcp.f32 %v7657_v60  ;;  %v6885_v54 = vpop.f32.mrb[122].mxu0 }
0x117e   : > { %v10329_v1 = vpop.eup %10328  ;;  %v7576_v31 = vsub.f32 0.0, %v7548_v6  ;;  %v8780_v34 = vpop.f32.mrb[123].mxu0 }
0x117f   : > { %v7658_v61 = vadd.f32 1.0, %v10329_v1  ;;  %v6922_v14 = vpop.f32.mrb[116].mxu1 }
0x1180   : > { %v7615_v58 = vmul.f32 1.442695, %v7576_v31  ;;  %v7549_v29 = vadd.f32 %v14957_v8, %v6922_v14  ;;  %v8787_v44 = vpop.f32.mrb[117].mxu1 }
0x1181   : > { %10336 = vrcp.f32 %v7658_v61  ;;  %v6925_v18 = vpop.f32.mrb[118].mxu1 }
0x1182   : > { %v10331_v50 = vpop.eup %10330  ;;  %10338 = vpow2.f32 %v7615_v58  ;;  %v7577_v23 = vsub.f32 0.0, %v7549_v29  ;;  %v8788_v43 = vpop.f32.mrb[119].mxu1 }
0x1183   : > { %v10333_v25 = vpop.eup %10332  ;;  %v7659_v15 = vadd.f32 1.0, %v10331_v50  ;;  %v6962_v40 = vpop.f32.mrb[124].mxu0 }
0x1184   : > { %7741 = vst.msk [vmem:[%s14975_s4 + $0x7] sm:$0x1] %vm7733_vm6, %v10333_v25  ;;  %v7617_v4 = vmul.f32 1.442695, %v7577_v23  ;;  %v7550_v35 = vadd.f32 %v14957_v8, %v6962_v40  ;;  %v8795_v37 = vpop.f32.mrb[125].mxu0 }
0x1185   : > { %10340 = vrcp.f32 %v7659_v15  ;;  %v6965_v12 = vpop.f32.mrb[126].mxu0 }
0x1186   : > { %10342 = vpow2.f32 %v7617_v4  ;;  %v7578_v30 = vsub.f32 0.0, %v7550_v35  ;;  %v8796_v49 = vpop.f32.mrb[127].mxu0 }
0x1187   : > { %v10335_v36 = vpop.eup %10334  ;;  %v7002_v59 = vpop.f32.mrb[120].mxu1 }
0x1188   : > { %7742 = vst.msk [vmem:[%s14975_s4 + $0x8] sm:$0x1] %vm7733_vm6, %v10335_v36  ;;  %v7619_v7 = vmul.f32 1.442695, %v7578_v30  ;;  %v7551_v32 = vadd.f32 %v14957_v8, %v7002_v59  ;;  %v8803_v24 = vpop.f32.mrb[121].mxu1 }
0x1189   : > { %v7005_v45 = vpop.f32.mrb[122].mxu1 }
0x118a   : > { %10344 = vpow2.f32 %v7619_v7  ;;  %v7579_v51 = vsub.f32 0.0, %v7551_v32  ;;  %v8804_v13 = vpop.f32.mrb[123].mxu1 }
0x118b   : > { %v10337_v62 = vpop.eup %10336 }
0x118c   : > { %v10339_v20 = vpop.eup %10338  ;;  %7743 = vst.msk [vmem:[%s14975_s4 + $0x9] sm:$0x1] %vm7733_vm6, %v10337_v62  ;;  %v7621_v10 = vmul.f32 1.442695, %v7579_v51 }
0x118d   : > { %v7660_v52 = vadd.f32 1.0, %v10339_v20 }
0x118e   : > { %10346 = vpow2.f32 %v7621_v10 }
0x118f   : > { %v10341_v38 = vpop.eup %10340  ;;  %10348 = vrcp.f32 %v7660_v52  ;;  %v7042_v57 = vpop.f32.mrb[128].mxu0 }
0x1190   : > { %v10343_v48 = vpop.eup %10342  ;;  %7744 = vst.msk [vmem:[%s14975_s4 + $0xa] sm:$0x1] %vm7733_vm6, %v10341_v38  ;;  %v7552_v55 = vadd.f32 %v14957_v8, %v7042_v57  ;;  %v8811_v0 = vpop.f32.mrb[129].mxu0 }
0x1191   : > { %v7661_v53 = vadd.f32 1.0, %v10343_v48  ;;  %v7045_v28 = vpop.f32.mrb[130].mxu0 }
0x1192   : > { %v7580_v17 = vsub.f32 0.0, %v7552_v55  ;;  %v8812_v33 = vpop.f32.mrb[131].mxu0 }
0x1193   : > { %10350 = vrcp.f32 %v7661_v53  ;;  %v7082_v9 = vpop.f32.mrb[124].mxu1 }
0x1194   : > { %v10345_v63 = vpop.eup %10344  ;;  %v7623_v56 = vmul.f32 1.442695, %v7580_v17  ;;  %v7553_v41 = vadd.f32 %v14957_v8, %v7082_v9  ;;  %v8819_v19 = vpop.f32.mrb[125].mxu1 }
0x1195   : > { %v7662_v46 = vadd.f32 1.0, %v10345_v63  ;;  %v7085_v27 = vpop.f32.mrb[126].mxu1 }
0x1196   : > { %10352 = vpow2.f32 %v7623_v56  ;;  %v7581_v16 = vsub.f32 0.0, %v7553_v41  ;;  %v8820_v21 = vpop.f32.mrb[127].mxu1 }
0x1197   : > { %10354 = vrcp.f32 %v7662_v46  ;;  %v7122_v11 = vpop.f32.mrb[132].mxu0 }
0x1198   : > { %v10347_v22 = vpop.eup %10346  ;;  %v7625_v3 = vmul.f32 1.442695, %v7581_v16  ;;  %v7554_v42 = vadd.f32 %v14957_v8, %v7122_v11  ;;  %v8827_v39 = vpop.f32.mrb[133].mxu0 }
0x1199   : > { %v10349_v5 = vpop.eup %10348  ;;  %v7663_v2 = vadd.f32 1.0, %v10347_v22  ;;  %v7125_v60 = vpop.f32.mrb[134].mxu0 }
0x119a   : > { %7745 = vst.msk [vmem:[%s14975_s4 + $0xb] sm:$0x1] %vm7733_vm6, %v10349_v5  ;;  %10356 = vpow2.f32 %v7625_v3  ;;  %v7582_v47 = vsub.f32 0.0, %v7554_v42  ;;  %v8828_v6 = vpop.f32.mrb[135].mxu0 }
0x119b   : > { %10358 = vrcp.f32 %v7663_v2  ;;  %v7162_v26 = vpop.f32.mrb[128].mxu1 }
0x119c   : > { %v7627_v54 = vmul.f32 1.442695, %v7582_v47  ;;  %v7555_v1 = vadd.f32 %v14957_v8, %v7162_v26  ;;  %v8835_v31 = vpop.f32.mrb[129].mxu1 }
0x119d   : > { %v10351_v34 = vpop.eup %10350  ;;  %v7165_v61 = vpop.f32.mrb[130].mxu1 }
0x119e   : > { %7746 = vst.msk [vmem:[%s14975_s4 + $0xc] sm:$0x1] %vm7733_vm6, %v10351_v34  ;;  %10360 = vpow2.f32 %v7627_v54  ;;  %v7583_v14 = vsub.f32 0.0, %v7555_v1  ;;  %v8836_v58 = vpop.f32.mrb[131].mxu1 }
0x11a0   : > { %v10353_v29 = vpop.eup %10352  ;;  %v7629_v44 = vmul.f32 1.442695, %v7583_v14 }
0x11a1   : > { %v10355_v18 = vpop.eup %10354  ;;  %v7664_v50 = vadd.f32 1.0, %v10353_v29 }
0x11a2   : > { %7747 = vst.msk [vmem:[%s14975_s4 + $0xd] sm:$0x1] %vm7733_vm6, %v10355_v18  ;;  %10362 = vpow2.f32 %v7629_v44 }
0x11a3   : > { %10364 = vrcp.f32 %v7664_v50 }
0x11a4   : > { %v10357_v23 = vpop.eup %10356 }
0x11a5   : > { %v10359_v43 = vpop.eup %10358  ;;  %v7665_v25 = vadd.f32 1.0, %v10357_v23 }
0x11a6   : > { %7748 = vst.msk [vmem:[%s14975_s4 + $0xe] sm:$0x1] %vm7733_vm6, %v10359_v43 }
0x11a7   : > { %10366 = vrcp.f32 %v7665_v25 }
0x11a8   : > { %v10361_v15 = vpop.eup %10360 }
0x11a9   : > { %v7666_v40 = vadd.f32 1.0, %v10361_v15 }
0x11ab   : > { %10368 = vrcp.f32 %v7666_v40 }
0x11ac   : > { %v10363_v4 = vpop.eup %10362 }
0x11ad   : > { %v10365_v35 = vpop.eup %10364  ;;  %v7667_v37 = vadd.f32 1.0, %v10363_v4 }
0x11ae   : > { %7749 = vst.msk [vmem:[%s14975_s4 + $0xf] sm:$0x1] %vm7733_vm6, %v10365_v35 }
0x11af   : > { %10370 = vrcp.f32 %v7667_v37 }
0x11b1   : > { %v10367_v12 = vpop.eup %10366 }
0x11b2   : > { %7750 = vst.msk [vmem:[%s14975_s4 + $0x10] sm:$0x1] %vm7733_vm6, %v10367_v12 }
0x11b5   : > { %v10369_v30 = vpop.eup %10368 }
0x11b6   : > { %7751 = vst.msk [vmem:[%s14975_s4 + $0x11] sm:$0x1] %vm7733_vm6, %v10369_v30 }
0x11b9   : > { %v10371_v49 = vpop.eup %10370 }
0x11ba   : > { %7752 = vst.msk [vmem:[%s14975_s4 + $0x12] sm:$0x1] %vm7733_vm6, %v10371_v49 }
0x11cd   : > { %v7202_v36 = vpop.f32.mrb[136].mxu0 }
0x11ce   : > { %v7556_v59 = vadd.f32 %v14957_v8, %v7202_v36  ;;  %v8843_v7 = vpop.f32.mrb[137].mxu0 }
0x11cf   : > { %v7205_v32 = vpop.f32.mrb[138].mxu0 }
0x11d0   : > { %v7584_v24 = vsub.f32 0.0, %v7556_v59  ;;  %v8844_v45 = vpop.f32.mrb[139].mxu0 }
0x11d1   : > { %v7242_v51 = vpop.f32.mrb[132].mxu1 }
0x11d2   : > { %v7631_v13 = vmul.f32 1.442695, %v7584_v24  ;;  %v7557_v62 = vadd.f32 %v14957_v8, %v7242_v51  ;;  %v8851_v20 = vpop.f32.mrb[133].mxu1 }
0x11d3   : > { %v7245_v10 = vpop.f32.mrb[134].mxu1 }
0x11d4   : > { %10372 = vpow2.f32 %v7631_v13  ;;  %v7585_v52 = vsub.f32 0.0, %v7557_v62  ;;  %v8852_v38 = vpop.f32.mrb[135].mxu1 }
0x11d5   : > { %v7282_v57 = vpop.f32.mrb[140].mxu0 }
0x11d6   : > { %v7633_v48 = vmul.f32 1.442695, %v7585_v52  ;;  %v7558_v55 = vadd.f32 %v14957_v8, %v7282_v57  ;;  %v8859_v0 = vpop.f32.mrb[141].mxu0 }
0x11d7   : > { %v7285_v53 = vpop.f32.mrb[142].mxu0 }
0x11d8   : > { %10374 = vpow2.f32 %v7633_v48  ;;  %v7586_v28 = vsub.f32 0.0, %v7558_v55  ;;  %v8860_v17 = vpop.f32.mrb[143].mxu0 }
0x11d9   : > { %v7322_v33 = vpop.f32.mrb[136].mxu1 }
0x11da   : > { %v7635_v9 = vmul.f32 1.442695, %v7586_v28  ;;  %v7559_v63 = vadd.f32 %v14957_v8, %v7322_v33  ;;  %v8867_v56 = vpop.f32.mrb[137].mxu1 }
0x11db   : > { %v7325_v41 = vpop.f32.mrb[138].mxu1 }
0x11dc   : > { %10376 = vpow2.f32 %v7635_v9  ;;  %v7587_v19 = vsub.f32 0.0, %v7559_v63  ;;  %v8868_v46 = vpop.f32.mrb[139].mxu1 }
0x11dd   : > { %v7362_v27 = vpop.f32.mrb[144].mxu0 }
0x11de   : > { %v10373_v16 = vpop.eup %10372  ;;  %v7637_v21 = vmul.f32 1.442695, %v7587_v19  ;;  %v7560_v11 = vadd.f32 %v14957_v8, %v7362_v27  ;;  %v8875_v22 = vpop.f32.mrb[145].mxu0 }
0x11df   : > { %v7668_v3 = vadd.f32 1.0, %v10373_v16  ;;  %v7365_v42 = vpop.f32.mrb[146].mxu0 }
0x11e0   : > { %10378 = vpow2.f32 %v7637_v21  ;;  %v7588_v39 = vsub.f32 0.0, %v7560_v11  ;;  %v8876_v5 = vpop.f32.mrb[147].mxu0 }
0x11e1   : > { %10380 = vrcp.f32 %v7668_v3  ;;  %v7402_v2 = vpop.f32.mrb[140].mxu1 }
0x11e2   : > { %v10375_v60 = vpop.eup %10374  ;;  %v7639_v47 = vmul.f32 1.442695, %v7588_v39  ;;  %v7561_v6 = vadd.f32 %v14957_v8, %v7402_v2  ;;  %v8883_v26 = vpop.f32.mrb[141].mxu1 }
0x11e3   : > { %v7669_v54 = vadd.f32 1.0, %v10375_v60  ;;  %v7405_v1 = vpop.f32.mrb[142].mxu1 }
0x11e4   : > { %10382 = vpow2.f32 %v7639_v47  ;;  %v7589_v31 = vsub.f32 0.0, %v7561_v6  ;;  %v8884_v34 = vpop.f32.mrb[143].mxu1 }
0x11e5   : > { %10384 = vrcp.f32 %v7669_v54 }
0x11e6   : > { %v10377_v61 = vpop.eup %10376  ;;  %v7641_v14 = vmul.f32 1.442695, %v7589_v31 }
0x11e7   : > { %v7670_v58 = vadd.f32 1.0, %v10377_v61 }
0x11e8   : > { %10386 = vpow2.f32 %v7641_v14 }
0x11e9   : > { %10388 = vrcp.f32 %v7670_v58 }
0x11ea   : > { %v10379_v29 = vpop.eup %10378 }
0x11eb   : > { %v10381_v44 = vpop.eup %10380  ;;  %v7671_v18 = vadd.f32 1.0, %v10379_v29  ;;  %v7442_v50 = vpop.f32.mrb[148].mxu0 }
0x11ec   : > { %7753 = vst.msk [vmem:[%s14975_s4 + $0x13] sm:$0x1] %vm7733_vm6, %v10381_v44  ;;  %v7562_v23 = vadd.f32 %v14957_v8, %v7442_v50  ;;  %v8891_v43 = vpop.f32.mrb[149].mxu0 }
0x11ed   : > { %10390 = vrcp.f32 %v7671_v18  ;;  %v7445_v25 = vpop.f32.mrb[150].mxu0 }
0x11ee   : > { %v10383_v15 = vpop.eup %10382  ;;  %v7590_v40 = vsub.f32 0.0, %v7562_v23  ;;  %v8892_v4 = vpop.f32.mrb[151].mxu0 }
0x11ef   : > { %v10385_v35 = vpop.eup %10384  ;;  %v7672_v37 = vadd.f32 1.0, %v10383_v15  ;;  %v7482_v12 = vpop.f32.mrb[144].mxu1 }
0x11f0   : > { %7754 = vst.msk [vmem:[%s14975_s4 + $0x14] sm:$0x1] %vm7733_vm6, %v10385_v35  ;;  %v7643_v30 = vmul.f32 1.442695, %v7590_v40  ;;  %v7563_v49 = vadd.f32 %v14957_v8, %v7482_v12  ;;  %v8899_v36 = vpop.f32.mrb[145].mxu1 }
0x11f1   : > { %10392 = vrcp.f32 %v7672_v37  ;;  %v7485_v59 = vpop.f32.mrb[146].mxu1 }
0x11f2   : > { %v10387_v7 = vpop.eup %10386  ;;  %10394 = vpow2.f32 %v7643_v30  ;;  %v7591_v32 = vsub.f32 0.0, %v7563_v49  ;;  %v8900_v24 = vpop.f32.mrb[147].mxu1 }
0x11f3   : > { %v10389_v45 = vpop.eup %10388  ;;  %v7673_v51 = vadd.f32 1.0, %v10387_v7 }
0x11f4   : > { %7755 = vst.msk [vmem:[%s14975_s4 + $0x15] sm:$0x1] %vm7733_vm6, %v10389_v45  ;;  %v7645_v13 = vmul.f32 1.442695, %v7591_v32 }
0x11f5   : > { %10396 = vrcp.f32 %v7673_v51 }
0x11f6   : > { %10398 = vpow2.f32 %v7645_v13 }
0x11f7   : > { %v10391_v62 = vpop.eup %10390 }
0x11f8   : > { %7756 = vst.msk [vmem:[%s14975_s4 + $0x16] sm:$0x1] %vm7733_vm6, %v10391_v62 }
0x11fb   : > { %v10393_v20 = vpop.eup %10392 }
0x11fc   : > { %v10395_v10 = vpop.eup %10394  ;;  %7757 = vst.msk [vmem:[%s14975_s4 + $0x17] sm:$0x1] %vm7733_vm6, %v10393_v20 }
0x11fd   : > { %v7674_v52 = vadd.f32 1.0, %v10395_v10 }
0x11ff   : > { %v10397_v38 = vpop.eup %10396  ;;  %10400 = vrcp.f32 %v7674_v52  ;;  %v7522_v57 = vpop.f32.mrb[152].mxu0 }
0x1200   : > { %v10399_v48 = vpop.eup %10398  ;;  %7758 = vst.msk [vmem:[%s14975_s4 + $0x18] sm:$0x1] %vm7733_vm6, %v10397_v38  ;;  %v7564_v55 = vadd.f32 %v14957_v8, %v7522_v57  ;;  %v8907_v0 = vpop.f32.mrb[153].mxu0 }
0x1201   : > { %v7675_v53 = vadd.f32 1.0, %v10399_v48  ;;  %v7525_v28 = vpop.f32.mrb[154].mxu0 }
0x1202   : > { %v7592_v17 = vsub.f32 0.0, %v7564_v55  ;;  %v8908_v33 = vpop.f32.mrb[155].mxu0 }
0x1203   : > { %10402 = vrcp.f32 %v7675_v53 }
0x1204   : > { %v7647_v9 = vmul.f32 1.442695, %v7592_v17 }
0x1206   : > { %10404 = vpow2.f32 %v7647_v9 }
0x1209   : > { %v10401_v63 = vpop.eup %10400 }
0x120a   : > { %7759 = vst.msk [vmem:[%s14975_s4 + $0x19] sm:$0x1] %vm7733_vm6, %v10401_v63 }
0x120d   : > { %v10403_v56 = vpop.eup %10402 }
0x120e   : > { %7760 = vst.msk [vmem:[%s14975_s4 + $0x1a] sm:$0x1] %vm7733_vm6, %v10403_v56 }
0x1210   : > { %v10405_v8 = vpop.eup %10404 }
0x1211   : > { %v7676_v41 = vadd.f32 1.0, %v10405_v8 }
0x1213   : > { %10406 = vrcp.f32 %v7676_v41 }
0x121d   : > { %v10407_v19 = vpop.eup %10406 }
0x121e   : > { %7761 = vst.msk [vmem:[%s14975_s4 + $0x1b] sm:$0x1] %vm7733_vm6, %v10407_v19 }
0x121f   : > { %10421 = shalt.err (!%p10418_p3)
}
0x1220   : > { %s10422_s1 = scalar_lea.hbm %s15057_s12, 448  ;;  %s10426_s2 = scalar_lea.hbm %s15120_s11, 896 }
0x1221   : > { %p10423_p4 = scmp.ne.s32.totalorder %s15057_s12, %s10422_s1  ;;  %p10427_p9 = scmp.lt.u32.totalorder %s15057_s12, %s15120_s11 }
0x1222   : > { %p10428_p10 = scmp.lt.u32.totalorder %s10426_s2, %s10422_s1  ;;  %p10430_p12 = scmp.lt.u32.totalorder %s10422_s1, %s15057_s12 }
0x1223   : > { %p10424_p7 = pnand %p10423_p4, %p10602_p5 }
0x1224   : > { %p10429_p11 = por %p10428_p10, %p10427_p9 }
0x1225   : > { %p10425_p8 = pneg %p10424_p7 }
0x1226   : > { %p10431_p13 = por %p10430_p12, %p10429_p11 }
0x1228   : > { %p10432_p0 = pnand %p10431_p13, %p10425_p8 }
0x122a   : > { %10435 = shalt.err (!%p10432_p0)
}
0x122b   : > { %8912 = dma.vmem_to_hbm [thread:$0]  (%p10602_p5), %s15059_s17, 448, %s15057_s12, %s15065_s23, %s15276_s3, %s15276_s3, %s15249_s25  }
0x122c PF: > { %p8918_p1 = scmp.ge.s32.totalorder %s10470_s22, 2  ;;  %s7791_s14 = sand.u32 1, %s10458_s19  }
0x122d   : > { %s7792_s18 = scalar_lea.sflag [#allocation4], %s7791_s14 }
0x122e   : > { %p8915_p2 = pnand %p8918_p1, %p10606_p6 }
0x1230   : > { %10453 = dma.done.wait (!%p8915_p2), %s7792_s18, 448  }
0x1231   : > { %10455 = vsyncadd (!%p8915_p2), %s7792_s18, 4294966848  ;;  %p23_p3 = scmp.ge.s32.totalorder %s10589_s24, 4   ;;  %s15327_s19 = smov %s10462_s20 }
0x1232   : > { %s15328_s20 = smov %s10466_s21  ;;  %s15329_s21 = smov %s10600_s27 }
0x1233   : > { %s15330_s22 = smov %s10589_s24  ;;  %25 = sbr.rel (!%p23_p3) target bundleno = 9 (0x9), region = 99 }
0x123a   :  { %7797 = vsyncpa [#allocation4], 1 }
0x123b   :  { %7799 = vsyncpa [#allocation4 + $0x1], 1 }

</bundles_post_ra>
